<compile_context>
chip_gen: v7x
topology: tpu7x:2x2x1
jax: 0.10.0
libtpu: 0.0.40
codegen_flags: <defaults>
</compile_context>

<pallas_src>
import jax
import jax.numpy as jnp
from jax.experimental import pallas as pl
from jax.experimental.pallas import tpu as pltpu

EPS = 1e-5


def _fused_bn_add_relu_conv_bn_kernel(
    x217_ref,   # (tc_in, R)    input to first BN (channels-first rows)
    x210_ref,   # (tc_in, R)    residual add
    g1_ref,     # (tc_in, 1)    BN1 gamma
    b1_ref,     # (tc_in, 1)    BN1 beta
    w_ref,      # (C_out, tc_in) 1x1 conv weight tile (no transpose)
    g2_ref,     # (C_out, 1)    BN2 gamma
    b2_ref,     # (C_out, 1)    BN2 beta
    o_ref,      # (C_out, R)    output tile, resident across the Cin axis;
                #               doubles as the f32 conv accumulator
):
    k = pl.program_id(0)
    nk = pl.num_programs(0)

    @pl.when(k == 0)
    def _init():
        o_ref[...] = jnp.zeros_like(o_ref)

    x = x217_ref[...]                                   # (tc_in, R)
    # NOTE: assumes the R axis is never tiled (full rows per channel);
    # both BN1 here and BN2 in the finalize rely on this.
    inv_r = 1.0 / x.shape[-1]

    # BatchNorm2d(1024), training mode: per-channel (row) batch mean / biased
    # variance over the lane axis.  Each row holds a full channel, so tiling
    # Cin never splits a statistic.
    mean1 = jnp.sum(x, axis=-1, keepdims=True) * inv_r
    xc = x - mean1
    var1 = jnp.sum(xc * xc, axis=-1, keepdims=True) * inv_r
    scale1 = jax.lax.rsqrt(var1 + EPS) * g1_ref[...]
    x218 = xc * scale1 + b1_ref[...]

    # add + relu
    x220 = jnp.maximum(x218 + x210_ref[...], 0.0)

    # 1x1 conv (no bias) == (Cout, Cin) @ (Cin, R) on the MXU, accumulated
    # over Cin tiles directly into the resident output block.
    o_ref[...] += jnp.dot(w_ref[...], x220, preferred_element_type=jnp.float32)

    @pl.when(k == nk - 1)
    def _finalize():
        # BatchNorm2d(256), training mode, per output channel (row).
        y = o_ref[...]                                  # (C_out, R)
        mean2 = jnp.sum(y, axis=-1, keepdims=True) * inv_r
        yc = y - mean2
        var2 = jnp.sum(yc * yc, axis=-1, keepdims=True) * inv_r
        o_ref[...] = yc * (jax.lax.rsqrt(var2 + EPS) * g2_ref[...]) + b2_ref[...]


def fused_forward(x217, x210, gamma1, beta1, conv_w, gamma2, beta2, *, tc_in=512):
    """x217, x210: NCHW float32. conv_w: (Cout, Cin) from the (Cout, Cin, 1, 1) kernel."""
    N, C_in, H, W = x217.shape
    C_out = conv_w.shape[0]
    R = N * H * W

    assert C_in % tc_in == 0, (C_in, tc_in)
    assert C_out % 8 == 0, C_out

    def to_rows(x):
        if N == 1:
            # Free (contiguous) reshape: no HBM transpose emitted.
            return x.reshape(C_in, R)
        # General-N fallback needs a real channels-first gather.
        return jnp.transpose(x, (1, 0, 2, 3)).reshape(C_in, R)

    x217_rows = to_rows(x217)
    x210_rows = to_rows(x210)

    grid = (C_in // tc_in,)   # single Cout tile -> 1-D grid over the Cin contraction

    out_rows = pl.pallas_call(
        _fused_bn_add_relu_conv_bn_kernel,
        out_shape=jax.ShapeDtypeStruct((C_out, R), jnp.float32),
        grid_spec=pltpu.PrefetchScalarGridSpec(
            num_scalar_prefetch=0,
            grid=grid,
            in_specs=[
                pl.BlockSpec((tc_in, R), lambda k: (k, 0)),       # x217
                pl.BlockSpec((tc_in, R), lambda k: (k, 0)),       # x210
                pl.BlockSpec((tc_in, 1), lambda k: (k, 0)),       # gamma1
                pl.BlockSpec((tc_in, 1), lambda k: (k, 0)),       # beta1
                pl.BlockSpec((C_out, tc_in), lambda k: (0, k)),   # conv_w
                pl.BlockSpec((C_out, 1), lambda k: (0, 0)),       # gamma2
                pl.BlockSpec((C_out, 1), lambda k: (0, 0)),       # beta2
            ],
            out_specs=pl.BlockSpec((C_out, R), lambda k: (0, 0)),
        ),
        compiler_params=pltpu.CompilerParams(
            dimension_semantics=("arbitrary",),   # Cin is a contraction axis
        ),
    )(
        x217_rows,
        x210_rows,
        gamma1.reshape(C_in, 1),
        beta1.reshape(C_in, 1),
        conv_w,                                  # (Cout, Cin), no transpose
        gamma2.reshape(C_out, 1),
        beta2.reshape(C_out, 1),
    )

    if N == 1:
        return out_rows.reshape(1, C_out, H, W)  # free reshape back to NCHW
    return jnp.transpose(out_rows.reshape(C_out, N, H, W), (1, 0, 2, 3))


def reference_forward(x217, x210, gamma1, beta1, conv_w, gamma2, beta2):
    m1 = x217.mean(axis=(0, 2, 3), keepdims=True)
    v1 = x217.var(axis=(0, 2, 3), keepdims=True)
    x218 = (x217 - m1) / jnp.sqrt(v1 + EPS) * gamma1.reshape(1, -1, 1, 1) + beta1.reshape(1, -1, 1, 1)
    x220 = jnp.maximum(x218 + x210, 0.0)
    x221 = jnp.einsum("nchw,oc->nohw", x220, conv_w)
    m2 = x221.mean(axis=(0, 2, 3), keepdims=True)
    v2 = x221.var(axis=(0, 2, 3), keepdims=True)
    return (x221 - m2) / jnp.sqrt(v2 + EPS) * gamma2.reshape(1, -1, 1, 1) + beta2.reshape(1, -1, 1, 1)


if __name__ == "__main__":
    key = jax.random.PRNGKey(0)
    k_x217, k_x210, k_g1, k_b1, k_w, k_g2, k_b2 = jax.random.split(key, 7)

    N, C_IN, H, W = 1, 1024, 14, 14
    C_OUT = 256

    x217 = jax.random.normal(k_x217, (N, C_IN, H, W), dtype=jnp.float32)
    x210 = jax.random.normal(k_x210, (N, C_IN, H, W), dtype=jnp.float32)

    # Deterministic synthetic parameters (module __init__ shapes).
    gamma1 = 1.0 + 0.1 * jax.random.normal(k_g1, (C_IN,), dtype=jnp.float32)
    beta1 = 0.1 * jax.random.normal(k_b1, (C_IN,), dtype=jnp.float32)
    conv_w = 0.05 * jax.random.normal(k_w, (C_OUT, C_IN), dtype=jnp.float32)  # (Cout, Cin, 1, 1) squeezed
    gamma2 = 1.0 + 0.1 * jax.random.normal(k_g2, (C_OUT,), dtype=jnp.float32)
    beta2 = 0.1 * jax.random.normal(k_b2, (C_OUT,), dtype=jnp.float32)

    out = fused_forward(x217, x210, gamma1, beta1, conv_w, gamma2, beta2)
    out = jax.block_until_ready(out)

    ref = reference_forward(x217, x210, gamma1, beta1, conv_w, gamma2, beta2)
    assert out.shape == (N, C_OUT, H, W), out.shape
    assert jnp.allclose(out, ref, rtol=1e-3, atol=1e-3), float(jnp.max(jnp.abs(out - ref)))

    print("KERNEL_OK")
</pallas_src>

<mosaic_0001>
module attributes {stable_mosaic.version = 11 : i64} {
  func.func @_fused_bn_add_relu_conv_bn_kernel(%arg0: i32, %arg1: memref<512x196xf32, #tpu.memory_space<vmem>>, %arg2: memref<512x196xf32, #tpu.memory_space<vmem>>, %arg3: memref<512x1xf32, #tpu.memory_space<vmem>>, %arg4: memref<512x1xf32, #tpu.memory_space<vmem>>, %arg5: memref<256x512xf32, #tpu.memory_space<vmem>>, %arg6: memref<256x1xf32, #tpu.memory_space<vmem>>, %arg7: memref<256x1xf32, #tpu.memory_space<vmem>>, %arg8: memref<256x196xf32, #tpu.memory_space<vmem>>) attributes {dimension_semantics = [#tpu.dimension_semantics<arbitrary>], iteration_bounds = array<i64: 2>, scalar_prefetch = 0 : i64, scratch_operands = 0 : i64, tpu.core_type = #tpu.core_type<tc>, window_params = [{transform_indices = @transform_0, window_bounds = array<i64: 512, 196>}, {transform_indices = @transform_1, window_bounds = array<i64: 512, 196>}, {transform_indices = @transform_2, window_bounds = array<i64: 512, 1>}, {transform_indices = @transform_3, window_bounds = array<i64: 512, 1>}, {transform_indices = @transform_4, window_bounds = array<i64: 256, 512>}, {pipeline_mode = #tpu.pipeline_mode<synchronous>, transform_indices = @transform_5, window_bounds = array<i64: 256, 1>}, {pipeline_mode = #tpu.pipeline_mode<synchronous>, transform_indices = @transform_6, window_bounds = array<i64: 256, 1>}, {pipeline_mode = #tpu.pipeline_mode<synchronous>, transform_indices = @transform_7, window_bounds = array<i64: 256, 196>}]} {
    %c0_i32 = arith.constant 0 : i32
    %0 = arith.cmpi eq, %arg0, %c0_i32 : i32
    %1 = arith.extui %0 : i1 to i32
    %c0_i32_0 = arith.constant 0 : i32
    %2 = arith.cmpi ne, %1, %c0_i32_0 : i32
    scf.if %2 {
      %cst_21 = arith.constant 0.000000e+00 : f32
      %37 = vector.broadcast %cst_21 : f32 to vector<256x196xf32>
      %c0_22 = arith.constant 0 : index
      %c0_23 = arith.constant 0 : index
      %38 = vector.load %arg8[%c0_22, %c0_23] : memref<256x196xf32, #tpu.memory_space<vmem>>, vector<256x196xf32>
      tpu.vector_store %arg8[%c0_22, %c0_23], %37 {strides = array<i32>} : memref<256x196xf32, #tpu.memory_space<vmem>>, vector<256x196xf32>,
    } else {
    }
    %c0 = arith.constant 0 : index
    %c0_1 = arith.constant 0 : index
    %3 = vector.load %arg1[%c0, %c0_1] : memref<512x196xf32, #tpu.memory_space<vmem>>, vector<512x196xf32>
    %cst = arith.constant dense<0.000000e+00> : vector<512xf32>
    %4 = vector.multi_reduction <add>, %3, %cst [1] : vector<512x196xf32> to vector<512xf32>
    %5 = vector.shape_cast %4 : vector<512xf32> to vector<512x1xf32>
    %cst_2 = arith.constant 0.00510204071 : f32
    %6 = vector.broadcast %cst_2 : f32 to vector<512x1xf32>
    %7 = arith.mulf %5, %6 : vector<512x1xf32>
    %8 = vector.broadcast %7 : vector<512x1xf32> to vector<512x196xf32>
    %9 = arith.subf %3, %8 : vector<512x196xf32>
    %10 = arith.mulf %9, %9 : vector<512x196xf32>
    %cst_3 = arith.constant dense<0.000000e+00> : vector<512xf32>
    %11 = vector.multi_reduction <add>, %10, %cst_3 [1] : vector<512x196xf32> to vector<512xf32>
    %12 = vector.shape_cast %11 : vector<512xf32> to vector<512x1xf32>
    %cst_4 = arith.constant 0.00510204071 : f32
    %13 = vector.broadcast %cst_4 : f32 to vector<512x1xf32>
    %14 = arith.mulf %12, %13 : vector<512x1xf32>
    %cst_5 = arith.constant 9.99999974E-6 : f32
    %15 = vector.broadcast %cst_5 : f32 to vector<512x1xf32>
    %16 = arith.addf %14, %15 : vector<512x1xf32>
    %17 = math.rsqrt %16 : vector<512x1xf32>
    %c0_6 = arith.constant 0 : index
    %c0_7 = arith.constant 0 : index
    %18 = vector.load %arg3[%c0_6, %c0_7] : memref<512x1xf32, #tpu.memory_space<vmem>>, vector<512x1xf32>
    %19 = arith.mulf %17, %18 : vector<512x1xf32>
    %20 = vector.broadcast %19 : vector<512x1xf32> to vector<512x196xf32>
    %21 = arith.mulf %9, %20 : vector<512x196xf32>
    %c0_8 = arith.constant 0 : index
    %c0_9 = arith.constant 0 : index
    %22 = vector.load %arg4[%c0_8, %c0_9] : memref<512x1xf32, #tpu.memory_space<vmem>>, vector<512x1xf32>
    %23 = vector.broadcast %22 : vector<512x1xf32> to vector<512x196xf32>
    %24 = arith.addf %21, %23 : vector<512x196xf32>
    %c0_10 = arith.constant 0 : index
    %c0_11 = arith.constant 0 : index
    %25 = vector.load %arg2[%c0_10, %c0_11] : memref<512x196xf32, #tpu.memory_space<vmem>>, vector<512x196xf32>
    %26 = arith.addf %24, %25 : vector<512x196xf32>
    %cst_12 = arith.constant 0.000000e+00 : f32
    %27 = vector.broadcast %cst_12 : f32 to vector<512x196xf32>
    %28 = arith.maximumf %26, %27 : vector<512x196xf32>
    %c0_13 = arith.constant 0 : index
    %c0_14 = arith.constant 0 : index
    %29 = vector.load %arg8[%c0_13, %c0_14] : memref<256x196xf32, #tpu.memory_space<vmem>>, vector<256x196xf32>
    %c0_15 = arith.constant 0 : index
    %c0_16 = arith.constant 0 : index
    %30 = vector.load %arg5[%c0_15, %c0_16] : memref<256x512xf32, #tpu.memory_space<vmem>>, vector<256x512xf32>
    %cst_17 = arith.constant dense<0.000000e+00> : vector<256x196xf32>
    %31 = tpu.matmul %30, %28, %cst_17 {dimension_numbers = #tpu.dot_dimension_numbers<[1], [0], [0], [1], [0, 0, 1, 1], [], []>} : vector<256x512xf32>, vector<512x196xf32>, vector<256x196xf32> -> vector<256x196xf32>
    %32 = arith.addf %29, %31 : vector<256x196xf32>
    %c0_18 = arith.constant 0 : index
    %c0_19 = arith.constant 0 : index
    %33 = vector.load %arg8[%c0_18, %c0_19] : memref<256x196xf32, #tpu.memory_space<vmem>>, vector<256x196xf32>
    tpu.vector_store %arg8[%c0_18, %c0_19], %32 {strides = array<i32>} : memref<256x196xf32, #tpu.memory_space<vmem>>, vector<256x196xf32>,
    %c1_i32 = arith.constant 1 : i32
    %34 = arith.cmpi eq, %arg0, %c1_i32 : i32
    %35 = arith.extui %34 : i1 to i32
    %c0_i32_20 = arith.constant 0 : i32
    %36 = arith.cmpi ne, %35, %c0_i32_20 : i32
    scf.if %36 {
      %c0_21 = arith.constant 0 : index
      %c0_22 = arith.constant 0 : index
      %37 = vector.load %arg8[%c0_21, %c0_22] : memref<256x196xf32, #tpu.memory_space<vmem>>, vector<256x196xf32>
      %cst_23 = arith.constant dense<0.000000e+00> : vector<256xf32>
      %38 = vector.multi_reduction <add>, %37, %cst_23 [1] : vector<256x196xf32> to vector<256xf32>
      %39 = vector.shape_cast %38 : vector<256xf32> to vector<256x1xf32>
      %cst_24 = arith.constant 0.00510204071 : f32
      %40 = vector.broadcast %cst_24 : f32 to vector<256x1xf32>
      %41 = arith.mulf %39, %40 : vector<256x1xf32>
      %42 = vector.broadcast %41 : vector<256x1xf32> to vector<256x196xf32>
      %43 = arith.subf %37, %42 : vector<256x196xf32>
      %44 = arith.mulf %43, %43 : vector<256x196xf32>
      %cst_25 = arith.constant dense<0.000000e+00> : vector<256xf32>
      %45 = vector.multi_reduction <add>, %44, %cst_25 [1] : vector<256x196xf32> to vector<256xf32>
      %46 = vector.shape_cast %45 : vector<256xf32> to vector<256x1xf32>
      %cst_26 = arith.constant 0.00510204071 : f32
      %47 = vector.broadcast %cst_26 : f32 to vector<256x1xf32>
      %48 = arith.mulf %46, %47 : vector<256x1xf32>
      %cst_27 = arith.constant 9.99999974E-6 : f32
      %49 = vector.broadcast %cst_27 : f32 to vector<256x1xf32>
      %50 = arith.addf %48, %49 : vector<256x1xf32>
      %51 = math.rsqrt %50 : vector<256x1xf32>
      %c0_28 = arith.constant 0 : index
      %c0_29 = arith.constant 0 : index
      %52 = vector.load %arg6[%c0_28, %c0_29] : memref<256x1xf32, #tpu.memory_space<vmem>>, vector<256x1xf32>
      %53 = arith.mulf %51, %52 : vector<256x1xf32>
      %54 = vector.broadcast %53 : vector<256x1xf32> to vector<256x196xf32>
      %55 = arith.mulf %43, %54 : vector<256x196xf32>
      %c0_30 = arith.constant 0 : index
      %c0_31 = arith.constant 0 : index
      %56 = vector.load %arg7[%c0_30, %c0_31] : memref<256x1xf32, #tpu.memory_space<vmem>>, vector<256x1xf32>
      %57 = vector.broadcast %56 : vector<256x1xf32> to vector<256x196xf32>
      %58 = arith.addf %55, %57 : vector<256x196xf32>
      %c0_32 = arith.constant 0 : index
      %c0_33 = arith.constant 0 : index
      %59 = vector.load %arg8[%c0_32, %c0_33] : memref<256x196xf32, #tpu.memory_space<vmem>>, vector<256x196xf32>
      tpu.vector_store %arg8[%c0_32, %c0_33], %58 {strides = array<i32>} : memref<256x196xf32, #tpu.memory_space<vmem>>, vector<256x196xf32>,
    } else {
    }
    return
  }
  func.func @transform_0(%arg0: i32) -> (i32, i32) {
    %c0_i32 = arith.constant 0 : i32
    %c0_i32_0 = arith.constant 0 : i32
    return %arg0, %c0_i32 : i32, i32
  }
  func.func @transform_1(%arg0: i32) -> (i32, i32) {
    %c0_i32 = arith.constant 0 : i32
    %c0_i32_0 = arith.constant 0 : i32
    return %arg0, %c0_i32 : i32, i32
  }
  func.func @transform_2(%arg0: i32) -> (i32, i32) {
    %c0_i32 = arith.constant 0 : i32
    %c0_i32_0 = arith.constant 0 : i32
    return %arg0, %c0_i32 : i32, i32
  }
  func.func @transform_3(%arg0: i32) -> (i32, i32) {
    %c0_i32 = arith.constant 0 : i32
    %c0_i32_0 = arith.constant 0 : i32
    return %arg0, %c0_i32 : i32, i32
  }
  func.func @transform_4(%arg0: i32) -> (i32, i32) {
    %c0_i32 = arith.constant 0 : i32
    %c0_i32_0 = arith.constant 0 : i32
    return %c0_i32, %arg0 : i32, i32
  }
  func.func @transform_5(%arg0: i32) -> (i32, i32) {
    %c0_i32 = arith.constant 0 : i32
    %c0_i32_0 = arith.constant 0 : i32
    %c0_i32_1 = arith.constant 0 : i32
    return %c0_i32, %c0_i32_0 : i32, i32
  }
  func.func @transform_6(%arg0: i32) -> (i32, i32) {
    %c0_i32 = arith.constant 0 : i32
    %c0_i32_0 = arith.constant 0 : i32
    %c0_i32_1 = arith.constant 0 : i32
    return %c0_i32, %c0_i32_0 : i32, i32
  }
  func.func @transform_7(%arg0: i32) -> (i32, i32) {
    %c0_i32 = arith.constant 0 : i32
    %c0_i32_0 = arith.constant 0 : i32
    %c0_i32_1 = arith.constant 0 : i32
    return %c0_i32, %c0_i32_0 : i32, i32
  }
}

</mosaic_0001>

<bundles_post_ra>
// kernel: tpu_custom_call.1
= control target key start
LH: loop header
LB: loop body
LE: loop exit
PB: predicated region body
PF: predicated region fallthrough
CT: control target
= control target key end

     0   :  { %s5971_s24 = smov 0   ;;  %s5973_s25 = smov 0   ;;  %s10257_s0 = inlined_call_operand.vmem [shape: f32[1024,196], index: 0, kind: input, shape index: {}]   ;;  %s10258_s1 = inlined_call_operand.vmem [shape: f32[1024,196], index: 1, kind: input, shape index: {}]   ;;  %s10259_s2 = inlined_call_operand.vmem [shape: f32[1024,1], index: 2, kind: input, shape index: {}]   ;;  %s10260_s3 = inlined_call_operand.vmem [shape: f32[1024,1], index: 3, kind: input, shape index: {}]   ;;  %s10261_s4 = inlined_call_operand.vmem [shape: f32[256,1024], index: 4, kind: input, shape index: {}]   ;;  %s10262_s5 = inlined_call_operand.vmem [shape: f32[256,1], index: 5, kind: input, shape index: {}]   ;;  %s10263_s6 = inlined_call_operand.vmem [shape: f32[256,1], index: 6, kind: input, shape index: {}]   ;;  %s10264_s7 = inlined_call_operand.vmem [shape: f32[256,196], index: 7, kind: output, shape index: {}]  }
   0x1   :  { %s5975_s26 = smov 0  }
   0x2 LB: > { %s5987_s27 = sadd.s32 4294967295, %s5926_s26   ;;  %s5990_s28 = sadd.s32 1, %s5926_s26   ;;  %s5926_s26 = sphi %s5975_s26, %s10941_s26   ;;  %s5922_s25 = sphi %s5973_s25, %s10940_s25   ;;  %s5918_s24 = sphi %s5971_s24, %s10939_s24  }
   0x3   : > { %s125_s29 = ssub.s32 %s5926_s26, %s5990_s28  ;;  %s128_s30 = sadd.s32 1, %s5922_s25 }
   0x4   : > { %p126_p0 = scmp.eq.s32.totalorder %s125_s29, 0  ;;  %p135_p1 = scmp.ne.s32.totalorder %s5922_s25, %s5918_s24 }
   0x5   : > { %p136_p2 = scmp.eq.s32.totalorder %s5926_s26, 0  ;;  %p5433_p4 = scmp.ge.s32.totalorder %s5926_s26, 2 }
   0x6   : > { %s5999_s8 = scalar_select %p126_p0, %s5922_s25, %s128_s30  }
   0x7   : > { %p137_p3 = por %p136_p2, %p135_p1  ;;  %230 = sbr.rel (%p5433_p4) target bundleno = 82 (0x52), region = 24 }
   0xe   : > { %271 = sbr.rel (!%p137_p3) target bundleno = 82 (0x52), region = 44  ;;  %s273_s9 = sand.u32 (%p137_p3), 1, %s5922_s25  }
   0xf   : > { %s5453_s10 = sshll.u32 (%p137_p3), %s5926_s26, 5  ;;  %s5434_s11 = sshll.u32 (%p137_p3), %s273_s9, 10 }
  0x10   : > { %s6007_s14 = scalar_lea.vmem (%p137_p3), %s10261_s4, %s5453_s10  ;;  %s6012_s15 = scalar_lea.vmem (%p137_p3), [#allocation2], %s5434_s11 }
  0x11   : > { %v291_v0 = vld [vmem:[%s6007_s14] sm:$0xff] (%p137_p3)  ;;  %v293_v1 = vld [vmem:[%s6007_s14 + $0x8] sm:$0xff] (%p137_p3)  ;;  %v295_v2 = vld [vmem:[%s6007_s14 + $0x10] sm:$0xff] (%p137_p3) }
  0x12   : > { %292 = vst [vmem:[%s6012_s15] sm:$0xff] (%p137_p3), %v291_v0  ;;  %294 = vst [vmem:[%s6012_s15 + $0x8] sm:$0xff] (%p137_p3), %v293_v1  ;;  %v297_v3 = vld [vmem:[%s6007_s14 + $0x18] sm:$0xff] (%p137_p3)  ;;  %v299_v4 = vld [vmem:[%s6007_s14 + $0x40] sm:$0xff] (%p137_p3) }
  0x13   : > { %296 = vst [vmem:[%s6012_s15 + $0x10] sm:$0xff] (%p137_p3), %v295_v2  ;;  %v301_v5 = vld [vmem:[%s6007_s14 + $0x48] sm:$0xff] (%p137_p3)  ;;  %298 = vst [vmem:[%s6012_s15 + $0x18] sm:$0xff] (%p137_p3), %v297_v3  ;;  %v303_v6 = vld [vmem:[%s6007_s14 + $0x50] sm:$0xff] (%p137_p3) }
  0x14   : > { %300 = vst [vmem:[%s6012_s15 + $0x20] sm:$0xff] (%p137_p3), %v299_v4  ;;  %302 = vst [vmem:[%s6012_s15 + $0x28] sm:$0xff] (%p137_p3), %v301_v5  ;;  %v305_v7 = vld [vmem:[%s6007_s14 + $0x58] sm:$0xff] (%p137_p3)  ;;  %v307_v8 = vld [vmem:[%s6007_s14 + $0x80] sm:$0xff] (%p137_p3) }
  0x15   : > { %304 = vst [vmem:[%s6012_s15 + $0x30] sm:$0xff] %v303_v6  ;;  %306 = vst [vmem:[%s6012_s15 + $0x38] sm:$0xff] %v305_v7  ;;  %v309_v9 = vld [vmem:[%s6007_s14 + $0x88] sm:$0xff]  ;;  %v311_v10 = vld [vmem:[%s6007_s14 + $0x90] sm:$0xff] }
  0x16   : > { %308 = vst [vmem:[%s6012_s15 + $0x40] sm:$0xff] %v307_v8  ;;  %v313_v11 = vld [vmem:[%s6007_s14 + $0x98] sm:$0xff]  ;;  %310 = vst [vmem:[%s6012_s15 + $0x48] sm:$0xff] %v309_v9  ;;  %v315_v12 = vld [vmem:[%s6007_s14 + $0xc0] sm:$0xff] }
  0x17   : > { %312 = vst [vmem:[%s6012_s15 + $0x50] sm:$0xff] %v311_v10  ;;  %314 = vst [vmem:[%s6012_s15 + $0x58] sm:$0xff] %v313_v11  ;;  %v317_v13 = vld [vmem:[%s6007_s14 + $0xc8] sm:$0xff]  ;;  %v319_v14 = vld [vmem:[%s6007_s14 + $0xd0] sm:$0xff] }
  0x18   : > { %316 = vst [vmem:[%s6012_s15 + $0x60] sm:$0xff] %v315_v12  ;;  %318 = vst [vmem:[%s6012_s15 + $0x68] sm:$0xff] %v317_v13  ;;  %v321_v15 = vld [vmem:[%s6007_s14 + $0xd8] sm:$0xff]  ;;  %v323_v16 = vld [vmem:[%s6007_s14 + $0x100] sm:$0xff] }
  0x19   : > { %320 = vst [vmem:[%s6012_s15 + $0x70] sm:$0xff] %v319_v14  ;;  %v325_v17 = vld [vmem:[%s6007_s14 + $0x108] sm:$0xff]  ;;  %322 = vst [vmem:[%s6012_s15 + $0x78] sm:$0xff] %v321_v15  ;;  %v327_v18 = vld [vmem:[%s6007_s14 + $0x110] sm:$0xff] }
  0x1a   : > { %324 = vst [vmem:[%s6012_s15 + $0x80] sm:$0xff] %v323_v16  ;;  %326 = vst [vmem:[%s6012_s15 + $0x88] sm:$0xff] %v325_v17  ;;  %v329_v19 = vld [vmem:[%s6007_s14 + $0x118] sm:$0xff]  ;;  %v331_v20 = vld [vmem:[%s6007_s14 + $0x140] sm:$0xff] }
  0x1b   : > { %328 = vst [vmem:[%s6012_s15 + $0x90] sm:$0xff] %v327_v18  ;;  %330 = vst [vmem:[%s6012_s15 + $0x98] sm:$0xff] %v329_v19  ;;  %v333_v21 = vld [vmem:[%s6007_s14 + $0x148] sm:$0xff]  ;;  %v335_v22 = vld [vmem:[%s6007_s14 + $0x150] sm:$0xff] }
  0x1c   : > { %332 = vst [vmem:[%s6012_s15 + $0xa0] sm:$0xff] %v331_v20  ;;  %v337_v23 = vld [vmem:[%s6007_s14 + $0x158] sm:$0xff]  ;;  %334 = vst [vmem:[%s6012_s15 + $0xa8] sm:$0xff] %v333_v21  ;;  %v339_v24 = vld [vmem:[%s6007_s14 + $0x180] sm:$0xff] }
  0x1d   : > { %336 = vst [vmem:[%s6012_s15 + $0xb0] sm:$0xff] %v335_v22  ;;  %338 = vst [vmem:[%s6012_s15 + $0xb8] sm:$0xff] %v337_v23  ;;  %v341_v25 = vld [vmem:[%s6007_s14 + $0x188] sm:$0xff]  ;;  %v343_v26 = vld [vmem:[%s6007_s14 + $0x190] sm:$0xff] }
  0x1e   : > { %340 = vst [vmem:[%s6012_s15 + $0xc0] sm:$0xff] %v339_v24  ;;  %342 = vst [vmem:[%s6012_s15 + $0xc8] sm:$0xff] %v341_v25  ;;  %v345_v27 = vld [vmem:[%s6007_s14 + $0x198] sm:$0xff]  ;;  %v347_v28 = vld [vmem:[%s6007_s14 + $0x1c0] sm:$0xff] }
  0x1f   : > { %344 = vst [vmem:[%s6012_s15 + $0xd0] sm:$0xff] %v343_v26  ;;  %v349_v29 = vld [vmem:[%s6007_s14 + $0x1c8] sm:$0xff]  ;;  %346 = vst [vmem:[%s6012_s15 + $0xd8] sm:$0xff] %v345_v27  ;;  %v351_v30 = vld [vmem:[%s6007_s14 + $0x1d0] sm:$0xff] }
  0x20   : > { %348 = vst [vmem:[%s6012_s15 + $0xe0] sm:$0xff] %v347_v28  ;;  %350 = vst [vmem:[%s6012_s15 + $0xe8] sm:$0xff] %v349_v29  ;;  %v353_v31 = vld [vmem:[%s6007_s14 + $0x1d8] sm:$0xff]  ;;  %v355_v32 = vld [vmem:[%s6007_s14 + $0x200] sm:$0xff] }
  0x21   : > { %352 = vst [vmem:[%s6012_s15 + $0xf0] sm:$0xff] %v351_v30  ;;  %354 = vst [vmem:[%s6012_s15 + $0xf8] sm:$0xff] %v353_v31  ;;  %v357_v33 = vld [vmem:[%s6007_s14 + $0x208] sm:$0xff]  ;;  %v359_v34 = vld [vmem:[%s6007_s14 + $0x210] sm:$0xff] }
  0x22   : > { %356 = vst [vmem:[%s6012_s15 + $0x100] sm:$0xff] %v355_v32  ;;  %v361_v35 = vld [vmem:[%s6007_s14 + $0x218] sm:$0xff]  ;;  %358 = vst [vmem:[%s6012_s15 + $0x108] sm:$0xff] %v357_v33  ;;  %v363_v36 = vld [vmem:[%s6007_s14 + $0x240] sm:$0xff] }
  0x23   : > { %360 = vst [vmem:[%s6012_s15 + $0x110] sm:$0xff] %v359_v34  ;;  %362 = vst [vmem:[%s6012_s15 + $0x118] sm:$0xff] %v361_v35  ;;  %v365_v37 = vld [vmem:[%s6007_s14 + $0x248] sm:$0xff]  ;;  %v367_v38 = vld [vmem:[%s6007_s14 + $0x250] sm:$0xff] }
  0x24   : > { %364 = vst [vmem:[%s6012_s15 + $0x120] sm:$0xff] %v363_v36  ;;  %366 = vst [vmem:[%s6012_s15 + $0x128] sm:$0xff] %v365_v37  ;;  %v369_v39 = vld [vmem:[%s6007_s14 + $0x258] sm:$0xff]  ;;  %v371_v40 = vld [vmem:[%s6007_s14 + $0x280] sm:$0xff] }
  0x25   : > { %368 = vst [vmem:[%s6012_s15 + $0x130] sm:$0xff] %v367_v38  ;;  %v373_v41 = vld [vmem:[%s6007_s14 + $0x288] sm:$0xff]  ;;  %370 = vst [vmem:[%s6012_s15 + $0x138] sm:$0xff] %v369_v39  ;;  %v375_v42 = vld [vmem:[%s6007_s14 + $0x290] sm:$0xff] }
  0x26   : > { %372 = vst [vmem:[%s6012_s15 + $0x140] sm:$0xff] %v371_v40  ;;  %374 = vst [vmem:[%s6012_s15 + $0x148] sm:$0xff] %v373_v41  ;;  %v377_v43 = vld [vmem:[%s6007_s14 + $0x298] sm:$0xff]  ;;  %v379_v44 = vld [vmem:[%s6007_s14 + $0x2c0] sm:$0xff] }
  0x27   : > { %376 = vst [vmem:[%s6012_s15 + $0x150] sm:$0xff] %v375_v42  ;;  %378 = vst [vmem:[%s6012_s15 + $0x158] sm:$0xff] %v377_v43  ;;  %v381_v45 = vld [vmem:[%s6007_s14 + $0x2c8] sm:$0xff]  ;;  %v383_v46 = vld [vmem:[%s6007_s14 + $0x2d0] sm:$0xff] }
  0x28   : > { %380 = vst [vmem:[%s6012_s15 + $0x160] sm:$0xff] %v379_v44  ;;  %v385_v47 = vld [vmem:[%s6007_s14 + $0x2d8] sm:$0xff]  ;;  %382 = vst [vmem:[%s6012_s15 + $0x168] sm:$0xff] %v381_v45  ;;  %v387_v48 = vld [vmem:[%s6007_s14 + $0x300] sm:$0xff] }
  0x29   : > { %384 = vst [vmem:[%s6012_s15 + $0x170] sm:$0xff] %v383_v46  ;;  %386 = vst [vmem:[%s6012_s15 + $0x178] sm:$0xff] %v385_v47  ;;  %v389_v49 = vld [vmem:[%s6007_s14 + $0x308] sm:$0xff]  ;;  %v391_v50 = vld [vmem:[%s6007_s14 + $0x310] sm:$0xff] }
  0x2a   : > { %388 = vst [vmem:[%s6012_s15 + $0x180] sm:$0xff] %v387_v48  ;;  %390 = vst [vmem:[%s6012_s15 + $0x188] sm:$0xff] %v389_v49  ;;  %v393_v51 = vld [vmem:[%s6007_s14 + $0x318] sm:$0xff]  ;;  %v395_v52 = vld [vmem:[%s6007_s14 + $0x340] sm:$0xff] }
  0x2b   : > { %392 = vst [vmem:[%s6012_s15 + $0x190] sm:$0xff] %v391_v50  ;;  %v397_v53 = vld [vmem:[%s6007_s14 + $0x348] sm:$0xff]  ;;  %394 = vst [vmem:[%s6012_s15 + $0x198] sm:$0xff] %v393_v51  ;;  %v399_v54 = vld [vmem:[%s6007_s14 + $0x350] sm:$0xff] }
  0x2c   : > { %396 = vst [vmem:[%s6012_s15 + $0x1a0] sm:$0xff] %v395_v52  ;;  %398 = vst [vmem:[%s6012_s15 + $0x1a8] sm:$0xff] %v397_v53  ;;  %v401_v55 = vld [vmem:[%s6007_s14 + $0x358] sm:$0xff]  ;;  %v403_v56 = vld [vmem:[%s6007_s14 + $0x380] sm:$0xff] }
  0x2d   : > { %400 = vst [vmem:[%s6012_s15 + $0x1b0] sm:$0xff] %v399_v54  ;;  %402 = vst [vmem:[%s6012_s15 + $0x1b8] sm:$0xff] %v401_v55  ;;  %v405_v57 = vld [vmem:[%s6007_s14 + $0x388] sm:$0xff]  ;;  %v407_v58 = vld [vmem:[%s6007_s14 + $0x390] sm:$0xff] }
  0x2e   : > { %404 = vst [vmem:[%s6012_s15 + $0x1c0] sm:$0xff] %v403_v56  ;;  %v409_v59 = vld [vmem:[%s6007_s14 + $0x398] sm:$0xff]  ;;  %406 = vst [vmem:[%s6012_s15 + $0x1c8] sm:$0xff] %v405_v57  ;;  %v411_v60 = vld [vmem:[%s6007_s14 + $0x3c0] sm:$0xff] }
  0x2f   : > { %408 = vst [vmem:[%s6012_s15 + $0x1d0] sm:$0xff] %v407_v58  ;;  %410 = vst [vmem:[%s6012_s15 + $0x1d8] sm:$0xff] %v409_v59  ;;  %v413_v61 = vld [vmem:[%s6007_s14 + $0x3c8] sm:$0xff]  ;;  %v415_v62 = vld [vmem:[%s6007_s14 + $0x3d0] sm:$0xff] }
  0x30   : > { %412 = vst [vmem:[%s6012_s15 + $0x1e0] sm:$0xff] %v411_v60  ;;  %414 = vst [vmem:[%s6012_s15 + $0x1e8] sm:$0xff] %v413_v61  ;;  %v417_v63 = vld [vmem:[%s6007_s14 + $0x3d8] sm:$0xff]  ;;  %v419_v0 = vld [vmem:[%s6007_s14 + $0x400] sm:$0xff] }
  0x31   : > { %416 = vst [vmem:[%s6012_s15 + $0x1f0] sm:$0xff] %v415_v62  ;;  %v421_v1 = vld [vmem:[%s6007_s14 + $0x408] sm:$0xff]  ;;  %418 = vst [vmem:[%s6012_s15 + $0x1f8] sm:$0xff] %v417_v63  ;;  %v423_v2 = vld [vmem:[%s6007_s14 + $0x410] sm:$0xff] }
  0x32   : > { %420 = vst [vmem:[%s6012_s15 + $0x200] sm:$0xff] %v419_v0  ;;  %422 = vst [vmem:[%s6012_s15 + $0x208] sm:$0xff] %v421_v1  ;;  %v425_v3 = vld [vmem:[%s6007_s14 + $0x418] sm:$0xff]  ;;  %v427_v4 = vld [vmem:[%s6007_s14 + $0x440] sm:$0xff] }
  0x33   : > { %424 = vst [vmem:[%s6012_s15 + $0x210] sm:$0xff] %v423_v2  ;;  %426 = vst [vmem:[%s6012_s15 + $0x218] sm:$0xff] %v425_v3  ;;  %v429_v5 = vld [vmem:[%s6007_s14 + $0x448] sm:$0xff]  ;;  %v431_v6 = vld [vmem:[%s6007_s14 + $0x450] sm:$0xff] }
  0x34   : > { %428 = vst [vmem:[%s6012_s15 + $0x220] sm:$0xff] %v427_v4  ;;  %v433_v7 = vld [vmem:[%s6007_s14 + $0x458] sm:$0xff]  ;;  %430 = vst [vmem:[%s6012_s15 + $0x228] sm:$0xff] %v429_v5  ;;  %v435_v8 = vld [vmem:[%s6007_s14 + $0x480] sm:$0xff] }
  0x35   : > { %432 = vst [vmem:[%s6012_s15 + $0x230] sm:$0xff] %v431_v6  ;;  %434 = vst [vmem:[%s6012_s15 + $0x238] sm:$0xff] %v433_v7  ;;  %v437_v9 = vld [vmem:[%s6007_s14 + $0x488] sm:$0xff]  ;;  %v439_v10 = vld [vmem:[%s6007_s14 + $0x490] sm:$0xff] }
  0x36   : > { %436 = vst [vmem:[%s6012_s15 + $0x240] sm:$0xff] %v435_v8  ;;  %438 = vst [vmem:[%s6012_s15 + $0x248] sm:$0xff] %v437_v9  ;;  %v441_v11 = vld [vmem:[%s6007_s14 + $0x498] sm:$0xff]  ;;  %v443_v12 = vld [vmem:[%s6007_s14 + $0x4c0] sm:$0xff] }
  0x37   : > { %440 = vst [vmem:[%s6012_s15 + $0x250] sm:$0xff] %v439_v10  ;;  %v445_v13 = vld [vmem:[%s6007_s14 + $0x4c8] sm:$0xff]  ;;  %442 = vst [vmem:[%s6012_s15 + $0x258] sm:$0xff] %v441_v11  ;;  %v447_v14 = vld [vmem:[%s6007_s14 + $0x4d0] sm:$0xff] }
  0x38   : > { %444 = vst [vmem:[%s6012_s15 + $0x260] sm:$0xff] %v443_v12  ;;  %446 = vst [vmem:[%s6012_s15 + $0x268] sm:$0xff] %v445_v13  ;;  %v449_v15 = vld [vmem:[%s6007_s14 + $0x4d8] sm:$0xff]  ;;  %v451_v16 = vld [vmem:[%s6007_s14 + $0x500] sm:$0xff] }
  0x39   : > { %448 = vst [vmem:[%s6012_s15 + $0x270] sm:$0xff] %v447_v14  ;;  %450 = vst [vmem:[%s6012_s15 + $0x278] sm:$0xff] %v449_v15  ;;  %v453_v17 = vld [vmem:[%s6007_s14 + $0x508] sm:$0xff]  ;;  %v455_v18 = vld [vmem:[%s6007_s14 + $0x510] sm:$0xff] }
  0x3a   : > { %452 = vst [vmem:[%s6012_s15 + $0x280] sm:$0xff] %v451_v16  ;;  %v457_v19 = vld [vmem:[%s6007_s14 + $0x518] sm:$0xff]  ;;  %454 = vst [vmem:[%s6012_s15 + $0x288] sm:$0xff] %v453_v17  ;;  %v459_v20 = vld [vmem:[%s6007_s14 + $0x540] sm:$0xff] }
  0x3b   : > { %456 = vst [vmem:[%s6012_s15 + $0x290] sm:$0xff] %v455_v18  ;;  %458 = vst [vmem:[%s6012_s15 + $0x298] sm:$0xff] %v457_v19  ;;  %v461_v21 = vld [vmem:[%s6007_s14 + $0x548] sm:$0xff]  ;;  %v463_v22 = vld [vmem:[%s6007_s14 + $0x550] sm:$0xff] }
  0x3c   : > { %460 = vst [vmem:[%s6012_s15 + $0x2a0] sm:$0xff] %v459_v20  ;;  %462 = vst [vmem:[%s6012_s15 + $0x2a8] sm:$0xff] %v461_v21  ;;  %v465_v23 = vld [vmem:[%s6007_s14 + $0x558] sm:$0xff]  ;;  %v467_v24 = vld [vmem:[%s6007_s14 + $0x580] sm:$0xff] }
  0x3d   : > { %464 = vst [vmem:[%s6012_s15 + $0x2b0] sm:$0xff] %v463_v22  ;;  %v469_v25 = vld [vmem:[%s6007_s14 + $0x588] sm:$0xff]  ;;  %466 = vst [vmem:[%s6012_s15 + $0x2b8] sm:$0xff] %v465_v23  ;;  %v471_v26 = vld [vmem:[%s6007_s14 + $0x590] sm:$0xff] }
  0x3e   : > { %468 = vst [vmem:[%s6012_s15 + $0x2c0] sm:$0xff] %v467_v24  ;;  %470 = vst [vmem:[%s6012_s15 + $0x2c8] sm:$0xff] %v469_v25  ;;  %v473_v27 = vld [vmem:[%s6007_s14 + $0x598] sm:$0xff]  ;;  %v475_v28 = vld [vmem:[%s6007_s14 + $0x5c0] sm:$0xff] }
  0x3f   : > { %472 = vst [vmem:[%s6012_s15 + $0x2d0] sm:$0xff] %v471_v26  ;;  %474 = vst [vmem:[%s6012_s15 + $0x2d8] sm:$0xff] %v473_v27  ;;  %v477_v29 = vld [vmem:[%s6007_s14 + $0x5c8] sm:$0xff]  ;;  %v479_v30 = vld [vmem:[%s6007_s14 + $0x5d0] sm:$0xff] }
  0x40   : > { %476 = vst [vmem:[%s6012_s15 + $0x2e0] sm:$0xff] %v475_v28  ;;  %v481_v31 = vld [vmem:[%s6007_s14 + $0x5d8] sm:$0xff]  ;;  %478 = vst [vmem:[%s6012_s15 + $0x2e8] sm:$0xff] %v477_v29  ;;  %v483_v32 = vld [vmem:[%s6007_s14 + $0x600] sm:$0xff] }
  0x41   : > { %480 = vst [vmem:[%s6012_s15 + $0x2f0] sm:$0xff] %v479_v30  ;;  %482 = vst [vmem:[%s6012_s15 + $0x2f8] sm:$0xff] %v481_v31  ;;  %v485_v33 = vld [vmem:[%s6007_s14 + $0x608] sm:$0xff]  ;;  %v487_v34 = vld [vmem:[%s6007_s14 + $0x610] sm:$0xff] }
  0x42   : > { %484 = vst [vmem:[%s6012_s15 + $0x300] sm:$0xff] %v483_v32  ;;  %486 = vst [vmem:[%s6012_s15 + $0x308] sm:$0xff] %v485_v33  ;;  %v489_v35 = vld [vmem:[%s6007_s14 + $0x618] sm:$0xff]  ;;  %v491_v36 = vld [vmem:[%s6007_s14 + $0x640] sm:$0xff] }
  0x43   : > { %488 = vst [vmem:[%s6012_s15 + $0x310] sm:$0xff] %v487_v34  ;;  %v493_v37 = vld [vmem:[%s6007_s14 + $0x648] sm:$0xff]  ;;  %490 = vst [vmem:[%s6012_s15 + $0x318] sm:$0xff] %v489_v35  ;;  %v495_v38 = vld [vmem:[%s6007_s14 + $0x650] sm:$0xff] }
  0x44   : > { %492 = vst [vmem:[%s6012_s15 + $0x320] sm:$0xff] %v491_v36  ;;  %494 = vst [vmem:[%s6012_s15 + $0x328] sm:$0xff] %v493_v37  ;;  %v497_v39 = vld [vmem:[%s6007_s14 + $0x658] sm:$0xff]  ;;  %v499_v40 = vld [vmem:[%s6007_s14 + $0x680] sm:$0xff] }
  0x45   : > { %496 = vst [vmem:[%s6012_s15 + $0x330] sm:$0xff] %v495_v38  ;;  %498 = vst [vmem:[%s6012_s15 + $0x338] sm:$0xff] %v497_v39  ;;  %v501_v41 = vld [vmem:[%s6007_s14 + $0x688] sm:$0xff]  ;;  %v503_v42 = vld [vmem:[%s6007_s14 + $0x690] sm:$0xff] }
  0x46   : > { %500 = vst [vmem:[%s6012_s15 + $0x340] sm:$0xff] %v499_v40  ;;  %v505_v43 = vld [vmem:[%s6007_s14 + $0x698] sm:$0xff]  ;;  %502 = vst [vmem:[%s6012_s15 + $0x348] sm:$0xff] %v501_v41  ;;  %v507_v44 = vld [vmem:[%s6007_s14 + $0x6c0] sm:$0xff] }
  0x47   : > { %504 = vst [vmem:[%s6012_s15 + $0x350] sm:$0xff] %v503_v42  ;;  %506 = vst [vmem:[%s6012_s15 + $0x358] sm:$0xff] %v505_v43  ;;  %v509_v45 = vld [vmem:[%s6007_s14 + $0x6c8] sm:$0xff]  ;;  %v511_v46 = vld [vmem:[%s6007_s14 + $0x6d0] sm:$0xff] }
  0x48   : > { %508 = vst [vmem:[%s6012_s15 + $0x360] sm:$0xff] %v507_v44  ;;  %510 = vst [vmem:[%s6012_s15 + $0x368] sm:$0xff] %v509_v45  ;;  %v513_v47 = vld [vmem:[%s6007_s14 + $0x6d8] sm:$0xff]  ;;  %v515_v48 = vld [vmem:[%s6007_s14 + $0x700] sm:$0xff] }
  0x49   : > { %512 = vst [vmem:[%s6012_s15 + $0x370] sm:$0xff] %v511_v46  ;;  %v517_v49 = vld [vmem:[%s6007_s14 + $0x708] sm:$0xff]  ;;  %514 = vst [vmem:[%s6012_s15 + $0x378] sm:$0xff] %v513_v47  ;;  %v519_v50 = vld [vmem:[%s6007_s14 + $0x710] sm:$0xff] }
  0x4a   : > { %516 = vst [vmem:[%s6012_s15 + $0x380] sm:$0xff] %v515_v48  ;;  %518 = vst [vmem:[%s6012_s15 + $0x388] sm:$0xff] %v517_v49  ;;  %v521_v51 = vld [vmem:[%s6007_s14 + $0x718] sm:$0xff]  ;;  %v523_v52 = vld [vmem:[%s6007_s14 + $0x740] sm:$0xff] }
  0x4b   : > { %520 = vst [vmem:[%s6012_s15 + $0x390] sm:$0xff] %v519_v50  ;;  %522 = vst [vmem:[%s6012_s15 + $0x398] sm:$0xff] %v521_v51  ;;  %v525_v53 = vld [vmem:[%s6007_s14 + $0x748] sm:$0xff]  ;;  %v527_v54 = vld [vmem:[%s6007_s14 + $0x750] sm:$0xff] }
  0x4c   : > { %524 = vst [vmem:[%s6012_s15 + $0x3a0] sm:$0xff] %v523_v52  ;;  %v529_v55 = vld [vmem:[%s6007_s14 + $0x758] sm:$0xff]  ;;  %526 = vst [vmem:[%s6012_s15 + $0x3a8] sm:$0xff] %v525_v53  ;;  %v531_v56 = vld [vmem:[%s6007_s14 + $0x780] sm:$0xff] }
  0x4d   : > { %528 = vst [vmem:[%s6012_s15 + $0x3b0] sm:$0xff] %v527_v54  ;;  %530 = vst [vmem:[%s6012_s15 + $0x3b8] sm:$0xff] %v529_v55  ;;  %v533_v57 = vld [vmem:[%s6007_s14 + $0x788] sm:$0xff]  ;;  %v535_v58 = vld [vmem:[%s6007_s14 + $0x790] sm:$0xff] }
  0x4e   : > { %532 = vst [vmem:[%s6012_s15 + $0x3c0] sm:$0xff] %v531_v56  ;;  %534 = vst [vmem:[%s6012_s15 + $0x3c8] sm:$0xff] %v533_v57  ;;  %v537_v59 = vld [vmem:[%s6007_s14 + $0x798] sm:$0xff]  ;;  %v539_v60 = vld [vmem:[%s6007_s14 + $0x7c0] sm:$0xff] }
  0x4f   : > { %536 = vst [vmem:[%s6012_s15 + $0x3d0] sm:$0xff] %v535_v58  ;;  %v541_v61 = vld [vmem:[%s6007_s14 + $0x7c8] sm:$0xff]  ;;  %538 = vst [vmem:[%s6012_s15 + $0x3d8] sm:$0xff] %v537_v59  ;;  %v543_v62 = vld [vmem:[%s6007_s14 + $0x7d0] sm:$0xff] }
  0x50   : > { %540 = vst [vmem:[%s6012_s15 + $0x3e0] sm:$0xff] %v539_v60  ;;  %542 = vst [vmem:[%s6012_s15 + $0x3e8] sm:$0xff] %v541_v61  ;;  %v545_v63 = vld [vmem:[%s6007_s14 + $0x7d8] sm:$0xff] }
  0x51   : > { %544 = vst [vmem:[%s6012_s15 + $0x3f0] sm:$0xff] %v543_v62  ;;  %546 = vst [vmem:[%s6012_s15 + $0x3f8] sm:$0xff] %v545_v63 }
  0x52 PF: > { %p5437_p5 = scmp.ge.s32.totalorder %s5926_s26, 1  ;;  %p551_p6 = scmp.lt.s32.totalorder %s5926_s26, 3 }
  0x54   : > { %p552_p7 = pnand %p5437_p5, %p551_p6 }
  0x56   : > { %555 = sbr.rel (%p552_p7) target bundleno = 1747 (0x6d3), region = 67 }
  0x5d   : > { %s558_s16 = sand.u32 1, %s5918_s24   ;;  %s5439_s17 = sshll.u32 %s5987_s27, 6 }
  0x5e   : > { %s5438_s18 = sshll.u32 %s558_s16, 10  ;;  %p607_p8 = scmp.lt.s32.totalorder %s5439_s17, 127 }
  0x5f   : > { %s6291_s14 = scalar_lea.vmem [#allocation2], %s5438_s18  ;;  %p5449_p9 = scmp.ne.s32.totalorder %s5987_s27, 0 }
  0x60   : > { %s10943_s17 = smov (!%p607_p8, %s5439_s17), 127  ;;  %vm638_vm0 = vcmask (!%p5449_p9), 556032   ;;  %v5928_v0 = vmov (!%p5449_p9), 0.0  }
  0x61   : > { %s5454_s19 = sshll.u32 %s10943_s17, 4  ;;  %s5446_s20 = sshll.u32 %s10943_s17, 3  ;;  %637 = vst [vmem:[%s10264_s7] sm:$0xff] (!%p5449_p9), %v5928_v0  ;;  %640 = vst [vmem:[%s10264_s7 + $0x10] sm:$0xff] (!%p5449_p9), %v5928_v0 }
  0x62   : > { %s6274_s23 = scalar_lea.vmem %s10257_s0, %s5454_s19  ;;  %s6279_s26 = scalar_lea.vmem %s10258_s1, %s5454_s19  ;;  %642 = vst [vmem:[%s10264_s7 + $0x20] sm:$0xff] (!%p5449_p9), %v5928_v0  ;;  %644 = vst [vmem:[%s10264_s7 + $0x30] sm:$0xff] (!%p5449_p9), %v5928_v0 }
  0x63   : > { %s6284_s24 = scalar_lea.vmem %s10259_s2, %s5446_s20  ;;  %s6289_s13 = scalar_lea.vmem %s10260_s3, %s5446_s20  ;;  %646 = vst [vmem:[%s10264_s7 + $0x40] sm:$0xff] (!%p5449_p9), %v5928_v0  ;;  %648 = vst [vmem:[%s10264_s7 + $0x50] sm:$0xff] (!%p5449_p9), %v5928_v0 }
  0x64   : > { %636 = sbr.rel (%p5449_p9) target bundleno = 129 (0x81), region = 75  ;;  %650 = vst [vmem:[%s10264_s7 + $0x60] sm:$0xff] (!%p5449_p9), %v5928_v0  ;;  %652 = vst [vmem:[%s10264_s7 + $0x70] sm:$0xff] (!%p5449_p9), %v5928_v0 }
  0x65   : > { %654 = vst [vmem:[%s10264_s7 + $0x80] sm:$0xff] (!%p5449_p9), %v5928_v0  ;;  %656 = vst [vmem:[%s10264_s7 + $0x90] sm:$0xff] (!%p5449_p9), %v5928_v0 }
  0x66   : > { %658 = vst [vmem:[%s10264_s7 + $0xa0] sm:$0xff] (!%p5449_p9), %v5928_v0  ;;  %660 = vst [vmem:[%s10264_s7 + $0xb0] sm:$0xff] (!%p5449_p9), %v5928_v0 }
  0x67   : > { %662 = vst [vmem:[%s10264_s7 + $0xc0] sm:$0xff] (!%p5449_p9), %v5928_v0  ;;  %664 = vst [vmem:[%s10264_s7 + $0xd0] sm:$0xff] (!%p5449_p9), %v5928_v0 }
  0x68   : > { %666 = vst [vmem:[%s10264_s7 + $0xe0] sm:$0xff] (!%p5449_p9), %v5928_v0  ;;  %668 = vst [vmem:[%s10264_s7 + $0xf0] sm:$0xff] (!%p5449_p9), %v5928_v0 }
  0x69   : > { %670 = vst [vmem:[%s10264_s7 + $0x100] sm:$0xff] (!%p5449_p9), %v5928_v0  ;;  %672 = vst [vmem:[%s10264_s7 + $0x110] sm:$0xff] (!%p5449_p9), %v5928_v0 }
  0x6a   : > { %674 = vst [vmem:[%s10264_s7 + $0x120] sm:$0xff] (!%p5449_p9), %v5928_v0  ;;  %676 = vst [vmem:[%s10264_s7 + $0x130] sm:$0xff] (!%p5449_p9), %v5928_v0 }
  0x6b   : > { %678 = vst [vmem:[%s10264_s7 + $0x140] sm:$0xff] %v5928_v0  ;;  %680 = vst [vmem:[%s10264_s7 + $0x150] sm:$0xff] %v5928_v0 }
  0x6c   : > { %682 = vst [vmem:[%s10264_s7 + $0x160] sm:$0xff] %v5928_v0  ;;  %684 = vst [vmem:[%s10264_s7 + $0x170] sm:$0xff] %v5928_v0 }
  0x6d   : > { %686 = vst [vmem:[%s10264_s7 + $0x180] sm:$0xff] %v5928_v0  ;;  %688 = vst [vmem:[%s10264_s7 + $0x190] sm:$0xff] %v5928_v0 }
  0x6e   : > { %690 = vst [vmem:[%s10264_s7 + $0x1a0] sm:$0xff] %v5928_v0  ;;  %692 = vst [vmem:[%s10264_s7 + $0x1b0] sm:$0xff] %v5928_v0 }
  0x6f   : > { %694 = vst [vmem:[%s10264_s7 + $0x1c0] sm:$0xff] %v5928_v0  ;;  %696 = vst [vmem:[%s10264_s7 + $0x1d0] sm:$0xff] %v5928_v0 }
  0x70   : > { %698 = vst [vmem:[%s10264_s7 + $0x1e0] sm:$0xff] %v5928_v0  ;;  %700 = vst [vmem:[%s10264_s7 + $0x1f0] sm:$0xff] %v5928_v0 }
  0x71   : > { %639 = vst.msk [vmem:[%s10264_s7 + $0x8] sm:$0xff] %vm638_vm0, %v5928_v0  ;;  %641 = vst.msk [vmem:[%s10264_s7 + $0x18] sm:$0xff] %vm638_vm0, %v5928_v0 }
  0x72   : > { %643 = vst.msk [vmem:[%s10264_s7 + $0x28] sm:$0xff] %vm638_vm0, %v5928_v0  ;;  %645 = vst.msk [vmem:[%s10264_s7 + $0x38] sm:$0xff] %vm638_vm0, %v5928_v0 }
  0x73   : > { %647 = vst.msk [vmem:[%s10264_s7 + $0x48] sm:$0xff] %vm638_vm0, %v5928_v0  ;;  %649 = vst.msk [vmem:[%s10264_s7 + $0x58] sm:$0xff] %vm638_vm0, %v5928_v0 }
  0x74   : > { %651 = vst.msk [vmem:[%s10264_s7 + $0x68] sm:$0xff] %vm638_vm0, %v5928_v0  ;;  %653 = vst.msk [vmem:[%s10264_s7 + $0x78] sm:$0xff] %vm638_vm0, %v5928_v0 }
  0x75   : > { %655 = vst.msk [vmem:[%s10264_s7 + $0x88] sm:$0xff] %vm638_vm0, %v5928_v0  ;;  %657 = vst.msk [vmem:[%s10264_s7 + $0x98] sm:$0xff] %vm638_vm0, %v5928_v0 }
  0x76   : > { %659 = vst.msk [vmem:[%s10264_s7 + $0xa8] sm:$0xff] %vm638_vm0, %v5928_v0  ;;  %661 = vst.msk [vmem:[%s10264_s7 + $0xb8] sm:$0xff] %vm638_vm0, %v5928_v0 }
  0x77   : > { %663 = vst.msk [vmem:[%s10264_s7 + $0xc8] sm:$0xff] %vm638_vm0, %v5928_v0  ;;  %665 = vst.msk [vmem:[%s10264_s7 + $0xd8] sm:$0xff] %vm638_vm0, %v5928_v0 }
  0x78   : > { %667 = vst.msk [vmem:[%s10264_s7 + $0xe8] sm:$0xff] %vm638_vm0, %v5928_v0  ;;  %669 = vst.msk [vmem:[%s10264_s7 + $0xf8] sm:$0xff] %vm638_vm0, %v5928_v0 }
  0x79   : > { %671 = vst.msk [vmem:[%s10264_s7 + $0x108] sm:$0xff] %vm638_vm0, %v5928_v0  ;;  %673 = vst.msk [vmem:[%s10264_s7 + $0x118] sm:$0xff] %vm638_vm0, %v5928_v0 }
  0x7a   : > { %675 = vst.msk [vmem:[%s10264_s7 + $0x128] sm:$0xff] %vm638_vm0, %v5928_v0  ;;  %677 = vst.msk [vmem:[%s10264_s7 + $0x138] sm:$0xff] %vm638_vm0, %v5928_v0 }
  0x7b   : > { %679 = vst.msk [vmem:[%s10264_s7 + $0x148] sm:$0xff] %vm638_vm0, %v5928_v0  ;;  %681 = vst.msk [vmem:[%s10264_s7 + $0x158] sm:$0xff] %vm638_vm0, %v5928_v0 }
  0x7c   : > { %683 = vst.msk [vmem:[%s10264_s7 + $0x168] sm:$0xff] %vm638_vm0, %v5928_v0  ;;  %685 = vst.msk [vmem:[%s10264_s7 + $0x178] sm:$0xff] %vm638_vm0, %v5928_v0 }
  0x7d   : > { %687 = vst.msk [vmem:[%s10264_s7 + $0x188] sm:$0xff] %vm638_vm0, %v5928_v0  ;;  %689 = vst.msk [vmem:[%s10264_s7 + $0x198] sm:$0xff] %vm638_vm0, %v5928_v0 }
  0x7e   : > { %691 = vst.msk [vmem:[%s10264_s7 + $0x1a8] sm:$0xff] %vm638_vm0, %v5928_v0  ;;  %693 = vst.msk [vmem:[%s10264_s7 + $0x1b8] sm:$0xff] %vm638_vm0, %v5928_v0 }
  0x7f   : > { %695 = vst.msk [vmem:[%s10264_s7 + $0x1c8] sm:$0xff] %vm638_vm0, %v5928_v0  ;;  %697 = vst.msk [vmem:[%s10264_s7 + $0x1d8] sm:$0xff] %vm638_vm0, %v5928_v0 }
  0x80   : > { %699 = vst.msk [vmem:[%s10264_s7 + $0x1e8] sm:$0xff] %vm638_vm0, %v5928_v0  ;;  %701 = vst.msk [vmem:[%s10264_s7 + $0x1f8] sm:$0xff] %vm638_vm0, %v5928_v0 }
  0x81 PF: > { %v6583_v1 = vld [vmem:[%s6274_s23] sm:$0xff]  ;;  %v6586_v2 = vld [vmem:[%s6274_s23 + $0x8] sm:$0xff]  ;;  %vm830_vm1 = vcmask 556032   ;;  %v6597_v6 = vld [vmem:[%s6274_s23 + $0x10] sm:$0xff]  ;;  %p5450_p10 = scmp.ne.s32.totalorder %s5987_s27, 1 }
  0x82   : > { %v6589_v3 = vld [vmem:[%s6274_s23 + $0x20] sm:$0xff]  ;;  %v831_v4 = vsel %vm830_vm1, %v6586_v2, 0.0  ;;  %v6594_v5 = vld [vmem:[%s6274_s23 + $0x28] sm:$0xff]  ;;  %v6600_v7 = vld [vmem:[%s6274_s23 + $0x18] sm:$0xff] }
  0x83   : > { %v832_v8 = vadd.f32 %v831_v4, %v6583_v1  ;;  %v839_v9 = vsel %vm830_vm1, %v6594_v5, 0.0  ;;  %v835_v10 = vsel %vm830_vm1, %v6600_v7, 0.0  ;;  %v6608_v11 = vld [vmem:[%s6274_s23 + $0x30] sm:$0xff]  ;;  %v6611_v12 = vld [vmem:[%s6274_s23 + $0x38] sm:$0xff]  ;;  %v6617_v15 = vld [vmem:[%s6274_s23 + $0x48] sm:$0xff] }
  0x84   : > { %v840_v13 = vadd.f32 %v839_v9, %v6589_v3  ;;  %v843_v14 = vsel %vm830_vm1, %v6611_v12, 0.0  ;;  %v6620_v16 = vld [vmem:[%s6274_s23 + $0x58] sm:$0xff]  ;;  %v836_v17 = vadd.f32 %v835_v10, %v6597_v6  ;;  %v6625_v19 = vld [vmem:[%s6274_s23 + $0x40] sm:$0xff]  ;;  %v847_v20 = vsel %vm830_vm1, %v6617_v15, 0.0  ;;  %v6630_v21 = vld [vmem:[%s6274_s23 + $0x50] sm:$0xff] }
  0x85   : > { %833 = vadd.xlane.f32.xlu0 %v832_v8  ;;  %v844_v18 = vadd.f32 %v843_v14, %v6608_v11  ;;  %v851_v22 = vsel %vm830_vm1, %v6620_v16, 0.0  ;;  %v6635_v23 = vld [vmem:[%s6274_s23 + $0x68] sm:$0xff]  ;;  %v6638_v24 = vld [vmem:[%s6274_s23 + $0x78] sm:$0xff]  ;;  %v848_v25 = vadd.f32 %v847_v20, %v6625_v19  ;;  %v6643_v27 = vld [vmem:[%s6274_s23 + $0x60] sm:$0xff] }
  0x86   : > { %841 = vadd.xlane.f32.xlu1 %v840_v13  ;;  %v852_v26 = vadd.f32 %v851_v22, %v6630_v21  ;;  %v855_v28 = vsel %vm830_vm1, %v6635_v23, 0.0  ;;  %v6648_v29 = vld [vmem:[%s6274_s23 + $0x70] sm:$0xff]  ;;  %v859_v30 = vsel %vm830_vm1, %v6638_v24, 0.0  ;;  %v6653_v31 = vld [vmem:[%s6274_s23 + $0x88] sm:$0xff]  ;;  %v6656_v32 = vld [vmem:[%s6274_s23 + $0x98] sm:$0xff] }
  0x87   : > { %v856_v33 = vadd.f32 %v855_v28, %v6643_v27  ;;  %v860_v34 = vadd.f32 %v859_v30, %v6648_v29  ;;  %v6661_v35 = vld [vmem:[%s6274_s23 + $0x80] sm:$0xff]  ;;  %v863_v36 = vsel %vm830_vm1, %v6653_v31, 0.0  ;;  %v6666_v37 = vld [vmem:[%s6274_s23 + $0x90] sm:$0xff]  ;;  %v867_v38 = vsel %vm830_vm1, %v6656_v32, 0.0  ;;  %v6671_v39 = vld [vmem:[%s6274_s23 + $0xa8] sm:$0xff] }
  0x88   : > { %v6674_v40 = vld [vmem:[%s6274_s23 + $0xb8] sm:$0xff]  ;;  %v864_v41 = vadd.f32 %v863_v36, %v6661_v35  ;;  %v868_v42 = vadd.f32 %v867_v38, %v6666_v37  ;;  %v6679_v43 = vld [vmem:[%s6274_s23 + $0xa0] sm:$0xff]  ;;  %v871_v44 = vsel %vm830_vm1, %v6671_v39, 0.0  ;;  %v6684_v45 = vld [vmem:[%s6274_s23 + $0xb0] sm:$0xff] }
  0x89   : > { %837 = vadd.xlane.f32.xlu0 %v836_v17  ;;  %v875_v46 = vsel %vm830_vm1, %v6674_v40, 0.0  ;;  %v6689_v47 = vld [vmem:[%s6274_s23 + $0xc8] sm:$0xff]  ;;  %v6692_v48 = vld [vmem:[%s6274_s23 + $0xd8] sm:$0xff]  ;;  %v872_v49 = vadd.f32 %v871_v44, %v6679_v43  ;;  %v6697_v51 = vld [vmem:[%s6274_s23 + $0xc0] sm:$0xff] }
  0x8a   : > { %845 = vadd.xlane.f32.xlu1 %v844_v18  ;;  %v876_v50 = vadd.f32 %v875_v46, %v6684_v45  ;;  %v879_v52 = vsel %vm830_vm1, %v6689_v47, 0.0  ;;  %v6702_v53 = vld [vmem:[%s6274_s23 + $0xd0] sm:$0xff]  ;;  %v883_v54 = vsel %vm830_vm1, %v6692_v48, 0.0  ;;  %v6707_v55 = vld [vmem:[%s6274_s23 + $0xe8] sm:$0xff]  ;;  %v6710_v56 = vld [vmem:[%s6274_s23 + $0xf8] sm:$0xff] }
  0x8b   : > { %v880_v57 = vadd.f32 %v879_v52, %v6697_v51  ;;  %v884_v58 = vadd.f32 %v883_v54, %v6702_v53  ;;  %v6715_v59 = vld [vmem:[%s6274_s23 + $0xe0] sm:$0xff]  ;;  %v887_v60 = vsel %vm830_vm1, %v6707_v55, 0.0  ;;  %v6720_v61 = vld [vmem:[%s6274_s23 + $0xf0] sm:$0xff]  ;;  %v891_v62 = vsel %vm830_vm1, %v6710_v56, 0.0  ;;  %v6725_v63 = vld [vmem:[%s6274_s23 + $0x108] sm:$0xff] }
  0x8c   : > { %v6728_v0 = vld [vmem:[%s6274_s23 + $0x118] sm:$0xff]  ;;  %v888_v4 = vadd.f32 %v887_v60, %v6715_v59  ;;  %v892_v8 = vadd.f32 %v891_v62, %v6720_v61  ;;  %v6733_v9 = vld [vmem:[%s6274_s23 + $0x100] sm:$0xff]  ;;  %v895_v10 = vsel %vm830_vm1, %v6725_v63, 0.0  ;;  %v6738_v13 = vld [vmem:[%s6274_s23 + $0x110] sm:$0xff] }
  0x8d   : > { %849 = vadd.xlane.f32.xlu0 %v848_v25  ;;  %v899_v14 = vsel %vm830_vm1, %v6728_v0, 0.0  ;;  %v6743_v17 = vld [vmem:[%s6274_s23 + $0x128] sm:$0xff]  ;;  %v6746_v18 = vld [vmem:[%s6274_s23 + $0x138] sm:$0xff]  ;;  %v896_v20 = vadd.f32 %v895_v10, %v6733_v9  ;;  %v6751_v25 = vld [vmem:[%s6274_s23 + $0x120] sm:$0xff] }
  0x8e   : > { %853 = vadd.xlane.f32.xlu1 %v852_v26  ;;  %v900_v22 = vadd.f32 %v899_v14, %v6738_v13  ;;  %v903_v26 = vsel %vm830_vm1, %v6743_v17, 0.0  ;;  %v6756_v28 = vld [vmem:[%s6274_s23 + $0x130] sm:$0xff]  ;;  %v907_v30 = vsel %vm830_vm1, %v6746_v18, 0.0 }
  0x8f   : > { %v904_v36 = vadd.f32 %v903_v26, %v6751_v25  ;;  %v908_v38 = vadd.f32 %v907_v30, %v6756_v28  ;;  %v6774_v44 = vld [vmem:[%s6274_s23 + $0x150] sm:$0xff] }
  0x90   : > { %v6792_v60 = vld [vmem:[%s6274_s23 + $0x170] sm:$0xff] }
  0x91   : > { %857 = vadd.xlane.f32.xlu0 %v856_v33  ;;  %v6761_v33 = vld [vmem:[%s6274_s23 + $0x148] sm:$0xff]  ;;  %10484 = vst [vmem:[#allocation6_spill] sm:$0xff] %v6792_v60  ;;  %v6810_v26 = vld [vmem:[%s6274_s23 + $0x190] sm:$0xff] }
  0x92   : > { %861 = vadd.xlane.f32.xlu1 %v860_v34  ;;  %v6764_v34 = vld [vmem:[%s6274_s23 + $0x158] sm:$0xff]  ;;  %10488 = vst [vmem:[#allocation10_spill] sm:$0xff] %v6810_v26 }
  0x93   : > { %v915_v46 = vsel %vm830_vm1, %v6764_v34, 0.0 }
  0x94   : > { %v916_v54 = vadd.f32 %v915_v46, %v6774_v44 }
  0x95   : > { %865 = vadd.xlane.f32.xlu0 %v864_v41  ;;  %v6769_v41 = vld [vmem:[%s6274_s23 + $0x140] sm:$0xff] }
  0x96   : > { %869 = vadd.xlane.f32.xlu1 %v868_v42  ;;  %v911_v42 = vsel %vm830_vm1, %v6761_v33, 0.0 }
  0x97   : > { %v912_v52 = vadd.f32 %v911_v42, %v6769_v41 }
  0x99   : > { %873 = vadd.xlane.f32.xlu0 %v872_v49  ;;  %v6779_v49 = vld [vmem:[%s6274_s23 + $0x168] sm:$0xff] }
  0x9a   : > { %877 = vadd.xlane.f32.xlu1 %v876_v50  ;;  %10481 = vst [vmem:[#allocation3_spill] sm:$0xff] %v6779_v49  ;;  %v6782_v50 = vld [vmem:[%s6274_s23 + $0x178] sm:$0xff] }
  0x9b   : > { %10482 = vst [vmem:[#allocation4_spill] sm:$0xff] %v6782_v50  ;;  %v923_v62 = vsel %vm830_vm1, %v6782_v50, 0.0  ;;  %v809_v50 = vld [vmem:[%s6274_s23 + $0x358] sm:$0xff] }
  0x9c   : > { %v924_v14 = vadd.f32 %v923_v62, %v6792_v60  ;;  %v822_v60 = vld [vmem:[%s6274_s23 + $0x3c0] sm:$0xff] }
  0x9d   : > { %881 = vadd.xlane.f32.xlu0 %v880_v57  ;;  %v6787_v57 = vld [vmem:[%s6274_s23 + $0x160] sm:$0xff] }
  0x9e   : > { %885 = vadd.xlane.f32.xlu1 %v884_v58  ;;  %10483 = vst [vmem:[#allocation5_spill] sm:$0xff] %v6787_v57  ;;  %v919_v58 = vsel %vm830_vm1, %v6779_v49, 0.0  ;;  %v826_v49 = vld [vmem:[%s6274_s23 + $0x3e0] sm:$0xff] }
  0x9f   : > { %v920_v10 = vadd.f32 %v919_v58, %v6787_v57  ;;  %v6828_v58 = vld [vmem:[%s6274_s23 + $0x1b0] sm:$0xff] }
  0xa0   : > { %10492 = vst [vmem:[#allocation14_spill] sm:$0xff] %v6828_v58 }
  0xa1   : > { %889 = vadd.xlane.f32.xlu0 %v888_v4  ;;  %v6797_v4 = vld [vmem:[%s6274_s23 + $0x188] sm:$0xff] }
  0xa2   : > { %893 = vadd.xlane.f32.xlu1 %v892_v8  ;;  %10485 = vst [vmem:[#allocation7_spill] sm:$0xff] %v6797_v4  ;;  %v6800_v8 = vld [vmem:[%s6274_s23 + $0x198] sm:$0xff] }
  0xa3   : > { %10486 = vst [vmem:[#allocation8_spill] sm:$0xff] %v6800_v8  ;;  %v931_v30 = vsel %vm830_vm1, %v6800_v8, 0.0  ;;  %v6833_v8 = vld [vmem:[%s6274_s23 + $0x1c8] sm:$0xff] }
  0xa4   : > { %v932_v46 = vadd.f32 %v931_v30, %v6810_v26  ;;  %10493 = vst [vmem:[#allocation15_spill] sm:$0xff] %v6833_v8  ;;  %v6841_v30 = vld [vmem:[%s6274_s23 + $0x1c0] sm:$0xff] }
  0xa5   : > { %897 = vadd.xlane.f32.xlu0 %v896_v20  ;;  %v6805_v20 = vld [vmem:[%s6274_s23 + $0x180] sm:$0xff]  ;;  %10495 = vst [vmem:[#allocation17_spill] sm:$0xff] %v6841_v30 }
  0xa6   : > { %901 = vadd.xlane.f32.xlu1 %v900_v22  ;;  %10487 = vst [vmem:[#allocation9_spill] sm:$0xff] %v6805_v20  ;;  %v927_v22 = vsel %vm830_vm1, %v6797_v4, 0.0  ;;  %v6851_v4 = vld [vmem:[%s6274_s23 + $0x1e8] sm:$0xff] }
  0xa7   : > { %v928_v42 = vadd.f32 %v927_v22, %v6805_v20  ;;  %10497 = vst [vmem:[#allocation19_spill] sm:$0xff] %v6851_v4  ;;  %v803_v20 = vld [vmem:[%s6274_s23 + $0x328] sm:$0xff] }
  0xa9   : > { %905 = vadd.xlane.f32.xlu0 %v904_v36  ;;  %v6815_v36 = vld [vmem:[%s6274_s23 + $0x1a8] sm:$0xff] }
  0xaa   : > { %909 = vadd.xlane.f32.xlu1 %v908_v38  ;;  %10489 = vst [vmem:[#allocation11_spill] sm:$0xff] %v6815_v36  ;;  %v6818_v38 = vld [vmem:[%s6274_s23 + $0x1b8] sm:$0xff] }
  0xab   : > { %10490 = vst [vmem:[#allocation12_spill] sm:$0xff] %v6818_v38  ;;  %v939_v62 = vsel %vm830_vm1, %v6818_v38, 0.0  ;;  %v6846_v38 = vld [vmem:[%s6274_s23 + $0x1d0] sm:$0xff] }
  0xac   : > { %v940_v22 = vadd.f32 %v939_v62, %v6828_v58  ;;  %10496 = vst [vmem:[#allocation18_spill] sm:$0xff] %v6846_v38  ;;  %v6859_v62 = vld [vmem:[%s6274_s23 + $0x1e0] sm:$0xff] }
  0xad   : > { %913 = vadd.xlane.f32.xlu0 %v912_v52  ;;  %v6823_v52 = vld [vmem:[%s6274_s23 + $0x1a0] sm:$0xff]  ;;  %10499 = vst [vmem:[#allocation21_spill] sm:$0xff] %v6859_v62 }
  0xae   : > { %917 = vadd.xlane.f32.xlu1 %v916_v54  ;;  %10491 = vst [vmem:[#allocation13_spill] sm:$0xff] %v6823_v52  ;;  %v935_v54 = vsel %vm830_vm1, %v6815_v36, 0.0  ;;  %v943_v36 = vsel %vm830_vm1, %v6833_v8, 0.0  ;;  %v951_v8 = vsel %vm830_vm1, %v6851_v4, 0.0 }
  0xb1   : > { %921 = vadd.xlane.f32.xlu0 %v920_v10  ;;  %v6836_v10 = vld [vmem:[%s6274_s23 + $0x1d8] sm:$0xff] }
  0xb2   : > { %925 = vadd.xlane.f32.xlu1 %v924_v14  ;;  %10494 = vst [vmem:[#allocation16_spill] sm:$0xff] %v6836_v10  ;;  %v936_v14 = vadd.f32 %v935_v54, %v6823_v52  ;;  %v947_v26 = vsel %vm830_vm1, %v6836_v10, 0.0  ;;  %v6864_v10 = vld [vmem:[%s6274_s23 + $0x1f0] sm:$0xff]  ;;  %v6869_v52 = vld [vmem:[%s6274_s23 + $0x208] sm:$0xff] }
  0xb3   : > { %v948_v54 = vadd.f32 %v947_v26, %v6846_v38  ;;  %10500 = vst [vmem:[#allocation22_spill] sm:$0xff] %v6864_v10  ;;  %10501 = vst [vmem:[#allocation23_spill] sm:$0xff] %v6869_v52  ;;  %v952_v26 = vadd.f32 %v951_v8, %v6859_v62  ;;  %v959_v4 = vsel %vm830_vm1, %v6869_v52, 0.0  ;;  %v6905_v62 = vld [vmem:[%s6274_s23 + $0x248] sm:$0xff] }
  0xb4   : > { %10509 = vst [vmem:[#allocation31_spill] sm:$0xff] %v6905_v62 }
  0xb5   : > { %929 = vadd.xlane.f32.xlu0 %v928_v42  ;;  %v6854_v42 = vld [vmem:[%s6274_s23 + $0x1f8] sm:$0xff] }
  0xb6   : > { %933 = vadd.xlane.f32.xlu1 %v932_v46  ;;  %10498 = vst [vmem:[#allocation20_spill] sm:$0xff] %v6854_v42  ;;  %v944_v46 = vadd.f32 %v943_v36, %v6841_v30  ;;  %v955_v58 = vsel %vm830_vm1, %v6854_v42, 0.0  ;;  %v6882_v42 = vld [vmem:[%s6274_s23 + $0x210] sm:$0xff]  ;;  %v6887_v30 = vld [vmem:[%s6274_s23 + $0x228] sm:$0xff] }
  0xb7   : > { %v956_v36 = vadd.f32 %v955_v58, %v6864_v10  ;;  %10504 = vst [vmem:[#allocation26_spill] sm:$0xff] %v6882_v42  ;;  %10505 = vst [vmem:[#allocation27_spill] sm:$0xff] %v6887_v30  ;;  %v967_v52 = vsel %vm830_vm1, %v6887_v30, 0.0  ;;  %v975_v30 = vsel %vm830_vm1, %v6905_v62, 0.0 }
  0xb9   : > { %937 = vadd.xlane.f32.xlu0 %v936_v14  ;;  %v6872_v14 = vld [vmem:[%s6274_s23 + $0x218] sm:$0xff] }
  0xba   : > { %941 = vadd.xlane.f32.xlu1 %v940_v22  ;;  %10502 = vst [vmem:[#allocation24_spill] sm:$0xff] %v6872_v14  ;;  %v6877_v22 = vld [vmem:[%s6274_s23 + $0x200] sm:$0xff]  ;;  %v963_v38 = vsel %vm830_vm1, %v6872_v14, 0.0  ;;  %v6900_v14 = vld [vmem:[%s6274_s23 + $0x230] sm:$0xff] }
  0xbb   : > { %10503 = vst [vmem:[#allocation25_spill] sm:$0xff] %v6877_v22  ;;  %v960_v8 = vadd.f32 %v959_v4, %v6877_v22  ;;  %v964_v58 = vadd.f32 %v963_v38, %v6882_v42  ;;  %10508 = vst [vmem:[#allocation30_spill] sm:$0xff] %v6900_v14  ;;  %v6923_v22 = vld [vmem:[%s6274_s23 + $0x268] sm:$0xff] }
  0xbc   : > { %10513 = vst [vmem:[#allocation35_spill] sm:$0xff] %v6923_v22  ;;  %v983_v62 = vsel %vm830_vm1, %v6923_v22, 0.0 }
  0xbd   : > { %945 = vadd.xlane.f32.xlu0 %v944_v46  ;;  %v6890_v46 = vld [vmem:[%s6274_s23 + $0x238] sm:$0xff] }
  0xbe   : > { %949 = vadd.xlane.f32.xlu1 %v948_v54  ;;  %10506 = vst [vmem:[#allocation28_spill] sm:$0xff] %v6890_v46  ;;  %v6895_v54 = vld [vmem:[%s6274_s23 + $0x220] sm:$0xff]  ;;  %v971_v10 = vsel %vm830_vm1, %v6890_v46, 0.0  ;;  %v6918_v46 = vld [vmem:[%s6274_s23 + $0x250] sm:$0xff] }
  0xbf   : > { %10507 = vst [vmem:[#allocation29_spill] sm:$0xff] %v6895_v54  ;;  %v968_v4 = vadd.f32 %v967_v52, %v6895_v54  ;;  %v972_v38 = vadd.f32 %v971_v10, %v6900_v14  ;;  %10512 = vst [vmem:[#allocation34_spill] sm:$0xff] %v6918_v46  ;;  %v6941_v54 = vld [vmem:[%s6274_s23 + $0x288] sm:$0xff] }
  0xc0   : > { %10517 = vst [vmem:[#allocation39_spill] sm:$0xff] %v6941_v54  ;;  %v991_v22 = vsel %vm830_vm1, %v6941_v54, 0.0 }
  0xc1   : > { %953 = vadd.xlane.f32.xlu0 %v952_v26  ;;  %v6908_v26 = vld [vmem:[%s6274_s23 + $0x258] sm:$0xff] }
  0xc2   : > { %957 = vadd.xlane.f32.xlu1 %v956_v36  ;;  %10510 = vst [vmem:[#allocation32_spill] sm:$0xff] %v6908_v26  ;;  %v6913_v36 = vld [vmem:[%s6274_s23 + $0x240] sm:$0xff]  ;;  %v979_v42 = vsel %vm830_vm1, %v6908_v26, 0.0  ;;  %v6936_v26 = vld [vmem:[%s6274_s23 + $0x270] sm:$0xff] }
  0xc3   : > { %10511 = vst [vmem:[#allocation33_spill] sm:$0xff] %v6913_v36  ;;  %v976_v52 = vadd.f32 %v975_v30, %v6913_v36  ;;  %v980_v10 = vadd.f32 %v979_v42, %v6918_v46  ;;  %10516 = vst [vmem:[#allocation38_spill] sm:$0xff] %v6936_v26  ;;  %v6959_v36 = vld [vmem:[%s6274_s23 + $0x2a8] sm:$0xff] }
  0xc4   : > { %10521 = vst [vmem:[#allocation43_spill] sm:$0xff] %v6959_v36  ;;  %v999_v54 = vsel %vm830_vm1, %v6959_v36, 0.0 }
  0xc5   : > { %961 = vadd.xlane.f32.xlu0 %v960_v8  ;;  %v6926_v8 = vld [vmem:[%s6274_s23 + $0x278] sm:$0xff] }
  0xc6   : > { %965 = vadd.xlane.f32.xlu1 %v964_v58  ;;  %10514 = vst [vmem:[#allocation36_spill] sm:$0xff] %v6926_v8  ;;  %v6931_v58 = vld [vmem:[%s6274_s23 + $0x260] sm:$0xff]  ;;  %v987_v14 = vsel %vm830_vm1, %v6926_v8, 0.0  ;;  %v6954_v8 = vld [vmem:[%s6274_s23 + $0x290] sm:$0xff] }
  0xc7   : > { %10515 = vst [vmem:[#allocation37_spill] sm:$0xff] %v6931_v58  ;;  %v984_v30 = vadd.f32 %v983_v62, %v6931_v58  ;;  %v988_v42 = vadd.f32 %v987_v14, %v6936_v26  ;;  %10520 = vst [vmem:[#allocation42_spill] sm:$0xff] %v6954_v8  ;;  %v6977_v58 = vld [vmem:[%s6274_s23 + $0x2c8] sm:$0xff] }
  0xc8   : > { %10525 = vst [vmem:[#allocation47_spill] sm:$0xff] %v6977_v58  ;;  %v1007_v36 = vsel %vm830_vm1, %v6977_v58, 0.0 }
  0xc9   : > { %969 = vadd.xlane.f32.xlu0 %v968_v4  ;;  %v6944_v4 = vld [vmem:[%s6274_s23 + $0x298] sm:$0xff] }
  0xca   : > { %973 = vadd.xlane.f32.xlu1 %v972_v38  ;;  %10518 = vst [vmem:[#allocation40_spill] sm:$0xff] %v6944_v4  ;;  %v6949_v38 = vld [vmem:[%s6274_s23 + $0x280] sm:$0xff]  ;;  %v995_v46 = vsel %vm830_vm1, %v6944_v4, 0.0  ;;  %v6972_v4 = vld [vmem:[%s6274_s23 + $0x2b0] sm:$0xff] }
  0xcb   : > { %10519 = vst [vmem:[#allocation41_spill] sm:$0xff] %v6949_v38  ;;  %v992_v62 = vadd.f32 %v991_v22, %v6949_v38  ;;  %v996_v14 = vadd.f32 %v995_v46, %v6954_v8  ;;  %10524 = vst [vmem:[#allocation46_spill] sm:$0xff] %v6972_v4  ;;  %v6995_v38 = vld [vmem:[%s6274_s23 + $0x2e8] sm:$0xff] }
  0xcc   : > { %10529 = vst [vmem:[#allocation51_spill] sm:$0xff] %v6995_v38  ;;  %v1015_v58 = vsel %vm830_vm1, %v6995_v38, 0.0  ;;  %v800_v38 = vld [vmem:[%s6274_s23 + $0x310] sm:$0xff] }
  0xcd   : > { %977 = vadd.xlane.f32.xlu0 %v976_v52  ;;  %v6962_v52 = vld [vmem:[%s6274_s23 + $0x2b8] sm:$0xff] }
  0xce   : > { %981 = vadd.xlane.f32.xlu1 %v980_v10  ;;  %10522 = vst [vmem:[#allocation44_spill] sm:$0xff] %v6962_v52  ;;  %v6967_v10 = vld [vmem:[%s6274_s23 + $0x2a0] sm:$0xff]  ;;  %v1003_v26 = vsel %vm830_vm1, %v6962_v52, 0.0  ;;  %v6990_v52 = vld [vmem:[%s6274_s23 + $0x2d0] sm:$0xff] }
  0xcf   : > { %10523 = vst [vmem:[#allocation45_spill] sm:$0xff] %v6967_v10  ;;  %v1000_v22 = vadd.f32 %v999_v54, %v6967_v10  ;;  %v1004_v46 = vadd.f32 %v1003_v26, %v6972_v4  ;;  %10528 = vst [vmem:[#allocation50_spill] sm:$0xff] %v6990_v52  ;;  %v7006_v4 = vld [vmem:[%s6274_s23 + $0x2f0] sm:$0xff]  ;;  %v799_v10 = vld [vmem:[%s6274_s23 + $0x308] sm:$0xff] }
  0xd0   : > { %10531 = vst [vmem:[#allocation53_spill] sm:$0xff] %v7006_v4 }
  0xd1   : > { %985 = vadd.xlane.f32.xlu0 %v984_v30  ;;  %v6980_v30 = vld [vmem:[%s6274_s23 + $0x2d8] sm:$0xff] }
  0xd2   : > { %989 = vadd.xlane.f32.xlu1 %v988_v42  ;;  %10526 = vst [vmem:[#allocation48_spill] sm:$0xff] %v6980_v30  ;;  %v6985_v42 = vld [vmem:[%s6274_s23 + $0x2c0] sm:$0xff]  ;;  %v1011_v8 = vsel %vm830_vm1, %v6980_v30, 0.0 }
  0xd3   : > { %10527 = vst [vmem:[#allocation49_spill] sm:$0xff] %v6985_v42  ;;  %v1008_v54 = vadd.f32 %v1007_v36, %v6985_v42  ;;  %v1012_v26 = vadd.f32 %v1011_v8, %v6990_v52  ;;  %v1023_v52 = vsel %vm830_vm1, %v799_v10, 0.0  ;;  %v807_v10 = vld [vmem:[%s6274_s23 + $0x348] sm:$0xff] }
  0xd5   : > { %993 = vadd.xlane.f32.xlu0 %v992_v62  ;;  %v797_v62 = vld [vmem:[%s6274_s23 + $0x2f8] sm:$0xff] }
  0xd6   : > { %997 = vadd.xlane.f32.xlu1 %v996_v14  ;;  %v7001_v14 = vld [vmem:[%s6274_s23 + $0x2e0] sm:$0xff]  ;;  %v1019_v30 = vsel %vm830_vm1, %v797_v62, 0.0  ;;  %v805_v62 = vld [vmem:[%s6274_s23 + $0x338] sm:$0xff] }
  0xd7   : > { %10530 = vst [vmem:[#allocation52_spill] sm:$0xff] %v7001_v14  ;;  %v1016_v36 = vadd.f32 %v1015_v58, %v7001_v14  ;;  %v1020_v8 = vadd.f32 %v1019_v30, %v7006_v4  ;;  %v1031_v30 = vsel %vm830_vm1, %v803_v20, 0.0  ;;  %v804_v4 = vld [vmem:[%s6274_s23 + $0x330] sm:$0xff]  ;;  %v1035_v14 = vsel %vm830_vm1, %v805_v62, 0.0  ;;  %v811_v20 = vld [vmem:[%s6274_s23 + $0x368] sm:$0xff] }
  0xd9   : > { %1001 = vadd.xlane.f32.xlu0 %v1000_v22  ;;  %v801_v22 = vld [vmem:[%s6274_s23 + $0x318] sm:$0xff] }
  0xda   : > { %1005 = vadd.xlane.f32.xlu1 %v1004_v46  ;;  %v798_v46 = vld [vmem:[%s6274_s23 + $0x300] sm:$0xff]  ;;  %v1027_v42 = vsel %vm830_vm1, %v801_v22, 0.0 }
  0xdb   : > { %v1028_v58 = vadd.f32 %v1027_v42, %v800_v38  ;;  %v1039_v38 = vsel %vm830_vm1, %v807_v10, 0.0  ;;  %v808_v42 = vld [vmem:[%s6274_s23 + $0x350] sm:$0xff]  ;;  %v817_v10 = vld [vmem:[%s6274_s23 + $0x398] sm:$0xff] }
  0xdd   : > { %1009 = vadd.xlane.f32.xlu0 %v1008_v54  ;;  %v1024_v54 = vadd.f32 %v1023_v52, %v798_v46  ;;  %v806_v52 = vld [vmem:[%s6274_s23 + $0x340] sm:$0xff]  ;;  %v813_v46 = vld [vmem:[%s6274_s23 + $0x378] sm:$0xff] }
  0xde   : > { %1013 = vadd.xlane.f32.xlu1 %v1012_v26  ;;  %v802_v26 = vld [vmem:[%s6274_s23 + $0x320] sm:$0xff]  ;;  %v1040_v62 = vadd.f32 %v1039_v38, %v806_v52  ;;  %v816_v38 = vld [vmem:[%s6274_s23 + $0x390] sm:$0xff] }
  0xdf   : > { %v1032_v22 = vadd.f32 %v1031_v30, %v802_v26  ;;  %v1051_v26 = vsel %vm830_vm1, %v813_v46, 0.0  ;;  %v815_v30 = vld [vmem:[%s6274_s23 + $0x388] sm:$0xff] }
  0xe0   : > { %v1055_v52 = vsel %vm830_vm1, %v815_v30, 0.0  ;;  %v825_v30 = vld [vmem:[%s6274_s23 + $0x3d8] sm:$0xff] }
  0xe1   : > { %1017 = vadd.xlane.f32.xlu0 %v1016_v36  ;;  %v1036_v36 = vadd.f32 %v1035_v14, %v804_v4  ;;  %v1047_v4 = vsel %vm830_vm1, %v811_v20, 0.0  ;;  %v812_v14 = vld [vmem:[%s6274_s23 + $0x370] sm:$0xff]  ;;  %v821_v20 = vld [vmem:[%s6274_s23 + $0x3b8] sm:$0xff] }
  0xe2   : > { %1021 = vadd.xlane.f32.xlu1 %v1020_v8  ;;  %v1043_v8 = vsel %vm830_vm1, %v809_v50, 0.0 }
  0xe5   : > { %1025 = vadd.xlane.f32.xlu0 %v1024_v54  ;;  %v1044_v54 = vadd.f32 %v1043_v8, %v808_v42  ;;  %v1059_v42 = vsel %vm830_vm1, %v817_v10, 0.0  ;;  %v819_v8 = vld [vmem:[%s6274_s23 + $0x3a8] sm:$0xff] }
  0xe6   : > { %1029 = vadd.xlane.f32.xlu1 %v1028_v58  ;;  %v810_v58 = vld [vmem:[%s6274_s23 + $0x360] sm:$0xff] }
  0xe7   : > { %v1048_v50 = vadd.f32 %v1047_v4, %v810_v58  ;;  %v1063_v58 = vsel %vm830_vm1, %v819_v8, 0.0  ;;  %v820_v4 = vld [vmem:[%s6274_s23 + $0x3b0] sm:$0xff] }
  0xe9   : > { %1033 = vadd.xlane.f32.xlu0 %v1032_v22  ;;  %v1052_v22 = vadd.f32 %v1051_v26, %v812_v14  ;;  %v1067_v14 = vsel %vm830_vm1, %v821_v20, 0.0  ;;  %v823_v26 = vld [vmem:[%s6274_s23 + $0x3c8] sm:$0xff] }
  0xea   : > { %1037 = vadd.xlane.f32.xlu1 %v1036_v36  ;;  %v814_v36 = vld [vmem:[%s6274_s23 + $0x380] sm:$0xff] }
  0xeb   : > { %v1056_v46 = vadd.f32 %v1055_v52, %v814_v36  ;;  %v824_v36 = vld [vmem:[%s6274_s23 + $0x3d0] sm:$0xff]  ;;  %v1075_v52 = vsel %vm830_vm1, %v825_v30, 0.0 }
  0xec   : > { %v1076_v20 = vadd.f32 %v1075_v52, %v824_v36 }
  0xed   : > { %1041 = vadd.xlane.f32.xlu0 %v1040_v62  ;;  %v1060_v62 = vadd.f32 %v1059_v42, %v816_v38  ;;  %v827_v38 = vld [vmem:[%s6274_s23 + $0x3e8] sm:$0xff]  ;;  %v829_v42 = vld [vmem:[%s6274_s23 + $0x3f8] sm:$0xff] }
  0xee   : > { %1045 = vadd.xlane.f32.xlu1 %v1044_v54  ;;  %v818_v54 = vld [vmem:[%s6274_s23 + $0x3a0] sm:$0xff]  ;;  %v1079_v57 = vsel %vm830_vm1, %v827_v38, 0.0 }
  0xef   : > { %v1064_v10 = vadd.f32 %v1063_v58, %v818_v54  ;;  %v1083_v54 = vsel %vm830_vm1, %v829_v42, 0.0 }
  0xf1   : > { %1049 = vadd.xlane.f32.xlu0 %v1048_v50  ;;  %v1068_v50 = vadd.f32 %v1067_v14, %v820_v4 }
  0xf2   : > { %1053 = vadd.xlane.f32.xlu1 %v1052_v22  ;;  %v1071_v22 = vsel %vm830_vm1, %v823_v26, 0.0 }
  0xf3   : > { %v1072_v8 = vadd.f32 %v1071_v22, %v822_v60 }
  0xf5   : > { %1057 = vadd.xlane.f32.xlu0 %v1056_v46  ;;  %v828_v46 = vld [vmem:[%s6274_s23 + $0x3f0] sm:$0xff] }
  0xf6   : > { %1061 = vadd.xlane.f32.xlu1 %v1060_v62  ;;  %v1080_v62 = vadd.f32 %v1079_v57, %v826_v49  ;;  %v1084_v58 = vadd.f32 %v1083_v54, %v828_v46 }
  0xf9   : > { %1065 = vadd.xlane.f32.xlu0 %v1064_v10 }
  0xfa   : > { %1069 = vadd.xlane.f32.xlu1 %v1068_v50 }
  0xfd   : > { %1073 = vadd.xlane.f32.xlu0 %v1072_v8 }
  0xfe   : > { %1077 = vadd.xlane.f32.xlu1 %v1076_v20 }
 0x101   : > { %1081 = vadd.xlane.f32.xlu0 %v1080_v62 }
 0x102   : > { %1085 = vadd.xlane.f32.xlu1 %v1084_v58 }
 0x112   : > { %v834_v4 = vpop.xlane.xlu0 %833 }
 0x113   : > { %v1087_v14 = vmul.f32 0.0051020407, %v834_v4  ;;  %v842_v26 = vpop.xlane.xlu1 %841 }
 0x114   : > { %v1089_v30 = vmul.f32 0.0051020407, %v842_v26 }
 0x115   : > { %v7060_v60 = vsub.f32 %v6583_v1, %v1087_v14  ;;  %v7063_v10 = vsub.f32 %v6586_v2, %v1087_v14 }
 0x116   : > { %v7066_v50 = vsub.f32 %v6589_v3, %v1089_v30  ;;  %v7069_v22 = vsub.f32 %v6594_v5, %v1089_v30  ;;  %v838_v49 = vpop.xlane.xlu0 %837 }
 0x117   : > { %v1088_v57 = vmul.f32 0.0051020407, %v838_v49  ;;  %v846_v36 = vpop.xlane.xlu1 %845  ;;  %v1279_v52 = vmul.f32 %v7060_v60, %v7060_v60  ;;  %v1280_v38 = vmul.f32 %v7063_v10, %v7063_v10 }
 0x118   : > { %v1090_v1 = vmul.f32 0.0051020407, %v846_v36  ;;  %v1283_v2 = vmul.f32 %v7066_v50, %v7066_v50  ;;  %v1284_v3 = vmul.f32 %v7069_v22, %v7069_v22 }
 0x119   : > { %v7080_v42 = vsub.f32 %v6597_v6, %v1088_v57  ;;  %v7083_v5 = vsub.f32 %v6600_v7, %v1088_v57  ;;  %v1407_v8 = vsel %vm830_vm1, %v1280_v38, 0.0 }
 0x11a   : > { %v7087_v20 = vsub.f32 %v6608_v11, %v1090_v1  ;;  %v7090_v46 = vsub.f32 %v6611_v12, %v1090_v1  ;;  %v850_v54 = vpop.xlane.xlu0 %849  ;;  %v1408_v62 = vadd.f32 %v1407_v8, %v1279_v52  ;;  %v1415_v58 = vsel %vm830_vm1, %v1284_v3, 0.0 }
 0x11b   : > { %v1091_v4 = vmul.f32 0.0051020407, %v850_v54  ;;  %v854_v14 = vpop.xlane.xlu1 %853  ;;  %v1281_v6 = vmul.f32 %v7080_v42, %v7080_v42  ;;  %v1282_v7 = vmul.f32 %v7083_v5, %v7083_v5  ;;  %v1416_v30 = vadd.f32 %v1415_v58, %v1283_v2 }
 0x11c   : > { %1409 = vadd.xlane.f32.xlu0 %v1408_v62  ;;  %v1092_v26 = vmul.f32 0.0051020407, %v854_v14  ;;  %v1285_v11 = vmul.f32 %v7087_v20, %v7087_v20  ;;  %v1286_v12 = vmul.f32 %v7090_v46, %v7090_v46 }
 0x11d   : > { %v7102_v49 = vsub.f32 %v6625_v19, %v1091_v4  ;;  %v7105_v57 = vsub.f32 %v6617_v15, %v1091_v4  ;;  %v1411_v36 = vsel %vm830_vm1, %v1282_v7, 0.0 }
 0x11e   : > { %v7109_v52 = vsub.f32 %v6630_v21, %v1092_v26  ;;  %v7112_v38 = vsub.f32 %v6620_v16, %v1092_v26  ;;  %v858_v1 = vpop.xlane.xlu0 %857  ;;  %v1412_v2 = vadd.f32 %v1411_v36, %v1281_v6  ;;  %v1419_v3 = vsel %vm830_vm1, %v1286_v12, 0.0 }
 0x11f   : > { %10532 = vst [vmem:[#allocation54_spill] sm:$0xff] %v7102_v49  ;;  %10533 = vst [vmem:[#allocation55_spill] sm:$0xff] %v7105_v57  ;;  %v1093_v8 = vmul.f32 0.0051020407, %v858_v1  ;;  %v862_v54 = vpop.xlane.xlu1 %861  ;;  %v1287_v19 = vmul.f32 %v7102_v49, %v7102_v49  ;;  %v1288_v15 = vmul.f32 %v7105_v57, %v7105_v57  ;;  %v1420_v21 = vadd.f32 %v1419_v3, %v1285_v11 }
 0x120   : > { %10534 = vst [vmem:[#allocation56_spill] sm:$0xff] %v7109_v52  ;;  %10535 = vst [vmem:[#allocation57_spill] sm:$0xff] %v7112_v38  ;;  %1417 = vadd.xlane.f32.xlu0 %v1416_v30  ;;  %1413 = vadd.xlane.f32.xlu1 %v1412_v2  ;;  %v1094_v62 = vmul.f32 0.0051020407, %v862_v54  ;;  %v1289_v16 = vmul.f32 %v7109_v52, %v7109_v52  ;;  %v1290_v58 = vmul.f32 %v7112_v38, %v7112_v38  ;;  %v2437_v52 = vld [vmem:[%s6289_s13 + $0x30] sm:$0xff] }
 0x121   : > { %v7124_v4 = vsub.f32 %v6643_v27, %v1093_v8  ;;  %v7127_v14 = vsub.f32 %v6635_v23, %v1093_v8  ;;  %v1423_v6 = vsel %vm830_vm1, %v1288_v15, 0.0 }
 0x122   : > { %v7131_v7 = vsub.f32 %v6648_v29, %v1094_v62  ;;  %v7134_v26 = vsub.f32 %v6638_v24, %v1094_v62  ;;  %v866_v30 = vpop.xlane.xlu0 %865  ;;  %v1424_v11 = vadd.f32 %v1423_v6, %v1287_v19  ;;  %v1427_v12 = vsel %vm830_vm1, %v1290_v58, 0.0 }
 0x123   : > { %10536 = vst [vmem:[#allocation58_spill] sm:$0xff] %v7124_v4  ;;  %10537 = vst [vmem:[#allocation59_spill] sm:$0xff] %v7127_v14  ;;  %v1095_v36 = vmul.f32 0.0051020407, %v866_v30  ;;  %v870_v1 = vpop.xlane.xlu1 %869  ;;  %v1291_v27 = vmul.f32 %v7124_v4, %v7124_v4  ;;  %v1292_v23 = vmul.f32 %v7127_v14, %v7127_v14  ;;  %v1428_v29 = vadd.f32 %v1427_v12, %v1289_v16 }
 0x124   : > { %10538 = vst [vmem:[#allocation60_spill] sm:$0xff] %v7131_v7  ;;  %10539 = vst [vmem:[#allocation61_spill] sm:$0xff] %v7134_v26  ;;  %1421 = vadd.xlane.f32.xlu1 %v1420_v21  ;;  %1425 = vadd.xlane.f32.xlu0 %v1424_v11  ;;  %v1096_v2 = vmul.f32 0.0051020407, %v870_v1  ;;  %v1293_v24 = vmul.f32 %v7131_v7, %v7131_v7  ;;  %v1294_v3 = vmul.f32 %v7134_v26, %v7134_v26 }
 0x125   : > { %v7146_v8 = vsub.f32 %v6661_v35, %v1095_v36  ;;  %v7149_v54 = vsub.f32 %v6653_v31, %v1095_v36  ;;  %v1431_v19 = vsel %vm830_vm1, %v1292_v23, 0.0 }
 0x126   : > { %v7153_v15 = vsub.f32 %v6666_v37, %v1096_v2  ;;  %v7156_v62 = vsub.f32 %v6656_v32, %v1096_v2  ;;  %v874_v21 = vpop.xlane.xlu0 %873  ;;  %v1432_v16 = vadd.f32 %v1431_v19, %v1291_v27  ;;  %v1435_v58 = vsel %vm830_vm1, %v1294_v3, 0.0 }
 0x127   : > { %10540 = vst [vmem:[#allocation62_spill] sm:$0xff] %v7146_v8  ;;  %10541 = vst [vmem:[#allocation63_spill] sm:$0xff] %v7149_v54  ;;  %v1097_v6 = vmul.f32 0.0051020407, %v874_v21  ;;  %v878_v30 = vpop.xlane.xlu1 %877  ;;  %v1295_v35 = vmul.f32 %v7146_v8, %v7146_v8  ;;  %v1296_v31 = vmul.f32 %v7149_v54, %v7149_v54  ;;  %v1436_v37 = vadd.f32 %v1435_v58, %v1293_v24 }
 0x128   : > { %10542 = vst [vmem:[#allocation64_spill] sm:$0xff] %v7153_v15  ;;  %10543 = vst [vmem:[#allocation65_spill] sm:$0xff] %v7156_v62  ;;  %1429 = vadd.xlane.f32.xlu1 %v1428_v29  ;;  %1433 = vadd.xlane.f32.xlu0 %v1432_v16  ;;  %v1098_v11 = vmul.f32 0.0051020407, %v878_v30  ;;  %v1297_v32 = vmul.f32 %v7153_v15, %v7153_v15  ;;  %v1298_v12 = vmul.f32 %v7156_v62, %v7156_v62 }
 0x129   : > { %v7168_v36 = vsub.f32 %v6679_v43, %v1097_v6  ;;  %v7171_v1 = vsub.f32 %v6671_v39, %v1097_v6  ;;  %v1439_v27 = vsel %vm830_vm1, %v1296_v31, 0.0 }
 0x12a   : > { %v7175_v23 = vsub.f32 %v6684_v45, %v1098_v11  ;;  %v7178_v2 = vsub.f32 %v6674_v40, %v1098_v11  ;;  %v882_v29 = vpop.xlane.xlu0 %881  ;;  %v1440_v24 = vadd.f32 %v1439_v27, %v1295_v35  ;;  %v1443_v3 = vsel %vm830_vm1, %v1298_v12, 0.0 }
 0x12b   : > { %10544 = vst [vmem:[#allocation66_spill] sm:$0xff] %v7168_v36  ;;  %10545 = vst [vmem:[#allocation67_spill] sm:$0xff] %v7171_v1  ;;  %v1099_v19 = vmul.f32 0.0051020407, %v882_v29  ;;  %v886_v21 = vpop.xlane.xlu1 %885  ;;  %v1299_v43 = vmul.f32 %v7168_v36, %v7168_v36  ;;  %v1300_v39 = vmul.f32 %v7171_v1, %v7171_v1  ;;  %v1444_v45 = vadd.f32 %v1443_v3, %v1297_v32 }
 0x12c   : > { %10546 = vst [vmem:[#allocation68_spill] sm:$0xff] %v7175_v23  ;;  %10547 = vst [vmem:[#allocation69_spill] sm:$0xff] %v7178_v2  ;;  %1437 = vadd.xlane.f32.xlu1 %v1436_v37  ;;  %1441 = vadd.xlane.f32.xlu0 %v1440_v24  ;;  %v1100_v16 = vmul.f32 0.0051020407, %v886_v21  ;;  %v1301_v40 = vmul.f32 %v7175_v23, %v7175_v23  ;;  %v1302_v58 = vmul.f32 %v7178_v2, %v7178_v2 }
 0x12d   : > { %v7190_v6 = vsub.f32 %v6697_v51, %v1099_v19  ;;  %v7193_v30 = vsub.f32 %v6689_v47, %v1099_v19  ;;  %v1447_v35 = vsel %vm830_vm1, %v1300_v39, 0.0 }
 0x12e   : > { %v7197_v31 = vsub.f32 %v6702_v53, %v1100_v16  ;;  %v7200_v11 = vsub.f32 %v6692_v48, %v1100_v16  ;;  %v890_v37 = vpop.xlane.xlu0 %889  ;;  %v1448_v32 = vadd.f32 %v1447_v35, %v1299_v43  ;;  %v1451_v12 = vsel %vm830_vm1, %v1302_v58, 0.0 }
 0x12f   : > { %10548 = vst [vmem:[#allocation70_spill] sm:$0xff] %v7190_v6  ;;  %10549 = vst [vmem:[#allocation71_spill] sm:$0xff] %v7193_v30  ;;  %v1101_v27 = vmul.f32 0.0051020407, %v890_v37  ;;  %v894_v29 = vpop.xlane.xlu1 %893  ;;  %v1303_v51 = vmul.f32 %v7190_v6, %v7190_v6  ;;  %v1304_v47 = vmul.f32 %v7193_v30, %v7193_v30  ;;  %v1452_v53 = vadd.f32 %v1451_v12, %v1301_v40  ;;  %v10647_v6 = vld [vmem:[#allocation44_spill] sm:$0xff] }
 0x130   : > { %10550 = vst [vmem:[#allocation72_spill] sm:$0xff] %v7197_v31  ;;  %10551 = vst [vmem:[#allocation73_spill] sm:$0xff] %v7200_v11  ;;  %1445 = vadd.xlane.f32.xlu1 %v1444_v45  ;;  %1449 = vadd.xlane.f32.xlu0 %v1448_v32  ;;  %v1102_v24 = vmul.f32 0.0051020407, %v894_v29  ;;  %v1305_v48 = vmul.f32 %v7197_v31, %v7197_v31  ;;  %v1306_v3 = vmul.f32 %v7200_v11, %v7200_v11 }
 0x131   : > { %v7212_v19 = vsub.f32 %v6715_v59, %v1101_v27  ;;  %v7215_v21 = vsub.f32 %v6707_v55, %v1101_v27  ;;  %v1455_v43 = vsel %vm830_vm1, %v1304_v47, 0.0  ;;  %v5929_v47 = vmov 0  }
 0x132   : > { %v7219_v39 = vsub.f32 %v6720_v61, %v1102_v24  ;;  %v7222_v16 = vsub.f32 %v6710_v56, %v1102_v24  ;;  %v898_v45 = vpop.xlane.xlu0 %897  ;;  %v1456_v40 = vadd.f32 %v1455_v43, %v1303_v51  ;;  %v1459_v58 = vsel %vm830_vm1, %v1306_v3, 0.0  ;;  %5676 = vset.pattern.permute.xlu0 %v5929_v47  ;;  %5675 = vset.pattern.permute.xlu1 %v5929_v47 }
 0x133   : > { %10552 = vst [vmem:[#allocation74_spill] sm:$0xff] %v7212_v19  ;;  %10553 = vst [vmem:[#allocation75_spill] sm:$0xff] %v7215_v21  ;;  %v1103_v35 = vmul.f32 0.0051020407, %v898_v45  ;;  %v902_v37 = vpop.xlane.xlu1 %901  ;;  %v1460_v32 = vadd.f32 %v1459_v58, %v1305_v48  ;;  %v1307_v59 = vmul.f32 %v7212_v19, %v7212_v19  ;;  %v1308_v55 = vmul.f32 %v7215_v21, %v7215_v21 }
 0x134   : > { %10554 = vst [vmem:[#allocation76_spill] sm:$0xff] %v7219_v39  ;;  %10555 = vst [vmem:[#allocation77_spill] sm:$0xff] %v7222_v16  ;;  %1453 = vadd.xlane.f32.xlu1 %v1452_v53  ;;  %1457 = vadd.xlane.f32.xlu0 %v1456_v40  ;;  %v1104_v61 = vmul.f32 0.0051020407, %v902_v37  ;;  %v1309_v56 = vmul.f32 %v7219_v39, %v7219_v39  ;;  %v1310_v12 = vmul.f32 %v7222_v16, %v7222_v16 }
 0x135   : > { %v7234_v27 = vsub.f32 %v6733_v9, %v1103_v35  ;;  %v7237_v29 = vsub.f32 %v6725_v63, %v1103_v35  ;;  %v1463_v51 = vsel %vm830_vm1, %v1308_v55, 0.0 }
 0x136   : > { %v7241_v24 = vsub.f32 %v6738_v13, %v1104_v61  ;;  %v7244_v53 = vsub.f32 %v6728_v0, %v1104_v61  ;;  %v906_v48 = vpop.xlane.xlu0 %905  ;;  %v1464_v3 = vadd.f32 %v1463_v51, %v1307_v59  ;;  %v1467_v43 = vsel %vm830_vm1, %v1310_v12, 0.0 }
 0x137   : > { %10556 = vst [vmem:[#allocation78_spill] sm:$0xff] %v7234_v27  ;;  %10557 = vst [vmem:[#allocation79_spill] sm:$0xff] %v7237_v29  ;;  %v1105_v9 = vmul.f32 0.0051020407, %v906_v48  ;;  %v910_v45 = vpop.xlane.xlu1 %909  ;;  %v1311_v63 = vmul.f32 %v7234_v27, %v7234_v27  ;;  %v1312_v40 = vmul.f32 %v7237_v29, %v7237_v29  ;;  %v1468_v13 = vadd.f32 %v1467_v43, %v1309_v56 }
 0x138   : > { %10558 = vst [vmem:[#allocation80_spill] sm:$0xff] %v7241_v24  ;;  %10559 = vst [vmem:[#allocation81_spill] sm:$0xff] %v7244_v53  ;;  %1461 = vadd.xlane.f32.xlu1 %v1460_v32  ;;  %1465 = vadd.xlane.f32.xlu0 %v1464_v3  ;;  %v1106_v58 = vmul.f32 0.0051020407, %v910_v45  ;;  %v1313_v0 = vmul.f32 %v7241_v24, %v7241_v24  ;;  %v1314_v35 = vmul.f32 %v7244_v53, %v7244_v53  ;;  %v10623_v53 = vld [vmem:[#allocation32_spill] sm:$0xff] }
 0x139   : > { %v7256_v37 = vsub.f32 %v6751_v25, %v1105_v9  ;;  %v7259_v59 = vsub.f32 %v6743_v17, %v1105_v9  ;;  %v1471_v55 = vsel %vm830_vm1, %v1312_v40, 0.0 }
 0x13a   : > { %v7263_v61 = vsub.f32 %v6756_v28, %v1106_v58  ;;  %v7266_v32 = vsub.f32 %v6746_v18, %v1106_v58  ;;  %v914_v56 = vpop.xlane.xlu0 %913  ;;  %v1472_v12 = vadd.f32 %v1471_v55, %v1311_v63  ;;  %v1475_v51 = vsel %vm830_vm1, %v1314_v35, 0.0 }
 0x13b   : > { %10560 = vst [vmem:[#allocation82_spill] sm:$0xff] %v7256_v37  ;;  %10561 = vst [vmem:[#allocation83_spill] sm:$0xff] %v7259_v59  ;;  %v1107_v47 = vmul.f32 0.0051020407, %v914_v56  ;;  %v918_v48 = vpop.xlane.xlu1 %917  ;;  %v1315_v25 = vmul.f32 %v7256_v37, %v7256_v37  ;;  %v1316_v17 = vmul.f32 %v7259_v59, %v7259_v59  ;;  %v1476_v28 = vadd.f32 %v1475_v51, %v1313_v0  ;;  %v10621_v59 = vld [vmem:[#allocation34_spill] sm:$0xff] }
 0x13c   : > { %10562 = vst [vmem:[#allocation84_spill] sm:$0xff] %v7263_v61  ;;  %10563 = vst [vmem:[#allocation85_spill] sm:$0xff] %v7266_v32  ;;  %1469 = vadd.xlane.f32.xlu1 %v1468_v13  ;;  %1473 = vadd.xlane.f32.xlu0 %v1472_v12  ;;  %v1108_v3 = vmul.f32 0.0051020407, %v918_v48  ;;  %v1317_v18 = vmul.f32 %v7263_v61, %v7263_v61  ;;  %v1318_v43 = vmul.f32 %v7266_v32, %v7266_v32 }
 0x13d   : > { %v7278_v9 = vsub.f32 %v6769_v41, %v1107_v47  ;;  %v7281_v45 = vsub.f32 %v6761_v33, %v1107_v47  ;;  %v1479_v63 = vsel %vm830_vm1, %v1316_v17, 0.0  ;;  %v10568_v47 = vld [vmem:[#allocation5_spill] sm:$0xff] }
 0x13e   : > { %v7285_v40 = vsub.f32 %v6774_v44, %v1108_v3  ;;  %v7288_v58 = vsub.f32 %v6764_v34, %v1108_v3  ;;  %v922_v13 = vpop.xlane.xlu0 %921  ;;  %v1480_v0 = vadd.f32 %v1479_v63, %v1315_v25  ;;  %v1483_v35 = vsel %vm830_vm1, %v1318_v43, 0.0  ;;  %v10570_v25 = vld [vmem:[#allocation3_spill] sm:$0xff]  ;;  %v10572_v43 = vld [vmem:[#allocation6_spill] sm:$0xff] }
 0x13f   : > { %10564 = vst [vmem:[#allocation86_spill] sm:$0xff] %v7278_v9  ;;  %10565 = vst [vmem:[#allocation87_spill] sm:$0xff] %v7281_v45  ;;  %v1109_v55 = vmul.f32 0.0051020407, %v922_v13  ;;  %v926_v56 = vpop.xlane.xlu1 %925  ;;  %v1319_v41 = vmul.f32 %v7278_v9, %v7278_v9  ;;  %v1320_v33 = vmul.f32 %v7281_v45, %v7281_v45  ;;  %v1484_v44 = vadd.f32 %v1483_v35, %v1317_v18 }
 0x140   : > { %10566 = vst [vmem:[#allocation88_spill] sm:$0xff] %v7285_v40  ;;  %10567 = vst [vmem:[#allocation89_spill] sm:$0xff] %v7288_v58  ;;  %1477 = vadd.xlane.f32.xlu1 %v1476_v28  ;;  %1481 = vadd.xlane.f32.xlu0 %v1480_v0  ;;  %v1110_v12 = vmul.f32 0.0051020407, %v926_v56  ;;  %v1321_v34 = vmul.f32 %v7285_v40, %v7285_v40  ;;  %v1322_v51 = vmul.f32 %v7288_v58, %v7288_v58  ;;  %v10574_v28 = vld [vmem:[#allocation4_spill] sm:$0xff]  ;;  %v10614_v40 = vld [vmem:[#allocation30_spill] sm:$0xff] }
 0x141   : > { %v7300_v48 = vsub.f32 %v10568_v47, %v1109_v55  ;;  %v7303_v17 = vsub.f32 %v10570_v25, %v1109_v55  ;;  %v1487_v3 = vsel %vm830_vm1, %v1320_v33, 0.0 }
 0x142   : > { %v7307_v63 = vsub.f32 %v10572_v43, %v1110_v12  ;;  %v7310_v13 = vsub.f32 %v10574_v28, %v1110_v12  ;;  %v930_v18 = vpop.xlane.xlu0 %929  ;;  %v1488_v0 = vadd.f32 %v1487_v3, %v1319_v41  ;;  %v1491_v35 = vsel %vm830_vm1, %v1322_v51, 0.0  ;;  %v10576_v3 = vld [vmem:[#allocation9_spill] sm:$0xff]  ;;  %v10578_v43 = vld [vmem:[#allocation7_spill] sm:$0xff] }
 0x143   : > { %10569 = vst [vmem:[#allocation5_spill] sm:$0xff] %v7300_v48  ;;  %10571 = vst [vmem:[#allocation3_spill] sm:$0xff] %v7303_v17  ;;  %v1111_v56 = vmul.f32 0.0051020407, %v930_v18  ;;  %v934_v58 = vpop.xlane.xlu1 %933  ;;  %v1323_v47 = vmul.f32 %v7300_v48, %v7300_v48  ;;  %v1324_v55 = vmul.f32 %v7303_v17, %v7303_v17  ;;  %v1492_v25 = vadd.f32 %v1491_v35, %v1321_v34  ;;  %v10580_v48 = vld [vmem:[#allocation10_spill] sm:$0xff] }
 0x144   : > { %10573 = vst [vmem:[#allocation6_spill] sm:$0xff] %v7307_v63  ;;  %10575 = vst [vmem:[#allocation4_spill] sm:$0xff] %v7310_v13  ;;  %1485 = vadd.xlane.f32.xlu1 %v1484_v44  ;;  %1489 = vadd.xlane.f32.xlu0 %v1488_v0  ;;  %v1112_v33 = vmul.f32 0.0051020407, %v934_v58  ;;  %v1325_v12 = vmul.f32 %v7307_v63, %v7307_v63  ;;  %v1326_v41 = vmul.f32 %v7310_v13, %v7310_v13  ;;  %v10582_v44 = vld [vmem:[#allocation8_spill] sm:$0xff] }
 0x145   : > { %v7322_v51 = vsub.f32 %v10576_v3, %v1111_v56  ;;  %v7325_v28 = vsub.f32 %v10578_v43, %v1111_v56  ;;  %v1495_v18 = vsel %vm830_vm1, %v1324_v55, 0.0  ;;  %v10584_v43 = vld [vmem:[#allocation13_spill] sm:$0xff] }
 0x146   : > { %v7329_v17 = vsub.f32 %v10580_v48, %v1112_v33  ;;  %v7332_v58 = vsub.f32 %v10582_v44, %v1112_v33  ;;  %v938_v34 = vpop.xlane.xlu0 %937  ;;  %v1496_v0 = vadd.f32 %v1495_v18, %v1323_v47  ;;  %v1499_v35 = vsel %vm830_vm1, %v1326_v41, 0.0  ;;  %v10586_v18 = vld [vmem:[#allocation11_spill] sm:$0xff] }
 0x147   : > { %10577 = vst [vmem:[#allocation9_spill] sm:$0xff] %v7322_v51  ;;  %10579 = vst [vmem:[#allocation7_spill] sm:$0xff] %v7325_v28  ;;  %v1113_v63 = vmul.f32 0.0051020407, %v938_v34  ;;  %v942_v13 = vpop.xlane.xlu1 %941  ;;  %v1327_v3 = vmul.f32 %v7322_v51, %v7322_v51  ;;  %v1328_v56 = vmul.f32 %v7325_v28, %v7325_v28  ;;  %v1500_v48 = vadd.f32 %v1499_v35, %v1325_v12  ;;  %v10588_v51 = vld [vmem:[#allocation14_spill] sm:$0xff] }
 0x148   : > { %10581 = vst [vmem:[#allocation10_spill] sm:$0xff] %v7329_v17  ;;  %10583 = vst [vmem:[#allocation8_spill] sm:$0xff] %v7332_v58  ;;  %1493 = vadd.xlane.f32.xlu1 %v1492_v25  ;;  %1497 = vadd.xlane.f32.xlu0 %v1496_v0  ;;  %v1114_v55 = vmul.f32 0.0051020407, %v942_v13  ;;  %v1329_v33 = vmul.f32 %v7329_v17, %v7329_v17  ;;  %v1330_v47 = vmul.f32 %v7332_v58, %v7332_v58  ;;  %v10590_v25 = vld [vmem:[#allocation12_spill] sm:$0xff] }
 0x149   : > { %v7344_v41 = vsub.f32 %v10584_v43, %v1113_v63  ;;  %v7347_v44 = vsub.f32 %v10586_v18, %v1113_v63  ;;  %v1503_v34 = vsel %vm830_vm1, %v1328_v56, 0.0  ;;  %v10592_v18 = vld [vmem:[#allocation17_spill] sm:$0xff] }
 0x14a   : > { %v7351_v28 = vsub.f32 %v10588_v51, %v1114_v55  ;;  %v7354_v13 = vsub.f32 %v10590_v25, %v1114_v55  ;;  %v946_v12 = vpop.xlane.xlu0 %945  ;;  %v1504_v0 = vadd.f32 %v1503_v34, %v1327_v3  ;;  %v1507_v35 = vsel %vm830_vm1, %v1330_v47, 0.0  ;;  %v10594_v34 = vld [vmem:[#allocation15_spill] sm:$0xff] }
 0x14b   : > { %10585 = vst [vmem:[#allocation13_spill] sm:$0xff] %v7344_v41  ;;  %10587 = vst [vmem:[#allocation11_spill] sm:$0xff] %v7347_v44  ;;  %v1115_v17 = vmul.f32 0.0051020407, %v946_v12  ;;  %v950_v58 = vpop.xlane.xlu1 %949  ;;  %v1331_v43 = vmul.f32 %v7344_v41, %v7344_v41  ;;  %v1332_v63 = vmul.f32 %v7347_v44, %v7347_v44  ;;  %v1508_v51 = vadd.f32 %v1507_v35, %v1329_v33  ;;  %v10596_v41 = vld [vmem:[#allocation18_spill] sm:$0xff] }
 0x14c   : > { %10589 = vst [vmem:[#allocation14_spill] sm:$0xff] %v7351_v28  ;;  %10591 = vst [vmem:[#allocation12_spill] sm:$0xff] %v7354_v13  ;;  %1501 = vadd.xlane.f32.xlu1 %v1500_v48  ;;  %1505 = vadd.xlane.f32.xlu0 %v1504_v0  ;;  %v1116_v56 = vmul.f32 0.0051020407, %v950_v58  ;;  %v1333_v55 = vmul.f32 %v7351_v28, %v7351_v28  ;;  %v1334_v3 = vmul.f32 %v7354_v13, %v7354_v13  ;;  %v10598_v48 = vld [vmem:[#allocation16_spill] sm:$0xff] }
 0x14d   : > { %v7366_v47 = vsub.f32 %v10592_v18, %v1115_v17  ;;  %v7369_v25 = vsub.f32 %v10594_v34, %v1115_v17  ;;  %v1511_v12 = vsel %vm830_vm1, %v1332_v63, 0.0  ;;  %v10600_v34 = vld [vmem:[#allocation21_spill] sm:$0xff] }
 0x14e   : > { %v7373_v44 = vsub.f32 %v10596_v41, %v1116_v56  ;;  %v7376_v58 = vsub.f32 %v10598_v48, %v1116_v56  ;;  %v954_v33 = vpop.xlane.xlu0 %953  ;;  %v1512_v0 = vadd.f32 %v1511_v12, %v1331_v43  ;;  %v1515_v35 = vsel %vm830_vm1, %v1334_v3, 0.0  ;;  %v10602_v12 = vld [vmem:[#allocation19_spill] sm:$0xff] }
 0x14f   : > { %10593 = vst [vmem:[#allocation17_spill] sm:$0xff] %v7366_v47  ;;  %10595 = vst [vmem:[#allocation15_spill] sm:$0xff] %v7369_v25  ;;  %v1117_v28 = vmul.f32 0.0051020407, %v954_v33  ;;  %v958_v13 = vpop.xlane.xlu1 %957  ;;  %v1335_v18 = vmul.f32 %v7366_v47, %v7366_v47  ;;  %v1336_v17 = vmul.f32 %v7369_v25, %v7369_v25  ;;  %v1516_v41 = vadd.f32 %v1515_v35, %v1333_v55  ;;  %v10604_v47 = vld [vmem:[#allocation22_spill] sm:$0xff] }
 0x150   : > { %10597 = vst [vmem:[#allocation18_spill] sm:$0xff] %v7373_v44  ;;  %10599 = vst [vmem:[#allocation16_spill] sm:$0xff] %v7376_v58  ;;  %1509 = vadd.xlane.f32.xlu1 %v1508_v51  ;;  %1513 = vadd.xlane.f32.xlu0 %v1512_v0  ;;  %v1118_v63 = vmul.f32 0.0051020407, %v958_v13  ;;  %v1337_v56 = vmul.f32 %v7373_v44, %v7373_v44  ;;  %v1338_v43 = vmul.f32 %v7376_v58, %v7376_v58  ;;  %v10606_v51 = vld [vmem:[#allocation20_spill] sm:$0xff] }
 0x151   : > { %v7388_v3 = vsub.f32 %v10600_v34, %v1117_v28  ;;  %v7391_v48 = vsub.f32 %v10602_v12, %v1117_v28  ;;  %v1519_v33 = vsel %vm830_vm1, %v1336_v17, 0.0  ;;  %v10608_v12 = vld [vmem:[#allocation25_spill] sm:$0xff] }
 0x152   : > { %v7395_v25 = vsub.f32 %v10604_v47, %v1118_v63  ;;  %v7398_v13 = vsub.f32 %v10606_v51, %v1118_v63  ;;  %v962_v55 = vpop.xlane.xlu0 %961  ;;  %v1520_v0 = vadd.f32 %v1519_v33, %v1335_v18  ;;  %v1523_v35 = vsel %vm830_vm1, %v1338_v43, 0.0  ;;  %v10609_v33 = vld [vmem:[#allocation23_spill] sm:$0xff] }
 0x153   : > { %10601 = vst [vmem:[#allocation21_spill] sm:$0xff] %v7388_v3  ;;  %10603 = vst [vmem:[#allocation19_spill] sm:$0xff] %v7391_v48  ;;  %v1119_v44 = vmul.f32 0.0051020407, %v962_v55  ;;  %v966_v58 = vpop.xlane.xlu1 %965  ;;  %v1339_v34 = vmul.f32 %v7388_v3, %v7388_v3  ;;  %v1340_v28 = vmul.f32 %v7391_v48, %v7391_v48  ;;  %v1524_v47 = vadd.f32 %v1523_v35, %v1337_v56  ;;  %v10610_v3 = vld [vmem:[#allocation26_spill] sm:$0xff] }
 0x154   : > { %10605 = vst [vmem:[#allocation22_spill] sm:$0xff] %v7395_v25  ;;  %10607 = vst [vmem:[#allocation20_spill] sm:$0xff] %v7398_v13  ;;  %1517 = vadd.xlane.f32.xlu1 %v1516_v41  ;;  %1521 = vadd.xlane.f32.xlu0 %v1520_v0  ;;  %v1120_v17 = vmul.f32 0.0051020407, %v966_v58  ;;  %v1341_v63 = vmul.f32 %v7395_v25, %v7395_v25  ;;  %v1342_v18 = vmul.f32 %v7398_v13, %v7398_v13  ;;  %v10611_v41 = vld [vmem:[#allocation24_spill] sm:$0xff] }
 0x155   : > { %v7410_v43 = vsub.f32 %v10608_v12, %v1119_v44  ;;  %v7413_v51 = vsub.f32 %v10609_v33, %v1119_v44  ;;  %v1527_v55 = vsel %vm830_vm1, %v1340_v28, 0.0  ;;  %v10612_v33 = vld [vmem:[#allocation29_spill] sm:$0xff] }
 0x156   : > { %v7417_v48 = vsub.f32 %v10610_v3, %v1120_v17  ;;  %v7420_v58 = vsub.f32 %v10611_v41, %v1120_v17  ;;  %v970_v56 = vpop.xlane.xlu0 %969  ;;  %v1528_v0 = vadd.f32 %v1527_v55, %v1339_v34  ;;  %v1531_v35 = vsel %vm830_vm1, %v1342_v18, 0.0  ;;  %v10613_v55 = vld [vmem:[#allocation27_spill] sm:$0xff] }
 0x157   : > { %v1121_v25 = vmul.f32 0.0051020407, %v970_v56  ;;  %v974_v13 = vpop.xlane.xlu1 %973  ;;  %v1343_v12 = vmul.f32 %v7410_v43, %v7410_v43  ;;  %v1344_v44 = vmul.f32 %v7413_v51, %v7413_v51  ;;  %v1532_v3 = vadd.f32 %v1531_v35, %v1341_v63 }
 0x158   : > { %1525 = vadd.xlane.f32.xlu1 %v1524_v47  ;;  %1529 = vadd.xlane.f32.xlu0 %v1528_v0  ;;  %v1122_v28 = vmul.f32 0.0051020407, %v974_v13  ;;  %v1345_v17 = vmul.f32 %v7417_v48, %v7417_v48  ;;  %v1346_v34 = vmul.f32 %v7420_v58, %v7420_v58  ;;  %v10615_v47 = vld [vmem:[#allocation28_spill] sm:$0xff] }
 0x159   : > { %v7432_v18 = vsub.f32 %v10612_v33, %v1121_v25  ;;  %v7435_v41 = vsub.f32 %v10613_v55, %v1121_v25  ;;  %v1535_v56 = vsel %vm830_vm1, %v1344_v44, 0.0 }
 0x15a   : > { %v7439_v45 = vsub.f32 %v10614_v40, %v1122_v28  ;;  %v7442_v13 = vsub.f32 %v10615_v47, %v1122_v28  ;;  %v1536_v63 = vadd.f32 %v1535_v56, %v1343_v12  ;;  %v978_v0 = vpop.xlane.xlu0 %977  ;;  %v1539_v35 = vsel %vm830_vm1, %v1346_v34, 0.0  ;;  %v10617_v56 = vld [vmem:[#allocation33_spill] sm:$0xff]  ;;  %v10619_v47 = vld [vmem:[#allocation31_spill] sm:$0xff] }
 0x15b   : > { %v1347_v9 = vmul.f32 %v7432_v18, %v7432_v18  ;;  %v1348_v33 = vmul.f32 %v7435_v41, %v7435_v41  ;;  %v1123_v25 = vmul.f32 0.0051020407, %v978_v0  ;;  %v982_v55 = vpop.xlane.xlu1 %981  ;;  %v1540_v12 = vadd.f32 %v1539_v35, %v1345_v17 }
 0x15c   : > { %10616 = vst [vmem:[#allocation25_spill] sm:$0xff] %v7442_v13  ;;  %v1349_v44 = vmul.f32 %v7439_v45, %v7439_v45  ;;  %v1350_v40 = vmul.f32 %v7442_v13, %v7442_v13  ;;  %1533 = vadd.xlane.f32.xlu1 %v1532_v3  ;;  %1537 = vadd.xlane.f32.xlu0 %v1536_v63  ;;  %v1124_v28 = vmul.f32 0.0051020407, %v982_v55 }
 0x15d   : > { %v7454_v34 = vsub.f32 %v10617_v56, %v1123_v25  ;;  %v7457_v32 = vsub.f32 %v10619_v47, %v1123_v25  ;;  %v1543_v61 = vsel %vm830_vm1, %v1348_v33, 0.0  ;;  %v10625_v33 = vld [vmem:[#allocation37_spill] sm:$0xff] }
 0x15e   : > { %v1544_v0 = vadd.f32 %v1543_v61, %v1347_v9  ;;  %v7461_v37 = vsub.f32 %v10621_v59, %v1124_v28  ;;  %v7464_v24 = vsub.f32 %v10623_v53, %v1124_v28  ;;  %v986_v29 = vpop.xlane.xlu0 %985  ;;  %v1547_v3 = vsel %vm830_vm1, %v1350_v40, 0.0  ;;  %v10627_v40 = vld [vmem:[#allocation35_spill] sm:$0xff] }
 0x15f   : > { %10618 = vst [vmem:[#allocation23_spill] sm:$0xff] %v7454_v34  ;;  %10620 = vst [vmem:[#allocation26_spill] sm:$0xff] %v7457_v32  ;;  %v1351_v17 = vmul.f32 %v7454_v34, %v7454_v34  ;;  %v1352_v63 = vmul.f32 %v7457_v32, %v7457_v32  ;;  %v1125_v35 = vmul.f32 0.0051020407, %v986_v29  ;;  %v990_v25 = vpop.xlane.xlu1 %989  ;;  %v1548_v61 = vadd.f32 %v1547_v3, %v1349_v44  ;;  %v10629_v29 = vld [vmem:[#allocation38_spill] sm:$0xff] }
 0x160   : > { %10622 = vst [vmem:[#allocation24_spill] sm:$0xff] %v7461_v37  ;;  %10624 = vst [vmem:[#allocation29_spill] sm:$0xff] %v7464_v24  ;;  %1541 = vadd.xlane.f32.xlu1 %v1540_v12  ;;  %1545 = vadd.xlane.f32.xlu0 %v1544_v0  ;;  %v1353_v59 = vmul.f32 %v7461_v37, %v7461_v37  ;;  %v1354_v53 = vmul.f32 %v7464_v24, %v7464_v24  ;;  %v1126_v9 = vmul.f32 0.0051020407, %v990_v25  ;;  %v10631_v12 = vld [vmem:[#allocation36_spill] sm:$0xff]  ;;  %v1893_v24 = vld [vmem:[%s6284_s24 + $0x130] sm:$0xff] }
 0x161   : > { %v7476_v55 = vsub.f32 %v10625_v33, %v1125_v35  ;;  %v7479_v28 = vsub.f32 %v10627_v40, %v1125_v35  ;;  %v1551_v56 = vsel %vm830_vm1, %v1352_v63, 0.0  ;;  %v10633_v40 = vld [vmem:[#allocation41_spill] sm:$0xff]  ;;  %v2438_v32 = vld [vmem:[%s6289_s13 + $0x38] sm:$0xff] }
 0x162   : > { %v7483_v47 = vsub.f32 %v10629_v29, %v1126_v9  ;;  %v7486_v0 = vsub.f32 %v10631_v12, %v1126_v9  ;;  %v994_v27 = vpop.xlane.xlu0 %993  ;;  %v1552_v16 = vadd.f32 %v1551_v56, %v1351_v17  ;;  %v1555_v39 = vsel %vm830_vm1, %v1354_v53, 0.0  ;;  %v10635_v56 = vld [vmem:[#allocation39_spill] sm:$0xff] }
 0x163   : > { %10626 = vst [vmem:[#allocation27_spill] sm:$0xff] %v7476_v55  ;;  %10628 = vst [vmem:[#allocation30_spill] sm:$0xff] %v7479_v28  ;;  %v1355_v44 = vmul.f32 %v7476_v55, %v7476_v55  ;;  %v1356_v3 = vmul.f32 %v7479_v28, %v7479_v28  ;;  %v1127_v35 = vmul.f32 0.0051020407, %v994_v27  ;;  %v998_v25 = vpop.xlane.xlu1 %997  ;;  %v1556_v17 = vadd.f32 %v1555_v39, %v1353_v59  ;;  %v10637_v27 = vld [vmem:[#allocation42_spill] sm:$0xff]  ;;  %v1889_v55 = vld [vmem:[%s6284_s24 + $0x110] sm:$0xff] }
 0x164   : > { %10630 = vst [vmem:[#allocation28_spill] sm:$0xff] %v7483_v47  ;;  %10632 = vst [vmem:[#allocation33_spill] sm:$0xff] %v7486_v0  ;;  %1549 = vadd.xlane.f32.xlu1 %v1548_v61  ;;  %v1357_v63 = vmul.f32 %v7483_v47, %v7483_v47  ;;  %v1358_v9 = vmul.f32 %v7486_v0, %v7486_v0  ;;  %1553 = vadd.xlane.f32.xlu0 %v1552_v16  ;;  %v1128_v33 = vmul.f32 0.0051020407, %v998_v25  ;;  %v10639_v61 = vld [vmem:[#allocation40_spill] sm:$0xff] }
 0x165   : > { %v7498_v53 = vsub.f32 %v10633_v40, %v1127_v35  ;;  %v7501_v29 = vsub.f32 %v10635_v56, %v1127_v35  ;;  %v1559_v12 = vsel %vm830_vm1, %v1356_v3, 0.0  ;;  %v10641_v56 = vld [vmem:[#allocation45_spill] sm:$0xff] }
 0x166   : > { %v7505_v21 = vsub.f32 %v10637_v27, %v1128_v33  ;;  %v7508_v19 = vsub.f32 %v10639_v61, %v1128_v33  ;;  %v1002_v11 = vpop.xlane.xlu0 %1001  ;;  %v1560_v31 = vadd.f32 %v1559_v12, %v1355_v44  ;;  %v1563_v16 = vsel %vm830_vm1, %v1358_v9, 0.0  ;;  %v10643_v12 = vld [vmem:[#allocation43_spill] sm:$0xff] }
 0x167   : > { %10634 = vst [vmem:[#allocation31_spill] sm:$0xff] %v7498_v53  ;;  %10636 = vst [vmem:[#allocation34_spill] sm:$0xff] %v7501_v29  ;;  %v1359_v39 = vmul.f32 %v7498_v53, %v7498_v53  ;;  %v1360_v59 = vmul.f32 %v7501_v29, %v7501_v29  ;;  %v1129_v35 = vmul.f32 0.0051020407, %v1002_v11  ;;  %v1006_v25 = vpop.xlane.xlu1 %1005  ;;  %v1564_v44 = vadd.f32 %v1563_v16, %v1357_v63  ;;  %v10645_v11 = vld [vmem:[#allocation46_spill] sm:$0xff] }
 0x168   : > { %10638 = vst [vmem:[#allocation32_spill] sm:$0xff] %v7505_v21  ;;  %10640 = vst [vmem:[#allocation37_spill] sm:$0xff] %v7508_v19  ;;  %v1361_v3 = vmul.f32 %v7505_v21, %v7505_v21  ;;  %v1362_v40 = vmul.f32 %v7508_v19, %v7508_v19  ;;  %1557 = vadd.xlane.f32.xlu1 %v1556_v17  ;;  %1561 = vadd.xlane.f32.xlu0 %v1560_v31  ;;  %v1130_v33 = vmul.f32 0.0051020407, %v1006_v25 }
 0x169   : > { %v7520_v9 = vsub.f32 %v10641_v56, %v1129_v35  ;;  %v7523_v27 = vsub.f32 %v10643_v12, %v1129_v35  ;;  %v1567_v61 = vsel %vm830_vm1, %v1360_v59, 0.0  ;;  %v10651_v56 = vld [vmem:[#allocation47_spill] sm:$0xff] }
 0x16a   : > { %v7527_v30 = vsub.f32 %v10645_v11, %v1130_v33  ;;  %v7530_v2 = vsub.f32 %v10647_v6, %v1130_v33  ;;  %v1010_v23 = vpop.xlane.xlu0 %1009  ;;  %v1568_v1 = vadd.f32 %v1567_v61, %v1359_v39  ;;  %v1571_v31 = vsel %vm830_vm1, %v1362_v40, 0.0  ;;  %v10649_v33 = vld [vmem:[#allocation49_spill] sm:$0xff] }
 0x16b   : > { %10642 = vst [vmem:[#allocation35_spill] sm:$0xff] %v7520_v9  ;;  %10644 = vst [vmem:[#allocation38_spill] sm:$0xff] %v7523_v27  ;;  %v1363_v63 = vmul.f32 %v7520_v9, %v7520_v9  ;;  %v1364_v17 = vmul.f32 %v7523_v27, %v7523_v27  ;;  %v1131_v16 = vmul.f32 0.0051020407, %v1010_v23  ;;  %v1014_v35 = vpop.xlane.xlu1 %1013  ;;  %v1572_v39 = vadd.f32 %v1571_v31, %v1361_v3  ;;  %v10653_v23 = vld [vmem:[#allocation50_spill] sm:$0xff]  ;;  %v10655_v27 = vld [vmem:[#allocation48_spill] sm:$0xff] }
 0x16c   : > { %10646 = vst [vmem:[#allocation36_spill] sm:$0xff] %v7527_v30  ;;  %10648 = vst [vmem:[#allocation41_spill] sm:$0xff] %v7530_v2  ;;  %v1365_v59 = vmul.f32 %v7527_v30, %v7527_v30  ;;  %v1366_v25 = vmul.f32 %v7530_v2, %v7530_v2  ;;  %1565 = vadd.xlane.f32.xlu1 %v1564_v44  ;;  %1569 = vadd.xlane.f32.xlu0 %v1568_v1  ;;  %v1132_v6 = vmul.f32 0.0051020407, %v1014_v35 }
 0x16d   : > { %v7542_v40 = vsub.f32 %v10649_v33, %v1131_v16  ;;  %v7545_v12 = vsub.f32 %v10651_v56, %v1131_v16  ;;  %v1575_v61 = vsel %vm830_vm1, %v1364_v17, 0.0  ;;  %v10659_v33 = vld [vmem:[#allocation51_spill] sm:$0xff] }
 0x16e   : > { %v7549_v11 = vsub.f32 %v10653_v23, %v1132_v6  ;;  %v7552_v30 = vsub.f32 %v10655_v27, %v1132_v6  ;;  %v1018_v9 = vpop.xlane.xlu0 %1017  ;;  %v1576_v2 = vadd.f32 %v1575_v61, %v1363_v63  ;;  %v1579_v1 = vsel %vm830_vm1, %v1366_v25, 0.0  ;;  %v10657_v6 = vld [vmem:[#allocation52_spill] sm:$0xff] }
 0x16f   : > { %10650 = vst [vmem:[#allocation39_spill] sm:$0xff] %v7542_v40  ;;  %10652 = vst [vmem:[#allocation42_spill] sm:$0xff] %v7545_v12  ;;  %v1367_v3 = vmul.f32 %v7542_v40, %v7542_v40  ;;  %v1368_v44 = vmul.f32 %v7545_v12, %v7545_v12  ;;  %v1133_v31 = vmul.f32 0.0051020407, %v1018_v9  ;;  %v1022_v16 = vpop.xlane.xlu1 %1021  ;;  %v1580_v35 = vadd.f32 %v1579_v1, %v1365_v59  ;;  %v10661_v9 = vld [vmem:[#allocation53_spill] sm:$0xff] }
 0x170   : > { %10654 = vst [vmem:[#allocation40_spill] sm:$0xff] %v7549_v11  ;;  %10656 = vst [vmem:[#allocation45_spill] sm:$0xff] %v7552_v30  ;;  %v1369_v17 = vmul.f32 %v7549_v11, %v7549_v11  ;;  %v1370_v27 = vmul.f32 %v7552_v30, %v7552_v30  ;;  %1573 = vadd.xlane.f32.xlu1 %v1572_v39  ;;  %1577 = vadd.xlane.f32.xlu0 %v1576_v2  ;;  %v1134_v63 = vmul.f32 0.0051020407, %v1022_v16  ;;  %v5805_v11 = vld [vmem:[%s6274_s23 + $0x2f8] sm:$0xff] }
 0x171   : > { %v7564_v25 = vsub.f32 %v10657_v6, %v1133_v31  ;;  %v7567_v56 = vsub.f32 %v10659_v33, %v1133_v31  ;;  %v1583_v61 = vsel %vm830_vm1, %v1368_v44, 0.0 }
 0x172   : > { %v7571_v23 = vsub.f32 %v10661_v9, %v1134_v63  ;;  %v7574_v12 = vsub.f32 %v5805_v11, %v1134_v63  ;;  %v1026_v39 = vpop.xlane.xlu0 %1025  ;;  %v1584_v2 = vadd.f32 %v1583_v61, %v1367_v3  ;;  %v1587_v59 = vsel %vm830_vm1, %v1370_v27, 0.0  ;;  %v5806_v63 = vld [vmem:[%s6274_s23 + $0x300] sm:$0xff]  ;;  %v5807_v61 = vld [vmem:[%s6274_s23 + $0x308] sm:$0xff] }
 0x173   : > { %10658 = vst [vmem:[#allocation43_spill] sm:$0xff] %v7564_v25  ;;  %10660 = vst [vmem:[#allocation46_spill] sm:$0xff] %v7567_v56  ;;  %v1371_v1 = vmul.f32 %v7564_v25, %v7564_v25  ;;  %v1372_v31 = vmul.f32 %v7567_v56, %v7567_v56  ;;  %v1135_v44 = vmul.f32 0.0051020407, %v1026_v39  ;;  %v1030_v16 = vpop.xlane.xlu1 %1029  ;;  %v1588_v27 = vadd.f32 %v1587_v59, %v1369_v17  ;;  %v5808_v39 = vld [vmem:[%s6274_s23 + $0x310] sm:$0xff] }
 0x174   : > { %10662 = vst [vmem:[#allocation44_spill] sm:$0xff] %v7571_v23  ;;  %10663 = vst [vmem:[#allocation49_spill] sm:$0xff] %v7574_v12  ;;  %v1373_v6 = vmul.f32 %v7571_v23, %v7571_v23  ;;  %v1374_v11 = vmul.f32 %v7574_v12, %v7574_v12  ;;  %1581 = vadd.xlane.f32.xlu1 %v1580_v35  ;;  %1585 = vadd.xlane.f32.xlu0 %v1584_v2  ;;  %v1136_v3 = vmul.f32 0.0051020407, %v1030_v16  ;;  %v5809_v23 = vld [vmem:[%s6274_s23 + $0x318] sm:$0xff] }
 0x175   : > { %v7586_v33 = vsub.f32 %v5806_v63, %v1135_v44  ;;  %v7589_v9 = vsub.f32 %v5807_v61, %v1135_v44  ;;  %v1591_v56 = vsel %vm830_vm1, %v1372_v31, 0.0  ;;  %v5811_v61 = vld [vmem:[%s6274_s23 + $0x328] sm:$0xff] }
 0x176   : > { %v7593_v25 = vsub.f32 %v5808_v39, %v1136_v3  ;;  %v7596_v30 = vsub.f32 %v5809_v23, %v1136_v3  ;;  %v1034_v35 = vpop.xlane.xlu0 %1033  ;;  %v1592_v2 = vadd.f32 %v1591_v56, %v1371_v1  ;;  %v1595_v17 = vsel %vm830_vm1, %v1374_v11, 0.0  ;;  %v5810_v11 = vld [vmem:[%s6274_s23 + $0x320] sm:$0xff] }
 0x177   : > { %10664 = vst [vmem:[#allocation47_spill] sm:$0xff] %v7586_v33  ;;  %10665 = vst [vmem:[#allocation50_spill] sm:$0xff] %v7589_v9  ;;  %v1375_v59 = vmul.f32 %v7586_v33, %v7586_v33  ;;  %v1376_v44 = vmul.f32 %v7589_v9, %v7589_v9  ;;  %v1137_v31 = vmul.f32 0.0051020407, %v1034_v35  ;;  %v1038_v16 = vpop.xlane.xlu1 %1037  ;;  %v1596_v1 = vadd.f32 %v1595_v17, %v1373_v6  ;;  %v5812_v35 = vld [vmem:[%s6274_s23 + $0x330] sm:$0xff] }
 0x178   : > { %10666 = vst [vmem:[#allocation48_spill] sm:$0xff] %v7593_v25  ;;  %10667 = vst [vmem:[#allocation52_spill] sm:$0xff] %v7596_v30  ;;  %v1377_v63 = vmul.f32 %v7593_v25, %v7593_v25  ;;  %v1378_v23 = vmul.f32 %v7596_v30, %v7596_v30  ;;  %1589 = vadd.xlane.f32.xlu1 %v1588_v27  ;;  %1593 = vadd.xlane.f32.xlu0 %v1592_v2  ;;  %v1138_v56 = vmul.f32 0.0051020407, %v1038_v16  ;;  %v5813_v25 = vld [vmem:[%s6274_s23 + $0x338] sm:$0xff] }
 0x179   : > { %v7608_v3 = vsub.f32 %v5810_v11, %v1137_v31  ;;  %v7611_v39 = vsub.f32 %v5811_v61, %v1137_v31  ;;  %v1599_v9 = vsel %vm830_vm1, %v1376_v44, 0.0  ;;  %v5815_v61 = vld [vmem:[%s6274_s23 + $0x348] sm:$0xff] }
 0x17a   : > { %v7615_v33 = vsub.f32 %v5812_v35, %v1138_v56  ;;  %v7618_v12 = vsub.f32 %v5813_v25, %v1138_v56  ;;  %v1042_v27 = vpop.xlane.xlu0 %1041  ;;  %v1600_v2 = vadd.f32 %v1599_v9, %v1375_v59  ;;  %v1603_v6 = vsel %vm830_vm1, %v1378_v23, 0.0  ;;  %v5814_v23 = vld [vmem:[%s6274_s23 + $0x340] sm:$0xff] }
 0x17b   : > { %10668 = vst [vmem:[#allocation51_spill] sm:$0xff] %v7608_v3  ;;  %10669 = vst [vmem:[#allocation53_spill] sm:$0xff] %v7611_v39  ;;  %v1379_v17 = vmul.f32 %v7608_v3, %v7608_v3  ;;  %v1380_v31 = vmul.f32 %v7611_v39, %v7611_v39  ;;  %v1139_v44 = vmul.f32 0.0051020407, %v1042_v27  ;;  %v1046_v16 = vpop.xlane.xlu1 %1045  ;;  %v1604_v59 = vadd.f32 %v1603_v6, %v1377_v63  ;;  %v5816_v27 = vld [vmem:[%s6274_s23 + $0x350] sm:$0xff] }
 0x17c   : > { %10670 = vst [vmem:[#allocation90_spill] sm:$0xff] %v7615_v33  ;;  %10671 = vst [vmem:[#allocation91_spill] sm:$0xff] %v7618_v12  ;;  %v1381_v11 = vmul.f32 %v7615_v33, %v7615_v33  ;;  %v1382_v25 = vmul.f32 %v7618_v12, %v7618_v12  ;;  %1597 = vadd.xlane.f32.xlu1 %v1596_v1  ;;  %1601 = vadd.xlane.f32.xlu0 %v1600_v2  ;;  %v1140_v9 = vmul.f32 0.0051020407, %v1046_v16  ;;  %v5817_v33 = vld [vmem:[%s6274_s23 + $0x358] sm:$0xff] }
 0x17d   : > { %v7630_v56 = vsub.f32 %v5814_v23, %v1139_v44  ;;  %v7633_v35 = vsub.f32 %v5815_v61, %v1139_v44  ;;  %v1607_v39 = vsel %vm830_vm1, %v1380_v31, 0.0  ;;  %v5819_v61 = vld [vmem:[%s6274_s23 + $0x368] sm:$0xff] }
 0x17e   : > { %v7637_v3 = vsub.f32 %v5816_v27, %v1140_v9  ;;  %v7640_v30 = vsub.f32 %v5817_v33, %v1140_v9  ;;  %v1050_v1 = vpop.xlane.xlu0 %1049  ;;  %v1608_v2 = vadd.f32 %v1607_v39, %v1379_v17  ;;  %v1611_v63 = vsel %vm830_vm1, %v1382_v25, 0.0  ;;  %v5818_v25 = vld [vmem:[%s6274_s23 + $0x360] sm:$0xff] }
 0x17f   : > { %10672 = vst [vmem:[#allocation92_spill] sm:$0xff] %v7630_v56  ;;  %10673 = vst [vmem:[#allocation93_spill] sm:$0xff] %v7633_v35  ;;  %v1383_v6 = vmul.f32 %v7630_v56, %v7630_v56  ;;  %v1384_v44 = vmul.f32 %v7633_v35, %v7633_v35  ;;  %v1141_v31 = vmul.f32 0.0051020407, %v1050_v1  ;;  %v1054_v16 = vpop.xlane.xlu1 %1053  ;;  %v1612_v17 = vadd.f32 %v1611_v63, %v1381_v11  ;;  %v5820_v1 = vld [vmem:[%s6274_s23 + $0x370] sm:$0xff] }
 0x180   : > { %10674 = vst [vmem:[#allocation94_spill] sm:$0xff] %v7637_v3  ;;  %10675 = vst [vmem:[#allocation95_spill] sm:$0xff] %v7640_v30  ;;  %v1385_v23 = vmul.f32 %v7637_v3, %v7637_v3  ;;  %v1386_v33 = vmul.f32 %v7640_v30, %v7640_v30  ;;  %1605 = vadd.xlane.f32.xlu1 %v1604_v59  ;;  %1609 = vadd.xlane.f32.xlu0 %v1608_v2  ;;  %v1142_v39 = vmul.f32 0.0051020407, %v1054_v16  ;;  %v5821_v3 = vld [vmem:[%s6274_s23 + $0x378] sm:$0xff] }
 0x181   : > { %v7652_v9 = vsub.f32 %v5818_v25, %v1141_v31  ;;  %v7655_v27 = vsub.f32 %v5819_v61, %v1141_v31  ;;  %v1615_v35 = vsel %vm830_vm1, %v1384_v44, 0.0  ;;  %v5823_v61 = vld [vmem:[%s6274_s23 + $0x388] sm:$0xff] }
 0x182   : > { %v7659_v56 = vsub.f32 %v5820_v1, %v1142_v39  ;;  %v7662_v12 = vsub.f32 %v5821_v3, %v1142_v39  ;;  %v1058_v59 = vpop.xlane.xlu0 %1057  ;;  %v1616_v2 = vadd.f32 %v1615_v35, %v1383_v6  ;;  %v1619_v11 = vsel %vm830_vm1, %v1386_v33, 0.0  ;;  %v5822_v33 = vld [vmem:[%s6274_s23 + $0x380] sm:$0xff] }
 0x183   : > { %10676 = vst [vmem:[#allocation96_spill] sm:$0xff] %v7652_v9  ;;  %10677 = vst [vmem:[#allocation97_spill] sm:$0xff] %v7655_v27  ;;  %v1387_v63 = vmul.f32 %v7652_v9, %v7652_v9  ;;  %v1388_v31 = vmul.f32 %v7655_v27, %v7655_v27  ;;  %v1143_v44 = vmul.f32 0.0051020407, %v1058_v59  ;;  %v1062_v16 = vpop.xlane.xlu1 %1061  ;;  %v1620_v6 = vadd.f32 %v1619_v11, %v1385_v23  ;;  %v5824_v59 = vld [vmem:[%s6274_s23 + $0x390] sm:$0xff] }
 0x184   : > { %10678 = vst [vmem:[#allocation98_spill] sm:$0xff] %v7659_v56  ;;  %10679 = vst [vmem:[#allocation99_spill] sm:$0xff] %v7662_v12  ;;  %v1389_v25 = vmul.f32 %v7659_v56, %v7659_v56  ;;  %v1390_v3 = vmul.f32 %v7662_v12, %v7662_v12  ;;  %1613 = vadd.xlane.f32.xlu1 %v1612_v17  ;;  %1617 = vadd.xlane.f32.xlu0 %v1616_v2  ;;  %v1144_v35 = vmul.f32 0.0051020407, %v1062_v16  ;;  %v5825_v56 = vld [vmem:[%s6274_s23 + $0x398] sm:$0xff] }
 0x185   : > { %v7674_v39 = vsub.f32 %v5822_v33, %v1143_v44  ;;  %v7677_v1 = vsub.f32 %v5823_v61, %v1143_v44  ;;  %v1623_v27 = vsel %vm830_vm1, %v1388_v31, 0.0  ;;  %v5827_v61 = vld [vmem:[%s6274_s23 + $0x3a8] sm:$0xff] }
 0x186   : > { %v7681_v9 = vsub.f32 %v5824_v59, %v1144_v35  ;;  %v7684_v30 = vsub.f32 %v5825_v56, %v1144_v35  ;;  %v1066_v17 = vpop.xlane.xlu0 %1065  ;;  %v1624_v2 = vadd.f32 %v1623_v27, %v1387_v63  ;;  %v1627_v23 = vsel %vm830_vm1, %v1390_v3, 0.0  ;;  %v5826_v3 = vld [vmem:[%s6274_s23 + $0x3a0] sm:$0xff] }
 0x187   : > { %10680 = vst [vmem:[#allocation100_spill] sm:$0xff] %v7674_v39  ;;  %10681 = vst [vmem:[#allocation101_spill] sm:$0xff] %v7677_v1  ;;  %v1391_v11 = vmul.f32 %v7674_v39, %v7674_v39  ;;  %v1392_v44 = vmul.f32 %v7677_v1, %v7677_v1  ;;  %v1145_v31 = vmul.f32 0.0051020407, %v1066_v17  ;;  %v1070_v16 = vpop.xlane.xlu1 %1069  ;;  %v1628_v63 = vadd.f32 %v1627_v23, %v1389_v25  ;;  %v5828_v17 = vld [vmem:[%s6274_s23 + $0x3b0] sm:$0xff] }
 0x188   : > { %10682 = vst [vmem:[#allocation102_spill] sm:$0xff] %v7681_v9  ;;  %10683 = vst [vmem:[#allocation103_spill] sm:$0xff] %v7684_v30  ;;  %v1393_v33 = vmul.f32 %v7681_v9, %v7681_v9  ;;  %v1394_v56 = vmul.f32 %v7684_v30, %v7684_v30  ;;  %1621 = vadd.xlane.f32.xlu1 %v1620_v6  ;;  %1625 = vadd.xlane.f32.xlu0 %v1624_v2  ;;  %v1146_v27 = vmul.f32 0.0051020407, %v1070_v16  ;;  %v5829_v9 = vld [vmem:[%s6274_s23 + $0x3b8] sm:$0xff] }
 0x189   : > { %v7696_v35 = vsub.f32 %v5826_v3, %v1145_v31  ;;  %v7699_v59 = vsub.f32 %v5827_v61, %v1145_v31  ;;  %v1631_v1 = vsel %vm830_vm1, %v1392_v44, 0.0  ;;  %v5831_v61 = vld [vmem:[%s6274_s23 + $0x3c8] sm:$0xff] }
 0x18a   : > { %v7703_v39 = vsub.f32 %v5828_v17, %v1146_v27  ;;  %v7706_v12 = vsub.f32 %v5829_v9, %v1146_v27  ;;  %v1074_v6 = vpop.xlane.xlu0 %1073  ;;  %v1632_v2 = vadd.f32 %v1631_v1, %v1391_v11  ;;  %v1635_v25 = vsel %vm830_vm1, %v1394_v56, 0.0  ;;  %v5830_v56 = vld [vmem:[%s6274_s23 + $0x3c0] sm:$0xff] }
 0x18b   : > { %10684 = vst [vmem:[#allocation104_spill] sm:$0xff] %v7696_v35  ;;  %10685 = vst [vmem:[#allocation105_spill] sm:$0xff] %v7699_v59  ;;  %v1395_v23 = vmul.f32 %v7696_v35, %v7696_v35  ;;  %v1396_v31 = vmul.f32 %v7699_v59, %v7699_v59  ;;  %v1147_v44 = vmul.f32 0.0051020407, %v1074_v6  ;;  %v1078_v16 = vpop.xlane.xlu1 %1077  ;;  %v1636_v11 = vadd.f32 %v1635_v25, %v1393_v33  ;;  %v5832_v6 = vld [vmem:[%s6274_s23 + $0x3d0] sm:$0xff] }
 0x18c   : > { %10686 = vst [vmem:[#allocation106_spill] sm:$0xff] %v7703_v39  ;;  %10687 = vst [vmem:[#allocation107_spill] sm:$0xff] %v7706_v12  ;;  %v1397_v3 = vmul.f32 %v7703_v39, %v7703_v39  ;;  %v1398_v9 = vmul.f32 %v7706_v12, %v7706_v12  ;;  %1629 = vadd.xlane.f32.xlu1 %v1628_v63  ;;  %1633 = vadd.xlane.f32.xlu0 %v1632_v2  ;;  %v1148_v1 = vmul.f32 0.0051020407, %v1078_v16  ;;  %v5833_v39 = vld [vmem:[%s6274_s23 + $0x3d8] sm:$0xff] }
 0x18d   : > { %v7718_v27 = vsub.f32 %v5830_v56, %v1147_v44  ;;  %v7721_v17 = vsub.f32 %v5831_v61, %v1147_v44  ;;  %v1639_v59 = vsel %vm830_vm1, %v1396_v31, 0.0  ;;  %v5835_v61 = vld [vmem:[%s6274_s23 + $0x3e8] sm:$0xff]  ;;  %v5837_v12 = vld [vmem:[%s6274_s23 + $0x3f8] sm:$0xff] }
 0x18e   : > { %v7725_v35 = vsub.f32 %v5832_v6, %v1148_v1  ;;  %v7728_v30 = vsub.f32 %v5833_v39, %v1148_v1  ;;  %v1082_v63 = vpop.xlane.xlu0 %1081  ;;  %v1640_v2 = vadd.f32 %v1639_v59, %v1395_v23  ;;  %v1643_v33 = vsel %vm830_vm1, %v1398_v9, 0.0  ;;  %v5834_v9 = vld [vmem:[%s6274_s23 + $0x3e0] sm:$0xff] }
 0x18f   : > { %10688 = vst [vmem:[#allocation108_spill] sm:$0xff] %v7718_v27  ;;  %10689 = vst [vmem:[#allocation109_spill] sm:$0xff] %v7721_v17  ;;  %v1399_v25 = vmul.f32 %v7718_v27, %v7718_v27  ;;  %v1400_v44 = vmul.f32 %v7721_v17, %v7721_v17  ;;  %v1149_v31 = vmul.f32 0.0051020407, %v1082_v63  ;;  %v1086_v16 = vpop.xlane.xlu1 %1085  ;;  %v1644_v23 = vadd.f32 %v1643_v33, %v1397_v3  ;;  %v5836_v63 = vld [vmem:[%s6274_s23 + $0x3f0] sm:$0xff] }
 0x190   : > { %10690 = vst [vmem:[#allocation110_spill] sm:$0xff] %v7725_v35  ;;  %10691 = vst [vmem:[#allocation111_spill] sm:$0xff] %v7728_v30  ;;  %v1401_v56 = vmul.f32 %v7725_v35, %v7725_v35  ;;  %v1402_v39 = vmul.f32 %v7728_v30, %v7728_v30  ;;  %1637 = vadd.xlane.f32.xlu1 %v1636_v11  ;;  %1641 = vadd.xlane.f32.xlu0 %v1640_v2  ;;  %v1150_v59 = vmul.f32 0.0051020407, %v1086_v16  ;;  %v1861_v30 = vld [vmem:[%s6284_s24 + $0x30] sm:$0xff] }
 0x191   : > { %v7740_v1 = vsub.f32 %v5834_v9, %v1149_v31  ;;  %v7743_v6 = vsub.f32 %v5835_v61, %v1149_v31  ;;  %v1647_v17 = vsel %vm830_vm1, %v1400_v44, 0.0  ;;  %v2431_v9 = vld [vmem:[%s6289_s13] sm:$0xff]  ;;  %v2432_v61 = vld [vmem:[%s6289_s13 + $0x8] sm:$0xff] }
 0x192   : > { %v7747_v27 = vsub.f32 %v5836_v63, %v1150_v59  ;;  %v7750_v35 = vsub.f32 %v5837_v12, %v1150_v59  ;;  %v1648_v40 = vadd.f32 %v1647_v17, %v1399_v25  ;;  %v1651_v11 = vsel %vm830_vm1, %v1402_v39, 0.0 }
 0x193   : > { %10692 = vst [vmem:[#allocation112_spill] sm:$0xff] %v7740_v1  ;;  %10693 = vst [vmem:[#allocation113_spill] sm:$0xff] %v7743_v6  ;;  %v1403_v3 = vmul.f32 %v7740_v1, %v7740_v1  ;;  %v1404_v2 = vmul.f32 %v7743_v6, %v7743_v6  ;;  %v1652_v12 = vadd.f32 %v1651_v11, %v1401_v56  ;;  %v2463_v11 = vld [vmem:[%s6289_s13 + $0x100] sm:$0xff] }
 0x194   : > { %10694 = vst [vmem:[#allocation114_spill] sm:$0xff] %v7747_v27  ;;  %10695 = vst [vmem:[#allocation115_spill] sm:$0xff] %v7750_v35  ;;  %v1405_v33 = vmul.f32 %v7747_v27, %v7747_v27  ;;  %v1406_v44 = vmul.f32 %v7750_v35, %v7750_v35  ;;  %1645 = vadd.xlane.f32.xlu1 %v1644_v23  ;;  %1649 = vadd.xlane.f32.xlu0 %v1648_v40 }
 0x195   : > { %v1655_v17 = vsel %vm830_vm1, %v1404_v2, 0.0 }
 0x196   : > { %v1656_v25 = vadd.f32 %v1655_v17, %v1403_v3  ;;  %v1659_v31 = vsel %vm830_vm1, %v1406_v44, 0.0  ;;  %v2464_v3 = vld [vmem:[%s6289_s13 + $0x108] sm:$0xff] }
 0x197   : > { %v1660_v16 = vadd.f32 %v1659_v31, %v1405_v33  ;;  %v2433_v31 = vld [vmem:[%s6289_s13 + $0x10] sm:$0xff] }
 0x198   : > { %1653 = vadd.xlane.f32.xlu1 %v1652_v12  ;;  %1657 = vadd.xlane.f32.xlu0 %v1656_v25 }
 0x19c   : > { %1661 = vadd.xlane.f32.xlu1 %v1660_v16 }
 0x1a9   : > { %v1410_v39 = vpop.xlane.xlu0 %1409 }
 0x1aa   : > { %v1663_v59 = vmul.f32 0.0051020407, %v1410_v39 }
 0x1ac   : > { %v1727_v63 = vadd.f32 1e-05, %v1663_v59 }
 0x1ad   : > { %v1414_v35 = vpop.xlane.xlu1 %1413  ;;  %v1418_v23 = vpop.xlane.xlu0 %1417  ;;  %2497 = vperm.xlu1 %5675, %v2431_v9   ;;  %v1855_v9 = vld [vmem:[%s6284_s24] sm:$0xff] }
 0x1ae   : > { %5677 = vrsqrt.f32 %v1727_v63  ;;  %v1664_v40 = vmul.f32 0.0051020407, %v1414_v35  ;;  %v1665_v56 = vmul.f32 0.0051020407, %v1418_v23  ;;  %2502 = vperm.xlu0 %5676, %v2432_v61  }
 0x1b0   : > { %v1728_v2 = vadd.f32 1e-05, %v1664_v40  ;;  %v1729_v44 = vadd.f32 1e-05, %v1665_v56 }
 0x1b1   : > { %v1422_v33 = vpop.xlane.xlu1 %1421  ;;  %v1426_v12 = vpop.xlane.xlu0 %1425  ;;  %2657 = vperm.xlu1 %5675, %v2463_v11   ;;  %v1856_v11 = vld [vmem:[%s6284_s24 + $0x8] sm:$0xff] }
 0x1b2   : > { %5679 = vrsqrt.f32 %v1728_v2  ;;  %v1666_v17 = vmul.f32 0.0051020407, %v1422_v33  ;;  %v1667_v25 = vmul.f32 0.0051020407, %v1426_v12  ;;  %2662 = vperm.xlu0 %5676, %v2464_v3  }
 0x1b3   : > { %5681 = vrsqrt.f32 %v1729_v44 }
 0x1b4   : > { %v1730_v16 = vadd.f32 1e-05, %v1666_v17  ;;  %v1731_v59 = vadd.f32 1e-05, %v1667_v25 }
 0x1b5   : > { %v1430_v39 = vpop.xlane.xlu1 %1429  ;;  %v1434_v35 = vpop.xlane.xlu0 %1433  ;;  %2507 = vperm.xlu1 %5675, %v2433_v31   ;;  %v1857_v31 = vld [vmem:[%s6284_s24 + $0x10] sm:$0xff] }
 0x1b6   : > { %5683 = vrsqrt.f32 %v1730_v16  ;;  %v1668_v63 = vmul.f32 0.0051020407, %v1430_v39  ;;  %v1669_v44 = vmul.f32 0.0051020407, %v1434_v35  ;;  %v1858_v35 = vld [vmem:[%s6284_s24 + $0x18] sm:$0xff] }
 0x1b7   : > { %5685 = vrsqrt.f32 %v1731_v59 }
 0x1b8   : > { %v5678_v61 = vpop.eup %5677  ;;  %v1732_v2 = vadd.f32 1e-05, %v1668_v63  ;;  %v1733_v16 = vadd.f32 1e-05, %v1669_v44 }
 0x1b9   : > { %v1438_v23 = vpop.xlane.xlu1 %1437  ;;  %v7769_v40 = vpop.xlane.xlu0 %1441  ;;  %v1919_v56 = vmul.f32 %v5678_v61, %v1855_v9 }
 0x1ba   : > { %5687 = vrsqrt.f32 %v1732_v2  ;;  %v1670_v39 = vmul.f32 0.0051020407, %v1438_v23  ;;  %v1671_v4 = vmul.f32 0.0051020407, %v7769_v40 }
 0x1bb   : > { %1985 = vperm.xlu0 %5676, %v1919_v56   ;;  %5689 = vrsqrt.f32 %v1733_v16 }
 0x1bc   : > { %v5680_v3 = vpop.eup %5679  ;;  %v1734_v27 = vadd.f32 1e-05, %v1670_v39 }
 0x1bd   : > { %v7772_v33 = vpop.xlane.xlu1 %1445  ;;  %v7774_v12 = vpop.xlane.xlu0 %1449  ;;  %v1920_v17 = vmul.f32 %v5680_v3, %v1856_v11  ;;  %v1859_v11 = vld [vmem:[%s6284_s24 + $0x20] sm:$0xff] }
 0x1be   : > { %v5682_v25 = vpop.eup %5681  ;;  %5691 = vrsqrt.f32 %v1734_v27  ;;  %v1672_v38 = vmul.f32 0.0051020407, %v7772_v33 }
 0x1bf   : > { %1990 = vperm.xlu1 %5675, %v1920_v17   ;;  %v1921_v61 = vmul.f32 %v5682_v25, %v1857_v31 }
 0x1c0   : > { %v5684_v56 = vpop.eup %5683 }
 0x1c1   : > { %v7777_v9 = vpop.xlane.xlu1 %1453  ;;  %v7779_v59 = vpop.xlane.xlu0 %1457  ;;  %v1922_v2 = vmul.f32 %v5684_v56, %v1858_v35 }
 0x1c2   : > { %v5686_v63 = vpop.eup %5685  ;;  %v1674_v34 = vmul.f32 0.0051020407, %v7777_v9 }
 0x1c3   : > { %1995 = vperm.xlu1 %5675, %v1921_v61   ;;  %v1923_v23 = vmul.f32 %v5686_v63, %v1859_v11  ;;  %v1860_v61 = vld [vmem:[%s6284_s24 + $0x28] sm:$0xff]  ;;  %v1862_v11 = vld [vmem:[%s6284_s24 + $0x38] sm:$0xff] }
 0x1c4   : > { %v5688_v31 = vpop.eup %5687 }
 0x1c5   : > { %v7783_v3 = vpop.xlane.xlu1 %1461  ;;  %v7785_v17 = vpop.xlane.xlu0 %1465  ;;  %v1924_v6 = vmul.f32 %v5688_v31, %v1860_v61 }
 0x1c6   : > { %v5690_v1 = vpop.eup %5689 }
 0x1c7   : > { %2000 = vperm.xlu1 %5675, %v1922_v2   ;;  %v1925_v27 = vmul.f32 %v5690_v1, %v1861_v30 }
 0x1c8   : > { %v5692_v63 = vpop.eup %5691 }
 0x1c9   : > { %v7787_v44 = vpop.xlane.xlu1 %1469  ;;  %v7789_v25 = vpop.xlane.xlu0 %1473 }
 0x1cb   : > { %2005 = vperm.xlu1 %5675, %v1923_v23   ;;  %v1926_v23 = vmul.f32 %v5692_v63, %v1862_v11 }
 0x1cd   : > { %v7792_v16 = vpop.xlane.xlu1 %1477  ;;  %v7794_v39 = vpop.xlane.xlu0 %1481 }
 0x1cf   : > { %2010 = vperm.xlu1 %5675, %v1924_v6  }
 0x1d1   : > { %v7797_v56 = vpop.xlane.xlu1 %1485  ;;  %v7799_v35 = vpop.xlane.xlu0 %1489 }
 0x1d3   : > { %2015 = vperm.xlu1 %5675, %v1925_v27  }
 0x1d5   : > { %v7802_v2 = vpop.xlane.xlu1 %1493  ;;  %v7804_v36 = vpop.xlane.xlu0 %1497 }
 0x1d7   : > { %2020 = vperm.xlu1 %5675, %v1926_v23  }
 0x1d9   : > { %v7806_v19 = vpop.xlane.xlu1 %1501  ;;  %v7808_v31 = vpop.xlane.xlu0 %1505 }
 0x1dd   : > { %v7810_v61 = vpop.xlane.xlu1 %1509  ;;  %v7812_v6 = vpop.xlane.xlu0 %1513 }
 0x1de   : > { %10696 = vst [vmem:[#allocation116_spill] sm:$0xff] %v7812_v6 }
 0x1e1   : > { %v7814_v21 = vpop.xlane.xlu1 %1517  ;;  %v7816_v30 = vpop.xlane.xlu0 %1521 }
 0x1e2   : > { %10697 = vst [vmem:[#allocation117_spill] sm:$0xff] %v7814_v21  ;;  %10698 = vst [vmem:[#allocation118_spill] sm:$0xff] %v7816_v30 }
 0x1e5   : > { %v7818_v1 = vpop.xlane.xlu1 %1525  ;;  %v7820_v27 = vpop.xlane.xlu0 %1529 }
 0x1e6   : > { %10699 = vst [vmem:[#allocation119_spill] sm:$0xff] %v7818_v1  ;;  %10700 = vst [vmem:[#allocation120_spill] sm:$0xff] %v7820_v27 }
 0x1e9   : > { %v7822_v62 = vpop.xlane.xlu1 %1533  ;;  %v1538_v63 = vpop.xlane.xlu0 %1537 }
 0x1ea   : > { %10701 = vst [vmem:[#allocation121_spill] sm:$0xff] %v7822_v62  ;;  %v1695_v11 = vmul.f32 0.0051020407, %v1538_v63 }
 0x1ec   : > { %v1759_v23 = vadd.f32 1e-05, %v1695_v11 }
 0x1ed   : > { %v1542_v15 = vpop.xlane.xlu1 %1541  ;;  %v1546_v29 = vpop.xlane.xlu0 %1545 }
 0x1ee   : > { %v1696_v53 = vmul.f32 0.0051020407, %v1542_v15  ;;  %v1697_v54 = vmul.f32 0.0051020407, %v1546_v29  ;;  %5693 = vrsqrt.f32 %v1759_v23  ;;  %v1887_v15 = vld [vmem:[%s6284_s24 + $0x100] sm:$0xff] }
 0x1f0   : > { %v1760_v8 = vadd.f32 1e-05, %v1696_v53  ;;  %v1761_v0 = vadd.f32 1e-05, %v1697_v54 }
 0x1f1   : > { %v1550_v47 = vpop.xlane.xlu1 %1549  ;;  %v1554_v26 = vpop.xlane.xlu0 %1553 }
 0x1f2   : > { %5695 = vrsqrt.f32 %v1760_v8  ;;  %v1698_v30 = vmul.f32 0.0051020407, %v1550_v47  ;;  %v1699_v1 = vmul.f32 0.0051020407, %v1554_v26  ;;  %v1888_v8 = vld [vmem:[%s6284_s24 + $0x108] sm:$0xff] }
 0x1f3   : > { %5697 = vrsqrt.f32 %v1761_v0 }
 0x1f4   : > { %v1762_v62 = vadd.f32 1e-05, %v1698_v30  ;;  %v1763_v27 = vadd.f32 1e-05, %v1699_v1 }
 0x1f5   : > { %v1558_v63 = vpop.xlane.xlu1 %1557  ;;  %v1562_v11 = vpop.xlane.xlu0 %1561 }
 0x1f6   : > { %5699 = vrsqrt.f32 %v1762_v62  ;;  %v1700_v7 = vmul.f32 0.0051020407, %v1558_v63  ;;  %v1701_v47 = vmul.f32 0.0051020407, %v1562_v11  ;;  %v1890_v63 = vld [vmem:[%s6284_s24 + $0x118] sm:$0xff] }
 0x1f7   : > { %5701 = vrsqrt.f32 %v1763_v27 }
 0x1f8   : > { %v5694_v29 = vpop.eup %5693  ;;  %v1764_v23 = vadd.f32 1e-05, %v1700_v7  ;;  %v1765_v21 = vadd.f32 1e-05, %v1701_v47 }
 0x1f9   : > { %v1566_v53 = vpop.xlane.xlu1 %1565  ;;  %v1570_v54 = vpop.xlane.xlu0 %1569  ;;  %v1951_v28 = vmul.f32 %v5694_v29, %v1887_v15  ;;  %v2465_v29 = vld [vmem:[%s6289_s13 + $0x110] sm:$0xff] }
 0x1fa   : > { %5703 = vrsqrt.f32 %v1764_v23 }
 0x1fb   : > { %2145 = vperm.xlu1 %5675, %v1951_v28   ;;  %v1891_v28 = vld [vmem:[%s6284_s24 + $0x120] sm:$0xff]  ;;  %5705 = vrsqrt.f32 %v1765_v21 }
 0x1fc   : > { %v5696_v26 = vpop.eup %5695 }
 0x1fd   : > { %v5698_v0 = vpop.eup %5697  ;;  %v1952_v30 = vmul.f32 %v5696_v26, %v1888_v8  ;;  %v1574_v1 = vpop.xlane.xlu1 %1573  ;;  %v1702_v26 = vmul.f32 0.0051020407, %v1566_v53  ;;  %v2435_v53 = vld [vmem:[%s6289_s13 + $0x20] sm:$0xff] }
 0x1fe   : > { %v7827_v62 = vpop.xlane.xlu0 %1577  ;;  %v1953_v27 = vmul.f32 %v5698_v0, %v1889_v55  ;;  %v2434_v55 = vld [vmem:[%s6289_s13 + $0x18] sm:$0xff] }
 0x1ff   : > { %2150 = vperm.xlu0 %5676, %v1952_v30   ;;  %v1766_v30 = vadd.f32 1e-05, %v1702_v26  ;;  %v1735_v26 = vadd.f32 1e-05, %v1671_v4 }
 0x200   : > { %v5700_v7 = vpop.eup %5699  ;;  %2155 = vperm.xlu1 %5675, %v1953_v27  }
 0x201   : > { %v5702_v15 = vpop.eup %5701  ;;  %v1954_v11 = vmul.f32 %v5700_v7, %v1890_v63  ;;  %v7831_v14 = vpop.xlane.xlu1 %1581  ;;  %v2466_v63 = vld [vmem:[%s6289_s13 + $0x118] sm:$0xff]  ;;  %v1892_v7 = vld [vmem:[%s6284_s24 + $0x128] sm:$0xff]  ;;  %5707 = vrsqrt.f32 %v1766_v30 }
 0x202   : > { %v7834_v8 = vpop.xlane.xlu0 %1585  ;;  %v1955_v23 = vmul.f32 %v5702_v15, %v1891_v28  ;;  %v1703_v15 = vmul.f32 0.0051020407, %v1570_v54  ;;  %v2436_v54 = vld [vmem:[%s6289_s13 + $0x28] sm:$0xff]  ;;  %5709 = vrsqrt.f32 %v1735_v26 }
 0x203   : > { %2160 = vperm.xlu0 %5676, %v1954_v11  }
 0x204   : > { %2667 = vperm.xlu1 %5675, %v2465_v29   ;;  %v5704_v27 = vpop.eup %5703  ;;  %v1767_v40 = vadd.f32 1e-05, %v1703_v15  ;;  %v2468_v15 = vld [vmem:[%s6289_s13 + $0x128] sm:$0xff] }
 0x205   : > { %v7837_v47 = vpop.xlane.xlu1 %1589  ;;  %v1956_v29 = vmul.f32 %v5704_v27, %v1892_v7  ;;  %v5706_v28 = vpop.eup %5705  ;;  %v1736_v7 = vadd.f32 1e-05, %v1672_v38  ;;  %v2469_v38 = vld [vmem:[%s6289_s13 + $0x130] sm:$0xff] }
 0x206   : > { %v7839_v0 = vpop.xlane.xlu0 %1593  ;;  %v1957_v30 = vmul.f32 %v5706_v28, %v1893_v24  ;;  %5711 = vrsqrt.f32 %v1767_v40 }
 0x207   : > { %2512 = vperm.xlu0 %5676, %v2434_v55   ;;  %v2467_v55 = vld [vmem:[%s6289_s13 + $0x120] sm:$0xff]  ;;  %5713 = vrsqrt.f32 %v1736_v7  ;;  %v1705_v7 = vmul.f32 0.0051020407, %v7827_v62  ;;  %v1864_v62 = vld [vmem:[%s6284_s24 + $0x48] sm:$0xff] }
 0x208   : > { %2165 = vperm.xlu1 %5675, %v1955_v23  }
 0x209   : > { %v7845_v21 = vpop.xlane.xlu1 %1597 }
 0x20a   : > { %v7847_v11 = vpop.xlane.xlu0 %1601 }
 0x20b   : > { %2672 = vperm.xlu0 %5676, %v2466_v63   ;;  %v5708_v63 = vpop.eup %5707 }
 0x20c   : > { %2517 = vperm.xlu1 %5675, %v2435_v53   ;;  %v1704_v53 = vmul.f32 0.0051020407, %v1574_v1 }
 0x20d   : > { %v7850_v23 = vpop.xlane.xlu1 %1605 }
 0x20e   : > { %v7853_v37 = vpop.xlane.xlu0 %1609  ;;  %v1768_v26 = vadd.f32 1e-05, %v1704_v53 }
 0x20f   : > { %2170 = vperm.xlu0 %5676, %v1956_v29   ;;  %v1894_v29 = vld [vmem:[%s6284_s24 + $0x138] sm:$0xff] }
 0x210   : > { %2677 = vperm.xlu1 %5675, %v2467_v55   ;;  %v1958_v28 = vmul.f32 %v5708_v63, %v1894_v29  ;;  %v1673_v55 = vmul.f32 0.0051020407, %v7774_v12  ;;  %5715 = vrsqrt.f32 %v1768_v26  ;;  %v1895_v12 = vld [vmem:[%s6284_s24 + $0x140] sm:$0xff] }
 0x211   : > { %v7857_v27 = vpop.xlane.xlu1 %1613 }
 0x212   : > { %v7859_v4 = vpop.xlane.xlu0 %1617  ;;  %v1737_v63 = vadd.f32 1e-05, %v1673_v55 }
 0x213   : > { %2522 = vperm.xlu0 %5676, %v2436_v54   ;;  %v5710_v54 = vpop.eup %5709 }
 0x214   : > { %2175 = vperm.xlu1 %5675, %v1957_v30   ;;  %v1863_v30 = vld [vmem:[%s6284_s24 + $0x40] sm:$0xff]  ;;  %5717 = vrsqrt.f32 %v1737_v63  ;;  %v1896_v63 = vld [vmem:[%s6284_s24 + $0x148] sm:$0xff] }
 0x215   : > { %v7864_v33 = vpop.xlane.xlu1 %1621  ;;  %v1927_v29 = vmul.f32 %v5710_v54, %v1863_v30  ;;  %v2439_v54 = vld [vmem:[%s6289_s13 + $0x40] sm:$0xff] }
 0x216   : > { %v7866_v24 = vpop.xlane.xlu0 %1625 }
 0x217   : > { %2682 = vperm.xlu0 %5676, %v2468_v15   ;;  %v5712_v15 = vpop.eup %5711 }
 0x218   : > { %2527 = vperm.xlu1 %5675, %v2437_v52   ;;  %v1959_v26 = vmul.f32 %v5712_v15, %v1895_v12  ;;  %v5714_v55 = vpop.eup %5713 }
 0x219   : > { %v7870_v1 = vpop.xlane.xlu1 %1629  ;;  %v1928_v9 = vmul.f32 %v5714_v55, %v1864_v62  ;;  %v2440_v55 = vld [vmem:[%s6289_s13 + $0x48] sm:$0xff] }
 0x21a   : > { %v7872_v40 = vpop.xlane.xlu0 %1633  ;;  %v5716_v15 = vpop.eup %5715 }
 0x21b   : > { %2180 = vperm.xlu0 %5676, %v1958_v28   ;;  %v2470_v28 = vld [vmem:[%s6289_s13 + $0x138] sm:$0xff] }
 0x21c   : > { %2687 = vperm.xlu1 %5675, %v2469_v38   ;;  %v1769_v38 = vadd.f32 1e-05, %v1705_v7 }
 0x21d   : > { %v7877_v52 = vpop.xlane.xlu1 %1637 }
 0x21e   : > { %10702 = vst [vmem:[#allocation122_spill] sm:$0xff] %v7877_v52  ;;  %v7880_v53 = vpop.xlane.xlu0 %1641  ;;  %v1738_v52 = vadd.f32 1e-05, %v1674_v34  ;;  %5719 = vrsqrt.f32 %v1769_v38  ;;  %v1675_v34 = vmul.f32 0.0051020407, %v7779_v59  ;;  %v1865_v38 = vld [vmem:[%s6284_s24 + $0x50] sm:$0xff] }
 0x21f   : > { %10703 = vst [vmem:[#allocation123_spill] sm:$0xff] %v7880_v53  ;;  %2532 = vperm.xlu0 %5676, %v2438_v32   ;;  %v1706_v32 = vmul.f32 0.0051020407, %v7831_v14  ;;  %v2471_v14 = vld [vmem:[%s6289_s13 + $0x140] sm:$0xff] }
 0x220   : > { %2025 = vperm.xlu1 %5675, %v1927_v29   ;;  %5721 = vrsqrt.f32 %v1738_v52  ;;  %v1960_v29 = vmul.f32 %v5716_v15, %v1896_v63  ;;  %v1739_v62 = vadd.f32 1e-05, %v1675_v34  ;;  %v1707_v52 = vmul.f32 0.0051020407, %v7834_v8  ;;  %v1897_v63 = vld [vmem:[%s6284_s24 + $0x150] sm:$0xff]  ;;  %v1866_v8 = vld [vmem:[%s6284_s24 + $0x58] sm:$0xff] }
 0x221   : > { %v7884_v57 = vpop.xlane.xlu1 %1645  ;;  %v1770_v7 = vadd.f32 1e-05, %v1706_v32  ;;  %v1676_v15 = vmul.f32 0.0051020407, %v7783_v3 }
 0x222   : > { %10704 = vst [vmem:[#allocation124_spill] sm:$0xff] %v7884_v57  ;;  %v7887_v49 = vpop.xlane.xlu0 %1649 }
 0x223   : > { %10705 = vst [vmem:[#allocation125_spill] sm:$0xff] %v7887_v49  ;;  %2692 = vperm.xlu0 %5676, %v2470_v28   ;;  %5723 = vrsqrt.f32 %v1770_v7  ;;  %v1771_v7 = vadd.f32 1e-05, %v1707_v52  ;;  %v1677_v52 = vmul.f32 0.0051020407, %v7785_v17 }
 0x224   : > { %2185 = vperm.xlu1 %5675, %v1959_v26   ;;  %v5718_v26 = vpop.eup %5717  ;;  %5725 = vrsqrt.f32 %v1739_v62  ;;  %v1898_v62 = vld [vmem:[%s6284_s24 + $0x158] sm:$0xff]  ;;  %v1709_v17 = vmul.f32 0.0051020407, %v7839_v0  ;;  %v1678_v0 = vmul.f32 0.0051020407, %v7787_v44 }
 0x225   : > { %v7891_v30 = vpop.xlane.xlu1 %1653  ;;  %5727 = vrsqrt.f32 %v1771_v7  ;;  %v1710_v44 = vmul.f32 0.0051020407, %v7845_v21  ;;  %v1679_v21 = vmul.f32 0.0051020407, %v7789_v25  ;;  %v1901_v25 = vld [vmem:[%s6284_s24 + $0x170] sm:$0xff] }
 0x226   : > { %10706 = vst [vmem:[#allocation126_spill] sm:$0xff] %v7891_v30  ;;  %v7894_v12 = vpop.xlane.xlu0 %1657  ;;  %v2944_v30 = vld [vmem:[%s6279_s26 + $0x8] sm:$0xff] }
 0x227   : > { %2030 = vperm.xlu0 %5676, %v1928_v9   ;;  %10707 = vst [vmem:[#allocation127_spill] sm:$0xff] %v7894_v12  ;;  %v1929_v9 = vmul.f32 %v5718_v26, %v1865_v38  ;;  %v1740_v12 = vadd.f32 1e-05, %v1676_v15  ;;  %v1708_v26 = vmul.f32 0.0051020407, %v7837_v47  ;;  %v2473_v47 = vld [vmem:[%s6289_s13 + $0x150] sm:$0xff] }
 0x228   : > { %2537 = vperm.xlu1 %5675, %v2439_v54   ;;  %v5720_v59 = vpop.eup %5719 }
 0x229   : > { %v7898_v28 = vpop.xlane.xlu1 %1661  ;;  %v1961_v34 = vmul.f32 %v5720_v59, %v1897_v63  ;;  %5729 = vrsqrt.f32 %v1740_v12  ;;  %v1772_v59 = vadd.f32 1e-05, %v1708_v26  ;;  %v1867_v12 = vld [vmem:[%s6284_s24 + $0x60] sm:$0xff]  ;;  %v2442_v26 = vld [vmem:[%s6289_s13 + $0x58] sm:$0xff] }
 0x22a   : > { %10708 = vst [vmem:[#allocation128_spill] sm:$0xff] %v7898_v28 }
 0x22b   : > { %2190 = vperm.xlu0 %5676, %v1960_v29   ;;  %v2472_v29 = vld [vmem:[%s6289_s13 + $0x148] sm:$0xff]  ;;  %5731 = vrsqrt.f32 %v1772_v59  ;;  %v2474_v59 = vld [vmem:[%s6289_s13 + $0x158] sm:$0xff] }
 0x22c   : > { %2697 = vperm.xlu1 %5675, %v2471_v14   ;;  %v5722_v14 = vpop.eup %5721 }
 0x22d   : > { %v2498_v32 = vpop.permute.xlu1 %2497  ;;  %v7903_v54 = vpop.permute.xlu0 %2502  ;;  %v1930_v38 = vmul.f32 %v5722_v14, %v1866_v8  ;;  %v1741_v8 = vadd.f32 1e-05, %v1677_v52 }
 0x22f   : > { %2542 = vperm.xlu0 %5676, %v2440_v55   ;;  %v2441_v55 = vld [vmem:[%s6289_s13 + $0x50] sm:$0xff]  ;;  %5733 = vrsqrt.f32 %v1741_v8 }
 0x230   : > { %2035 = vperm.xlu1 %5675, %v1929_v9   ;;  %v5724_v9 = vpop.eup %5723 }
 0x231   : > { %v7908_v28 = vpop.permute.xlu1 %2657  ;;  %v7912_v3 = vpop.permute.xlu0 %2662  ;;  %v1962_v63 = vmul.f32 %v5724_v9, %v1898_v62 }
 0x232   : > { %v5726_v7 = vpop.eup %5725 }
 0x233   : > { %2702 = vperm.xlu0 %5676, %v2472_v29   ;;  %v1931_v62 = vmul.f32 %v5726_v7, %v1867_v12  ;;  %v1868_v12 = vld [vmem:[%s6284_s24 + $0x68] sm:$0xff] }
 0x234   : > { %2195 = vperm.xlu1 %5675, %v1961_v34  }
 0x235   : > { %v7917_v15 = vpop.permute.xlu1 %2507 }
 0x237   : > { %2040 = vperm.xlu0 %5676, %v1930_v38  }
 0x238   : > { %2547 = vperm.xlu1 %5675, %v2441_v55  }
 0x23a   : > { %v1986_v29 = vpop.permute.xlu0 %1985 }
 0x23b   : > { %v2303_v14 = vmul.f32 %v1986_v29, %v7060_v60  ;;  %v2304_v34 = vmul.f32 %v1986_v29, %v7063_v10  ;;  %2200 = vperm.xlu0 %5676, %v1962_v63   ;;  %v2943_v60 = vld [vmem:[%s6279_s26] sm:$0xff]  ;;  %v5728_v10 = vpop.eup %5727 }
 0x23c   : > { %2707 = vperm.xlu1 %5675, %v2473_v47   ;;  %v1899_v29 = vld [vmem:[%s6284_s24 + $0x160] sm:$0xff]  ;;  %v1773_v47 = vadd.f32 1e-05, %v1709_v17  ;;  %v5730_v7 = vpop.eup %5729 }
 0x23d   : > { %v2815_v38 = vadd.f32 %v2498_v32, %v2303_v14  ;;  %v2816_v55 = vadd.f32 %v2498_v32, %v2304_v34  ;;  %v2946_v32 = vld [vmem:[%s6279_s26 + $0x18] sm:$0xff]  ;;  %v2945_v14 = vld [vmem:[%s6279_s26 + $0x10] sm:$0xff]  ;;  %v1932_v17 = vmul.f32 %v5730_v7, %v1868_v12 }
 0x23e   : > { %v1991_v9 = vpop.permute.xlu1 %1990  ;;  %5735 = vrsqrt.f32 %v1773_v47  ;;  %v2476_v47 = vld [vmem:[%s6289_s13 + $0x168] sm:$0xff] }
 0x23f   : > { %v2305_v63 = vmul.f32 %v1991_v9, %v7080_v42  ;;  %v2306_v52 = vmul.f32 %v1991_v9, %v7083_v5  ;;  %2552 = vperm.xlu0 %5676, %v2442_v26   ;;  %v3072_v42 = vadd.f32 %v2944_v30, %v2816_v55  ;;  %v3071_v57 = vadd.f32 %v2943_v60, %v2815_v38  ;;  %v5732_v30 = vpop.eup %5731 }
 0x240   : > { %2045 = vperm.xlu1 %5675, %v1931_v62   ;;  %v1963_v5 = vmul.f32 %v5728_v10, %v1899_v29  ;;  %v1742_v9 = vadd.f32 1e-05, %v1678_v0  ;;  %v2443_v62 = vld [vmem:[%s6289_s13 + $0x60] sm:$0xff]  ;;  %v1774_v55 = vadd.f32 1e-05, %v1710_v44 }
 0x241   : > { %v2817_v34 = vadd.f32 %v7903_v54, %v2305_v63  ;;  %v2818_v49 = vadd.f32 %v7903_v54, %v2306_v52  ;;  %v3200_v53 = vmax.f32 %v3072_v42, 0.0  ;;  %v3199_v6 = vmax.f32 %v3071_v57, 0.0  ;;  %v1900_v54 = vld [vmem:[%s6284_s24 + $0x168] sm:$0xff]  ;;  %v2475_v10 = vld [vmem:[%s6289_s13 + $0x160] sm:$0xff]  ;;  %v5734_v52 = vpop.eup %5733  ;;  %v1869_v57 = vld [vmem:[%s6284_s24 + $0x70] sm:$0xff] }
 0x242   : > { %5737 = vrsqrt.f32 %v1742_v9  ;;  %v1964_v60 = vmul.f32 %v5732_v30, %v1900_v54  ;;  %v1933_v29 = vmul.f32 %v5734_v52, %v1869_v57  ;;  %v1680_v0 = vmul.f32 0.0051020407, %v7792_v16  ;;  %v7953_v44 = vpop.permute.xlu1 %1995  ;;  %v2446_v30 = vld [vmem:[%s6289_s13 + $0x78] sm:$0xff] }
 0x243   : > { %2712 = vperm.xlu0 %5676, %v2474_v59   ;;  %v3074_v26 = vadd.f32 %v2946_v32, %v2818_v49  ;;  %v3073_v8 = vadd.f32 %v2945_v14, %v2817_v34  ;;  %5739 = vrsqrt.f32 %v1774_v55  ;;  %v2444_v59 = vld [vmem:[%s6289_s13 + $0x68] sm:$0xff]  ;;  %v1870_v34 = vld [vmem:[%s6284_s24 + $0x78] sm:$0xff]  ;;  %v1681_v9 = vmul.f32 0.0051020407, %v7794_v39  ;;  %v1903_v39 = vld [vmem:[%s6284_s24 + $0x180] sm:$0xff] }
 0x244   : > { %2205 = vperm.xlu1 %5675, %v1963_v5   ;;  %v1744_v12 = vadd.f32 1e-05, %v1680_v0  ;;  %v2445_v5 = vld [vmem:[%s6289_s13 + $0x70] sm:$0xff]  ;;  %v1904_v0 = vld [vmem:[%s6284_s24 + $0x188] sm:$0xff] }
 0x245   : > { %v3202_v63 = vmax.f32 %v3074_v26, 0.0  ;;  %v3201_v13 = vmax.f32 %v3073_v8, 0.0  ;;  %v1902_v26 = vld [vmem:[%s6284_s24 + $0x178] sm:$0xff]  ;;  %v1745_v54 = vadd.f32 1e-05, %v1681_v9 }
 0x247   : > { %2050 = vperm.xlu0 %5676, %v1932_v17   ;;  %v5456_v38 = vpack.c.bf16 %v3202_v63, %v3200_v53  ;;  %v5458_v49 = vpack.c.bf16 %v3201_v13, %v3199_v6  ;;  %v1743_v53 = vadd.f32 1e-05, %v1679_v21  ;;  %v1711_v13 = vmul.f32 0.0051020407, %v7847_v11  ;;  %v1871_v63 = vld [vmem:[%s6284_s24 + $0x80] sm:$0xff]  ;;  %v7959_v21 = vpop.permute.xlu1 %2000 }
 0x248   : > { %2557 = vperm.xlu1 %5675, %v2443_v62   ;;  %v5736_v6 = vpop.eup %5735  ;;  %v1712_v11 = vmul.f32 0.0051020407, %v7850_v23  ;;  %v2477_v62 = vld [vmem:[%s6289_s13 + $0x170] sm:$0xff] }
 0x249   : > { %5457 = vmatprep.subr.bf16.mxu1 %v5456_v38  ;;  %5741 = vrsqrt.f32 %v1743_v53  ;;  %v1775_v32 = vadd.f32 1e-05, %v1711_v13  ;;  %v1965_v7 = vmul.f32 %v5736_v6, %v1901_v25  ;;  %v1713_v38 = vmul.f32 0.0051020407, %v7853_v37  ;;  %v1872_v53 = vld [vmem:[%s6284_s24 + $0x88] sm:$0xff] }
 0x24a   : > { %5459 = vmatpush1.bf16.msra.mxu1 %v5458_v49  ;;  %v1776_v8 = vadd.f32 1e-05, %v1712_v11  ;;  %v1714_v13 = vmul.f32 0.0051020407, %v7857_v27 }
 0x24b   : > { %2210 = vperm.xlu0 %5676, %v1964_v60   ;;  %5743 = vrsqrt.f32 %v1775_v32  ;;  %v1682_v60 = vmul.f32 0.0051020407, %v7797_v56  ;;  %v1777_v52 = vadd.f32 1e-05, %v1713_v38  ;;  %v7966_v6 = vpop.permute.xlu1 %2005  ;;  %v2447_v56 = vld [vmem:[%s6289_s13 + $0x80] sm:$0xff] }
 0x24c   : > { %2717 = vperm.xlu1 %5675, %v2475_v10   ;;  %v5738_v14 = vpop.eup %5737  ;;  %5745 = vrsqrt.f32 %v1744_v12  ;;  %v2478_v10 = vld [vmem:[%s6289_s13 + $0x178] sm:$0xff]  ;;  %v1778_v32 = vadd.f32 1e-05, %v1714_v13  ;;  %v1873_v12 = vld [vmem:[%s6284_s24 + $0x90] sm:$0xff] }
 0x24d   : > { %v1934_v42 = vmul.f32 %v5738_v14, %v1870_v34  ;;  %v5740_v16 = vpop.eup %5739  ;;  %5747 = vrsqrt.f32 %v1776_v8  ;;  %v1746_v37 = vadd.f32 1e-05, %v1682_v60  ;;  %v1905_v8 = vld [vmem:[%s6284_s24 + $0x190] sm:$0xff] }
 0x24e   : > { %v1966_v17 = vmul.f32 %v5740_v16, %v1902_v26  ;;  %5749 = vrsqrt.f32 %v1745_v54  ;;  %v1716_v54 = vmul.f32 0.0051020407, %v7864_v33 }
 0x24f   : > { %2562 = vperm.xlu0 %5676, %v2444_v59   ;;  %5751 = vrsqrt.f32 %v1777_v52  ;;  %v7972_v34 = vpop.permute.xlu1 %2010  ;;  %v1686_v52 = vmul.f32 0.0051020407, %v7806_v19 }
 0x250   : > { %2055 = vperm.xlu1 %5675, %v1933_v29   ;;  %5753 = vrsqrt.f32 %v1746_v37  ;;  %v1780_v60 = vadd.f32 1e-05, %v1716_v54  ;;  %v1875_v37 = vld [vmem:[%s6284_s24 + $0xa0] sm:$0xff] }
 0x251   : > { %5755 = vrsqrt.f32 %v1778_v32 }
 0x253   : > { %2722 = vperm.xlu0 %5676, %v2476_v47   ;;  %v5742_v23 = vpop.eup %5741  ;;  %v1683_v47 = vmul.f32 0.0051020407, %v7799_v35  ;;  %v1715_v35 = vmul.f32 0.0051020407, %v7859_v4  ;;  %v1685_v4 = vmul.f32 0.0051020407, %v7804_v36 }
 0x254   : > { %2215 = vperm.xlu1 %5675, %v1965_v7   ;;  %v1935_v49 = vmul.f32 %v5742_v23, %v1871_v63  ;;  %v2479_v7 = vld [vmem:[%s6289_s13 + $0x180] sm:$0xff]  ;;  %v7980_v23 = vpop.permute.xlu1 %2015  ;;  %v1717_v36 = vmul.f32 0.0051020407, %v7866_v24  ;;  %v2307_v24 = vmul.f32 %v7953_v44, %v7066_v50 }
 0x255   : > { %v5744_v55 = vpop.eup %5743  ;;  %v1747_v11 = vadd.f32 1e-05, %v1683_v47  ;;  %v1749_v33 = vadd.f32 1e-05, %v1685_v4 }
 0x256   : > { %v5746_v57 = vpop.eup %5745  ;;  %v1967_v59 = vmul.f32 %v5744_v55, %v1903_v39  ;;  %v1906_v39 = vld [vmem:[%s6284_s24 + $0x198] sm:$0xff] }
 0x257   : > { %2060 = vperm.xlu0 %5676, %v1934_v42   ;;  %v1936_v29 = vmul.f32 %v5746_v57, %v1872_v53  ;;  %v5748_v25 = vpop.eup %5747  ;;  %v1684_v42 = vmul.f32 0.0051020407, %v7802_v2  ;;  %5757 = vrsqrt.f32 %v1747_v11  ;;  %v1718_v11 = vmul.f32 0.0051020407, %v7870_v1 }
 0x258   : > { %2567 = vperm.xlu1 %5675, %v2445_v5   ;;  %v1968_v14 = vmul.f32 %v5748_v25, %v1904_v0  ;;  %v5750_v27 = vpop.eup %5749  ;;  %v2448_v5 = vld [vmem:[%s6289_s13 + $0x88] sm:$0xff]  ;;  %v2450_v0 = vld [vmem:[%s6289_s13 + $0x98] sm:$0xff] }
 0x259   : > { %v1937_v16 = vmul.f32 %v5750_v27, %v1873_v12  ;;  %v5752_v26 = vpop.eup %5751  ;;  %v1748_v9 = vadd.f32 1e-05, %v1684_v42  ;;  %v3007_v27 = vld [vmem:[%s6279_s26 + $0x200] sm:$0xff]  ;;  %v1781_v42 = vadd.f32 1e-05, %v1717_v36 }
 0x25a   : > { %v5754_v2 = vpop.eup %5753  ;;  %v1969_v63 = vmul.f32 %v5752_v26, %v1905_v8  ;;  %v3010_v26 = vld [vmem:[%s6279_s26 + $0x218] sm:$0xff]  ;;  %v3009_v8 = vld [vmem:[%s6279_s26 + $0x210] sm:$0xff]  ;;  %v1782_v54 = vadd.f32 1e-05, %v1718_v11 }
 0x25b   : > { %2220 = vperm.xlu0 %5676, %v1966_v17   ;;  %v2480_v17 = vld [vmem:[%s6289_s13 + $0x188] sm:$0xff]  ;;  %5759 = vrsqrt.f32 %v1748_v9  ;;  %v5756_v55 = vpop.eup %5755 }
 0x25c   : > { %2727 = vperm.xlu1 %5675, %v2477_v62   ;;  %v1779_v62 = vadd.f32 1e-05, %v1715_v35  ;;  %v1970_v57 = vmul.f32 %v5756_v55, %v1906_v39  ;;  %v2948_v55 = vld [vmem:[%s6279_s26 + $0x28] sm:$0xff]  ;;  %v2309_v39 = vmul.f32 %v7959_v21, %v7087_v20  ;;  %v2949_v20 = vld [vmem:[%s6279_s26 + $0x30] sm:$0xff] }
 0x25e   : > { %5761 = vrsqrt.f32 %v1779_v62 }
 0x25f   : > { %2572 = vperm.xlu0 %5676, %v2446_v30   ;;  %v1874_v30 = vld [vmem:[%s6284_s24 + $0x98] sm:$0xff]  ;;  %5763 = vrsqrt.f32 %v1780_v60 }
 0x260   : > { %2065 = vperm.xlu1 %5675, %v1935_v49   ;;  %v1938_v38 = vmul.f32 %v5754_v2, %v1874_v30  ;;  %v2449_v49 = vld [vmem:[%s6289_s13 + $0x90] sm:$0xff]  ;;  %5765 = vrsqrt.f32 %v1749_v33 }
 0x261   : > { %v5758_v53 = vpop.eup %5757 }
 0x262   : > { %v1939_v47 = vmul.f32 %v5758_v53, %v1875_v37 }
 0x263   : > { %2732 = vperm.xlu0 %5676, %v2478_v10   ;;  %v7987_v10 = vpop.permute.xlu1 %2020 }
 0x264   : > { %2225 = vperm.xlu1 %5675, %v1967_v59   ;;  %v2481_v59 = vld [vmem:[%s6289_s13 + $0x190] sm:$0xff] }
 0x265   : > { %v5760_v32 = vpop.eup %5759 }
 0x267   : > { %2070 = vperm.xlu0 %5676, %v1936_v29   ;;  %v1750_v29 = vadd.f32 1e-05, %v1686_v52 }
 0x268   : > { %2577 = vperm.xlu1 %5675, %v2447_v56   ;;  %v1687_v56 = vmul.f32 0.0051020407, %v7808_v31  ;;  %v5762_v12 = vpop.eup %5761 }
 0x269   : > { %5767 = vrsqrt.f32 %v1750_v29  ;;  %v5764_v33 = vpop.eup %5763 }
 0x26a   : > { %5769 = vrsqrt.f32 %v1781_v42 }
 0x26b   : > { %2230 = vperm.xlu0 %5676, %v1968_v14   ;;  %v2308_v14 = vmul.f32 %v7953_v44, %v7069_v22  ;;  %v1907_v22 = vld [vmem:[%s6284_s24 + $0x1a0] sm:$0xff]  ;;  %v1876_v44 = vld [vmem:[%s6284_s24 + $0xa8] sm:$0xff]  ;;  %5771 = vrsqrt.f32 %v1782_v54 }
 0x26c   : > { %2737 = vperm.xlu1 %5675, %v2479_v7   ;;  %v1940_v30 = vmul.f32 %v5760_v32, %v1876_v44  ;;  %v10712_v54 = vld [vmem:[#allocation55_spill] sm:$0xff] }
 0x26d   : > { %v2820_v62 = vadd.f32 %v7917_v15, %v2308_v14 }
 0x26f   : > { %2582 = vperm.xlu0 %5676, %v2448_v5  }
 0x270   : > { %2075 = vperm.xlu1 %5675, %v1937_v16   ;;  %v8010_v16 = vadd.f32 1e-05, %v1687_v56 }
 0x272   : > { %5773 = vrsqrt.f32 %v8010_v16 }
 0x273   : > { %2742 = vperm.xlu0 %5676, %v2480_v17  }
 0x274   : > { %2235 = vperm.xlu1 %5675, %v1969_v63   ;;  %v1971_v63 = vmul.f32 %v5762_v12, %v1907_v22  ;;  %v10709_v12 = vld [vmem:[#allocation25_spill] sm:$0xff] }
 0x277   : > { %2080 = vperm.xlu0 %5676, %v1938_v38  }
 0x278   : > { %2587 = vperm.xlu1 %5675, %v2449_v49  }
 0x27a   : > { %v2146_v13 = vpop.permute.xlu1 %2145 }
 0x27b   : > { %2240 = vperm.xlu0 %5676, %v1970_v57   ;;  %v2367_v25 = vmul.f32 %v2146_v13, %v7410_v43  ;;  %v2368_v19 = vmul.f32 %v2146_v13, %v7413_v51  ;;  %v3008_v51 = vld [vmem:[%s6279_s26 + $0x208] sm:$0xff]  ;;  %v2451_v57 = vld [vmem:[%s6289_s13 + $0xa0] sm:$0xff] }
 0x27c   : > { %2747 = vperm.xlu1 %5675, %v2481_v59   ;;  %v1908_v13 = vld [vmem:[%s6284_s24 + $0x1a8] sm:$0xff] }
 0x27d   : > { %v2879_v7 = vadd.f32 %v7908_v28, %v2367_v25  ;;  %v2880_v43 = vadd.f32 %v7908_v28, %v2368_v19  ;;  %v2482_v28 = vld [vmem:[%s6289_s13 + $0x198] sm:$0xff] }
 0x27e   : > { %v2151_v31 = vpop.permute.xlu0 %2150  ;;  %v2950_v25 = vld [vmem:[%s6279_s26 + $0x38] sm:$0xff] }
 0x27f   : > { %v2156_v5 = vpop.permute.xlu1 %2155  ;;  %v2369_v50 = vmul.f32 %v2151_v31, %v7417_v48  ;;  %v2370_v35 = vmul.f32 %v2151_v31, %v7420_v58  ;;  %2592 = vperm.xlu0 %5676, %v2450_v0   ;;  %v3136_v17 = vadd.f32 %v3008_v51, %v2880_v43  ;;  %v3135_v48 = vadd.f32 %v3007_v27, %v2879_v7  ;;  %v3011_v0 = vld [vmem:[%s6279_s26 + $0x220] sm:$0xff] }
 0x280   : > { %2085 = vperm.xlu1 %5675, %v1939_v47   ;;  %v2819_v58 = vadd.f32 %v7917_v15, %v2307_v24  ;;  %v2310_v15 = vmul.f32 %v7959_v21, %v7090_v46  ;;  %v2371_v60 = vmul.f32 %v2156_v5, %v7432_v18  ;;  %v2372_v52 = vmul.f32 %v2156_v5, %v7435_v41  ;;  %v5766_v18 = vpop.eup %5765  ;;  %v3012_v41 = vld [vmem:[%s6279_s26 + $0x228] sm:$0xff] }
 0x281   : > { %v2881_v9 = vadd.f32 %v7912_v3, %v2369_v50  ;;  %v2882_v1 = vadd.f32 %v7912_v3, %v2370_v35  ;;  %v2947_v3 = vld [vmem:[%s6279_s26 + $0x20] sm:$0xff]  ;;  %v3264_v59 = vmax.f32 %v3136_v17, 0.0  ;;  %v3263_v37 = vmax.f32 %v3135_v48, 0.0  ;;  %v8038_v35 = vpop.eup %5767  ;;  %v1877_v17 = vld [vmem:[%s6284_s24 + $0xb0] sm:$0xff] }
 0x282   : > { %v2161_v2 = vpop.permute.xlu0 %2160  ;;  %v3076_v46 = vadd.f32 %v2948_v55, %v2820_v62  ;;  %v3075_v21 = vadd.f32 %v2947_v3, %v2819_v58  ;;  %v1688_v31 = vmul.f32 0.0051020407, %v7810_v61  ;;  %v1719_v43 = vmul.f32 0.0051020407, %v7872_v40  ;;  %v2483_v50 = vld [vmem:[%s6289_s13 + $0x1a0] sm:$0xff]  ;;  %v3013_v61 = vld [vmem:[%s6279_s26 + $0x230] sm:$0xff] }
 0x283   : > { %v2668_v4 = vpop.permute.xlu1 %2667  ;;  %2752 = vperm.xlu0 %5676, %v2482_v28   ;;  %v3138_v38 = vadd.f32 %v3010_v26, %v2882_v1  ;;  %v3137_v49 = vadd.f32 %v3009_v8, %v2881_v9  ;;  %v1972_v51 = vmul.f32 %v5764_v33, %v1908_v13  ;;  %v2373_v27 = vmul.f32 %v2161_v2, %v7439_v45  ;;  %v3014_v28 = vld [vmem:[%s6279_s26 + $0x238] sm:$0xff]  ;;  %v10710_v62 = vld [vmem:[#allocation116_spill] sm:$0xff] }
 0x284   : > { %2245 = vperm.xlu1 %5675, %v1971_v63   ;;  %v2883_v29 = vadd.f32 %v2668_v4, %v2371_v60  ;;  %v2884_v56 = vadd.f32 %v2668_v4, %v2372_v52  ;;  %v2374_v11 = vmul.f32 %v2161_v2, %v10709_v12  ;;  %v3204_v26 = vmax.f32 %v3076_v46, 0.0  ;;  %v10711_v63 = vld [vmem:[#allocation54_spill] sm:$0xff]  ;;  %v1909_v60 = vld [vmem:[%s6284_s24 + $0x1b0] sm:$0xff] }
 0x285   : > { %v3266_v53 = vmax.f32 %v3138_v38, 0.0  ;;  %v3265_v36 = vmax.f32 %v3137_v49, 0.0  ;;  %v3203_v8 = vmax.f32 %v3075_v21, 0.0  ;;  %v1689_v2 = vmul.f32 0.0051020407, %v10710_v62  ;;  %v2452_v38 = vld [vmem:[%s6289_s13 + $0xa8] sm:$0xff]  ;;  %v5770_v49 = vpop.eup %5769 }
 0x286   : > { %v2513_v19 = vpop.permute.xlu0 %2512  ;;  %v3139_v22 = vadd.f32 %v3011_v0, %v2883_v29  ;;  %v3140_v44 = vadd.f32 %v3012_v41, %v2884_v56  ;;  %v2312_v4 = vmul.f32 %v7966_v6, %v10712_v54  ;;  %v1783_v52 = vadd.f32 1e-05, %v1719_v43  ;;  %v10714_v46 = vld [vmem:[#allocation26_spill] sm:$0xff]  ;;  %v10715_v41 = vld [vmem:[#allocation56_spill] sm:$0xff] }
 0x287   : > { %v2166_v47 = vpop.permute.xlu1 %2165  ;;  %v2821_v32 = vadd.f32 %v2513_v19, %v2309_v39  ;;  %v2822_v24 = vadd.f32 %v2513_v19, %v2310_v15  ;;  %2090 = vperm.xlu0 %5676, %v1940_v30   ;;  %v5520_v14 = vpack.c.bf16 %v3266_v53, %v3264_v59  ;;  %v5522_v7 = vpack.c.bf16 %v3265_v36, %v3263_v37  ;;  %v2951_v53 = vld [vmem:[%s6279_s26 + $0x40] sm:$0xff]  ;;  %v2952_v37 = vld [vmem:[%s6279_s26 + $0x48] sm:$0xff]  ;;  %v1878_v43 = vld [vmem:[%s6284_s24 + $0xb8] sm:$0xff] }
 0x288   : > { %2597 = vperm.xlu1 %5675, %v2451_v57   ;;  %v2311_v30 = vmul.f32 %v7966_v6, %v10711_v63  ;;  %v1941_v59 = vmul.f32 %v5766_v18, %v1877_v17  ;;  %v3268_v6 = vmax.f32 %v3140_v44, 0.0  ;;  %v3267_v29 = vmax.f32 %v3139_v22, 0.0  ;;  %v2484_v18 = vld [vmem:[%s6289_s13 + $0x1a8] sm:$0xff]  ;;  %v3015_v44 = vld [vmem:[%s6279_s26 + $0x240] sm:$0xff]  ;;  %v1910_v54 = vld [vmem:[%s6284_s24 + $0x1b8] sm:$0xff] }
 0x289   : > { %v3077_v42 = vadd.f32 %v2949_v20, %v2821_v32  ;;  %v3078_v5 = vadd.f32 %v2950_v25, %v2822_v24  ;;  %5521 = vmatprep.subr.bf16.mxu0 %v5520_v14  ;;  %v1752_v20 = vadd.f32 1e-05, %v1688_v31  ;;  %v10713_v25 = vld [vmem:[#allocation23_spill] sm:$0xff]  ;;  %v2376_v21 = vmul.f32 %v2166_v47, %v10714_v46  ;;  %v10716_v24 = vld [vmem:[#allocation57_spill] sm:$0xff]  ;;  %v10719_v17 = vld [vmem:[#allocation24_spill] sm:$0xff] }
 0x28a   : > { %5523 = vmatpush1.bf16.msra.mxu0 %v5522_v7  ;;  %v2673_v40 = vpop.permute.xlu0 %2672  ;;  %v2375_v19 = vmul.f32 %v2166_v47, %v10713_v25  ;;  %v1973_v0 = vmul.f32 %v5770_v49, %v1909_v60  ;;  %v2313_v32 = vmul.f32 %v7972_v34, %v10715_v41  ;;  %v2314_v14 = vmul.f32 %v7972_v34, %v10716_v24  ;;  %v2485_v25 = vld [vmem:[%s6289_s13 + $0x1b0] sm:$0xff] }
 0x28b   : > { %v2518_v9 = vpop.permute.xlu1 %2517  ;;  %v2885_v45 = vadd.f32 %v2673_v40, %v2373_v27  ;;  %v2886_v1 = vadd.f32 %v2673_v40, %v2374_v11  ;;  %2250 = vperm.xlu0 %5676, %v1972_v51   ;;  %v3206_v48 = vmax.f32 %v3078_v5, 0.0  ;;  %v3205_v58 = vmax.f32 %v3077_v42, 0.0  ;;  %v5772_v51 = vpop.eup %5771  ;;  %v2953_v42 = vld [vmem:[%s6279_s26 + $0x50] sm:$0xff]  ;;  %v2954_v5 = vld [vmem:[%s6279_s26 + $0x58] sm:$0xff] }
 0x28c   : > { %2757 = vperm.xlu1 %5675, %v2483_v50   ;;  %v2823_v16 = vadd.f32 %v2518_v9, %v2311_v30  ;;  %v2824_v33 = vadd.f32 %v2518_v9, %v2312_v4  ;;  %v8063_v22 = vadd.f32 1e-05, %v1689_v2  ;;  %5775 = vrsqrt.f32 %v1783_v52  ;;  %v10718_v9 = vld [vmem:[#allocation123_spill] sm:$0xff]  ;;  %v2453_v30 = vld [vmem:[%s6289_s13 + $0xb0] sm:$0xff]  ;;  %v5774_v4 = vpop.eup %5773 }
 0x28d   : > { %v3141_v55 = vadd.f32 %v3013_v61, %v2885_v45  ;;  %v3142_v3 = vadd.f32 %v3014_v28, %v2886_v1  ;;  %v5460_v39 = vpack.c.bf16 %v3206_v48, %v3204_v26  ;;  %v5462_v15 = vpack.c.bf16 %v3205_v58, %v3203_v8  ;;  %v3016_v61 = vld [vmem:[%s6279_s26 + $0x248] sm:$0xff]  ;;  %v10717_v26 = vld [vmem:[#allocation122_spill] sm:$0xff]  ;;  %v10720_v58 = vld [vmem:[#allocation29_spill] sm:$0xff] }
 0x28e   : > { %v2171_v57 = vpop.permute.xlu0 %2170  ;;  %v3079_v27 = vadd.f32 %v2951_v53, %v2823_v16  ;;  %v3080_v12 = vadd.f32 %v2952_v37, %v2824_v33  ;;  %5777 = vrsqrt.f32 %v1752_v20  ;;  %v1720_v8 = vmul.f32 0.0051020407, %v10717_v26  ;;  %v10721_v37 = vld [vmem:[#allocation58_spill] sm:$0xff] }
 0x28f   : > { %v2678_v36 = vpop.permute.xlu1 %2677  ;;  %2602 = vperm.xlu0 %5676, %v2452_v38   ;;  %5461 = vmatprep.subr.bf16.mxu1 %v5460_v39  ;;  %v3270_v13 = vmax.f32 %v3142_v3, 0.0  ;;  %v3269_v56 = vmax.f32 %v3141_v55, 0.0  ;;  %v1721_v45 = vmul.f32 0.0051020407, %v10718_v9  ;;  %v1942_v1 = vmul.f32 %v8038_v35, %v1878_v43  ;;  %v3017_v55 = vld [vmem:[%s6279_s26 + $0x250] sm:$0xff]  ;;  %v3018_v3 = vld [vmem:[%s6279_s26 + $0x258] sm:$0xff] }
 0x290   : > { %2095 = vperm.xlu1 %5675, %v1941_v59   ;;  %5463 = vmatpush1.bf16.msra.mxu1 %v5462_v15  ;;  %v2887_v47 = vadd.f32 %v2678_v36, %v2375_v19  ;;  %v2888_v11 = vadd.f32 %v2678_v36, %v2376_v21  ;;  %v2377_v48 = vmul.f32 %v2171_v57, %v10719_v17  ;;  %v3208_v15 = vmax.f32 %v3080_v12, 0.0  ;;  %v1879_v59 = vld [vmem:[%s6284_s24 + $0xc0] sm:$0xff]  ;;  %v10723_v21 = vld [vmem:[#allocation117_spill] sm:$0xff] }
 0x291   : > { %v5524_v7 = vpack.c.bf16 %v3270_v13, %v3268_v6  ;;  %v5526_v31 = vpack.c.bf16 %v3269_v56, %v3267_v29  ;;  %v2378_v62 = vmul.f32 %v2171_v57, %v10720_v58  ;;  %v3207_v60 = vmax.f32 %v3079_v27, 0.0  ;;  %v10722_v6 = vld [vmem:[#allocation59_spill] sm:$0xff] }
 0x292   : > { %v2523_v50 = vpop.permute.xlu0 %2522  ;;  %v3143_v38 = vadd.f32 %v3015_v44, %v2887_v47  ;;  %v3144_v49 = vadd.f32 %v3016_v61, %v2888_v11  ;;  %v1784_v53 = vadd.f32 1e-05, %v1720_v8  ;;  %v2315_v36 = vmul.f32 %v7980_v23, %v10721_v37  ;;  %v10724_v47 = vld [vmem:[#allocation27_spill] sm:$0xff]  ;;  %v10726_v61 = vld [vmem:[#allocation60_spill] sm:$0xff] }
 0x293   : > { %v2176_v28 = vpop.permute.xlu1 %2175  ;;  %v2825_v34 = vadd.f32 %v2523_v50, %v2313_v32  ;;  %v2826_v40 = vadd.f32 %v2523_v50, %v2314_v14  ;;  %2762 = vperm.xlu0 %5676, %v2484_v18   ;;  %5525 = vmatprep.subr.bf16.mxu0 %v5524_v7  ;;  %v2316_v13 = vmul.f32 %v7980_v23, %v10722_v6  ;;  %v1690_v18 = vmul.f32 0.0051020407, %v10723_v21  ;;  %v2955_v14 = vld [vmem:[%s6279_s26 + $0x60] sm:$0xff]  ;;  %v2956_v7 = vld [vmem:[%s6279_s26 + $0x68] sm:$0xff]  ;;  %v2454_v50 = vld [vmem:[%s6289_s13 + $0xb8] sm:$0xff] }
 0x294   : > { %2255 = vperm.xlu1 %5675, %v1973_v0   ;;  %5527 = vmatpush1.bf16.msra.mxu0 %v5526_v31  ;;  %v1974_v29 = vmul.f32 %v5772_v51, %v1910_v54  ;;  %v1943_v24 = vmul.f32 %v5774_v4, %v1879_v59  ;;  %v3272_v23 = vmax.f32 %v3144_v49, 0.0  ;;  %v3271_v51 = vmax.f32 %v3143_v38, 0.0  ;;  %v3020_v54 = vld [vmem:[%s6279_s26 + $0x268] sm:$0xff]  ;;  %v3021_v59 = vld [vmem:[%s6279_s26 + $0x270] sm:$0xff] }
 0x295   : > { %v3081_v2 = vadd.f32 %v2953_v42, %v2825_v34  ;;  %v3082_v63 = vadd.f32 %v2954_v5, %v2826_v40  ;;  %5779 = vrsqrt.f32 %v1784_v53  ;;  %v1785_v12 = vadd.f32 1e-05, %v1721_v45  ;;  %v10725_v42 = vld [vmem:[#allocation30_spill] sm:$0xff]  ;;  %v10727_v40 = vld [vmem:[#allocation61_spill] sm:$0xff]  ;;  %v1911_v45 = vld [vmem:[%s6284_s24 + $0x1c0] sm:$0xff] }
 0x296   : > { %v2683_v39 = vpop.permute.xlu0 %2682  ;;  %v2379_v11 = vmul.f32 %v2176_v28, %v10724_v47  ;;  %v2380_v5 = vmul.f32 %v2176_v28, %v10725_v42  ;;  %v5776_v44 = vpop.eup %5775  ;;  %v2317_v34 = vmul.f32 %v7987_v10, %v10726_v61  ;;  %v2318_v26 = vmul.f32 %v7987_v10, %v10727_v40  ;;  %v3022_v53 = vld [vmem:[%s6279_s26 + $0x278] sm:$0xff] }
 0x297   : > { %v2528_v52 = vpop.permute.xlu1 %2527  ;;  %v2889_v35 = vadd.f32 %v2683_v39, %v2377_v48  ;;  %v2890_v16 = vadd.f32 %v2683_v39, %v2378_v62  ;;  %2100 = vperm.xlu0 %5676, %v1942_v1   ;;  %v3210_v33 = vmax.f32 %v3082_v63, 0.0  ;;  %v3209_v57 = vmax.f32 %v3081_v2, 0.0  ;;  %v2957_v62 = vld [vmem:[%s6279_s26 + $0x70] sm:$0xff]  ;;  %v2958_v2 = vld [vmem:[%s6279_s26 + $0x78] sm:$0xff]  ;;  %v10728_v39 = vld [vmem:[#allocation28_spill] sm:$0xff] }
 0x298   : > { %2607 = vperm.xlu1 %5675, %v2453_v30   ;;  %v2827_v0 = vadd.f32 %v2528_v52, %v2315_v36  ;;  %v2828_v41 = vadd.f32 %v2528_v52, %v2316_v13  ;;  %v5778_v1 = vpop.eup %5777  ;;  %5781 = vrsqrt.f32 %v8063_v22  ;;  %v3019_v30 = vld [vmem:[%s6279_s26 + $0x260] sm:$0xff]  ;;  %v1754_v49 = vadd.f32 1e-05, %v1690_v18 }
 0x299   : > { %v3145_v56 = vadd.f32 %v3017_v55, %v2889_v35  ;;  %v3146_v20 = vadd.f32 %v3018_v3, %v2890_v16  ;;  %v5464_v19 = vpack.c.bf16 %v3210_v33, %v3208_v15  ;;  %v5466_v46 = vpack.c.bf16 %v3209_v57, %v3207_v60  ;;  %v2486_v55 = vld [vmem:[%s6289_s13 + $0x1b8] sm:$0xff]  ;;  %v10729_v60 = vld [vmem:[#allocation33_spill] sm:$0xff]  ;;  %v1880_v16 = vld [vmem:[%s6284_s24 + $0xc8] sm:$0xff] }
 0x29a   : > { %v2181_v32 = vpop.permute.xlu0 %2180  ;;  %v3083_v17 = vadd.f32 %v2955_v14, %v2827_v0  ;;  %v3084_v48 = vadd.f32 %v2956_v7, %v2828_v41  ;;  %5783 = vrsqrt.f32 %v1785_v12  ;;  %v1975_v3 = vmul.f32 %v5776_v44, %v1911_v45  ;;  %v2455_v41 = vld [vmem:[%s6289_s13 + $0xc0] sm:$0xff]  ;;  %v10731_v7 = vld [vmem:[#allocation118_spill] sm:$0xff] }
 0x29b   : > { %v2688_v31 = vpop.permute.xlu1 %2687  ;;  %2260 = vperm.xlu0 %5676, %v1974_v29   ;;  %5465 = vmatprep.subr.bf16.mxu1 %v5464_v19  ;;  %v3274_v43 = vmax.f32 %v3146_v20, 0.0  ;;  %v3273_v27 = vmax.f32 %v3145_v56, 0.0  ;;  %v2381_v15 = vmul.f32 %v2181_v32, %v10728_v39  ;;  %v2382_v22 = vmul.f32 %v2181_v32, %v10729_v60  ;;  %v10730_v19 = vld [vmem:[#allocation124_spill] sm:$0xff]  ;;  %v10733_v44 = vld [vmem:[#allocation62_spill] sm:$0xff] }
 0x29c   : > { %2767 = vperm.xlu1 %5675, %v2485_v25   ;;  %5467 = vmatpush1.bf16.msra.mxu1 %v5466_v46  ;;  %v2891_v28 = vadd.f32 %v2688_v31, %v2379_v11  ;;  %v2892_v58 = vadd.f32 %v2688_v31, %v2380_v5  ;;  %v3212_v36 = vmax.f32 %v3084_v48, 0.0  ;;  %v3211_v6 = vmax.f32 %v3083_v17, 0.0  ;;  %v10732_v5 = vld [vmem:[#allocation125_spill] sm:$0xff]  ;;  %v10738_v60 = vld [vmem:[#allocation64_spill] sm:$0xff] }
 0x29d   : > { %v5528_v8 = vpack.c.bf16 %v3274_v43, %v3272_v23  ;;  %v5530_v9 = vpack.c.bf16 %v3273_v27, %v3271_v51  ;;  %v1722_v46 = vmul.f32 0.0051020407, %v10730_v19  ;;  %v1944_v21 = vmul.f32 %v5778_v1, %v1880_v16  ;;  %v1912_v43 = vld [vmem:[%s6284_s24 + $0x1c8] sm:$0xff] }
 0x29e   : > { %v2533_v63 = vpop.permute.xlu0 %2532  ;;  %v3147_v33 = vadd.f32 %v3019_v30, %v2891_v28  ;;  %v3148_v57 = vadd.f32 %v3020_v54, %v2892_v58  ;;  %5785 = vrsqrt.f32 %v1754_v49  ;;  %v1691_v31 = vmul.f32 0.0051020407, %v10731_v7  ;;  %v2959_v54 = vld [vmem:[%s6279_s26 + $0x80] sm:$0xff] }
 0x29f   : > { %v2026_v4 = vpop.permute.xlu1 %2025  ;;  %v2829_v38 = vadd.f32 %v2533_v63, %v2317_v34  ;;  %v2830_v10 = vadd.f32 %v2533_v63, %v2318_v26  ;;  %2612 = vperm.xlu0 %5676, %v2454_v50   ;;  %5529 = vmatprep.subr.bf16.mxu0 %v5528_v8  ;;  %v5780_v14 = vpop.eup %5779  ;;  %v1786_v42 = vadd.f32 1e-05, %v1722_v46  ;;  %v1723_v50 = vmul.f32 0.0051020407, %v10732_v5  ;;  %v10734_v34 = vld [vmem:[#allocation63_spill] sm:$0xff] }
 0x2a0   : > { %2105 = vperm.xlu1 %5675, %v1943_v24   ;;  %5531 = vmatpush1.bf16.msra.mxu0 %v5530_v9  ;;  %v3275_v51 = vmax.f32 %v3147_v33, 0.0  ;;  %v3276_v27 = vmax.f32 %v3148_v57, 0.0  ;;  %v2319_v61 = vmul.f32 %v2026_v4, %v10733_v44  ;;  %v2320_v40 = vmul.f32 %v2026_v4, %v10734_v34  ;;  %v2487_v8 = vld [vmem:[%s6289_s13 + $0x1c0] sm:$0xff]  ;;  %v2960_v4 = vld [vmem:[%s6279_s26 + $0x88] sm:$0xff]  ;;  %v1913_v33 = vld [vmem:[%s6284_s24 + $0x1d0] sm:$0xff] }
 0x2a1   : > { %v3085_v52 = vadd.f32 %v2957_v62, %v2829_v38  ;;  %v3086_v35 = vadd.f32 %v2958_v2, %v2830_v10  ;;  %v1976_v9 = vmul.f32 %v5780_v14, %v1912_v43  ;;  %v1881_v62 = vld [vmem:[%s6284_s24 + $0xd0] sm:$0xff]  ;;  %v1755_v2 = vadd.f32 1e-05, %v1691_v31  ;;  %v10735_v63 = vld [vmem:[#allocation119_spill] sm:$0xff] }
 0x2a2   : > { %v2693_v37 = vpop.permute.xlu0 %2692  ;;  %v5782_v26 = vpop.eup %5781  ;;  %v1692_v30 = vmul.f32 0.0051020407, %v10735_v63  ;;  %5787 = vrsqrt.f32 %v1786_v42  ;;  %v1787_v10 = vadd.f32 1e-05, %v1723_v50  ;;  %v10736_v49 = vld [vmem:[#allocation31_spill] sm:$0xff]  ;;  %v1914_v63 = vld [vmem:[%s6284_s24 + $0x1d8] sm:$0xff] }
 0x2a3   : > { %v2186_v13 = vpop.permute.xlu1 %2185  ;;  %v2893_v29 = vadd.f32 %v2693_v37, %v2381_v15  ;;  %v2894_v56 = vadd.f32 %v2693_v37, %v2382_v22  ;;  %2772 = vperm.xlu0 %5676, %v2486_v55   ;;  %v3214_v20 = vmax.f32 %v3086_v35, 0.0  ;;  %v3213_v25 = vmax.f32 %v3085_v52, 0.0  ;;  %v2456_v15 = vld [vmem:[%s6289_s13 + $0xc8] sm:$0xff]  ;;  %v10739_v52 = vld [vmem:[#allocation65_spill] sm:$0xff] }
 0x2a4   : > { %2265 = vperm.xlu1 %5675, %v1975_v3   ;;  %v5784_v17 = vpop.eup %5783  ;;  %v2383_v55 = vmul.f32 %v2186_v13, %v10736_v49  ;;  %v10737_v3 = vld [vmem:[#allocation34_spill] sm:$0xff]  ;;  %v1945_v16 = vmul.f32 %v5782_v26, %v1881_v62  ;;  %5789 = vrsqrt.f32 %v1755_v2 }
 0x2a5   : > { %v3149_v18 = vadd.f32 %v3021_v59, %v2893_v29  ;;  %v3150_v0 = vadd.f32 %v3022_v53, %v2894_v56  ;;  %v5468_v32 = vpack.c.bf16 %v3214_v20, %v3212_v36  ;;  %v5470_v24 = vpack.c.bf16 %v3213_v25, %v3211_v6  ;;  %v2961_v36 = vld [vmem:[%s6279_s26 + $0x90] sm:$0xff]  ;;  %v2962_v6 = vld [vmem:[%s6279_s26 + $0x98] sm:$0xff]  ;;  %v3024_v56 = vld [vmem:[%s6279_s26 + $0x288] sm:$0xff] }
 0x2a6   : > { %v2031_v23 = vpop.permute.xlu0 %2030  ;;  %v2384_v39 = vmul.f32 %v2186_v13, %v10737_v3  ;;  %v3023_v13 = vld [vmem:[%s6279_s26 + $0x280] sm:$0xff]  ;;  %5791 = vrsqrt.f32 %v1787_v10 }
 0x2a7   : > { %v3277_v12 = vmax.f32 %v3149_v18, 0.0  ;;  %v3278_v47 = vmax.f32 %v3150_v0, 0.0  ;;  %v2538_v11 = vpop.permute.xlu1 %2537  ;;  %2110 = vperm.xlu0 %5676, %v1944_v21   ;;  %5469 = vmatprep.subr.bf16.mxu1 %v5468_v32  ;;  %v2321_v22 = vmul.f32 %v2031_v23, %v10738_v60  ;;  %v2322_v35 = vmul.f32 %v2031_v23, %v10739_v52  ;;  %v2488_v0 = vld [vmem:[%s6289_s13 + $0x1c8] sm:$0xff]  ;;  %v1882_v23 = vld [vmem:[%s6284_s24 + $0xd8] sm:$0xff]  ;;  %v10746_v60 = vld [vmem:[#allocation67_spill] sm:$0xff] }
 0x2a8   : > { %2617 = vperm.xlu1 %5675, %v2455_v41   ;;  %5471 = vmatpush1.bf16.msra.mxu1 %v5470_v24  ;;  %v2831_v48 = vadd.f32 %v2538_v11, %v2319_v61  ;;  %v2832_v28 = vadd.f32 %v2538_v11, %v2320_v40  ;;  %v5786_v46 = vpop.eup %5785  ;;  %v1756_v21 = vadd.f32 1e-05, %v1692_v30  ;;  %v1977_v18 = vmul.f32 %v5784_v17, %v1913_v33  ;;  %v10740_v41 = vld [vmem:[#allocation32_spill] sm:$0xff]  ;;  %v10741_v24 = vld [vmem:[#allocation37_spill] sm:$0xff]  ;;  %v3026_v11 = vld [vmem:[%s6279_s26 + $0x298] sm:$0xff] }
 0x2a9   : > { %v5532_v45 = vpack.c.bf16 %v3278_v47, %v3276_v27  ;;  %v5534_v1 = vpack.c.bf16 %v3277_v12, %v3275_v51  ;;  %v3025_v47 = vld [vmem:[%s6279_s26 + $0x290] sm:$0xff]  ;;  %v10742_v40 = vld [vmem:[#allocation126_spill] sm:$0xff] }
 0x2aa   : > { %v2191_v58 = vpop.permute.xlu0 %2190  ;;  %v3087_v57 = vadd.f32 %v2959_v54, %v2831_v48  ;;  %v3088_v59 = vadd.f32 %v2960_v4, %v2832_v28  ;;  %v1724_v26 = vmul.f32 0.0051020407, %v10742_v40  ;;  %5793 = vrsqrt.f32 %v1756_v21  ;;  %v10748_v21 = vld [vmem:[#allocation35_spill] sm:$0xff] }
 0x2ab   : > { %v2698_v38 = vpop.permute.xlu1 %2697  ;;  %2270 = vperm.xlu0 %5676, %v1976_v9   ;;  %5533 = vmatprep.subr.bf16.mxu0 %v5532_v45  ;;  %v2385_v32 = vmul.f32 %v2191_v58, %v10740_v41  ;;  %v2386_v14 = vmul.f32 %v2191_v58, %v10741_v24  ;;  %v10743_v58 = vld [vmem:[#allocation120_spill] sm:$0xff] }
 0x2ac   : > { %2777 = vperm.xlu1 %5675, %v2487_v8   ;;  %5535 = vmatpush1.bf16.msra.mxu0 %v5534_v1  ;;  %v2895_v53 = vadd.f32 %v2698_v38, %v2383_v55  ;;  %v2896_v37 = vadd.f32 %v2698_v38, %v2384_v39  ;;  %v3215_v43 = vmax.f32 %v3087_v57, 0.0  ;;  %v3216_v51 = vmax.f32 %v3088_v59, 0.0  ;;  %v2457_v1 = vld [vmem:[%s6289_s13 + $0xd0] sm:$0xff]  ;;  %v5788_v28 = vpop.eup %5787  ;;  %v10744_v55 = vld [vmem:[#allocation127_spill] sm:$0xff]  ;;  %v10745_v39 = vld [vmem:[#allocation66_spill] sm:$0xff] }
 0x2ad   : > { %v1946_v8 = vmul.f32 %v5786_v46, %v1882_v23  ;;  %v1693_v62 = vmul.f32 0.0051020407, %v10743_v58  ;;  %v1788_v49 = vadd.f32 1e-05, %v1724_v26  ;;  %v1725_v3 = vmul.f32 0.0051020407, %v10744_v55 }
 0x2ae   : > { %v2543_v29 = vpop.permute.xlu0 %2542  ;;  %v3151_v27 = vadd.f32 %v3023_v13, %v2895_v53  ;;  %v3152_v12 = vadd.f32 %v3024_v56, %v2896_v37  ;;  %v5790_v52 = vpop.eup %5789  ;;  %v10747_v13 = vld [vmem:[#allocation121_spill] sm:$0xff]  ;;  %v10750_v24 = vld [vmem:[#allocation68_spill] sm:$0xff] }
 0x2af   : > { %v2036_v20 = vpop.permute.xlu1 %2035  ;;  %v2833_v25 = vadd.f32 %v2543_v29, %v2321_v22  ;;  %v2834_v19 = vadd.f32 %v2543_v29, %v2322_v35  ;;  %2622 = vperm.xlu0 %5676, %v2456_v15   ;;  %v2489_v35 = vld [vmem:[%s6289_s13 + $0x1d0] sm:$0xff]  ;;  %v1757_v29 = vadd.f32 1e-05, %v1693_v62  ;;  %v1694_v56 = vmul.f32 0.0051020407, %v10747_v13 }
 0x2b0   : > { %2115 = vperm.xlu1 %5675, %v1945_v16   ;;  %v3279_v30 = vmax.f32 %v3151_v27, 0.0  ;;  %v3280_v54 = vmax.f32 %v3152_v12, 0.0  ;;  %v2323_v15 = vmul.f32 %v2036_v20, %v10745_v39  ;;  %v2324_v22 = vmul.f32 %v2036_v20, %v10746_v60  ;;  %v5792_v59 = vpop.eup %5791  ;;  %v2964_v20 = vld [vmem:[%s6279_s26 + $0xa8] sm:$0xff] }
 0x2b1   : > { %v3089_v7 = vadd.f32 %v2961_v36, %v2833_v25  ;;  %v3090_v31 = vadd.f32 %v2962_v6, %v2834_v19  ;;  %v1978_v16 = vmul.f32 %v5788_v28, %v1914_v63  ;;  %v1883_v6 = vld [vmem:[%s6284_s24 + $0xe0] sm:$0xff]  ;;  %5795 = vrsqrt.f32 %v1788_v49 }
 0x2b2   : > { %v2703_v42 = vpop.permute.xlu0 %2702  ;;  %v2963_v25 = vld [vmem:[%s6279_s26 + $0xa0] sm:$0xff]  ;;  %v1789_v46 = vadd.f32 1e-05, %v1725_v3  ;;  %v1947_v23 = vmul.f32 %v5790_v52, %v1883_v6  ;;  %5797 = vrsqrt.f32 %v1757_v29  ;;  %v1916_v6 = vld [vmem:[%s6284_s24 + $0x1e8] sm:$0xff] }
 0x2b3   : > { %v3217_v5 = vmax.f32 %v3089_v7, 0.0  ;;  %v3218_v50 = vmax.f32 %v3090_v31, 0.0  ;;  %v2196_v44 = vpop.permute.xlu1 %2195  ;;  %v2897_v61 = vadd.f32 %v2703_v42, %v2385_v32  ;;  %v2898_v34 = vadd.f32 %v2703_v42, %v2386_v14  ;;  %2782 = vperm.xlu0 %5676, %v2488_v0   ;;  %v10749_v0 = vld [vmem:[#allocation38_spill] sm:$0xff]  ;;  %v10751_v7 = vld [vmem:[#allocation69_spill] sm:$0xff] }
 0x2b4   : > { %2275 = vperm.xlu1 %5675, %v1977_v18   ;;  %v2387_v18 = vmul.f32 %v2196_v44, %v10748_v21  ;;  %v2388_v41 = vmul.f32 %v2196_v44, %v10749_v0  ;;  %v2458_v32 = vld [vmem:[%s6289_s13 + $0xd8] sm:$0xff]  ;;  %v3028_v44 = vld [vmem:[%s6279_s26 + $0x2a8] sm:$0xff]  ;;  %v5794_v26 = vpop.eup %5793  ;;  %5799 = vrsqrt.f32 %v1789_v46 }
 0x2b5   : > { %v3153_v9 = vadd.f32 %v3025_v47, %v2897_v61  ;;  %v3154_v45 = vadd.f32 %v3026_v11, %v2898_v34  ;;  %v5472_v17 = vpack.c.bf16 %v3218_v50, %v3216_v51  ;;  %v5474_v48 = vpack.c.bf16 %v3217_v5, %v3215_v43  ;;  %v1915_v43 = vld [vmem:[%s6284_s24 + $0x1e0] sm:$0xff]  ;;  %v2965_v11 = vld [vmem:[%s6279_s26 + $0xb0] sm:$0xff]  ;;  %v2966_v42 = vld [vmem:[%s6279_s26 + $0xb8] sm:$0xff] }
 0x2b6   : > { %v2041_v2 = vpop.permute.xlu0 %2040  ;;  %v3027_v50 = vld [vmem:[%s6279_s26 + $0x2a0] sm:$0xff]  ;;  %v10755_v46 = vld [vmem:[#allocation70_spill] sm:$0xff] }
 0x2b7   : > { %v3281_v4 = vmax.f32 %v3153_v9, 0.0  ;;  %v3282_v38 = vmax.f32 %v3154_v45, 0.0  ;;  %v2548_v10 = vpop.permute.xlu1 %2547  ;;  %2120 = vperm.xlu0 %5676, %v1946_v8   ;;  %5473 = vmatprep.subr.bf16.mxu1 %v5472_v17  ;;  %v2325_v14 = vmul.f32 %v2041_v2, %v10750_v24  ;;  %v2326_v31 = vmul.f32 %v2041_v2, %v10751_v7  ;;  %v2490_v45 = vld [vmem:[%s6289_s13 + $0x1d8] sm:$0xff]  ;;  %v1884_v2 = vld [vmem:[%s6284_s24 + $0xe8] sm:$0xff] }
 0x2b8   : > { %2627 = vperm.xlu1 %5675, %v2457_v1   ;;  %5475 = vmatpush1.bf16.msra.mxu1 %v5474_v48  ;;  %v2835_v53 = vadd.f32 %v2548_v10, %v2323_v15  ;;  %v2836_v37 = vadd.f32 %v2548_v10, %v2324_v22  ;;  %v1758_v8 = vadd.f32 1e-05, %v1694_v56  ;;  %v1979_v9 = vmul.f32 %v5792_v59, %v1915_v43  ;;  %v10752_v1 = vld [vmem:[#allocation36_spill] sm:$0xff]  ;;  %v10753_v48 = vld [vmem:[#allocation41_spill] sm:$0xff]  ;;  %v3030_v10 = vld [vmem:[%s6279_s26 + $0x2b8] sm:$0xff] }
 0x2b9   : > { %v5536_v33 = vpack.c.bf16 %v3282_v38, %v3280_v54  ;;  %v5538_v57 = vpack.c.bf16 %v3281_v4, %v3279_v30  ;;  %v3029_v38 = vld [vmem:[%s6279_s26 + $0x2b0] sm:$0xff]  ;;  %v10754_v22 = vld [vmem:[#allocation128_spill] sm:$0xff] }
 0x2ba   : > { %v2201_v36 = vpop.permute.xlu0 %2200  ;;  %v3091_v51 = vadd.f32 %v2963_v25, %v2835_v53  ;;  %v3092_v27 = vadd.f32 %v2964_v20, %v2836_v37  ;;  %v1726_v52 = vmul.f32 0.0051020407, %v10754_v22  ;;  %5801 = vrsqrt.f32 %v1758_v8 }
 0x2bb   : > { %v2708_v19 = vpop.permute.xlu1 %2707  ;;  %2280 = vperm.xlu0 %5676, %v1978_v16   ;;  %5537 = vmatprep.subr.bf16.mxu0 %v5536_v33  ;;  %v2389_v17 = vmul.f32 %v2201_v36, %v10752_v1  ;;  %v2390_v28 = vmul.f32 %v2201_v36, %v10753_v48  ;;  %v5796_v37 = vpop.eup %5795 }
 0x2bc   : > { %2787 = vperm.xlu1 %5675, %v2489_v35   ;;  %5539 = vmatpush1.bf16.msra.mxu0 %v5538_v57  ;;  %v2899_v12 = vadd.f32 %v2708_v19, %v2387_v18  ;;  %v2900_v47 = vadd.f32 %v2708_v19, %v2388_v41  ;;  %v3219_v63 = vmax.f32 %v3091_v51, 0.0  ;;  %v3220_v30 = vmax.f32 %v3092_v27, 0.0  ;;  %v2459_v57 = vld [vmem:[%s6289_s13 + $0xe0] sm:$0xff]  ;;  %v5798_v41 = vpop.eup %5797  ;;  %v1885_v27 = vld [vmem:[%s6284_s24 + $0xf0] sm:$0xff] }
 0x2bd   : > { %v1948_v35 = vmul.f32 %v5794_v26, %v1884_v2  ;;  %v1790_v19 = vadd.f32 1e-05, %v1726_v52  ;;  %v10756_v18 = vld [vmem:[#allocation71_spill] sm:$0xff]  ;;  %v1980_v24 = vmul.f32 %v5796_v37, %v1916_v6  ;;  %v10760_v26 = vld [vmem:[#allocation73_spill] sm:$0xff]  ;;  %v3034_v37 = vld [vmem:[%s6279_s26 + $0x2d8] sm:$0xff] }
 0x2be   : > { %v2553_v5 = vpop.permute.xlu0 %2552  ;;  %v3155_v54 = vadd.f32 %v3027_v50, %v2899_v12  ;;  %v3156_v4 = vadd.f32 %v3028_v44, %v2900_v47  ;;  %v2967_v12 = vld [vmem:[%s6279_s26 + $0xc0] sm:$0xff]  ;;  %v2968_v47 = vld [vmem:[%s6279_s26 + $0xc8] sm:$0xff]  ;;  %v10758_v50 = vld [vmem:[#allocation42_spill] sm:$0xff] }
 0x2bf   : > { %v2046_v61 = vpop.permute.xlu1 %2045  ;;  %v2837_v34 = vadd.f32 %v2553_v5, %v2325_v14  ;;  %v2838_v40 = vadd.f32 %v2553_v5, %v2326_v31  ;;  %2632 = vperm.xlu0 %5676, %v2458_v32   ;;  %v2491_v32 = vld [vmem:[%s6289_s13 + $0x1e0] sm:$0xff]  ;;  %v5800_v31 = vpop.eup %5799  ;;  %5803 = vrsqrt.f32 %v1790_v19 }
 0x2c0   : > { %2125 = vperm.xlu1 %5675, %v1947_v23   ;;  %v3283_v29 = vmax.f32 %v3155_v54, 0.0  ;;  %v3284_v13 = vmax.f32 %v3156_v4, 0.0  ;;  %v2327_v21 = vmul.f32 %v2046_v61, %v10755_v46  ;;  %v2328_v0 = vmul.f32 %v2046_v61, %v10756_v18  ;;  %v2460_v61 = vld [vmem:[%s6289_s13 + $0xe8] sm:$0xff] }
 0x2c1   : > { %v3093_v58 = vadd.f32 %v2965_v11, %v2837_v34  ;;  %v3094_v62 = vadd.f32 %v2966_v42, %v2838_v40  ;;  %v10757_v42 = vld [vmem:[#allocation39_spill] sm:$0xff]  ;;  %v10759_v34 = vld [vmem:[#allocation72_spill] sm:$0xff] }
 0x2c2   : > { %v2713_v49 = vpop.permute.xlu0 %2712 }
 0x2c3   : > { %v3221_v55 = vmax.f32 %v3093_v58, 0.0  ;;  %v3222_v3 = vmax.f32 %v3094_v62, 0.0  ;;  %v2206_v39 = vpop.permute.xlu1 %2205  ;;  %v2901_v15 = vadd.f32 %v2713_v49, %v2389_v17  ;;  %v2902_v60 = vadd.f32 %v2713_v49, %v2390_v28  ;;  %2792 = vperm.xlu0 %5676, %v2490_v45   ;;  %v1917_v45 = vld [vmem:[%s6284_s24 + $0x1f0] sm:$0xff]  ;;  %v2970_v62 = vld [vmem:[%s6279_s26 + $0xd8] sm:$0xff] }
 0x2c4   : > { %2285 = vperm.xlu1 %5675, %v1979_v9   ;;  %v2391_v5 = vmul.f32 %v2206_v39, %v10757_v42  ;;  %v2392_v44 = vmul.f32 %v2206_v39, %v10758_v50  ;;  %v1949_v9 = vmul.f32 %v5798_v41, %v1885_v27  ;;  %v2969_v58 = vld [vmem:[%s6279_s26 + $0xd0] sm:$0xff]  ;;  %v1981_v49 = vmul.f32 %v5800_v31, %v1917_v45 }
 0x2c5   : > { %v3157_v16 = vadd.f32 %v3029_v38, %v2901_v15  ;;  %v3158_v33 = vadd.f32 %v3030_v10, %v2902_v60  ;;  %v5476_v59 = vpack.c.bf16 %v3222_v3, %v3220_v30  ;;  %v5478_v53 = vpack.c.bf16 %v3221_v55, %v3219_v63  ;;  %v3031_v63 = vld [vmem:[%s6279_s26 + $0x2c0] sm:$0xff]  ;;  %v3032_v30 = vld [vmem:[%s6279_s26 + $0x2c8] sm:$0xff]  ;;  %v5802_v10 = vpop.eup %5801  ;;  %v10762_v15 = vld [vmem:[#allocation45_spill] sm:$0xff] }
 0x2c6   : > { %v2051_v36 = vpop.permute.xlu0 %2050  ;;  %v2492_v55 = vld [vmem:[%s6289_s13 + $0x1e8] sm:$0xff] }
 0x2c7   : > { %v3285_v56 = vmax.f32 %v3157_v16, 0.0  ;;  %v3286_v25 = vmax.f32 %v3158_v33, 0.0  ;;  %v2558_v20 = vpop.permute.xlu1 %2557  ;;  %2130 = vperm.xlu0 %5676, %v1948_v35   ;;  %5477 = vmatprep.subr.bf16.mxu1 %v5476_v59  ;;  %v2329_v40 = vmul.f32 %v2051_v36, %v10759_v34  ;;  %v2330_v8 = vmul.f32 %v2051_v36, %v10760_v26  ;;  %v10761_v3 = vld [vmem:[#allocation40_spill] sm:$0xff]  ;;  %v1886_v35 = vld [vmem:[%s6284_s24 + $0xf8] sm:$0xff] }
 0x2c8   : > { %2637 = vperm.xlu1 %5675, %v2459_v57   ;;  %5479 = vmatpush1.bf16.msra.mxu1 %v5478_v53  ;;  %v2839_v23 = vadd.f32 %v2558_v20, %v2327_v21  ;;  %v2840_v43 = vadd.f32 %v2558_v20, %v2328_v0  ;;  %v3033_v53 = vld [vmem:[%s6279_s26 + $0x2d0] sm:$0xff]  ;;  %v1950_v20 = vmul.f32 %v5802_v10, %v1886_v35  ;;  %v2972_v26 = vld [vmem:[%s6279_s26 + $0xe8] sm:$0xff]  ;;  %v2974_v10 = vld [vmem:[%s6279_s26 + $0xf8] sm:$0xff] }
 0x2c9   : > { %v5540_v14 = vpack.c.bf16 %v3286_v25, %v3284_v13  ;;  %v5542_v7 = vpack.c.bf16 %v3285_v56, %v3283_v29  ;;  %v2461_v21 = vld [vmem:[%s6289_s13 + $0xf0] sm:$0xff]  ;;  %v5804_v41 = vpop.eup %5803 }
 0x2ca   : > { %v2211_v51 = vpop.permute.xlu0 %2210  ;;  %v3095_v1 = vadd.f32 %v2967_v12, %v2839_v23  ;;  %v3096_v17 = vadd.f32 %v2968_v47, %v2840_v43  ;;  %v10764_v12 = vld [vmem:[#allocation75_spill] sm:$0xff] }
 0x2cb   : > { %v2718_v11 = vpop.permute.xlu1 %2717  ;;  %2290 = vperm.xlu0 %5676, %v1980_v24   ;;  %5541 = vmatprep.subr.bf16.mxu0 %v5540_v14  ;;  %v2393_v39 = vmul.f32 %v2211_v51, %v10761_v3  ;;  %v2394_v60 = vmul.f32 %v2211_v51, %v10762_v15  ;;  %v1918_v24 = vld [vmem:[%s6284_s24 + $0x1f8] sm:$0xff]  ;;  %v3036_v3 = vld [vmem:[%s6279_s26 + $0x2e8] sm:$0xff] }
 0x2cc   : > { %2797 = vperm.xlu1 %5675, %v2491_v32   ;;  %5543 = vmatpush1.bf16.msra.mxu0 %v5542_v7  ;;  %v2903_v48 = vadd.f32 %v2718_v11, %v2391_v5  ;;  %v2904_v28 = vadd.f32 %v2718_v11, %v2392_v44  ;;  %v3223_v16 = vmax.f32 %v3095_v1, 0.0  ;;  %v3224_v33 = vmax.f32 %v3096_v17, 0.0  ;;  %v10763_v51 = vld [vmem:[#allocation74_spill] sm:$0xff]  ;;  %v2493_v11 = vld [vmem:[%s6289_s13 + $0x1f0] sm:$0xff] }
 0x2cd   : > { %v1982_v42 = vmul.f32 %v5804_v41, %v1918_v24  ;;  %v10766_v1 = vld [vmem:[#allocation46_spill] sm:$0xff] }
 0x2ce   : > { %v2563_v2 = vpop.permute.xlu0 %2562  ;;  %v3159_v57 = vadd.f32 %v3031_v63, %v2903_v48  ;;  %v3160_v59 = vadd.f32 %v3032_v30, %v2904_v28  ;;  %v2462_v48 = vld [vmem:[%s6289_s13 + $0xf8] sm:$0xff]  ;;  %v10767_v28 = vld [vmem:[#allocation76_spill] sm:$0xff] }
 0x2cf   : > { %v2056_v54 = vpop.permute.xlu1 %2055  ;;  %v2841_v4 = vadd.f32 %v2563_v2, %v2329_v40  ;;  %v2842_v38 = vadd.f32 %v2563_v2, %v2330_v8  ;;  %2642 = vperm.xlu0 %5676, %v2460_v61   ;;  %v2971_v40 = vld [vmem:[%s6279_s26 + $0xe0] sm:$0xff] }
 0x2d0   : > { %2135 = vperm.xlu1 %5675, %v1949_v9   ;;  %v3287_v14 = vmax.f32 %v3159_v57, 0.0  ;;  %v3288_v7 = vmax.f32 %v3160_v59, 0.0  ;;  %v2331_v27 = vmul.f32 %v2056_v54, %v10763_v51  ;;  %v2332_v47 = vmul.f32 %v2056_v54, %v10764_v12  ;;  %v10765_v9 = vld [vmem:[#allocation43_spill] sm:$0xff]  ;;  %v10771_v51 = vld [vmem:[#allocation78_spill] sm:$0xff] }
 0x2d1   : > { %v3097_v22 = vadd.f32 %v2969_v58, %v2841_v4  ;;  %v3098_v52 = vadd.f32 %v2970_v62, %v2842_v38  ;;  %v10768_v62 = vld [vmem:[#allocation77_spill] sm:$0xff]  ;;  %v10772_v12 = vld [vmem:[#allocation79_spill] sm:$0xff] }
 0x2d2   : > { %v2723_v36 = vpop.permute.xlu0 %2722  ;;  %v2973_v38 = vld [vmem:[%s6279_s26 + $0xf0] sm:$0xff] }
 0x2d3   : > { %v3225_v6 = vmax.f32 %v3097_v22, 0.0  ;;  %v3226_v29 = vmax.f32 %v3098_v52, 0.0  ;;  %v2216_v13 = vpop.permute.xlu1 %2215  ;;  %v2905_v56 = vadd.f32 %v2723_v36, %v2393_v39  ;;  %v2906_v25 = vadd.f32 %v2723_v36, %v2394_v60  ;;  %2802 = vperm.xlu0 %5676, %v2492_v55   ;;  %v3035_v55 = vld [vmem:[%s6279_s26 + $0x2e0] sm:$0xff]  ;;  %v2494_v22 = vld [vmem:[%s6289_s13 + $0x1f8] sm:$0xff]  ;;  %v10769_v52 = vld [vmem:[#allocation44_spill] sm:$0xff] }
 0x2d4   : > { %2295 = vperm.xlu1 %5675, %v1981_v49   ;;  %v2395_v45 = vmul.f32 %v2216_v13, %v10765_v9  ;;  %v2396_v17 = vmul.f32 %v2216_v13, %v10766_v1  ;;  %v3038_v13 = vld [vmem:[%s6279_s26 + $0x2f8] sm:$0xff]  ;;  %v3392_v1 = vld [vmem:[%s6291_s14 + $0x8] sm:$0xff] }
 0x2d5   : > { %v3161_v19 = vadd.f32 %v3033_v53, %v2905_v56  ;;  %v3162_v46 = vadd.f32 %v3034_v37, %v2906_v25  ;;  %v5480_v18 = vpack.c.bf16 %v3226_v29, %v3224_v33  ;;  %v5482_v0 = vpack.c.bf16 %v3225_v6, %v3223_v16  ;;  %v10770_v16 = vld [vmem:[#allocation49_spill] sm:$0xff]  ;;  %v10774_v9 = vld [vmem:[#allocation50_spill] sm:$0xff]  ;;  %3583 = vmatprep.mubr.f32.mxu1 %v3392_v1 }
 0x2d6   : > { %v2061_v32 = vpop.permute.xlu0 %2060  ;;  %v3037_v29 = vld [vmem:[%s6279_s26 + $0x2f0] sm:$0xff] }
 0x2d7   : > { %v3289_v31 = vmax.f32 %v3161_v19, 0.0  ;;  %v3290_v23 = vmax.f32 %v3162_v46, 0.0  ;;  %v2568_v43 = vpop.permute.xlu1 %2567  ;;  %2140 = vperm.xlu0 %5676, %v1950_v20   ;;  %5481 = vmatprep.subr.bf16.mxu1 %v5480_v18  ;;  %v2333_v58 = vmul.f32 %v2061_v32, %v10767_v28  ;;  %v2334_v2 = vmul.f32 %v2061_v32, %v10768_v62  ;;  %v10784_v1 = vld [vmem:[#allocation85_spill] sm:$0xff] }
 0x2d8   : > { %2647 = vperm.xlu1 %5675, %v2461_v21   ;;  %5483 = vmatpush1.bf16.msra.mxu1 %v5482_v0  ;;  %v2843_v44 = vadd.f32 %v2568_v43, %v2331_v27  ;;  %v2844_v61 = vadd.f32 %v2568_v43, %v2332_v47 }
 0x2d9   : > { %v5544_v5 = vpack.c.bf16 %v3290_v23, %v3288_v7  ;;  %v5546_v50 = vpack.c.bf16 %v3289_v31, %v3287_v14 }
 0x2da   : > { %v2221_v34 = vpop.permute.xlu0 %2220  ;;  %v3099_v63 = vadd.f32 %v2971_v40, %v2843_v44  ;;  %v3100_v30 = vadd.f32 %v2972_v26, %v2844_v61  ;;  %v2975_v61 = vld [vmem:[%s6279_s26 + $0x100] sm:$0xff] }
 0x2db   : > { %v2728_v8 = vpop.permute.xlu1 %2727  ;;  %2300 = vperm.xlu0 %5676, %v1982_v42   ;;  %5545 = vmatprep.subr.bf16.mxu0 %v5544_v5  ;;  %v2397_v35 = vmul.f32 %v2221_v34, %v10769_v52  ;;  %v2398_v33 = vmul.f32 %v2221_v34, %v10770_v16  ;;  %v2976_v34 = vld [vmem:[%s6279_s26 + $0x108] sm:$0xff]  ;;  %v10773_v26 = vld [vmem:[#allocation47_spill] sm:$0xff] }
 0x2dc   : > { %2807 = vperm.xlu1 %5675, %v2493_v11   ;;  %5547 = vmatpush1.bf16.msra.mxu0 %v5546_v50  ;;  %v2907_v54 = vadd.f32 %v2728_v8, %v2395_v45  ;;  %v2908_v4 = vadd.f32 %v2728_v8, %v2396_v17  ;;  %v3227_v53 = vmax.f32 %v3099_v63, 0.0  ;;  %v3228_v37 = vmax.f32 %v3100_v30, 0.0  ;;  %v3394_v17 = vld [vmem:[%s6291_s14 + $0x18] sm:$0xff]  ;;  %v10778_v52 = vld [vmem:[#allocation52_spill] sm:$0xff] }
 0x2dd   : > { %3840 = vmatprep.mubr.f32.mxu0 %v3394_v17 }
 0x2de   : > { %v2573_v49 = vpop.permute.xlu0 %2572  ;;  %v3163_v36 = vadd.f32 %v3035_v55, %v2907_v54  ;;  %v3164_v6 = vadd.f32 %v3036_v3, %v2908_v4  ;;  %v2977_v4 = vld [vmem:[%s6279_s26 + $0x110] sm:$0xff]  ;;  %v3040_v55 = vld [vmem:[%s6279_s26 + $0x308] sm:$0xff] }
 0x2df   : > { %v2066_v39 = vpop.permute.xlu1 %2065  ;;  %v2845_v15 = vadd.f32 %v2573_v49, %v2333_v58  ;;  %v2846_v60 = vadd.f32 %v2573_v49, %v2334_v2  ;;  %2652 = vperm.xlu0 %5676, %v2462_v48   ;;  %v10775_v48 = vld [vmem:[#allocation80_spill] sm:$0xff]  ;;  %v10776_v58 = vld [vmem:[#allocation81_spill] sm:$0xff]  ;;  %v3039_v49 = vld [vmem:[%s6279_s26 + $0x300] sm:$0xff] }
 0x2e0   : > { %v3291_v14 = vmax.f32 %v3163_v36, 0.0  ;;  %v3292_v7 = vmax.f32 %v3164_v6, 0.0  ;;  %v2335_v27 = vmul.f32 %v2066_v39, %v10771_v51  ;;  %v2336_v47 = vmul.f32 %v2066_v39, %v10772_v12  ;;  %v3041_v36 = vld [vmem:[%s6279_s26 + $0x310] sm:$0xff]  ;;  %v3042_v6 = vld [vmem:[%s6279_s26 + $0x318] sm:$0xff]  ;;  %v10780_v51 = vld [vmem:[#allocation83_spill] sm:$0xff] }
 0x2e1   : > { %v3101_v57 = vadd.f32 %v2973_v38, %v2845_v15  ;;  %v3102_v59 = vadd.f32 %v2974_v10, %v2846_v60  ;;  %v2978_v38 = vld [vmem:[%s6279_s26 + $0x118] sm:$0xff]  ;;  %v10777_v60 = vld [vmem:[#allocation48_spill] sm:$0xff] }
 0x2e2   : > { %v2733_v56 = vpop.permute.xlu0 %2732 }
 0x2e3   : > { %v3229_v25 = vmax.f32 %v3101_v57, 0.0  ;;  %v3230_v20 = vmax.f32 %v3102_v59, 0.0  ;;  %v2226_v19 = vpop.permute.xlu1 %2225  ;;  %v2909_v46 = vadd.f32 %v2733_v56, %v2397_v35  ;;  %v2910_v21 = vadd.f32 %v2733_v56, %v2398_v33  ;;  %2812 = vperm.xlu0 %5676, %v2494_v22  }
 0x2e4   : > { %v2399_v8 = vmul.f32 %v2226_v19, %v10773_v26  ;;  %v2400_v45 = vmul.f32 %v2226_v19, %v10774_v9  ;;  %v10782_v26 = vld [vmem:[#allocation53_spill] sm:$0xff]  ;;  %v10783_v9 = vld [vmem:[#allocation84_spill] sm:$0xff] }
 0x2e5   : > { %v3165_v18 = vadd.f32 %v3037_v29, %v2909_v46  ;;  %v3166_v0 = vadd.f32 %v3038_v13, %v2910_v21  ;;  %v5484_v41 = vpack.c.bf16 %v3230_v20, %v3228_v37  ;;  %v5486_v32 = vpack.c.bf16 %v3229_v25, %v3227_v53 }
 0x2e6   : > { %v2071_v24 = vpop.permute.xlu0 %2070 }
 0x2e7   : > { %v3293_v31 = vmax.f32 %v3165_v18, 0.0  ;;  %v3294_v23 = vmax.f32 %v3166_v0, 0.0  ;;  %v2578_v43 = vpop.permute.xlu1 %2577  ;;  %5485 = vmatprep.subr.bf16.mxu1 %v5484_v41  ;;  %v2337_v28 = vmul.f32 %v2071_v24, %v10775_v48  ;;  %v2338_v62 = vmul.f32 %v2071_v24, %v10776_v58 }
 0x2e8   : > { %5487 = vmatpush1.bf16.msra.mxu1 %v5486_v32  ;;  %v2847_v5 = vadd.f32 %v2578_v43, %v2335_v27  ;;  %v2848_v50 = vadd.f32 %v2578_v43, %v2336_v47 }
 0x2e9   : > { %v5548_v11 = vpack.c.bf16 %v3294_v23, %v3292_v7  ;;  %v5550_v42 = vpack.c.bf16 %v3293_v31, %v3291_v14  ;;  %v10779_v23 = vld [vmem:[#allocation82_spill] sm:$0xff] }
 0x2ea   : > { %v2231_v44 = vpop.permute.xlu0 %2230  ;;  %v3103_v2 = vadd.f32 %v2975_v61, %v2847_v5  ;;  %v3104_v63 = vadd.f32 %v2976_v34, %v2848_v50  ;;  %v2979_v50 = vld [vmem:[%s6279_s26 + $0x120] sm:$0xff] }
 0x2eb   : > { %v2738_v40 = vpop.permute.xlu1 %2737  ;;  %5549 = vmatprep.subr.bf16.mxu0 %v5548_v11  ;;  %v2401_v22 = vmul.f32 %v2231_v44, %v10777_v60  ;;  %v2402_v35 = vmul.f32 %v2231_v44, %v10778_v52  ;;  %v2980_v44 = vld [vmem:[%s6279_s26 + $0x128] sm:$0xff]  ;;  %v10781_v34 = vld [vmem:[#allocation51_spill] sm:$0xff] }
 0x2ec   : > { %5551 = vmatpush1.bf16.msra.mxu0 %v5550_v42  ;;  %v2911_v30 = vadd.f32 %v2738_v40, %v2399_v8  ;;  %v2912_v54 = vadd.f32 %v2738_v40, %v2400_v45  ;;  %v3231_v57 = vmax.f32 %v3103_v2, 0.0  ;;  %v3232_v59 = vmax.f32 %v3104_v63, 0.0  ;;  %v2981_v2 = vld [vmem:[%s6279_s26 + $0x130] sm:$0xff]  ;;  %v2982_v63 = vld [vmem:[%s6279_s26 + $0x138] sm:$0xff] }
 0x2ee   : > { %v2583_v10 = vpop.permute.xlu0 %2582  ;;  %v3167_v53 = vadd.f32 %v3039_v49, %v2911_v30  ;;  %v3168_v37 = vadd.f32 %v3040_v55, %v2912_v54  ;;  %v3043_v54 = vld [vmem:[%s6279_s26 + $0x320] sm:$0xff]  ;;  %v10785_v55 = vld [vmem:[#allocation90_spill] sm:$0xff] }
 0x2ef   : > { %v2076_v3 = vpop.permute.xlu1 %2075  ;;  %v2849_v39 = vadd.f32 %v2583_v10, %v2337_v28  ;;  %v2850_v15 = vadd.f32 %v2583_v10, %v2338_v62 }
 0x2f0   : > { %v3295_v32 = vmax.f32 %v3167_v53, 0.0  ;;  %v3296_v24 = vmax.f32 %v3168_v37, 0.0  ;;  %v2339_v43 = vmul.f32 %v2076_v3, %v10779_v23  ;;  %v2340_v27 = vmul.f32 %v2076_v3, %v10780_v51 }
 0x2f1   : > { %v3105_v16 = vadd.f32 %v2977_v4, %v2849_v39  ;;  %v3106_v33 = vadd.f32 %v2978_v38, %v2850_v15  ;;  %v3044_v4 = vld [vmem:[%s6279_s26 + $0x328] sm:$0xff]  ;;  %v10786_v39 = vld [vmem:[#allocation91_spill] sm:$0xff] }
 0x2f2   : > { %v2743_v29 = vpop.permute.xlu0 %2742 }
 0x2f3   : > { %v3233_v13 = vmax.f32 %v3105_v16, 0.0  ;;  %v3234_v56 = vmax.f32 %v3106_v33, 0.0  ;;  %v2236_v25 = vpop.permute.xlu1 %2235  ;;  %v2913_v20 = vadd.f32 %v2743_v29, %v2401_v22  ;;  %v2914_v19 = vadd.f32 %v2743_v29, %v2402_v35 }
 0x2f4   : > { %v2403_v40 = vmul.f32 %v2236_v25, %v10781_v34  ;;  %v2404_v8 = vmul.f32 %v2236_v25, %v10782_v26  ;;  %v10791_v34 = vld [vmem:[#allocation88_spill] sm:$0xff]  ;;  %v10792_v26 = vld [vmem:[#allocation89_spill] sm:$0xff] }
 0x2f5   : > { %v3169_v46 = vadd.f32 %v3041_v36, %v2913_v20  ;;  %v3170_v21 = vadd.f32 %v3042_v6, %v2914_v19  ;;  %v5488_v18 = vpack.c.bf16 %v3234_v56, %v3232_v59  ;;  %v5490_v0 = vpack.c.bf16 %v3233_v13, %v3231_v57  ;;  %v3045_v57 = vld [vmem:[%s6279_s26 + $0x330] sm:$0xff]  ;;  %v3046_v59 = vld [vmem:[%s6279_s26 + $0x338] sm:$0xff] }
 0x2f6   : > { %v2081_v41 = vpop.permute.xlu0 %2080 }
 0x2f7   : > { %v3297_v14 = vmax.f32 %v3169_v46, 0.0  ;;  %v3298_v7 = vmax.f32 %v3170_v21, 0.0  ;;  %v2588_v31 = vpop.permute.xlu1 %2587  ;;  %5489 = vmatprep.subr.bf16.mxu1 %v5488_v18  ;;  %v2341_v45 = vmul.f32 %v2081_v41, %v10783_v9  ;;  %v2342_v17 = vmul.f32 %v2081_v41, %v10784_v1 }
 0x2f8   : > { %5491 = vmatpush1.bf16.msra.mxu1 %v5490_v0  ;;  %v2851_v11 = vadd.f32 %v2588_v31, %v2339_v43  ;;  %v2852_v42 = vadd.f32 %v2588_v31, %v2340_v27 }
 0x2f9   : > { %v5552_v12 = vpack.c.bf16 %v3298_v7, %v3296_v24  ;;  %v5554_v47 = vpack.c.bf16 %v3297_v14, %v3295_v32  ;;  %v10787_v24 = vld [vmem:[#allocation86_spill] sm:$0xff]  ;;  %v10788_v7 = vld [vmem:[#allocation87_spill] sm:$0xff] }
 0x2fa   : > { %v2241_v5 = vpop.permute.xlu0 %2240  ;;  %v3107_v48 = vadd.f32 %v2979_v50, %v2851_v11  ;;  %v3108_v28 = vadd.f32 %v2980_v44, %v2852_v42  ;;  %v2984_v11 = vld [vmem:[%s6279_s26 + $0x148] sm:$0xff]  ;;  %v10790_v44 = vld [vmem:[#allocation93_spill] sm:$0xff] }
 0x2fb   : > { %v2748_v61 = vpop.permute.xlu1 %2747  ;;  %5553 = vmatprep.subr.bf16.mxu0 %v5552_v12  ;;  %v2405_v3 = vmul.f32 %v2241_v5, %v10785_v55  ;;  %v2406_v15 = vmul.f32 %v2241_v5, %v10786_v39  ;;  %v10789_v5 = vld [vmem:[#allocation92_spill] sm:$0xff] }
 0x2fc   : > { %5555 = vmatpush1.bf16.msra.mxu0 %v5554_v47  ;;  %v2915_v58 = vadd.f32 %v2748_v61, %v2403_v40  ;;  %v2916_v62 = vadd.f32 %v2748_v61, %v2404_v8  ;;  %v3235_v52 = vmax.f32 %v3107_v48, 0.0  ;;  %v3236_v35 = vmax.f32 %v3108_v28, 0.0  ;;  %v2983_v47 = vld [vmem:[%s6279_s26 + $0x140] sm:$0xff]  ;;  %v2985_v48 = vld [vmem:[%s6279_s26 + $0x150] sm:$0xff]  ;;  %v2986_v28 = vld [vmem:[%s6279_s26 + $0x158] sm:$0xff] }
 0x2fe   : > { %v2593_v30 = vpop.permute.xlu0 %2592  ;;  %v3171_v16 = vadd.f32 %v3043_v54, %v2915_v58  ;;  %v3172_v33 = vadd.f32 %v3044_v4, %v2916_v62  ;;  %v3047_v62 = vld [vmem:[%s6279_s26 + $0x340] sm:$0xff]  ;;  %v10793_v4 = vld [vmem:[#allocation94_spill] sm:$0xff] }
 0x2ff   : > { %v2086_v38 = vpop.permute.xlu1 %2085  ;;  %v2853_v10 = vadd.f32 %v2593_v30, %v2341_v45  ;;  %v2854_v49 = vadd.f32 %v2593_v30, %v2342_v17 }
 0x300   : > { %v3299_v21 = vmax.f32 %v3171_v16, 0.0  ;;  %v3300_v18 = vmax.f32 %v3172_v33, 0.0  ;;  %v2343_v14 = vmul.f32 %v2086_v38, %v10787_v24  ;;  %v2344_v31 = vmul.f32 %v2086_v38, %v10788_v7 }
 0x301   : > { %v3109_v60 = vadd.f32 %v2981_v2, %v2853_v10  ;;  %v3110_v22 = vadd.f32 %v2982_v63, %v2854_v49  ;;  %v3048_v2 = vld [vmem:[%s6279_s26 + $0x348] sm:$0xff]  ;;  %v10794_v10 = vld [vmem:[#allocation95_spill] sm:$0xff] }
 0x302   : > { %v2753_v53 = vpop.permute.xlu0 %2752 }
 0x303   : > { %v3237_v37 = vmax.f32 %v3109_v60, 0.0  ;;  %v3238_v36 = vmax.f32 %v3110_v22, 0.0  ;;  %v2246_v6 = vpop.permute.xlu1 %2245  ;;  %v2917_v29 = vadd.f32 %v2753_v53, %v2405_v3  ;;  %v2918_v13 = vadd.f32 %v2753_v53, %v2406_v15 }
 0x304   : > { %v2407_v50 = vmul.f32 %v2246_v6, %v10789_v5  ;;  %v2408_v61 = vmul.f32 %v2246_v6, %v10790_v44  ;;  %v10799_v5 = vld [vmem:[#allocation6_spill] sm:$0xff]  ;;  %v10800_v44 = vld [vmem:[#allocation4_spill] sm:$0xff] }
 0x305   : > { %v3173_v56 = vadd.f32 %v3045_v57, %v2917_v29  ;;  %v3174_v25 = vadd.f32 %v3046_v59, %v2918_v13  ;;  %v5492_v20 = vpack.c.bf16 %v3238_v36, %v3236_v35  ;;  %v5494_v19 = vpack.c.bf16 %v3237_v37, %v3235_v52  ;;  %v3049_v52 = vld [vmem:[%s6279_s26 + $0x350] sm:$0xff]  ;;  %v3050_v35 = vld [vmem:[%s6279_s26 + $0x358] sm:$0xff] }
 0x306   : > { %v2091_v46 = vpop.permute.xlu0 %2090 }
 0x307   : > { %v3301_v0 = vmax.f32 %v3173_v56, 0.0  ;;  %v3302_v41 = vmax.f32 %v3174_v25, 0.0  ;;  %v2598_v32 = vpop.permute.xlu1 %2597  ;;  %5493 = vmatprep.subr.bf16.mxu1 %v5492_v20  ;;  %v2345_v40 = vmul.f32 %v2091_v46, %v10791_v34  ;;  %v2346_v8 = vmul.f32 %v2091_v46, %v10792_v26 }
 0x308   : > { %5495 = vmatpush1.bf16.msra.mxu1 %v5494_v19  ;;  %v2855_v51 = vadd.f32 %v2598_v32, %v2343_v14  ;;  %v2856_v27 = vadd.f32 %v2598_v32, %v2344_v31 }
 0x309   : > { %v5556_v23 = vpack.c.bf16 %v3302_v41, %v3300_v18  ;;  %v5558_v43 = vpack.c.bf16 %v3301_v0, %v3299_v21  ;;  %v10795_v18 = vld [vmem:[#allocation5_spill] sm:$0xff]  ;;  %v10796_v41 = vld [vmem:[#allocation3_spill] sm:$0xff] }
 0x30a   : > { %v2251_v12 = vpop.permute.xlu0 %2250  ;;  %v3111_v9 = vadd.f32 %v2983_v47, %v2855_v51  ;;  %v3112_v45 = vadd.f32 %v2984_v11, %v2856_v27  ;;  %v2988_v51 = vld [vmem:[%s6279_s26 + $0x168] sm:$0xff]  ;;  %v10798_v11 = vld [vmem:[#allocation97_spill] sm:$0xff] }
 0x30b   : > { %v2758_v42 = vpop.permute.xlu1 %2757  ;;  %5557 = vmatprep.subr.bf16.mxu0 %v5556_v23  ;;  %v2409_v38 = vmul.f32 %v2251_v12, %v10793_v4  ;;  %v2410_v49 = vmul.f32 %v2251_v12, %v10794_v10  ;;  %v10797_v12 = vld [vmem:[#allocation96_spill] sm:$0xff] }
 0x30c   : > { %5559 = vmatpush1.bf16.msra.mxu0 %v5558_v43  ;;  %v2919_v1 = vadd.f32 %v2758_v42, %v2407_v50  ;;  %v2920_v17 = vadd.f32 %v2758_v42, %v2408_v61  ;;  %v3239_v39 = vmax.f32 %v3111_v9, 0.0  ;;  %v3240_v15 = vmax.f32 %v3112_v45, 0.0  ;;  %v2987_v43 = vld [vmem:[%s6279_s26 + $0x160] sm:$0xff]  ;;  %v2989_v9 = vld [vmem:[%s6279_s26 + $0x170] sm:$0xff]  ;;  %v2990_v45 = vld [vmem:[%s6279_s26 + $0x178] sm:$0xff] }
 0x30e   : > { %v2603_v58 = vpop.permute.xlu0 %2602  ;;  %v3175_v60 = vadd.f32 %v3047_v62, %v2919_v1  ;;  %v3176_v22 = vadd.f32 %v3048_v2, %v2920_v17  ;;  %v3051_v17 = vld [vmem:[%s6279_s26 + $0x360] sm:$0xff]  ;;  %v10801_v2 = vld [vmem:[#allocation98_spill] sm:$0xff] }
 0x30f   : > { %v2096_v63 = vpop.permute.xlu1 %2095  ;;  %v2857_v30 = vadd.f32 %v2603_v58, %v2345_v40  ;;  %v2858_v54 = vadd.f32 %v2603_v58, %v2346_v8 }
 0x310   : > { %v3303_v25 = vmax.f32 %v3175_v60, 0.0  ;;  %v3304_v20 = vmax.f32 %v3176_v22, 0.0  ;;  %v2347_v0 = vmul.f32 %v2096_v63, %v10795_v18  ;;  %v2348_v32 = vmul.f32 %v2096_v63, %v10796_v41 }
 0x311   : > { %v3113_v55 = vadd.f32 %v2985_v48, %v2857_v30  ;;  %v3114_v3 = vadd.f32 %v2986_v28, %v2858_v54  ;;  %v3052_v48 = vld [vmem:[%s6279_s26 + $0x368] sm:$0xff]  ;;  %v10802_v30 = vld [vmem:[#allocation99_spill] sm:$0xff] }
 0x312   : > { %v2763_v16 = vpop.permute.xlu0 %2762 }
 0x313   : > { %v3241_v33 = vmax.f32 %v3113_v55, 0.0  ;;  %v3242_v57 = vmax.f32 %v3114_v3, 0.0  ;;  %v2256_v59 = vpop.permute.xlu1 %2255  ;;  %v2921_v53 = vadd.f32 %v2763_v16, %v2409_v38  ;;  %v2922_v37 = vadd.f32 %v2763_v16, %v2410_v49 }
 0x314   : > { %v2411_v47 = vmul.f32 %v2256_v59, %v10797_v12  ;;  %v2412_v42 = vmul.f32 %v2256_v59, %v10798_v11  ;;  %v10807_v12 = vld [vmem:[#allocation10_spill] sm:$0xff]  ;;  %v10808_v11 = vld [vmem:[#allocation8_spill] sm:$0xff] }
 0x315   : > { %v3177_v36 = vadd.f32 %v3049_v52, %v2921_v53  ;;  %v3178_v6 = vadd.f32 %v3050_v35, %v2922_v37  ;;  %v5496_v29 = vpack.c.bf16 %v3242_v57, %v3240_v15  ;;  %v5498_v13 = vpack.c.bf16 %v3241_v33, %v3239_v39  ;;  %v3053_v39 = vld [vmem:[%s6279_s26 + $0x370] sm:$0xff]  ;;  %v3054_v15 = vld [vmem:[%s6279_s26 + $0x378] sm:$0xff] }
 0x316   : > { %v2101_v56 = vpop.permute.xlu0 %2100 }
 0x317   : > { %v3305_v19 = vmax.f32 %v3177_v36, 0.0  ;;  %v3306_v46 = vmax.f32 %v3178_v6, 0.0  ;;  %v2608_v21 = vpop.permute.xlu1 %2607  ;;  %5497 = vmatprep.subr.bf16.mxu1 %v5496_v29  ;;  %v2349_v50 = vmul.f32 %v2101_v56, %v10799_v5  ;;  %v2350_v61 = vmul.f32 %v2101_v56, %v10800_v44 }
 0x318   : > { %5499 = vmatpush1.bf16.msra.mxu1 %v5498_v13  ;;  %v2859_v7 = vadd.f32 %v2608_v21, %v2347_v0  ;;  %v2860_v31 = vadd.f32 %v2608_v21, %v2348_v32 }
 0x319   : > { %v5560_v24 = vpack.c.bf16 %v3306_v46, %v3304_v20  ;;  %v5562_v14 = vpack.c.bf16 %v3305_v19, %v3303_v25  ;;  %v10803_v20 = vld [vmem:[#allocation9_spill] sm:$0xff]  ;;  %v10804_v46 = vld [vmem:[#allocation7_spill] sm:$0xff] }
 0x31a   : > { %v2261_v23 = vpop.permute.xlu0 %2260  ;;  %v3115_v34 = vadd.f32 %v2987_v43, %v2859_v7  ;;  %v3116_v40 = vadd.f32 %v2988_v51, %v2860_v31  ;;  %v2992_v7 = vld [vmem:[%s6279_s26 + $0x188] sm:$0xff]  ;;  %v10806_v51 = vld [vmem:[#allocation101_spill] sm:$0xff] }
 0x31b   : > { %v2768_v27 = vpop.permute.xlu1 %2767  ;;  %5561 = vmatprep.subr.bf16.mxu0 %v5560_v24  ;;  %v2413_v63 = vmul.f32 %v2261_v23, %v10801_v2  ;;  %v2414_v54 = vmul.f32 %v2261_v23, %v10802_v30  ;;  %v10805_v23 = vld [vmem:[#allocation100_spill] sm:$0xff] }
 0x31c   : > { %5563 = vmatpush1.bf16.msra.mxu0 %v5562_v14  ;;  %v2923_v26 = vadd.f32 %v2768_v27, %v2411_v47  ;;  %v2924_v8 = vadd.f32 %v2768_v27, %v2412_v42  ;;  %v3243_v10 = vmax.f32 %v3115_v34, 0.0  ;;  %v3244_v49 = vmax.f32 %v3116_v40, 0.0  ;;  %v2991_v14 = vld [vmem:[%s6279_s26 + $0x180] sm:$0xff]  ;;  %v2993_v34 = vld [vmem:[%s6279_s26 + $0x190] sm:$0xff]  ;;  %v2994_v40 = vld [vmem:[%s6279_s26 + $0x198] sm:$0xff] }
 0x31e   : > { %v2613_v1 = vpop.permute.xlu0 %2612  ;;  %v3179_v55 = vadd.f32 %v3051_v17, %v2923_v26  ;;  %v3180_v3 = vadd.f32 %v3052_v48, %v2924_v8  ;;  %v3055_v8 = vld [vmem:[%s6279_s26 + $0x380] sm:$0xff]  ;;  %v10809_v48 = vld [vmem:[#allocation102_spill] sm:$0xff] }
 0x31f   : > { %v2106_v28 = vpop.permute.xlu1 %2105  ;;  %v2861_v58 = vadd.f32 %v2613_v1, %v2349_v50  ;;  %v2862_v62 = vadd.f32 %v2613_v1, %v2350_v61 }
 0x320   : > { %v3307_v6 = vmax.f32 %v3179_v55, 0.0  ;;  %v3308_v29 = vmax.f32 %v3180_v3, 0.0  ;;  %v2351_v19 = vmul.f32 %v2106_v28, %v10803_v20  ;;  %v2352_v21 = vmul.f32 %v2106_v28, %v10804_v46 }
 0x321   : > { %v3117_v4 = vadd.f32 %v2989_v9, %v2861_v58  ;;  %v3118_v38 = vadd.f32 %v2990_v45, %v2862_v62  ;;  %v3056_v9 = vld [vmem:[%s6279_s26 + $0x388] sm:$0xff]  ;;  %v10810_v58 = vld [vmem:[#allocation103_spill] sm:$0xff] }
 0x322   : > { %v2773_v60 = vpop.permute.xlu0 %2772 }
 0x323   : > { %v3245_v22 = vmax.f32 %v3117_v4, 0.0  ;;  %v3246_v52 = vmax.f32 %v3118_v38, 0.0  ;;  %v2266_v35 = vpop.permute.xlu1 %2265  ;;  %v2925_v16 = vadd.f32 %v2773_v60, %v2413_v63  ;;  %v2926_v33 = vadd.f32 %v2773_v60, %v2414_v54 }
 0x324   : > { %v2415_v43 = vmul.f32 %v2266_v35, %v10805_v23  ;;  %v2416_v27 = vmul.f32 %v2266_v35, %v10806_v51  ;;  %v10815_v23 = vld [vmem:[#allocation14_spill] sm:$0xff]  ;;  %v10816_v51 = vld [vmem:[#allocation12_spill] sm:$0xff] }
 0x325   : > { %v3181_v57 = vadd.f32 %v3053_v39, %v2925_v16  ;;  %v3182_v59 = vadd.f32 %v3054_v15, %v2926_v33  ;;  %v5500_v53 = vpack.c.bf16 %v3246_v52, %v3244_v49  ;;  %v5502_v37 = vpack.c.bf16 %v3245_v22, %v3243_v10  ;;  %v3057_v10 = vld [vmem:[%s6279_s26 + $0x390] sm:$0xff]  ;;  %v3058_v49 = vld [vmem:[%s6279_s26 + $0x398] sm:$0xff] }
 0x326   : > { %v2111_v36 = vpop.permute.xlu0 %2110 }
 0x327   : > { %v3309_v13 = vmax.f32 %v3181_v57, 0.0  ;;  %v3310_v56 = vmax.f32 %v3182_v59, 0.0  ;;  %v2618_v25 = vpop.permute.xlu1 %2617  ;;  %5501 = vmatprep.subr.bf16.mxu1 %v5500_v53  ;;  %v2353_v47 = vmul.f32 %v2111_v36, %v10807_v12  ;;  %v2354_v42 = vmul.f32 %v2111_v36, %v10808_v11 }
 0x328   : > { %5503 = vmatpush1.bf16.msra.mxu1 %v5502_v37  ;;  %v2863_v41 = vadd.f32 %v2618_v25, %v2351_v19  ;;  %v2864_v32 = vadd.f32 %v2618_v25, %v2352_v21 }
 0x329   : > { %v5564_v18 = vpack.c.bf16 %v3310_v56, %v3308_v29  ;;  %v5566_v0 = vpack.c.bf16 %v3309_v13, %v3307_v6  ;;  %v10811_v29 = vld [vmem:[#allocation13_spill] sm:$0xff]  ;;  %v10812_v56 = vld [vmem:[#allocation11_spill] sm:$0xff] }
 0x32a   : > { %v2271_v24 = vpop.permute.xlu0 %2270  ;;  %v3119_v5 = vadd.f32 %v2991_v14, %v2863_v41  ;;  %v3120_v50 = vadd.f32 %v2992_v7, %v2864_v32  ;;  %v2996_v41 = vld [vmem:[%s6279_s26 + $0x1a8] sm:$0xff]  ;;  %v10814_v7 = vld [vmem:[#allocation105_spill] sm:$0xff] }
 0x32b   : > { %v2778_v31 = vpop.permute.xlu1 %2777  ;;  %5565 = vmatprep.subr.bf16.mxu0 %v5564_v18  ;;  %v2417_v28 = vmul.f32 %v2271_v24, %v10809_v48  ;;  %v2418_v62 = vmul.f32 %v2271_v24, %v10810_v58  ;;  %v10813_v24 = vld [vmem:[#allocation104_spill] sm:$0xff] }
 0x32c   : > { %5567 = vmatpush1.bf16.msra.mxu0 %v5566_v0  ;;  %v2927_v44 = vadd.f32 %v2778_v31, %v2415_v43  ;;  %v2928_v61 = vadd.f32 %v2778_v31, %v2416_v27  ;;  %v3247_v30 = vmax.f32 %v3119_v5, 0.0  ;;  %v3248_v54 = vmax.f32 %v3120_v50, 0.0  ;;  %v2995_v0 = vld [vmem:[%s6279_s26 + $0x1a0] sm:$0xff]  ;;  %v2997_v5 = vld [vmem:[%s6279_s26 + $0x1b0] sm:$0xff]  ;;  %v2998_v50 = vld [vmem:[%s6279_s26 + $0x1b8] sm:$0xff] }
 0x32e   : > { %v2623_v26 = vpop.permute.xlu0 %2622  ;;  %v3183_v4 = vadd.f32 %v3055_v8, %v2927_v44  ;;  %v3184_v38 = vadd.f32 %v3056_v9, %v2928_v61  ;;  %v3059_v61 = vld [vmem:[%s6279_s26 + $0x3a0] sm:$0xff]  ;;  %v10817_v9 = vld [vmem:[#allocation106_spill] sm:$0xff] }
 0x32f   : > { %v2116_v45 = vpop.permute.xlu1 %2115  ;;  %v2865_v1 = vadd.f32 %v2623_v26, %v2353_v47  ;;  %v2866_v17 = vadd.f32 %v2623_v26, %v2354_v42 }
 0x330   : > { %v3311_v59 = vmax.f32 %v3183_v4, 0.0  ;;  %v3312_v53 = vmax.f32 %v3184_v38, 0.0  ;;  %v2355_v13 = vmul.f32 %v2116_v45, %v10811_v29  ;;  %v2356_v25 = vmul.f32 %v2116_v45, %v10812_v56 }
 0x331   : > { %v3121_v2 = vadd.f32 %v2993_v34, %v2865_v1  ;;  %v3122_v63 = vadd.f32 %v2994_v40, %v2866_v17  ;;  %v3060_v34 = vld [vmem:[%s6279_s26 + $0x3a8] sm:$0xff]  ;;  %v10818_v1 = vld [vmem:[#allocation107_spill] sm:$0xff] }
 0x332   : > { %v2783_v55 = vpop.permute.xlu0 %2782 }
 0x333   : > { %v3249_v3 = vmax.f32 %v3121_v2, 0.0  ;;  %v3250_v39 = vmax.f32 %v3122_v63, 0.0  ;;  %v2276_v15 = vpop.permute.xlu1 %2275  ;;  %v2929_v60 = vadd.f32 %v2783_v55, %v2417_v28  ;;  %v2930_v22 = vadd.f32 %v2783_v55, %v2418_v62 }
 0x334   : > { %v2419_v14 = vmul.f32 %v2276_v15, %v10813_v24  ;;  %v2420_v31 = vmul.f32 %v2276_v15, %v10814_v7  ;;  %v10823_v24 = vld [vmem:[#allocation18_spill] sm:$0xff]  ;;  %v10824_v7 = vld [vmem:[#allocation16_spill] sm:$0xff] }
 0x335   : > { %v3185_v52 = vadd.f32 %v3057_v10, %v2929_v60  ;;  %v3186_v35 = vadd.f32 %v3058_v49, %v2930_v22  ;;  %v5504_v16 = vpack.c.bf16 %v3250_v39, %v3248_v54  ;;  %v5506_v33 = vpack.c.bf16 %v3249_v3, %v3247_v30  ;;  %v3061_v30 = vld [vmem:[%s6279_s26 + $0x3b0] sm:$0xff]  ;;  %v3062_v54 = vld [vmem:[%s6279_s26 + $0x3b8] sm:$0xff] }
 0x336   : > { %v2121_v57 = vpop.permute.xlu0 %2120 }
 0x337   : > { %v3313_v37 = vmax.f32 %v3185_v52, 0.0  ;;  %v3314_v36 = vmax.f32 %v3186_v35, 0.0  ;;  %v2628_v6 = vpop.permute.xlu1 %2627  ;;  %5505 = vmatprep.subr.bf16.mxu1 %v5504_v16  ;;  %v2357_v43 = vmul.f32 %v2121_v57, %v10815_v23  ;;  %v2358_v27 = vmul.f32 %v2121_v57, %v10816_v51 }
 0x338   : > { %5507 = vmatpush1.bf16.msra.mxu1 %v5506_v33  ;;  %v2867_v46 = vadd.f32 %v2628_v6, %v2355_v13  ;;  %v2868_v21 = vadd.f32 %v2628_v6, %v2356_v25 }
 0x339   : > { %v5568_v20 = vpack.c.bf16 %v3314_v36, %v3312_v53  ;;  %v5570_v19 = vpack.c.bf16 %v3313_v37, %v3311_v59  ;;  %v10819_v53 = vld [vmem:[#allocation17_spill] sm:$0xff]  ;;  %v10820_v36 = vld [vmem:[#allocation15_spill] sm:$0xff] }
 0x33a   : > { %v2281_v18 = vpop.permute.xlu0 %2280  ;;  %v3123_v12 = vadd.f32 %v2995_v0, %v2867_v46  ;;  %v3124_v47 = vadd.f32 %v2996_v41, %v2868_v21  ;;  %v3000_v46 = vld [vmem:[%s6279_s26 + $0x1c8] sm:$0xff]  ;;  %v10822_v41 = vld [vmem:[#allocation109_spill] sm:$0xff] }
 0x33b   : > { %v2788_v32 = vpop.permute.xlu1 %2787  ;;  %5569 = vmatprep.subr.bf16.mxu0 %v5568_v20  ;;  %v2421_v45 = vmul.f32 %v2281_v18, %v10817_v9  ;;  %v2422_v17 = vmul.f32 %v2281_v18, %v10818_v1  ;;  %v10821_v18 = vld [vmem:[#allocation108_spill] sm:$0xff] }
 0x33c   : > { %5571 = vmatpush1.bf16.msra.mxu0 %v5570_v19  ;;  %v2931_v11 = vadd.f32 %v2788_v32, %v2419_v14  ;;  %v2932_v42 = vadd.f32 %v2788_v32, %v2420_v31  ;;  %v3251_v58 = vmax.f32 %v3123_v12, 0.0  ;;  %v3252_v62 = vmax.f32 %v3124_v47, 0.0  ;;  %v2999_v19 = vld [vmem:[%s6279_s26 + $0x1c0] sm:$0xff]  ;;  %v3001_v12 = vld [vmem:[%s6279_s26 + $0x1d0] sm:$0xff]  ;;  %v3002_v47 = vld [vmem:[%s6279_s26 + $0x1d8] sm:$0xff] }
 0x33e   : > { %v2633_v44 = vpop.permute.xlu0 %2632  ;;  %v3187_v2 = vadd.f32 %v3059_v61, %v2931_v11  ;;  %v3188_v63 = vadd.f32 %v3060_v34, %v2932_v42  ;;  %v3063_v42 = vld [vmem:[%s6279_s26 + $0x3c0] sm:$0xff]  ;;  %v10825_v34 = vld [vmem:[#allocation110_spill] sm:$0xff] }
 0x33f   : > { %v2126_v40 = vpop.permute.xlu1 %2125  ;;  %v2869_v26 = vadd.f32 %v2633_v44, %v2357_v43  ;;  %v2870_v8 = vadd.f32 %v2633_v44, %v2358_v27 }
 0x340   : > { %v3315_v35 = vmax.f32 %v3187_v2, 0.0  ;;  %v3316_v16 = vmax.f32 %v3188_v63, 0.0  ;;  %v2359_v37 = vmul.f32 %v2126_v40, %v10819_v53  ;;  %v2360_v6 = vmul.f32 %v2126_v40, %v10820_v36 }
 0x341   : > { %v3125_v48 = vadd.f32 %v2997_v5, %v2869_v26  ;;  %v3126_v28 = vadd.f32 %v2998_v50, %v2870_v8  ;;  %v3064_v5 = vld [vmem:[%s6279_s26 + $0x3c8] sm:$0xff]  ;;  %v10826_v26 = vld [vmem:[#allocation111_spill] sm:$0xff] }
 0x342   : > { %v2793_v4 = vpop.permute.xlu0 %2792 }
 0x343   : > { %v3253_v38 = vmax.f32 %v3125_v48, 0.0  ;;  %v3254_v10 = vmax.f32 %v3126_v28, 0.0  ;;  %v2286_v49 = vpop.permute.xlu1 %2285  ;;  %v2933_v55 = vadd.f32 %v2793_v4, %v2421_v45  ;;  %v2934_v3 = vadd.f32 %v2793_v4, %v2422_v17 }
 0x344   : > { %v2423_v0 = vmul.f32 %v2286_v49, %v10821_v18  ;;  %v2424_v32 = vmul.f32 %v2286_v49, %v10822_v41  ;;  %v10831_v18 = vld [vmem:[#allocation22_spill] sm:$0xff]  ;;  %v10832_v41 = vld [vmem:[#allocation20_spill] sm:$0xff] }
 0x345   : > { %v3189_v39 = vadd.f32 %v3061_v30, %v2933_v55  ;;  %v3190_v15 = vadd.f32 %v3062_v54, %v2934_v3  ;;  %v5508_v60 = vpack.c.bf16 %v3254_v10, %v3252_v62  ;;  %v5510_v22 = vpack.c.bf16 %v3253_v38, %v3251_v58  ;;  %v3065_v58 = vld [vmem:[%s6279_s26 + $0x3d0] sm:$0xff]  ;;  %v3066_v62 = vld [vmem:[%s6279_s26 + $0x3d8] sm:$0xff] }
 0x346   : > { %v2131_v52 = vpop.permute.xlu0 %2130 }
 0x347   : > { %v3317_v33 = vmax.f32 %v3189_v39, 0.0  ;;  %v3318_v57 = vmax.f32 %v3190_v15, 0.0  ;;  %v2638_v59 = vpop.permute.xlu1 %2637  ;;  %5509 = vmatprep.subr.bf16.mxu1 %v5508_v60  ;;  %v2361_v14 = vmul.f32 %v2131_v52, %v10823_v24  ;;  %v2362_v31 = vmul.f32 %v2131_v52, %v10824_v7 }
 0x348   : > { %5511 = vmatpush1.bf16.msra.mxu1 %v5510_v22  ;;  %v2871_v56 = vadd.f32 %v2638_v59, %v2359_v37  ;;  %v2872_v25 = vadd.f32 %v2638_v59, %v2360_v6 }
 0x349   : > { %v5572_v29 = vpack.c.bf16 %v3318_v57, %v3316_v16  ;;  %v5574_v13 = vpack.c.bf16 %v3317_v33, %v3315_v35  ;;  %v10827_v16 = vld [vmem:[#allocation21_spill] sm:$0xff]  ;;  %v10828_v57 = vld [vmem:[#allocation19_spill] sm:$0xff] }
 0x34a   : > { %v2291_v20 = vpop.permute.xlu0 %2290  ;;  %v3127_v23 = vadd.f32 %v2999_v19, %v2871_v56  ;;  %v3128_v43 = vadd.f32 %v3000_v46, %v2872_v25  ;;  %v3004_v56 = vld [vmem:[%s6279_s26 + $0x1e8] sm:$0xff]  ;;  %v10830_v46 = vld [vmem:[#allocation113_spill] sm:$0xff] }
 0x34b   : > { %v2798_v21 = vpop.permute.xlu1 %2797  ;;  %5573 = vmatprep.subr.bf16.mxu0 %v5572_v29  ;;  %v2425_v40 = vmul.f32 %v2291_v20, %v10825_v34  ;;  %v2426_v8 = vmul.f32 %v2291_v20, %v10826_v26  ;;  %v10829_v20 = vld [vmem:[#allocation112_spill] sm:$0xff] }
 0x34c   : > { %5575 = vmatpush1.bf16.msra.mxu0 %v5574_v13  ;;  %v2935_v51 = vadd.f32 %v2798_v21, %v2423_v0  ;;  %v2936_v27 = vadd.f32 %v2798_v21, %v2424_v32  ;;  %v3255_v1 = vmax.f32 %v3127_v23, 0.0  ;;  %v3256_v17 = vmax.f32 %v3128_v43, 0.0  ;;  %v3003_v13 = vld [vmem:[%s6279_s26 + $0x1e0] sm:$0xff]  ;;  %v3005_v23 = vld [vmem:[%s6279_s26 + $0x1f0] sm:$0xff]  ;;  %v3006_v43 = vld [vmem:[%s6279_s26 + $0x1f8] sm:$0xff] }
 0x34e   : > { %v2643_v11 = vpop.permute.xlu0 %2642  ;;  %v3191_v48 = vadd.f32 %v3063_v42, %v2935_v51  ;;  %v3192_v28 = vadd.f32 %v3064_v5, %v2936_v27  ;;  %v3067_v27 = vld [vmem:[%s6279_s26 + $0x3e0] sm:$0xff]  ;;  %v10833_v42 = vld [vmem:[#allocation114_spill] sm:$0xff] }
 0x34f   : > { %v2136_v50 = vpop.permute.xlu1 %2135  ;;  %v2873_v44 = vadd.f32 %v2643_v11, %v2361_v14  ;;  %v2874_v61 = vadd.f32 %v2643_v11, %v2362_v31 }
 0x350   : > { %v3319_v15 = vmax.f32 %v3191_v48, 0.0  ;;  %v3320_v60 = vmax.f32 %v3192_v28, 0.0  ;;  %v2363_v33 = vmul.f32 %v2136_v50, %v10827_v16  ;;  %v2364_v59 = vmul.f32 %v2136_v50, %v10828_v57  ;;  %v10834_v50 = vld [vmem:[#allocation115_spill] sm:$0xff]  ;;  %v3397_v16 = vld [vmem:[%s6291_s14 + $0x30] sm:$0xff]  ;;  %v3402_v57 = vld [vmem:[%s6291_s14 + $0x58] sm:$0xff] }
 0x351   : > { %v3129_v9 = vadd.f32 %v3001_v12, %v2873_v44  ;;  %v3130_v45 = vadd.f32 %v3002_v47, %v2874_v61  ;;  %v3068_v12 = vld [vmem:[%s6279_s26 + $0x3e8] sm:$0xff] }
 0x352   : > { %v2803_v2 = vpop.permute.xlu0 %2802 }
 0x353   : > { %v3257_v63 = vmax.f32 %v3129_v9, 0.0  ;;  %v3258_v30 = vmax.f32 %v3130_v45, 0.0  ;;  %v2296_v54 = vpop.permute.xlu1 %2295  ;;  %v2937_v4 = vadd.f32 %v2803_v2, %v2425_v40  ;;  %v2938_v38 = vadd.f32 %v2803_v2, %v2426_v8  ;;  %v3069_v45 = vld [vmem:[%s6279_s26 + $0x3f0] sm:$0xff] }
 0x354   : > { %v2427_v19 = vmul.f32 %v2296_v54, %v10829_v20  ;;  %v2428_v21 = vmul.f32 %v2296_v54, %v10830_v46  ;;  %v3409_v20 = vld [vmem:[%s6291_s14 + $0x90] sm:$0xff]  ;;  %v3414_v46 = vld [vmem:[%s6291_s14 + $0xb8] sm:$0xff] }
 0x355   : > { %v3193_v10 = vadd.f32 %v3065_v58, %v2937_v4  ;;  %v3194_v49 = vadd.f32 %v3066_v62, %v2938_v38  ;;  %v5512_v55 = vpack.c.bf16 %v3258_v30, %v3256_v17  ;;  %v5514_v3 = vpack.c.bf16 %v3257_v63, %v3255_v1  ;;  %v3070_v1 = vld [vmem:[%s6279_s26 + $0x3f8] sm:$0xff] }
 0x356   : > { %v2141_v39 = vpop.permute.xlu0 %2140 }
 0x357   : > { %v3321_v22 = vmax.f32 %v3193_v10, 0.0  ;;  %v3322_v52 = vmax.f32 %v3194_v49, 0.0  ;;  %v2648_v35 = vpop.permute.xlu1 %2647  ;;  %5513 = vmatprep.subr.bf16.mxu1 %v5512_v55  ;;  %v2365_v0 = vmul.f32 %v2141_v39, %v10831_v18  ;;  %v2366_v32 = vmul.f32 %v2141_v39, %v10832_v41  ;;  %v3391_v55 = vld [vmem:[%s6291_s14] sm:$0xff]  ;;  %v3413_v18 = vld [vmem:[%s6291_s14 + $0xb0] sm:$0xff]  ;;  %v3418_v41 = vld [vmem:[%s6291_s14 + $0xd8] sm:$0xff] }
 0x358   : > { %5515 = vmatpush1.bf16.msra.mxu1 %v5514_v3  ;;  %v2875_v36 = vadd.f32 %v2648_v35, %v2363_v33  ;;  %v2876_v6 = vadd.f32 %v2648_v35, %v2364_v59  ;;  %v3400_v35 = vld [vmem:[%s6291_s14 + $0x48] sm:$0xff]  ;;  %v3399_v33 = vld [vmem:[%s6291_s14 + $0x40] sm:$0xff] }
 0x359   : > { %v5576_v53 = vpack.c.bf16 %v3322_v52, %v3320_v60  ;;  %v5578_v37 = vpack.c.bf16 %v3321_v22, %v3319_v15  ;;  %v3396_v15 = vld [vmem:[%s6291_s14 + $0x28] sm:$0xff]  ;;  %v3393_v60 = vld [vmem:[%s6291_s14 + $0x10] sm:$0xff]  ;;  %v3395_v22 = vld [vmem:[%s6291_s14 + $0x20] sm:$0xff] }
 0x35a   : > { %v2301_v29 = vpop.permute.xlu0 %2300  ;;  %v3131_v24 = vadd.f32 %v3003_v13, %v2875_v36  ;;  %v3132_v14 = vadd.f32 %v3004_v56, %v2876_v6  ;;  %v3398_v52 = vld [vmem:[%s6291_s14 + $0x38] sm:$0xff]  ;;  %v3404_v59 = vld [vmem:[%s6291_s14 + $0x68] sm:$0xff]  ;;  %v3407_v13 = vld [vmem:[%s6291_s14 + $0x80] sm:$0xff] }
 0x35b   : > { %v2808_v25 = vpop.permute.xlu1 %2807  ;;  %5577 = vmatprep.subr.bf16.mxu0 %v5576_v53  ;;  %v2429_v5 = vmul.f32 %v2301_v29, %v10833_v42  ;;  %v2430_v44 = vmul.f32 %v2301_v29, %v10834_v50  ;;  %v3401_v53 = vld [vmem:[%s6291_s14 + $0x50] sm:$0xff]  ;;  %v3406_v36 = vld [vmem:[%s6291_s14 + $0x78] sm:$0xff]  ;;  %v3408_v6 = vld [vmem:[%s6291_s14 + $0x88] sm:$0xff] }
 0x35c   : > { %5579 = vmatpush1.bf16.msra.mxu0 %v5578_v37  ;;  %v2939_v7 = vadd.f32 %v2808_v25, %v2427_v19  ;;  %v2940_v31 = vadd.f32 %v2808_v25, %v2428_v21  ;;  %v3259_v40 = vmax.f32 %v3131_v24, 0.0  ;;  %v3260_v26 = vmax.f32 %v3132_v14, 0.0  ;;  %v3403_v37 = vld [vmem:[%s6291_s14 + $0x60] sm:$0xff]  ;;  %v3405_v29 = vld [vmem:[%s6291_s14 + $0x70] sm:$0xff]  ;;  %v3410_v56 = vld [vmem:[%s6291_s14 + $0x98] sm:$0xff] }
 0x35d   : > { %v3412_v25 = vld [vmem:[%s6291_s14 + $0xa8] sm:$0xff]  ;;  %v3411_v19 = vld [vmem:[%s6291_s14 + $0xa0] sm:$0xff]  ;;  %v3417_v24 = vld [vmem:[%s6291_s14 + $0xd0] sm:$0xff] }
 0x35e   : > { %v2653_v51 = vpop.permute.xlu0 %2652  ;;  %v3195_v8 = vadd.f32 %v3067_v27, %v2939_v7  ;;  %v3196_v9 = vadd.f32 %v3068_v12, %v2940_v31  ;;  %v3416_v21 = vld [vmem:[%s6291_s14 + $0xc8] sm:$0xff]  ;;  %v3419_v14 = vld [vmem:[%s6291_s14 + $0xe0] sm:$0xff]  ;;  %v3422_v7 = vld [vmem:[%s6291_s14 + $0xf8] sm:$0xff] }
 0x35f   : > { %v2877_v47 = vadd.f32 %v2653_v51, %v2365_v0  ;;  %v2878_v11 = vadd.f32 %v2653_v51, %v2366_v32  ;;  %v3415_v0 = vld [vmem:[%s6291_s14 + $0xc0] sm:$0xff]  ;;  %v3420_v32 = vld [vmem:[%s6291_s14 + $0xe8] sm:$0xff]  ;;  %v3426_v51 = vld [vmem:[%s6291_s14 + $0x118] sm:$0xff] }
 0x360   : > { %v3323_v4 = vmax.f32 %v3195_v8, 0.0  ;;  %v3324_v38 = vmax.f32 %v3196_v9, 0.0  ;;  %v3424_v31 = vld [vmem:[%s6291_s14 + $0x108] sm:$0xff]  ;;  %v3425_v12 = vld [vmem:[%s6291_s14 + $0x110] sm:$0xff]  ;;  %v3431_v50 = vld [vmem:[%s6291_s14 + $0x140] sm:$0xff] }
 0x361   : > { %v3133_v61 = vadd.f32 %v3005_v23, %v2877_v47  ;;  %v3134_v34 = vadd.f32 %v3006_v43, %v2878_v11  ;;  %v3421_v23 = vld [vmem:[%s6291_s14 + $0xf0] sm:$0xff]  ;;  %v3423_v43 = vld [vmem:[%s6291_s14 + $0x100] sm:$0xff]  ;;  %v3428_v27 = vld [vmem:[%s6291_s14 + $0x128] sm:$0xff] }
 0x362   : > { %v2813_v17 = vpop.permute.xlu0 %2812  ;;  %v3427_v47 = vld [vmem:[%s6291_s14 + $0x120] sm:$0xff]  ;;  %v3430_v11 = vld [vmem:[%s6291_s14 + $0x138] sm:$0xff]  ;;  %v3432_v42 = vld [vmem:[%s6291_s14 + $0x148] sm:$0xff] }
 0x363   : > { %v3261_v48 = vmax.f32 %v3133_v61, 0.0  ;;  %v3262_v28 = vmax.f32 %v3134_v34, 0.0  ;;  %v2941_v58 = vadd.f32 %v2813_v17, %v2429_v5  ;;  %v2942_v62 = vadd.f32 %v2813_v17, %v2430_v44  ;;  %v3429_v5 = vld [vmem:[%s6291_s14 + $0x130] sm:$0xff]  ;;  %v3434_v44 = vld [vmem:[%s6291_s14 + $0x158] sm:$0xff]  ;;  %v3436_v61 = vld [vmem:[%s6291_s14 + $0x168] sm:$0xff] }
 0x364   : > { %v3433_v34 = vld [vmem:[%s6291_s14 + $0x150] sm:$0xff]  ;;  %v3440_v8 = vld [vmem:[%s6291_s14 + $0x188] sm:$0xff] }
 0x365   : > { %v3197_v2 = vadd.f32 %v3069_v45, %v2941_v58  ;;  %v3198_v63 = vadd.f32 %v3070_v1, %v2942_v62  ;;  %v5516_v30 = vpack.c.bf16 %v3262_v28, %v3260_v26  ;;  %v5518_v54 = vpack.c.bf16 %v3261_v48, %v3259_v40  ;;  %v3435_v40 = vld [vmem:[%s6291_s14 + $0x160] sm:$0xff]  ;;  %v3438_v26 = vld [vmem:[%s6291_s14 + $0x178] sm:$0xff]  ;;  %v3437_v9 = vld [vmem:[%s6291_s14 + $0x170] sm:$0xff] }
 0x366   : > { %v3439_v45 = vld [vmem:[%s6291_s14 + $0x180] sm:$0xff]  ;;  %v3442_v1 = vld [vmem:[%s6291_s14 + $0x198] sm:$0xff]  ;;  %v3444_v17 = vld [vmem:[%s6291_s14 + $0x1a8] sm:$0xff] }
 0x367   : > { %v3325_v10 = vmax.f32 %v3197_v2, 0.0  ;;  %v3326_v49 = vmax.f32 %v3198_v63, 0.0  ;;  %5517 = vmatprep.subr.bf16.mxu1 %v5516_v30  ;;  %v3441_v48 = vld [vmem:[%s6291_s14 + $0x190] sm:$0xff]  ;;  %v3443_v28 = vld [vmem:[%s6291_s14 + $0x1a0] sm:$0xff]  ;;  %v3446_v58 = vld [vmem:[%s6291_s14 + $0x1b8] sm:$0xff] }
 0x368   : > { %5519 = vmatpush1.bf16.msra.mxu1 %v5518_v54  ;;  %v3448_v62 = vld [vmem:[%s6291_s14 + $0x1c8] sm:$0xff]  ;;  %v3445_v2 = vld [vmem:[%s6291_s14 + $0x1b0] sm:$0xff]  ;;  %v3447_v63 = vld [vmem:[%s6291_s14 + $0x1c0] sm:$0xff] }
 0x369   : > { %v5580_v3 = vpack.c.bf16 %v3326_v49, %v3324_v38  ;;  %v5582_v39 = vpack.c.bf16 %v3325_v10, %v3323_v4  ;;  %v3450_v30 = vld [vmem:[%s6291_s14 + $0x1d8] sm:$0xff]  ;;  %v3452_v54 = vld [vmem:[%s6291_s14 + $0x1e8] sm:$0xff]  ;;  %v3449_v4 = vld [vmem:[%s6291_s14 + $0x1d0] sm:$0xff] }
 0x36a   : > { %v3451_v38 = vld [vmem:[%s6291_s14 + $0x1e0] sm:$0xff]  ;;  %v3454_v10 = vld [vmem:[%s6291_s14 + $0x1f8] sm:$0xff]  ;;  %v3456_v49 = vld [vmem:[%s6291_s14 + $0x208] sm:$0xff] }
 0x36b   : > { %5581 = vmatprep.subr.bf16.mxu0 %v5580_v3  ;;  %3584 = vmatmul.mubr.f32.vlgmr.msra.gmra.mrb[0].mxu1 %v3391_v55  ;;  %v3453_v55 = vld [vmem:[%s6291_s14 + $0x1f0] sm:$0xff]  ;;  %v3455_v3 = vld [vmem:[%s6291_s14 + $0x200] sm:$0xff] }
 0x36c   : > { %5583 = vmatpush1.bf16.msra.mxu0 %v5582_v39  ;;  %3589 = vmatprep.mubr.f32.mxu1 %v3396_v15  ;;  %v3458_v39 = vld [vmem:[%s6291_s14 + $0x218] sm:$0xff]  ;;  %v3460_v15 = vld [vmem:[%s6291_s14 + $0x228] sm:$0xff] }
 0x36f   : > { %3841 = vmatmul.mubr.f32.vlgmr.msra.gmra.mrb[0].mxu0 %v3393_v60  ;;  %3590 = vmatmul.mubr.f32.gmra.mrb[2].mxu1 %v3395_v22  ;;  %v3457_v60 = vld [vmem:[%s6291_s14 + $0x210] sm:$0xff]  ;;  %v3459_v22 = vld [vmem:[%s6291_s14 + $0x220] sm:$0xff] }
 0x370   : > { %3846 = vmatprep.mubr.f32.mxu0 %v3398_v52  ;;  %3595 = vmatprep.mubr.f32.mxu1 %v3400_v35  ;;  %v3462_v52 = vld [vmem:[%s6291_s14 + $0x238] sm:$0xff]  ;;  %v3464_v35 = vld [vmem:[%s6291_s14 + $0x248] sm:$0xff] }
 0x373   : > { %3847 = vmatmul.mubr.f32.gmra.mrb[2].mxu0 %v3397_v16  ;;  %3596 = vmatmul.mubr.f32.gmra.mrb[4].mxu1 %v3399_v33  ;;  %v3461_v16 = vld [vmem:[%s6291_s14 + $0x230] sm:$0xff]  ;;  %v3463_v33 = vld [vmem:[%s6291_s14 + $0x240] sm:$0xff] }
 0x374   : > { %3852 = vmatprep.mubr.f32.mxu0 %v3402_v57  ;;  %3601 = vmatprep.mubr.f32.mxu1 %v3404_v59  ;;  %v3466_v57 = vld [vmem:[%s6291_s14 + $0x258] sm:$0xff]  ;;  %v3468_v59 = vld [vmem:[%s6291_s14 + $0x268] sm:$0xff] }
 0x377   : > { %3853 = vmatmul.mubr.f32.gmra.mrb[4].mxu0 %v3401_v53  ;;  %3602 = vmatmul.mubr.f32.gmra.mrb[6].mxu1 %v3403_v37  ;;  %v3465_v53 = vld [vmem:[%s6291_s14 + $0x250] sm:$0xff]  ;;  %v3467_v37 = vld [vmem:[%s6291_s14 + $0x260] sm:$0xff] }
 0x378   : > { %3858 = vmatprep.mubr.f32.mxu0 %v3406_v36  ;;  %3607 = vmatprep.mubr.f32.mxu1 %v3408_v6  ;;  %v3470_v36 = vld [vmem:[%s6291_s14 + $0x278] sm:$0xff]  ;;  %v3472_v6 = vld [vmem:[%s6291_s14 + $0x288] sm:$0xff] }
 0x37b   : > { %3859 = vmatmul.mubr.f32.gmra.mrb[6].mxu0 %v3405_v29  ;;  %3608 = vmatmul.mubr.f32.gmra.mrb[8].mxu1 %v3407_v13  ;;  %v3469_v29 = vld [vmem:[%s6291_s14 + $0x270] sm:$0xff]  ;;  %v3471_v13 = vld [vmem:[%s6291_s14 + $0x280] sm:$0xff] }
 0x37c   : > { %3864 = vmatprep.mubr.f32.mxu0 %v3410_v56  ;;  %3613 = vmatprep.mubr.f32.mxu1 %v3412_v25  ;;  %v3474_v56 = vld [vmem:[%s6291_s14 + $0x298] sm:$0xff]  ;;  %v3476_v25 = vld [vmem:[%s6291_s14 + $0x2a8] sm:$0xff] }
 0x37f   : > { %3865 = vmatmul.mubr.f32.gmra.mrb[8].mxu0 %v3409_v20  ;;  %3614 = vmatmul.mubr.f32.gmra.mrb[10].mxu1 %v3411_v19  ;;  %v3473_v20 = vld [vmem:[%s6291_s14 + $0x290] sm:$0xff]  ;;  %v3475_v19 = vld [vmem:[%s6291_s14 + $0x2a0] sm:$0xff] }
 0x380   : > { %3870 = vmatprep.mubr.f32.mxu0 %v3414_v46  ;;  %3619 = vmatprep.mubr.f32.mxu1 %v3416_v21  ;;  %v3478_v46 = vld [vmem:[%s6291_s14 + $0x2b8] sm:$0xff]  ;;  %v3480_v21 = vld [vmem:[%s6291_s14 + $0x2c8] sm:$0xff] }
 0x383   : > { %3871 = vmatmul.mubr.f32.gmra.mrb[10].mxu0 %v3413_v18  ;;  %3620 = vmatmul.mubr.f32.gmra.mrb[12].mxu1 %v3415_v0  ;;  %v3477_v18 = vld [vmem:[%s6291_s14 + $0x2b0] sm:$0xff]  ;;  %v3479_v0 = vld [vmem:[%s6291_s14 + $0x2c0] sm:$0xff] }
 0x384   : > { %3876 = vmatprep.mubr.f32.mxu0 %v3418_v41  ;;  %3625 = vmatprep.mubr.f32.mxu1 %v3420_v32  ;;  %v3482_v41 = vld [vmem:[%s6291_s14 + $0x2d8] sm:$0xff]  ;;  %v3484_v32 = vld [vmem:[%s6291_s14 + $0x2e8] sm:$0xff] }
 0x387   : > { %3877 = vmatmul.mubr.f32.gmra.mrb[12].mxu0 %v3417_v24  ;;  %3626 = vmatmul.mubr.f32.gmra.mrb[14].mxu1 %v3419_v14  ;;  %v3481_v24 = vld [vmem:[%s6291_s14 + $0x2d0] sm:$0xff]  ;;  %v3483_v14 = vld [vmem:[%s6291_s14 + $0x2e0] sm:$0xff] }
 0x388   : > { %3882 = vmatprep.mubr.f32.mxu0 %v3422_v7  ;;  %3631 = vmatprep.mubr.f32.mxu1 %v3424_v31  ;;  %v3486_v7 = vld [vmem:[%s6291_s14 + $0x2f8] sm:$0xff]  ;;  %v3488_v31 = vld [vmem:[%s6291_s14 + $0x308] sm:$0xff] }
 0x38b   : > { %3883 = vmatmul.mubr.f32.gmra.mrb[14].mxu0 %v3421_v23  ;;  %3632 = vmatmul.mubr.f32.gmra.mrb[16].mxu1 %v3423_v43  ;;  %v3485_v23 = vld [vmem:[%s6291_s14 + $0x2f0] sm:$0xff]  ;;  %v3487_v43 = vld [vmem:[%s6291_s14 + $0x300] sm:$0xff] }
 0x38c   : > { %3888 = vmatprep.mubr.f32.mxu0 %v3426_v51  ;;  %3637 = vmatprep.mubr.f32.mxu1 %v3428_v27  ;;  %v3490_v51 = vld [vmem:[%s6291_s14 + $0x318] sm:$0xff]  ;;  %v3492_v27 = vld [vmem:[%s6291_s14 + $0x328] sm:$0xff] }
 0x38f   : > { %3889 = vmatmul.mubr.f32.gmra.mrb[16].mxu0 %v3425_v12  ;;  %3638 = vmatmul.mubr.f32.gmra.mrb[18].mxu1 %v3427_v47  ;;  %v3489_v12 = vld [vmem:[%s6291_s14 + $0x310] sm:$0xff]  ;;  %v3491_v47 = vld [vmem:[%s6291_s14 + $0x320] sm:$0xff] }
 0x390   : > { %3894 = vmatprep.mubr.f32.mxu0 %v3430_v11  ;;  %3643 = vmatprep.mubr.f32.mxu1 %v3432_v42  ;;  %v3494_v11 = vld [vmem:[%s6291_s14 + $0x338] sm:$0xff]  ;;  %v3496_v42 = vld [vmem:[%s6291_s14 + $0x348] sm:$0xff] }
 0x393   : > { %3895 = vmatmul.mubr.f32.gmra.mrb[18].mxu0 %v3429_v5  ;;  %3644 = vmatmul.mubr.f32.gmra.mrb[20].mxu1 %v3431_v50  ;;  %v3493_v5 = vld [vmem:[%s6291_s14 + $0x330] sm:$0xff]  ;;  %v3495_v50 = vld [vmem:[%s6291_s14 + $0x340] sm:$0xff] }
 0x394   : > { %3900 = vmatprep.mubr.f32.mxu0 %v3434_v44  ;;  %3649 = vmatprep.mubr.f32.mxu1 %v3436_v61  ;;  %v3498_v44 = vld [vmem:[%s6291_s14 + $0x358] sm:$0xff]  ;;  %v3500_v61 = vld [vmem:[%s6291_s14 + $0x368] sm:$0xff] }
 0x397   : > { %3901 = vmatmul.mubr.f32.gmra.mrb[20].mxu0 %v3433_v34  ;;  %3650 = vmatmul.mubr.f32.gmra.mrb[22].mxu1 %v3435_v40  ;;  %v3497_v34 = vld [vmem:[%s6291_s14 + $0x350] sm:$0xff]  ;;  %v3499_v40 = vld [vmem:[%s6291_s14 + $0x360] sm:$0xff] }
 0x398   : > { %3906 = vmatprep.mubr.f32.mxu0 %v3438_v26  ;;  %3655 = vmatprep.mubr.f32.mxu1 %v3440_v8  ;;  %v3502_v26 = vld [vmem:[%s6291_s14 + $0x378] sm:$0xff]  ;;  %v3504_v8 = vld [vmem:[%s6291_s14 + $0x388] sm:$0xff] }
 0x39b   : > { %3907 = vmatmul.mubr.f32.gmra.mrb[22].mxu0 %v3437_v9  ;;  %3656 = vmatmul.mubr.f32.gmra.mrb[24].mxu1 %v3439_v45  ;;  %v3501_v9 = vld [vmem:[%s6291_s14 + $0x370] sm:$0xff]  ;;  %v3503_v45 = vld [vmem:[%s6291_s14 + $0x380] sm:$0xff] }
 0x39c   : > { %3912 = vmatprep.mubr.f32.mxu0 %v3442_v1  ;;  %3661 = vmatprep.mubr.f32.mxu1 %v3444_v17  ;;  %v3506_v1 = vld [vmem:[%s6291_s14 + $0x398] sm:$0xff]  ;;  %v3508_v17 = vld [vmem:[%s6291_s14 + $0x3a8] sm:$0xff] }
 0x39f   : > { %3913 = vmatmul.mubr.f32.gmra.mrb[24].mxu0 %v3441_v48  ;;  %3662 = vmatmul.mubr.f32.gmra.mrb[26].mxu1 %v3443_v28  ;;  %v3505_v48 = vld [vmem:[%s6291_s14 + $0x390] sm:$0xff]  ;;  %v3507_v28 = vld [vmem:[%s6291_s14 + $0x3a0] sm:$0xff] }
 0x3a0   : > { %3918 = vmatprep.mubr.f32.mxu0 %v3446_v58  ;;  %3667 = vmatprep.mubr.f32.mxu1 %v3448_v62  ;;  %v3510_v58 = vld [vmem:[%s6291_s14 + $0x3b8] sm:$0xff]  ;;  %v3512_v62 = vld [vmem:[%s6291_s14 + $0x3c8] sm:$0xff] }
 0x3a3   : > { %3919 = vmatmul.mubr.f32.gmra.mrb[26].mxu0 %v3445_v2  ;;  %3668 = vmatmul.mubr.f32.gmra.mrb[28].mxu1 %v3447_v63  ;;  %v3509_v2 = vld [vmem:[%s6291_s14 + $0x3b0] sm:$0xff]  ;;  %v3511_v63 = vld [vmem:[%s6291_s14 + $0x3c0] sm:$0xff] }
 0x3a4   : > { %3924 = vmatprep.mubr.f32.mxu0 %v3450_v30  ;;  %3673 = vmatprep.mubr.f32.mxu1 %v3452_v54  ;;  %v3514_v30 = vld [vmem:[%s6291_s14 + $0x3d8] sm:$0xff]  ;;  %v3516_v54 = vld [vmem:[%s6291_s14 + $0x3e8] sm:$0xff] }
 0x3a7   : > { %3925 = vmatmul.mubr.f32.gmra.mrb[28].mxu0 %v3449_v4  ;;  %3674 = vmatmul.mubr.f32.gmra.mrb[30].mxu1 %v3451_v38  ;;  %v3513_v4 = vld [vmem:[%s6291_s14 + $0x3d0] sm:$0xff]  ;;  %v3515_v38 = vld [vmem:[%s6291_s14 + $0x3e0] sm:$0xff] }
 0x3a8   : > { %3930 = vmatprep.mubr.f32.mxu0 %v3454_v10  ;;  %3679 = vmatprep.mubr.f32.mxu1 %v3456_v49  ;;  %v3518_v10 = vld [vmem:[%s6291_s14 + $0x3f8] sm:$0xff]  ;;  %v3517_v49 = vld [vmem:[%s6291_s14 + $0x3f0] sm:$0xff] }
 0x3ab   : > { %3931 = vmatmul.mubr.f32.gmra.mrb[30].mxu0 %v3453_v55  ;;  %3680 = vmatmul.mubr.f32.gmra.mrb[32].mxu1 %v3455_v3 }
 0x3ac   : > { %3936 = vmatprep.mubr.f32.mxu0 %v3458_v39  ;;  %3685 = vmatprep.mubr.f32.mxu1 %v3460_v15  ;;  %v3327_v39 = vld [vmem:[%s10264_s7] sm:$0xff] }
 0x3af   : > { %3937 = vmatmul.mubr.f32.gmra.mrb[32].mxu0 %v3457_v60  ;;  %3686 = vmatmul.mubr.f32.gmra.mrb[34].mxu1 %v3459_v22 }
 0x3b0   : > { %3942 = vmatprep.mubr.f32.mxu0 %v3462_v52  ;;  %3691 = vmatprep.mubr.f32.mxu1 %v3464_v35  ;;  %v3328_v52 = vld [vmem:[%s10264_s7 + $0x8] sm:$0xff] }
 0x3b3   : > { %3943 = vmatmul.mubr.f32.gmra.mrb[34].mxu0 %v3461_v16  ;;  %3692 = vmatmul.mubr.f32.gmra.mrb[36].mxu1 %v3463_v33 }
 0x3b4   : > { %3948 = vmatprep.mubr.f32.mxu0 %v3466_v57  ;;  %3697 = vmatprep.mubr.f32.mxu1 %v3468_v59 }
 0x3b7   : > { %3949 = vmatmul.mubr.f32.gmra.mrb[36].mxu0 %v3465_v53  ;;  %3698 = vmatmul.mubr.f32.gmra.mrb[38].mxu1 %v3467_v37  ;;  %v3329_v53 = vld [vmem:[%s10264_s7 + $0x10] sm:$0xff] }
 0x3b8   : > { %3954 = vmatprep.mubr.f32.mxu0 %v3470_v36  ;;  %3703 = vmatprep.mubr.f32.mxu1 %v3472_v6 }
 0x3bb   : > { %3955 = vmatmul.mubr.f32.gmra.mrb[38].mxu0 %v3469_v29  ;;  %3704 = vmatmul.mubr.f32.gmra.mrb[40].mxu1 %v3471_v13  ;;  %v3330_v29 = vld [vmem:[%s10264_s7 + $0x18] sm:$0xff] }
 0x3bc   : > { %3960 = vmatprep.mubr.f32.mxu0 %v3474_v56  ;;  %3709 = vmatprep.mubr.f32.mxu1 %v3476_v25 }
 0x3bf   : > { %3961 = vmatmul.mubr.f32.gmra.mrb[40].mxu0 %v3473_v20  ;;  %3710 = vmatmul.mubr.f32.gmra.mrb[42].mxu1 %v3475_v19 }
 0x3c0   : > { %3966 = vmatprep.mubr.f32.mxu0 %v3478_v46  ;;  %3715 = vmatprep.mubr.f32.mxu1 %v3480_v21  ;;  %v3331_v46 = vld [vmem:[%s10264_s7 + $0x20] sm:$0xff] }
 0x3c3   : > { %3967 = vmatmul.mubr.f32.gmra.mrb[42].mxu0 %v3477_v18  ;;  %3716 = vmatmul.mubr.f32.gmra.mrb[44].mxu1 %v3479_v0 }
 0x3c4   : > { %3972 = vmatprep.mubr.f32.mxu0 %v3482_v41  ;;  %3721 = vmatprep.mubr.f32.mxu1 %v3484_v32  ;;  %v3332_v41 = vld [vmem:[%s10264_s7 + $0x28] sm:$0xff] }
 0x3c7   : > { %3973 = vmatmul.mubr.f32.gmra.mrb[44].mxu0 %v3481_v24  ;;  %3722 = vmatmul.mubr.f32.gmra.mrb[46].mxu1 %v3483_v14 }
 0x3c8   : > { %3978 = vmatprep.mubr.f32.mxu0 %v3486_v7  ;;  %3727 = vmatprep.mubr.f32.mxu1 %v3488_v31 }
 0x3cb   : > { %3979 = vmatmul.mubr.f32.gmra.mrb[46].mxu0 %v3485_v23  ;;  %3728 = vmatmul.mubr.f32.gmra.mrb[48].mxu1 %v3487_v43  ;;  %v3333_v23 = vld [vmem:[%s10264_s7 + $0x30] sm:$0xff] }
 0x3cc   : > { %3984 = vmatprep.mubr.f32.mxu0 %v3490_v51  ;;  %3733 = vmatprep.mubr.f32.mxu1 %v3492_v27 }
 0x3cf   : > { %3985 = vmatmul.mubr.f32.gmra.mrb[48].mxu0 %v3489_v12  ;;  %3734 = vmatmul.mubr.f32.gmra.mrb[50].mxu1 %v3491_v47  ;;  %v3334_v12 = vld [vmem:[%s10264_s7 + $0x38] sm:$0xff] }
 0x3d0   : > { %3990 = vmatprep.mubr.f32.mxu0 %v3494_v11  ;;  %3739 = vmatprep.mubr.f32.mxu1 %v3496_v42 }
 0x3d3   : > { %3991 = vmatmul.mubr.f32.gmra.mrb[50].mxu0 %v3493_v5  ;;  %3740 = vmatmul.mubr.f32.gmra.mrb[52].mxu1 %v3495_v50 }
 0x3d4   : > { %3996 = vmatprep.mubr.f32.mxu0 %v3498_v44  ;;  %3745 = vmatprep.mubr.f32.mxu1 %v3500_v61  ;;  %v3335_v44 = vld [vmem:[%s10264_s7 + $0x40] sm:$0xff] }
 0x3d7   : > { %3997 = vmatmul.mubr.f32.gmra.mrb[52].mxu0 %v3497_v34  ;;  %3746 = vmatmul.mubr.f32.gmra.mrb[54].mxu1 %v3499_v40 }
 0x3d8   : > { %4002 = vmatprep.mubr.f32.mxu0 %v3502_v26  ;;  %3751 = vmatprep.mubr.f32.mxu1 %v3504_v8  ;;  %v3336_v26 = vld [vmem:[%s10264_s7 + $0x48] sm:$0xff] }
 0x3db   : > { %4003 = vmatmul.mubr.f32.gmra.mrb[54].mxu0 %v3501_v9  ;;  %3752 = vmatmul.mubr.f32.gmra.mrb[56].mxu1 %v3503_v45 }
 0x3dc   : > { %4008 = vmatprep.mubr.f32.mxu0 %v3506_v1  ;;  %3757 = vmatprep.mubr.f32.mxu1 %v3508_v17 }
 0x3df   : > { %4009 = vmatmul.mubr.f32.gmra.mrb[56].mxu0 %v3505_v48  ;;  %3758 = vmatmul.mubr.f32.gmra.mrb[58].mxu1 %v3507_v28  ;;  %v3337_v48 = vld [vmem:[%s10264_s7 + $0x50] sm:$0xff] }
 0x3e0   : > { %4014 = vmatprep.mubr.f32.mxu0 %v3510_v58  ;;  %3763 = vmatprep.mubr.f32.mxu1 %v3512_v62 }
 0x3e3   : > { %4015 = vmatmul.mubr.f32.gmra.mrb[58].mxu0 %v3509_v2  ;;  %3764 = vmatmul.mubr.f32.gmra.mrb[60].mxu1 %v3511_v63  ;;  %v3338_v2 = vld [vmem:[%s10264_s7 + $0x58] sm:$0xff] }
 0x3e4   : > { %4020 = vmatprep.mubr.f32.mxu0 %v3514_v30  ;;  %3769 = vmatprep.mubr.f32.mxu1 %v3516_v54 }
 0x3e7   : > { %4021 = vmatmul.mubr.f32.gmra.mrb[60].mxu0 %v3513_v4  ;;  %3770 = vmatmul.mubr.f32.gmra.mrb[62].mxu1 %v3515_v38 }
 0x3e8   : > { %4026 = vmatprep.mubr.f32.mxu0 %v3518_v10  ;;  %v3339_v10 = vld [vmem:[%s10264_s7 + $0x60] sm:$0xff] }
 0x3eb   : > { %4027 = vmatmul.mubr.f32.gmra.mrb[62].mxu0 %v3517_v49 }
 0x43e   : > { %v3585_v55 = vpop.f32.mrb[0].mxu1 }
 0x43f   : > { %v3587_v3 = vpop.f32.mrb[1].mxu1 }
 0x442   : > { %v3842_v15 = vpop.f32.mrb[0].mxu0  ;;  %v3591_v60 = vpop.f32.mrb[2].mxu1 }
 0x443   : > { %v3843_v22 = vadd.f32 %v3842_v15, %v3585_v55  ;;  %v3844_v35 = vpop.f32.mrb[1].mxu0  ;;  %v3593_v16 = vpop.f32.mrb[3].mxu1 }
 0x444   : > { %v3845_v33 = vadd.f32 %v3844_v35, %v3587_v3 }
 0x445   : > { %v4033_v57 = vadd.f32 %v3843_v22, %v3327_v39  ;;  %v3340_v39 = vld [vmem:[%s10264_s7 + $0x68] sm:$0xff] }
 0x446   : > { %v4034_v59 = vadd.f32 %v3845_v33, %v3328_v52  ;;  %v3848_v37 = vpop.f32.mrb[2].mxu0  ;;  %v3597_v36 = vpop.f32.mrb[4].mxu1 }
 0x447   : > { %4097 = vst [vmem:[%s10264_s7] sm:$0xff] %v4033_v57  ;;  %v3849_v6 = vadd.f32 %v3848_v37, %v3591_v60  ;;  %v3850_v13 = vpop.f32.mrb[3].mxu0  ;;  %v3599_v56 = vpop.f32.mrb[5].mxu1 }
 0x448   : > { %4098 = vst.msk [vmem:[%s10264_s7 + $0x8] sm:$0xff] %vm830_vm1, %v4034_v59  ;;  %v3851_v25 = vadd.f32 %v3850_v13, %v3593_v16  ;;  %v3341_v16 = vld [vmem:[%s10264_s7 + $0x70] sm:$0xff] }
 0x449   : > { %v4035_v20 = vadd.f32 %v3849_v6, %v3329_v53  ;;  %v3342_v53 = vld [vmem:[%s10264_s7 + $0x78] sm:$0xff] }
 0x44a   : > { %v4036_v19 = vadd.f32 %v3851_v25, %v3330_v29  ;;  %v3854_v21 = vpop.f32.mrb[4].mxu0  ;;  %v3603_v18 = vpop.f32.mrb[6].mxu1 }
 0x44b   : > { %4099 = vst [vmem:[%s10264_s7 + $0x10] sm:$0xff] %v4035_v20  ;;  %v3855_v0 = vadd.f32 %v3854_v21, %v3597_v36  ;;  %v3856_v32 = vpop.f32.mrb[5].mxu0  ;;  %v3605_v24 = vpop.f32.mrb[7].mxu1 }
 0x44c   : > { %4100 = vst.msk [vmem:[%s10264_s7 + $0x18] sm:$0xff] %vm830_vm1, %v4036_v19  ;;  %v3857_v14 = vadd.f32 %v3856_v32, %v3599_v56  ;;  %v3343_v56 = vld [vmem:[%s10264_s7 + $0x80] sm:$0xff] }
 0x44d   : > { %v4037_v7 = vadd.f32 %v3855_v0, %v3331_v46  ;;  %v3344_v46 = vld [vmem:[%s10264_s7 + $0x88] sm:$0xff] }
 0x44e   : > { %v4038_v31 = vadd.f32 %v3857_v14, %v3332_v41  ;;  %v3860_v43 = vpop.f32.mrb[6].mxu0  ;;  %v3609_v51 = vpop.f32.mrb[8].mxu1 }
 0x44f   : > { %4101 = vst [vmem:[%s10264_s7 + $0x20] sm:$0xff] %v4037_v7  ;;  %v3861_v27 = vadd.f32 %v3860_v43, %v3603_v18  ;;  %v3862_v47 = vpop.f32.mrb[7].mxu0  ;;  %v3611_v11 = vpop.f32.mrb[9].mxu1 }
 0x450   : > { %4102 = vst.msk [vmem:[%s10264_s7 + $0x28] sm:$0xff] %vm830_vm1, %v4038_v31  ;;  %v3863_v42 = vadd.f32 %v3862_v47, %v3605_v24  ;;  %v3345_v24 = vld [vmem:[%s10264_s7 + $0x90] sm:$0xff] }
 0x451   : > { %v4039_v5 = vadd.f32 %v3861_v27, %v3333_v23  ;;  %v3346_v23 = vld [vmem:[%s10264_s7 + $0x98] sm:$0xff] }
 0x452   : > { %v4040_v50 = vadd.f32 %v3863_v42, %v3334_v12  ;;  %v3866_v61 = vpop.f32.mrb[8].mxu0  ;;  %v3615_v34 = vpop.f32.mrb[10].mxu1 }
 0x453   : > { %4103 = vst [vmem:[%s10264_s7 + $0x30] sm:$0xff] %v4039_v5  ;;  %v3867_v40 = vadd.f32 %v3866_v61, %v3609_v51  ;;  %v3868_v8 = vpop.f32.mrb[9].mxu0  ;;  %v3617_v9 = vpop.f32.mrb[11].mxu1 }
 0x454   : > { %4104 = vst.msk [vmem:[%s10264_s7 + $0x38] sm:$0xff] %vm830_vm1, %v4040_v50  ;;  %v3869_v45 = vadd.f32 %v3868_v8, %v3611_v11  ;;  %v3347_v11 = vld [vmem:[%s10264_s7 + $0xa0] sm:$0xff] }
 0x455   : > { %v4041_v1 = vadd.f32 %v3867_v40, %v3335_v44  ;;  %v3348_v44 = vld [vmem:[%s10264_s7 + $0xa8] sm:$0xff] }
 0x456   : > { %v4042_v17 = vadd.f32 %v3869_v45, %v3336_v26  ;;  %v3872_v28 = vpop.f32.mrb[10].mxu0  ;;  %v3621_v58 = vpop.f32.mrb[12].mxu1 }
 0x457   : > { %4105 = vst [vmem:[%s10264_s7 + $0x40] sm:$0xff] %v4041_v1  ;;  %v3873_v62 = vadd.f32 %v3872_v28, %v3615_v34  ;;  %v3874_v63 = vpop.f32.mrb[11].mxu0  ;;  %v3623_v30 = vpop.f32.mrb[13].mxu1 }
 0x458   : > { %4106 = vst.msk [vmem:[%s10264_s7 + $0x48] sm:$0xff] %vm830_vm1, %v4042_v17  ;;  %v3875_v54 = vadd.f32 %v3874_v63, %v3617_v9  ;;  %v3349_v9 = vld [vmem:[%s10264_s7 + $0xb0] sm:$0xff] }
 0x459   : > { %v4043_v4 = vadd.f32 %v3873_v62, %v3337_v48  ;;  %v3350_v48 = vld [vmem:[%s10264_s7 + $0xb8] sm:$0xff] }
 0x45a   : > { %v4044_v38 = vadd.f32 %v3875_v54, %v3338_v2  ;;  %v3878_v49 = vpop.f32.mrb[12].mxu0  ;;  %v3627_v55 = vpop.f32.mrb[14].mxu1 }
 0x45b   : > { %4107 = vst [vmem:[%s10264_s7 + $0x50] sm:$0xff] %v4043_v4  ;;  %v3879_v3 = vadd.f32 %v3878_v49, %v3621_v58  ;;  %v3880_v15 = vpop.f32.mrb[13].mxu0  ;;  %v3629_v60 = vpop.f32.mrb[15].mxu1 }
 0x45c   : > { %4108 = vst.msk [vmem:[%s10264_s7 + $0x58] sm:$0xff] %vm830_vm1, %v4044_v38  ;;  %v3881_v22 = vadd.f32 %v3880_v15, %v3623_v30  ;;  %v3351_v30 = vld [vmem:[%s10264_s7 + $0xc0] sm:$0xff] }
 0x45d   : > { %v4045_v52 = vadd.f32 %v3879_v3, %v3339_v10  ;;  %v3352_v10 = vld [vmem:[%s10264_s7 + $0xc8] sm:$0xff] }
 0x45e   : > { %v4046_v35 = vadd.f32 %v3881_v22, %v3340_v39  ;;  %v3884_v33 = vpop.f32.mrb[14].mxu0  ;;  %v3633_v57 = vpop.f32.mrb[16].mxu1 }
 0x45f   : > { %4109 = vst [vmem:[%s10264_s7 + $0x60] sm:$0xff] %v4045_v52  ;;  %v3885_v59 = vadd.f32 %v3884_v33, %v3627_v55  ;;  %v3886_v37 = vpop.f32.mrb[15].mxu0  ;;  %v3635_v36 = vpop.f32.mrb[17].mxu1 }
 0x460   : > { %4110 = vst.msk [vmem:[%s10264_s7 + $0x68] sm:$0xff] %vm830_vm1, %v4046_v35  ;;  %v3887_v6 = vadd.f32 %v3886_v37, %v3629_v60  ;;  %v3353_v60 = vld [vmem:[%s10264_s7 + $0xd0] sm:$0xff] }
 0x461   : > { %v4047_v29 = vadd.f32 %v3885_v59, %v3341_v16  ;;  %v3354_v16 = vld [vmem:[%s10264_s7 + $0xd8] sm:$0xff] }
 0x462   : > { %v4048_v13 = vadd.f32 %v3887_v6, %v3342_v53  ;;  %v3890_v25 = vpop.f32.mrb[16].mxu0  ;;  %v3639_v20 = vpop.f32.mrb[18].mxu1 }
 0x463   : > { %4111 = vst [vmem:[%s10264_s7 + $0x70] sm:$0xff] %v4047_v29  ;;  %v3891_v19 = vadd.f32 %v3890_v25, %v3633_v57  ;;  %v3892_v21 = vpop.f32.mrb[17].mxu0  ;;  %v3641_v18 = vpop.f32.mrb[19].mxu1 }
 0x464   : > { %4112 = vst.msk [vmem:[%s10264_s7 + $0x78] sm:$0xff] %vm830_vm1, %v4048_v13  ;;  %v3893_v0 = vadd.f32 %v3892_v21, %v3635_v36  ;;  %v3355_v36 = vld [vmem:[%s10264_s7 + $0xe0] sm:$0xff] }
 0x465   : > { %v4049_v41 = vadd.f32 %v3891_v19, %v3343_v56  ;;  %v3356_v56 = vld [vmem:[%s10264_s7 + $0xe8] sm:$0xff] }
 0x466   : > { %v4050_v32 = vadd.f32 %v3893_v0, %v3344_v46  ;;  %v3896_v14 = vpop.f32.mrb[18].mxu0  ;;  %v3645_v7 = vpop.f32.mrb[20].mxu1 }
 0x467   : > { %4113 = vst [vmem:[%s10264_s7 + $0x80] sm:$0xff] %v4049_v41  ;;  %v3897_v31 = vadd.f32 %v3896_v14, %v3639_v20  ;;  %v3898_v43 = vpop.f32.mrb[19].mxu0  ;;  %v3647_v51 = vpop.f32.mrb[21].mxu1 }
 0x468   : > { %4114 = vst.msk [vmem:[%s10264_s7 + $0x88] sm:$0xff] %vm830_vm1, %v4050_v32  ;;  %v3899_v27 = vadd.f32 %v3898_v43, %v3641_v18  ;;  %v3357_v18 = vld [vmem:[%s10264_s7 + $0xf0] sm:$0xff] }
 0x469   : > { %v4051_v12 = vadd.f32 %v3897_v31, %v3345_v24  ;;  %v3358_v24 = vld [vmem:[%s10264_s7 + $0xf8] sm:$0xff] }
 0x46a   : > { %v4052_v47 = vadd.f32 %v3899_v27, %v3346_v23  ;;  %v3902_v42 = vpop.f32.mrb[20].mxu0  ;;  %v3651_v5 = vpop.f32.mrb[22].mxu1 }
 0x46b   : > { %4115 = vst [vmem:[%s10264_s7 + $0x90] sm:$0xff] %v4051_v12  ;;  %v3903_v50 = vadd.f32 %v3902_v42, %v3645_v7  ;;  %v3904_v61 = vpop.f32.mrb[21].mxu0  ;;  %v3653_v34 = vpop.f32.mrb[23].mxu1 }
 0x46c   : > { %4116 = vst.msk [vmem:[%s10264_s7 + $0x98] sm:$0xff] %vm830_vm1, %v4052_v47  ;;  %v3905_v40 = vadd.f32 %v3904_v61, %v3647_v51  ;;  %v3359_v51 = vld [vmem:[%s10264_s7 + $0x100] sm:$0xff] }
 0x46d   : > { %v4053_v26 = vadd.f32 %v3903_v50, %v3347_v11  ;;  %v3360_v11 = vld [vmem:[%s10264_s7 + $0x108] sm:$0xff] }
 0x46e   : > { %v4054_v8 = vadd.f32 %v3905_v40, %v3348_v44  ;;  %v3908_v45 = vpop.f32.mrb[22].mxu0  ;;  %v3657_v1 = vpop.f32.mrb[24].mxu1 }
 0x46f   : > { %4117 = vst [vmem:[%s10264_s7 + $0xa0] sm:$0xff] %v4053_v26  ;;  %v3909_v17 = vadd.f32 %v3908_v45, %v3651_v5  ;;  %v3910_v28 = vpop.f32.mrb[23].mxu0  ;;  %v3659_v58 = vpop.f32.mrb[25].mxu1 }
 0x470   : > { %4118 = vst.msk [vmem:[%s10264_s7 + $0xa8] sm:$0xff] %vm830_vm1, %v4054_v8  ;;  %v3911_v62 = vadd.f32 %v3910_v28, %v3653_v34  ;;  %v3361_v34 = vld [vmem:[%s10264_s7 + $0x110] sm:$0xff] }
 0x471   : > { %v4055_v2 = vadd.f32 %v3909_v17, %v3349_v9  ;;  %v3362_v9 = vld [vmem:[%s10264_s7 + $0x118] sm:$0xff] }
 0x472   : > { %v4056_v63 = vadd.f32 %v3911_v62, %v3350_v48  ;;  %v3914_v54 = vpop.f32.mrb[24].mxu0  ;;  %v3663_v4 = vpop.f32.mrb[26].mxu1 }
 0x473   : > { %4119 = vst [vmem:[%s10264_s7 + $0xb0] sm:$0xff] %v4055_v2  ;;  %v3915_v38 = vadd.f32 %v3914_v54, %v3657_v1  ;;  %v3916_v49 = vpop.f32.mrb[25].mxu0  ;;  %v3665_v55 = vpop.f32.mrb[27].mxu1 }
 0x474   : > { %4120 = vst.msk [vmem:[%s10264_s7 + $0xb8] sm:$0xff] %vm830_vm1, %v4056_v63  ;;  %v3917_v3 = vadd.f32 %v3916_v49, %v3659_v58  ;;  %v3363_v58 = vld [vmem:[%s10264_s7 + $0x120] sm:$0xff] }
 0x475   : > { %v4057_v39 = vadd.f32 %v3915_v38, %v3351_v30  ;;  %v3364_v30 = vld [vmem:[%s10264_s7 + $0x128] sm:$0xff] }
 0x476   : > { %v4058_v15 = vadd.f32 %v3917_v3, %v3352_v10  ;;  %v3920_v22 = vpop.f32.mrb[26].mxu0  ;;  %v3669_v52 = vpop.f32.mrb[28].mxu1 }
 0x477   : > { %4121 = vst [vmem:[%s10264_s7 + $0xc0] sm:$0xff] %v4057_v39  ;;  %v3921_v35 = vadd.f32 %v3920_v22, %v3663_v4  ;;  %v3922_v33 = vpop.f32.mrb[27].mxu0  ;;  %v3671_v57 = vpop.f32.mrb[29].mxu1 }
 0x478   : > { %4122 = vst.msk [vmem:[%s10264_s7 + $0xc8] sm:$0xff] %vm830_vm1, %v4058_v15  ;;  %v3923_v59 = vadd.f32 %v3922_v33, %v3665_v55  ;;  %v3365_v55 = vld [vmem:[%s10264_s7 + $0x130] sm:$0xff] }
 0x479   : > { %v4059_v53 = vadd.f32 %v3921_v35, %v3353_v60  ;;  %v3366_v60 = vld [vmem:[%s10264_s7 + $0x138] sm:$0xff] }
 0x47a   : > { %v4060_v37 = vadd.f32 %v3923_v59, %v3354_v16  ;;  %v3926_v6 = vpop.f32.mrb[28].mxu0  ;;  %v3675_v29 = vpop.f32.mrb[30].mxu1 }
 0x47b   : > { %4123 = vst [vmem:[%s10264_s7 + $0xd0] sm:$0xff] %v4059_v53  ;;  %v3927_v13 = vadd.f32 %v3926_v6, %v3669_v52  ;;  %v3928_v25 = vpop.f32.mrb[29].mxu0  ;;  %v3677_v20 = vpop.f32.mrb[31].mxu1 }
 0x47c   : > { %4124 = vst.msk [vmem:[%s10264_s7 + $0xd8] sm:$0xff] %vm830_vm1, %v4060_v37  ;;  %v3929_v19 = vadd.f32 %v3928_v25, %v3671_v57  ;;  %v3367_v57 = vld [vmem:[%s10264_s7 + $0x140] sm:$0xff] }
 0x47d   : > { %v4061_v46 = vadd.f32 %v3927_v13, %v3355_v36  ;;  %v3368_v36 = vld [vmem:[%s10264_s7 + $0x148] sm:$0xff] }
 0x47e   : > { %v4062_v21 = vadd.f32 %v3929_v19, %v3356_v56  ;;  %v3932_v0 = vpop.f32.mrb[30].mxu0  ;;  %v3681_v41 = vpop.f32.mrb[32].mxu1 }
 0x47f   : > { %4125 = vst [vmem:[%s10264_s7 + $0xe0] sm:$0xff] %v4061_v46  ;;  %v3933_v32 = vadd.f32 %v3932_v0, %v3675_v29  ;;  %v3934_v14 = vpop.f32.mrb[31].mxu0  ;;  %v3683_v7 = vpop.f32.mrb[33].mxu1 }
 0x480   : > { %4126 = vst.msk [vmem:[%s10264_s7 + $0xe8] sm:$0xff] %vm830_vm1, %v4062_v21  ;;  %v3935_v31 = vadd.f32 %v3934_v14, %v3677_v20  ;;  %v3369_v20 = vld [vmem:[%s10264_s7 + $0x150] sm:$0xff] }
 0x481   : > { %v4063_v23 = vadd.f32 %v3933_v32, %v3357_v18  ;;  %v3370_v18 = vld [vmem:[%s10264_s7 + $0x158] sm:$0xff] }
 0x482   : > { %v4064_v43 = vadd.f32 %v3935_v31, %v3358_v24  ;;  %v3938_v27 = vpop.f32.mrb[32].mxu0  ;;  %v3687_v12 = vpop.f32.mrb[34].mxu1 }
 0x483   : > { %4127 = vst [vmem:[%s10264_s7 + $0xf0] sm:$0xff] %v4063_v23  ;;  %v3939_v47 = vadd.f32 %v3938_v27, %v3681_v41  ;;  %v3940_v42 = vpop.f32.mrb[33].mxu0  ;;  %v3689_v5 = vpop.f32.mrb[35].mxu1 }
 0x484   : > { %4128 = vst.msk [vmem:[%s10264_s7 + $0xf8] sm:$0xff] %vm830_vm1, %v4064_v43  ;;  %v3941_v50 = vadd.f32 %v3940_v42, %v3683_v7  ;;  %v3371_v7 = vld [vmem:[%s10264_s7 + $0x160] sm:$0xff] }
 0x485   : > { %v4065_v44 = vadd.f32 %v3939_v47, %v3359_v51  ;;  %v3372_v51 = vld [vmem:[%s10264_s7 + $0x168] sm:$0xff] }
 0x486   : > { %v4066_v61 = vadd.f32 %v3941_v50, %v3360_v11  ;;  %v3944_v40 = vpop.f32.mrb[34].mxu0  ;;  %v3693_v26 = vpop.f32.mrb[36].mxu1 }
 0x487   : > { %4129 = vst [vmem:[%s10264_s7 + $0x100] sm:$0xff] %v4065_v44  ;;  %v3945_v8 = vadd.f32 %v3944_v40, %v3687_v12  ;;  %v3946_v45 = vpop.f32.mrb[35].mxu0  ;;  %v3695_v1 = vpop.f32.mrb[37].mxu1 }
 0x488   : > { %4130 = vst.msk [vmem:[%s10264_s7 + $0x108] sm:$0xff] %vm830_vm1, %v4066_v61  ;;  %v3947_v17 = vadd.f32 %v3946_v45, %v3689_v5  ;;  %v3373_v5 = vld [vmem:[%s10264_s7 + $0x170] sm:$0xff] }
 0x489   : > { %v4067_v48 = vadd.f32 %v3945_v8, %v3361_v34  ;;  %v3374_v34 = vld [vmem:[%s10264_s7 + $0x178] sm:$0xff] }
 0x48a   : > { %v4068_v28 = vadd.f32 %v3947_v17, %v3362_v9  ;;  %v3950_v62 = vpop.f32.mrb[36].mxu0  ;;  %v3699_v2 = vpop.f32.mrb[38].mxu1 }
 0x48b   : > { %4131 = vst [vmem:[%s10264_s7 + $0x110] sm:$0xff] %v4067_v48  ;;  %v3951_v63 = vadd.f32 %v3950_v62, %v3693_v26  ;;  %v3952_v54 = vpop.f32.mrb[37].mxu0  ;;  %v3701_v4 = vpop.f32.mrb[39].mxu1 }
 0x48c   : > { %4132 = vst.msk [vmem:[%s10264_s7 + $0x118] sm:$0xff] %vm830_vm1, %v4068_v28  ;;  %v3953_v38 = vadd.f32 %v3952_v54, %v3695_v1  ;;  %v3375_v1 = vld [vmem:[%s10264_s7 + $0x180] sm:$0xff] }
 0x48d   : > { %v4069_v10 = vadd.f32 %v3951_v63, %v3363_v58  ;;  %v3376_v58 = vld [vmem:[%s10264_s7 + $0x188] sm:$0xff] }
 0x48e   : > { %v4070_v49 = vadd.f32 %v3953_v38, %v3364_v30  ;;  %v3956_v3 = vpop.f32.mrb[38].mxu0  ;;  %v3705_v39 = vpop.f32.mrb[40].mxu1 }
 0x48f   : > { %4133 = vst [vmem:[%s10264_s7 + $0x120] sm:$0xff] %v4069_v10  ;;  %v3957_v15 = vadd.f32 %v3956_v3, %v3699_v2  ;;  %v3958_v22 = vpop.f32.mrb[39].mxu0  ;;  %v3707_v52 = vpop.f32.mrb[41].mxu1 }
 0x490   : > { %4134 = vst.msk [vmem:[%s10264_s7 + $0x128] sm:$0xff] %vm830_vm1, %v4070_v49  ;;  %v3959_v35 = vadd.f32 %v3958_v22, %v3701_v4  ;;  %v3377_v4 = vld [vmem:[%s10264_s7 + $0x190] sm:$0xff] }
 0x491   : > { %v4071_v16 = vadd.f32 %v3957_v15, %v3365_v55  ;;  %v3378_v55 = vld [vmem:[%s10264_s7 + $0x198] sm:$0xff] }
 0x492   : > { %v4072_v33 = vadd.f32 %v3959_v35, %v3366_v60  ;;  %v3962_v59 = vpop.f32.mrb[40].mxu0  ;;  %v3711_v53 = vpop.f32.mrb[42].mxu1 }
 0x493   : > { %4135 = vst [vmem:[%s10264_s7 + $0x130] sm:$0xff] %v4071_v16  ;;  %v3963_v37 = vadd.f32 %v3962_v59, %v3705_v39  ;;  %v3964_v6 = vpop.f32.mrb[41].mxu0  ;;  %v3713_v29 = vpop.f32.mrb[43].mxu1 }
 0x494   : > { %4136 = vst.msk [vmem:[%s10264_s7 + $0x138] sm:$0xff] %vm830_vm1, %v4072_v33  ;;  %v3965_v13 = vadd.f32 %v3964_v6, %v3707_v52  ;;  %v3379_v52 = vld [vmem:[%s10264_s7 + $0x1a0] sm:$0xff] }
 0x495   : > { %v4073_v56 = vadd.f32 %v3963_v37, %v3367_v57  ;;  %v3380_v57 = vld [vmem:[%s10264_s7 + $0x1a8] sm:$0xff] }
 0x496   : > { %v4074_v25 = vadd.f32 %v3965_v13, %v3368_v36  ;;  %v3968_v19 = vpop.f32.mrb[42].mxu0  ;;  %v3717_v46 = vpop.f32.mrb[44].mxu1 }
 0x497   : > { %4137 = vst [vmem:[%s10264_s7 + $0x140] sm:$0xff] %v4073_v56  ;;  %v3969_v21 = vadd.f32 %v3968_v19, %v3711_v53  ;;  %v3970_v0 = vpop.f32.mrb[43].mxu0  ;;  %v3719_v41 = vpop.f32.mrb[45].mxu1 }
 0x498   : > { %4138 = vst.msk [vmem:[%s10264_s7 + $0x148] sm:$0xff] %vm830_vm1, %v4074_v25  ;;  %v3971_v32 = vadd.f32 %v3970_v0, %v3713_v29  ;;  %v3381_v29 = vld [vmem:[%s10264_s7 + $0x1b0] sm:$0xff] }
 0x499   : > { %v4075_v24 = vadd.f32 %v3969_v21, %v3369_v20  ;;  %v3382_v20 = vld [vmem:[%s10264_s7 + $0x1b8] sm:$0xff] }
 0x49a   : > { %v4076_v14 = vadd.f32 %v3971_v32, %v3370_v18  ;;  %v3974_v31 = vpop.f32.mrb[44].mxu0  ;;  %v3723_v23 = vpop.f32.mrb[46].mxu1 }
 0x49b   : > { %4139 = vst [vmem:[%s10264_s7 + $0x150] sm:$0xff] %v4075_v24  ;;  %v3975_v43 = vadd.f32 %v3974_v31, %v3717_v46  ;;  %v3976_v27 = vpop.f32.mrb[45].mxu0  ;;  %v3725_v12 = vpop.f32.mrb[47].mxu1 }
 0x49c   : > { %4140 = vst.msk [vmem:[%s10264_s7 + $0x158] sm:$0xff] %vm830_vm1, %v4076_v14  ;;  %v3977_v47 = vadd.f32 %v3976_v27, %v3719_v41  ;;  %v3383_v41 = vld [vmem:[%s10264_s7 + $0x1c0] sm:$0xff] }
 0x49d   : > { %v4077_v11 = vadd.f32 %v3975_v43, %v3371_v7  ;;  %v3384_v7 = vld [vmem:[%s10264_s7 + $0x1c8] sm:$0xff] }
 0x49e   : > { %v4078_v42 = vadd.f32 %v3977_v47, %v3372_v51  ;;  %v3980_v50 = vpop.f32.mrb[46].mxu0  ;;  %v3729_v44 = vpop.f32.mrb[48].mxu1 }
 0x49f   : > { %4141 = vst [vmem:[%s10264_s7 + $0x160] sm:$0xff] %v4077_v11  ;;  %v3981_v61 = vadd.f32 %v3980_v50, %v3723_v23  ;;  %v3982_v40 = vpop.f32.mrb[47].mxu0  ;;  %v3731_v26 = vpop.f32.mrb[49].mxu1 }
 0x4a0   : > { %4142 = vst.msk [vmem:[%s10264_s7 + $0x168] sm:$0xff] %vm830_vm1, %v4078_v42  ;;  %v3983_v8 = vadd.f32 %v3982_v40, %v3725_v12  ;;  %v3385_v12 = vld [vmem:[%s10264_s7 + $0x1d0] sm:$0xff] }
 0x4a1   : > { %v4079_v9 = vadd.f32 %v3981_v61, %v3373_v5  ;;  %v3386_v5 = vld [vmem:[%s10264_s7 + $0x1d8] sm:$0xff] }
 0x4a2   : > { %v4080_v45 = vadd.f32 %v3983_v8, %v3374_v34  ;;  %v3986_v17 = vpop.f32.mrb[48].mxu0  ;;  %v3735_v48 = vpop.f32.mrb[50].mxu1 }
 0x4a3   : > { %4143 = vst [vmem:[%s10264_s7 + $0x170] sm:$0xff] %v4079_v9  ;;  %v3987_v28 = vadd.f32 %v3986_v17, %v3729_v44  ;;  %v3988_v62 = vpop.f32.mrb[49].mxu0  ;;  %v3737_v2 = vpop.f32.mrb[51].mxu1 }
 0x4a4   : > { %4144 = vst.msk [vmem:[%s10264_s7 + $0x178] sm:$0xff] %vm830_vm1, %v4080_v45  ;;  %v3989_v63 = vadd.f32 %v3988_v62, %v3731_v26  ;;  %v3387_v26 = vld [vmem:[%s10264_s7 + $0x1e0] sm:$0xff] }
 0x4a5   : > { %v4081_v30 = vadd.f32 %v3987_v28, %v3375_v1  ;;  %v3388_v1 = vld [vmem:[%s10264_s7 + $0x1e8] sm:$0xff] }
 0x4a6   : > { %v4082_v54 = vadd.f32 %v3989_v63, %v3376_v58  ;;  %v3992_v38 = vpop.f32.mrb[50].mxu0  ;;  %v3741_v10 = vpop.f32.mrb[52].mxu1 }
 0x4a7   : > { %4145 = vst [vmem:[%s10264_s7 + $0x180] sm:$0xff] %v4081_v30  ;;  %v3993_v49 = vadd.f32 %v3992_v38, %v3735_v48  ;;  %v3994_v3 = vpop.f32.mrb[51].mxu0  ;;  %v3743_v39 = vpop.f32.mrb[53].mxu1 }
 0x4a8   : > { %4146 = vst.msk [vmem:[%s10264_s7 + $0x188] sm:$0xff] %vm830_vm1, %v4082_v54  ;;  %v3995_v15 = vadd.f32 %v3994_v3, %v3737_v2  ;;  %v3389_v2 = vld [vmem:[%s10264_s7 + $0x1f0] sm:$0xff]  ;;  %v3390_v54 = vld [vmem:[%s10264_s7 + $0x1f8] sm:$0xff] }
 0x4a9   : > { %v4083_v60 = vadd.f32 %v3993_v49, %v3377_v4 }
 0x4aa   : > { %v4084_v22 = vadd.f32 %v3995_v15, %v3378_v55  ;;  %v3998_v35 = vpop.f32.mrb[52].mxu0  ;;  %v3747_v16 = vpop.f32.mrb[54].mxu1 }
 0x4ab   : > { %4147 = vst [vmem:[%s10264_s7 + $0x190] sm:$0xff] %v4083_v60  ;;  %v3999_v33 = vadd.f32 %v3998_v35, %v3741_v10  ;;  %v4000_v59 = vpop.f32.mrb[53].mxu0  ;;  %v3749_v53 = vpop.f32.mrb[55].mxu1 }
 0x4ac   : > { %4148 = vst.msk [vmem:[%s10264_s7 + $0x198] sm:$0xff] %vm830_vm1, %v4084_v22  ;;  %v4001_v37 = vadd.f32 %v4000_v59, %v3743_v39 }
 0x4ad   : > { %v4085_v36 = vadd.f32 %v3999_v33, %v3379_v52 }
 0x4ae   : > { %v4086_v6 = vadd.f32 %v4001_v37, %v3380_v57  ;;  %v4004_v13 = vpop.f32.mrb[54].mxu0  ;;  %v3753_v56 = vpop.f32.mrb[56].mxu1 }
 0x4af   : > { %4149 = vst [vmem:[%s10264_s7 + $0x1a0] sm:$0xff] %v4085_v36  ;;  %v4005_v25 = vadd.f32 %v4004_v13, %v3747_v16  ;;  %v4006_v19 = vpop.f32.mrb[55].mxu0  ;;  %v3755_v46 = vpop.f32.mrb[57].mxu1 }
 0x4b0   : > { %4150 = vst.msk [vmem:[%s10264_s7 + $0x1a8] sm:$0xff] %vm830_vm1, %v4086_v6  ;;  %v4007_v21 = vadd.f32 %v4006_v19, %v3749_v53 }
 0x4b1   : > { %v4087_v18 = vadd.f32 %v4005_v25, %v3381_v29 }
 0x4b2   : > { %v4088_v0 = vadd.f32 %v4007_v21, %v3382_v20  ;;  %v4010_v32 = vpop.f32.mrb[56].mxu0  ;;  %v3759_v24 = vpop.f32.mrb[58].mxu1 }
 0x4b3   : > { %4151 = vst [vmem:[%s10264_s7 + $0x1b0] sm:$0xff] %v4087_v18  ;;  %v4011_v14 = vadd.f32 %v4010_v32, %v3753_v56  ;;  %v4012_v31 = vpop.f32.mrb[57].mxu0  ;;  %v3761_v23 = vpop.f32.mrb[59].mxu1 }
 0x4b4   : > { %4152 = vst.msk [vmem:[%s10264_s7 + $0x1b8] sm:$0xff] %vm830_vm1, %v4088_v0  ;;  %v4013_v43 = vadd.f32 %v4012_v31, %v3755_v46 }
 0x4b5   : > { %v4089_v51 = vadd.f32 %v4011_v14, %v3383_v41 }
 0x4b6   : > { %v4090_v27 = vadd.f32 %v4013_v43, %v3384_v7  ;;  %v4016_v47 = vpop.f32.mrb[58].mxu0  ;;  %v3765_v11 = vpop.f32.mrb[60].mxu1 }
 0x4b7   : > { %4153 = vst [vmem:[%s10264_s7 + $0x1c0] sm:$0xff] %v4089_v51  ;;  %v4017_v42 = vadd.f32 %v4016_v47, %v3759_v24  ;;  %v4018_v50 = vpop.f32.mrb[59].mxu0  ;;  %v3767_v44 = vpop.f32.mrb[61].mxu1 }
 0x4b8   : > { %4154 = vst.msk [vmem:[%s10264_s7 + $0x1c8] sm:$0xff] %vm830_vm1, %v4090_v27  ;;  %v4019_v61 = vadd.f32 %v4018_v50, %v3761_v23 }
 0x4b9   : > { %v4091_v34 = vadd.f32 %v4017_v42, %v3385_v12 }
 0x4ba   : > { %v4092_v40 = vadd.f32 %v4019_v61, %v3386_v5  ;;  %v4022_v8 = vpop.f32.mrb[60].mxu0  ;;  %v3771_v9 = vpop.f32.mrb[62].mxu1 }
 0x4bb   : > { %4155 = vst [vmem:[%s10264_s7 + $0x1d0] sm:$0xff] %v4091_v34  ;;  %v4023_v45 = vadd.f32 %v4022_v8, %v3765_v11  ;;  %v4024_v17 = vpop.f32.mrb[61].mxu0  ;;  %v3773_v48 = vpop.f32.mrb[63].mxu1 }
 0x4bc   : > { %4156 = vst.msk [vmem:[%s10264_s7 + $0x1d8] sm:$0xff] %vm830_vm1, %v4092_v40  ;;  %v4025_v28 = vadd.f32 %v4024_v17, %v3767_v44 }
 0x4bd   : > { %v4093_v58 = vadd.f32 %v4023_v45, %v3387_v26 }
 0x4be   : > { %v4094_v62 = vadd.f32 %v4025_v28, %v3388_v1  ;;  %v4028_v63 = vpop.f32.mrb[62].mxu0  ;;  %4164 = sbr.rel (%p5450_p10) target bundleno = 1747 (0x6d3), region = 79 }
 0x4bf   : > { %4157 = vst [vmem:[%s10264_s7 + $0x1e0] sm:$0xff] %v4093_v58  ;;  %v4029_v30 = vadd.f32 %v4028_v63, %v3771_v9  ;;  %v4030_v4 = vpop.f32.mrb[63].mxu0 }
 0x4c0   : > { %4158 = vst.msk [vmem:[%s10264_s7 + $0x1e8] sm:$0xff] %vm830_vm1, %v4094_v62  ;;  %v4031_v38 = vadd.f32 %v4030_v4, %v3773_v48 }
 0x4c1   : > { %v4095_v10 = vadd.f32 %v4029_v30, %v3389_v2 }
 0x4c2   : > { %v4096_v49 = vadd.f32 %v4031_v38, %v3390_v54 }
 0x4c3   : > { %4159 = vst [vmem:[%s10264_s7 + $0x1f0] sm:$0xff] %v4095_v10 }
 0x4c4   : > { %4160 = vst.msk [vmem:[%s10264_s7 + $0x1f8] sm:$0xff] %vm830_vm1, %v4096_v49 }
 0x4c5   : > { %v8882_v55 = vld [vmem:[%s10264_s7 + $0x20] sm:$0xff]  ;;  %v8887_v3 = vld [vmem:[%s10264_s7 + $0x28] sm:$0xff]  ;;  %v8904_v22 = vld [vmem:[%s10264_s7 + $0x30] sm:$0xff]  ;;  %v5930_v35 = vmov 0  }
 0x4c6   : > { %v8892_v39 = vld [vmem:[%s10264_s7] sm:$0xff]  ;;  %v4237_v15 = vsel %vm830_vm1, %v8887_v3, 0.0  ;;  %v8899_v60 = vld [vmem:[%s10264_s7 + $0x8] sm:$0xff]  ;;  %v8909_v52 = vld [vmem:[%s10264_s7 + $0x38] sm:$0xff]  ;;  %5838 = vset.pattern.permute.xlu1 %v5930_v35  ;;  %5839 = vset.pattern.permute.xlu0 %v5930_v35 }
 0x4c7   : > { %v4238_v16 = vadd.f32 %v4237_v15, %v8882_v55  ;;  %v4229_v33 = vsel %vm830_vm1, %v8899_v60, 0.0  ;;  %v4241_v57 = vsel %vm830_vm1, %v8909_v52, 0.0  ;;  %v8919_v59 = vld [vmem:[%s10264_s7 + $0x10] sm:$0xff]  ;;  %v8924_v53 = vld [vmem:[%s10264_s7 + $0x18] sm:$0xff]  ;;  %v8937_v29 = vld [vmem:[%s10264_s7 + $0x48] sm:$0xff] }
 0x4c8   : > { %v4230_v37 = vadd.f32 %v4229_v33, %v8892_v39  ;;  %v4233_v36 = vsel %vm830_vm1, %v8924_v53, 0.0  ;;  %v8932_v6 = vld [vmem:[%s10264_s7 + $0x58] sm:$0xff]  ;;  %v4242_v13 = vadd.f32 %v4241_v57, %v8904_v22  ;;  %v8944_v25 = vld [vmem:[%s10264_s7 + $0x50] sm:$0xff]  ;;  %v8951_v19 = vld [vmem:[%s10264_s7 + $0x40] sm:$0xff]  ;;  %v4245_v46 = vsel %vm830_vm1, %v8937_v29, 0.0 }
 0x4c9   : > { %4239 = vadd.xlane.f32.xlu1 %v4238_v16  ;;  %v4234_v56 = vadd.f32 %v4233_v36, %v8919_v59  ;;  %v4249_v20 = vsel %vm830_vm1, %v8932_v6, 0.0  ;;  %v8958_v21 = vld [vmem:[%s10264_s7 + $0x78] sm:$0xff]  ;;  %v8963_v18 = vld [vmem:[%s10264_s7 + $0x68] sm:$0xff]  ;;  %v4246_v41 = vadd.f32 %v4245_v46, %v8951_v19  ;;  %v8970_v32 = vld [vmem:[%s10264_s7 + $0x70] sm:$0xff] }
 0x4ca   : > { %4231 = vadd.xlane.f32.xlu0 %v4230_v37  ;;  %v4250_v0 = vadd.f32 %v4249_v20, %v8944_v25  ;;  %v4257_v24 = vsel %vm830_vm1, %v8958_v21, 0.0  ;;  %v8977_v14 = vld [vmem:[%s10264_s7 + $0x60] sm:$0xff]  ;;  %v4253_v7 = vsel %vm830_vm1, %v8963_v18, 0.0  ;;  %v8984_v31 = vld [vmem:[%s10264_s7 + $0x98] sm:$0xff]  ;;  %v8989_v23 = vld [vmem:[%s10264_s7 + $0x88] sm:$0xff] }
 0x4cb   : > { %v4258_v43 = vadd.f32 %v4257_v24, %v8970_v32  ;;  %v4254_v51 = vadd.f32 %v4253_v7, %v8977_v14  ;;  %v8996_v27 = vld [vmem:[%s10264_s7 + $0x90] sm:$0xff]  ;;  %v4265_v12 = vsel %vm830_vm1, %v8984_v31, 0.0  ;;  %v9003_v47 = vld [vmem:[%s10264_s7 + $0x80] sm:$0xff]  ;;  %v4261_v11 = vsel %vm830_vm1, %v8989_v23, 0.0  ;;  %v9010_v42 = vld [vmem:[%s10264_s7 + $0xb8] sm:$0xff] }
 0x4cc   : > { %v9015_v5 = vld [vmem:[%s10264_s7 + $0xa8] sm:$0xff]  ;;  %v4266_v50 = vadd.f32 %v4265_v12, %v8996_v27  ;;  %v4262_v44 = vadd.f32 %v4261_v11, %v9003_v47  ;;  %v9022_v61 = vld [vmem:[%s10264_s7 + $0xb0] sm:$0xff]  ;;  %v4273_v34 = vsel %vm830_vm1, %v9010_v42, 0.0  ;;  %v9029_v40 = vld [vmem:[%s10264_s7 + $0xa0] sm:$0xff] }
 0x4cd   : > { %4243 = vadd.xlane.f32.xlu1 %v4242_v13  ;;  %v4269_v26 = vsel %vm830_vm1, %v9015_v5, 0.0  ;;  %v9036_v8 = vld [vmem:[%s10264_s7 + $0xd8] sm:$0xff]  ;;  %v9041_v9 = vld [vmem:[%s10264_s7 + $0xc8] sm:$0xff]  ;;  %v4274_v45 = vadd.f32 %v4273_v34, %v9022_v61  ;;  %v9048_v17 = vld [vmem:[%s10264_s7 + $0xd0] sm:$0xff] }
 0x4ce   : > { %4235 = vadd.xlane.f32.xlu0 %v4234_v56  ;;  %v4270_v1 = vadd.f32 %v4269_v26, %v9029_v40  ;;  %v4281_v48 = vsel %vm830_vm1, %v9036_v8, 0.0  ;;  %v9055_v28 = vld [vmem:[%s10264_s7 + $0xc0] sm:$0xff]  ;;  %v4277_v58 = vsel %vm830_vm1, %v9041_v9, 0.0  ;;  %v9062_v62 = vld [vmem:[%s10264_s7 + $0xf8] sm:$0xff]  ;;  %v9067_v2 = vld [vmem:[%s10264_s7 + $0xe8] sm:$0xff] }
 0x4cf   : > { %v4282_v63 = vadd.f32 %v4281_v48, %v9048_v17  ;;  %v4278_v30 = vadd.f32 %v4277_v58, %v9055_v28  ;;  %v9074_v54 = vld [vmem:[%s10264_s7 + $0xf0] sm:$0xff]  ;;  %v4289_v4 = vsel %vm830_vm1, %v9062_v62, 0.0  ;;  %v9081_v38 = vld [vmem:[%s10264_s7 + $0xe0] sm:$0xff]  ;;  %v4285_v10 = vsel %vm830_vm1, %v9067_v2, 0.0  ;;  %v9088_v49 = vld [vmem:[%s10264_s7 + $0x118] sm:$0xff] }
 0x4d0   : > { %v9093_v15 = vld [vmem:[%s10264_s7 + $0x108] sm:$0xff]  ;;  %v4290_v35 = vadd.f32 %v4289_v4, %v9074_v54  ;;  %v4286_v16 = vadd.f32 %v4285_v10, %v9081_v38  ;;  %v9100_v33 = vld [vmem:[%s10264_s7 + $0x110] sm:$0xff]  ;;  %v4297_v57 = vsel %vm830_vm1, %v9088_v49, 0.0  ;;  %v9107_v37 = vld [vmem:[%s10264_s7 + $0x100] sm:$0xff] }
 0x4d1   : > { %4251 = vadd.xlane.f32.xlu1 %v4250_v0  ;;  %v4293_v36 = vsel %vm830_vm1, %v9093_v15, 0.0  ;;  %v9114_v13 = vld [vmem:[%s10264_s7 + $0x138] sm:$0xff]  ;;  %v9119_v56 = vld [vmem:[%s10264_s7 + $0x128] sm:$0xff]  ;;  %v4298_v20 = vadd.f32 %v4297_v57, %v9100_v33  ;;  %v9126_v0 = vld [vmem:[%s10264_s7 + $0x130] sm:$0xff] }
 0x4d2   : > { %4247 = vadd.xlane.f32.xlu0 %v4246_v41  ;;  %v4294_v46 = vadd.f32 %v4293_v36, %v9107_v37  ;;  %v4305_v41 = vsel %vm830_vm1, %v9114_v13, 0.0  ;;  %v9133_v24 = vld [vmem:[%s10264_s7 + $0x120] sm:$0xff]  ;;  %v4301_v7 = vsel %vm830_vm1, %v9119_v56, 0.0 }
 0x4d3   : > { %v4306_v12 = vadd.f32 %v4305_v41, %v9126_v0  ;;  %v4302_v11 = vadd.f32 %v4301_v7, %v9133_v24  ;;  %v9159_v34 = vld [vmem:[%s10264_s7 + $0x140] sm:$0xff] }
 0x4d4   : > { %v9185_v4 = vld [vmem:[%s10264_s7 + $0x160] sm:$0xff] }
 0x4d5   : > { %4259 = vadd.xlane.f32.xlu1 %v4258_v43  ;;  %v9140_v43 = vld [vmem:[%s10264_s7 + $0x158] sm:$0xff]  ;;  %v9211_v41 = vld [vmem:[%s10264_s7 + $0x180] sm:$0xff] }
 0x4d6   : > { %4255 = vadd.xlane.f32.xlu0 %v4254_v51  ;;  %v9145_v51 = vld [vmem:[%s10264_s7 + $0x148] sm:$0xff] }
 0x4d7   : > { %v4309_v26 = vsel %vm830_vm1, %v9145_v51, 0.0 }
 0x4d8   : > { %v4310_v58 = vadd.f32 %v4309_v26, %v9159_v34 }
 0x4d9   : > { %4267 = vadd.xlane.f32.xlu1 %v4266_v50  ;;  %v9152_v50 = vld [vmem:[%s10264_s7 + $0x150] sm:$0xff] }
 0x4da   : > { %4263 = vadd.xlane.f32.xlu0 %v4262_v44  ;;  %v4313_v44 = vsel %vm830_vm1, %v9140_v43, 0.0 }
 0x4db   : > { %v4314_v48 = vadd.f32 %v4313_v44, %v9152_v50 }
 0x4dd   : > { %4275 = vadd.xlane.f32.xlu1 %v4274_v45  ;;  %v9166_v45 = vld [vmem:[%s10264_s7 + $0x178] sm:$0xff] }
 0x4de   : > { %4271 = vadd.xlane.f32.xlu0 %v4270_v1  ;;  %v9171_v1 = vld [vmem:[%s10264_s7 + $0x168] sm:$0xff] }
 0x4df   : > { %v4317_v10 = vsel %vm830_vm1, %v9171_v1, 0.0 }
 0x4e0   : > { %v4318_v36 = vadd.f32 %v4317_v10, %v9185_v4 }
 0x4e1   : > { %4283 = vadd.xlane.f32.xlu1 %v4282_v63  ;;  %v9178_v63 = vld [vmem:[%s10264_s7 + $0x170] sm:$0xff] }
 0x4e2   : > { %4279 = vadd.xlane.f32.xlu0 %v4278_v30  ;;  %v4321_v30 = vsel %vm830_vm1, %v9166_v45, 0.0 }
 0x4e3   : > { %v4322_v57 = vadd.f32 %v4321_v30, %v9178_v63  ;;  %v9237_v30 = vld [vmem:[%s10264_s7 + $0x1a0] sm:$0xff] }
 0x4e4   : > { %10839 = vst [vmem:[#allocation133_spill] sm:$0xff] %v9237_v30 }
 0x4e5   : > { %4291 = vadd.xlane.f32.xlu1 %v4290_v35  ;;  %v9192_v35 = vld [vmem:[%s10264_s7 + $0x198] sm:$0xff] }
 0x4e6   : > { %4287 = vadd.xlane.f32.xlu0 %v4286_v16  ;;  %v9197_v16 = vld [vmem:[%s10264_s7 + $0x188] sm:$0xff] }
 0x4e7   : > { %10835 = vst [vmem:[#allocation129_spill] sm:$0xff] %v9197_v16  ;;  %v4325_v7 = vsel %vm830_vm1, %v9197_v16, 0.0  ;;  %v9263_v16 = vld [vmem:[%s10264_s7 + $0x1c0] sm:$0xff] }
 0x4e8   : > { %v4326_v26 = vadd.f32 %v4325_v7, %v9211_v41  ;;  %10842 = vst [vmem:[#allocation136_spill] sm:$0xff] %v9263_v16 }
 0x4e9   : > { %4299 = vadd.xlane.f32.xlu1 %v4298_v20  ;;  %v9204_v20 = vld [vmem:[%s10264_s7 + $0x190] sm:$0xff] }
 0x4ea   : > { %4295 = vadd.xlane.f32.xlu0 %v4294_v46  ;;  %v4329_v46 = vsel %vm830_vm1, %v9192_v35, 0.0 }
 0x4eb   : > { %v4330_v44 = vadd.f32 %v4329_v46, %v9204_v20 }
 0x4ed   : > { %4307 = vadd.xlane.f32.xlu1 %v4306_v12  ;;  %v9218_v12 = vld [vmem:[%s10264_s7 + $0x1b8] sm:$0xff] }
 0x4ee   : > { %4303 = vadd.xlane.f32.xlu0 %v4302_v11  ;;  %10836 = vst [vmem:[#allocation130_spill] sm:$0xff] %v9218_v12  ;;  %v9223_v11 = vld [vmem:[%s10264_s7 + $0x1a8] sm:$0xff] }
 0x4ef   : > { %10837 = vst [vmem:[#allocation131_spill] sm:$0xff] %v9223_v11  ;;  %v4333_v10 = vsel %vm830_vm1, %v9223_v11, 0.0  ;;  %v9256_v11 = vld [vmem:[%s10264_s7 + $0x1d0] sm:$0xff] }
 0x4f0   : > { %v4334_v7 = vadd.f32 %v4333_v10, %v9237_v30 }
 0x4f1   : > { %4315 = vadd.xlane.f32.xlu1 %v4314_v48  ;;  %v9230_v48 = vld [vmem:[%s10264_s7 + $0x1b0] sm:$0xff] }
 0x4f2   : > { %4311 = vadd.xlane.f32.xlu0 %v4310_v58  ;;  %10838 = vst [vmem:[#allocation132_spill] sm:$0xff] %v9230_v48  ;;  %v4337_v58 = vsel %vm830_vm1, %v9218_v12, 0.0 }
 0x4f3   : > { %v4338_v46 = vadd.f32 %v4337_v58, %v9230_v48  ;;  %v9275_v58 = vld [vmem:[%s10264_s7 + $0x1e8] sm:$0xff]  ;;  %v9289_v48 = vld [vmem:[%s10264_s7 + $0x1e0] sm:$0xff] }
 0x4f4   : > { %10844 = vst [vmem:[#allocation138_spill] sm:$0xff] %v9275_v58  ;;  %10846 = vst [vmem:[#allocation140_spill] sm:$0xff] %v9289_v48 }
 0x4f5   : > { %4323 = vadd.xlane.f32.xlu1 %v4322_v57  ;;  %v9244_v57 = vld [vmem:[%s10264_s7 + $0x1d8] sm:$0xff] }
 0x4f6   : > { %4319 = vadd.xlane.f32.xlu0 %v4318_v36  ;;  %10840 = vst [vmem:[#allocation134_spill] sm:$0xff] %v9244_v57  ;;  %v9249_v36 = vld [vmem:[%s10264_s7 + $0x1c8] sm:$0xff]  ;;  %v4345_v12 = vsel %vm830_vm1, %v9244_v57, 0.0 }
 0x4f7   : > { %10841 = vst [vmem:[#allocation135_spill] sm:$0xff] %v9249_v36  ;;  %v4346_v10 = vadd.f32 %v4345_v12, %v9256_v11 }
 0x4f9   : > { %4331 = vadd.xlane.f32.xlu1 %v4330_v44  ;;  %v4341_v44 = vsel %vm830_vm1, %v9249_v36, 0.0  ;;  %v9282_v36 = vld [vmem:[%s10264_s7 + $0x1f0] sm:$0xff] }
 0x4fa   : > { %4327 = vadd.xlane.f32.xlu0 %v4326_v26  ;;  %v9270_v26 = vld [vmem:[%s10264_s7 + $0x1f8] sm:$0xff]  ;;  %v4342_v57 = vadd.f32 %v4341_v44, %v9263_v16  ;;  %10845 = vst [vmem:[#allocation139_spill] sm:$0xff] %v9282_v36  ;;  %v5029_v44 = vld [vmem:[%s10263_s6] sm:$0xff] }
 0x4fb   : > { %10843 = vst [vmem:[#allocation137_spill] sm:$0xff] %v9270_v26  ;;  %v4353_v30 = vsel %vm830_vm1, %v9270_v26, 0.0  ;;  %v5031_v26 = vld [vmem:[%s10263_s6 + $0x10] sm:$0xff] }
 0x4fc   : > { %v4354_v12 = vadd.f32 %v4353_v30, %v9282_v36  ;;  %v5033_v30 = vld [vmem:[%s10263_s6 + $0x20] sm:$0xff] }
 0x4fd   : > { %4339 = vadd.xlane.f32.xlu1 %v4338_v46  ;;  %v4349_v46 = vsel %vm830_vm1, %v9275_v58, 0.0 }
 0x4fe   : > { %4335 = vadd.xlane.f32.xlu0 %v4334_v7  ;;  %v4350_v7 = vadd.f32 %v4349_v46, %v9289_v48  ;;  %v5035_v46 = vld [vmem:[%s10263_s6 + $0x30] sm:$0xff] }
 0x501   : > { %4347 = vadd.xlane.f32.xlu1 %v4346_v10  ;;  %v5030_v10 = vld [vmem:[%s10263_s6 + $0x8] sm:$0xff] }
 0x502   : > { %4343 = vadd.xlane.f32.xlu0 %v4342_v57  ;;  %v5032_v57 = vld [vmem:[%s10263_s6 + $0x18] sm:$0xff] }
 0x505   : > { %4355 = vadd.xlane.f32.xlu1 %v4354_v12  ;;  %v5034_v12 = vld [vmem:[%s10263_s6 + $0x28] sm:$0xff] }
 0x506   : > { %4351 = vadd.xlane.f32.xlu0 %v4350_v7  ;;  %v5036_v7 = vld [vmem:[%s10263_s6 + $0x38] sm:$0xff] }
 0x516   : > { %5063 = vperm.xlu1 %5838, %v5029_v44   ;;  %v5039_v44 = vld [vmem:[%s10263_s6 + $0x50] sm:$0xff] }
 0x51a   : > { %5073 = vperm.xlu1 %5838, %v5031_v26   ;;  %v5037_v26 = vld [vmem:[%s10263_s6 + $0x40] sm:$0xff] }
 0x51c   : > { %5068 = vperm.xlu0 %5839, %v5030_v10   ;;  %v5038_v10 = vld [vmem:[%s10263_s6 + $0x48] sm:$0xff] }
 0x51e   : > { %5083 = vperm.xlu1 %5838, %v5033_v30   ;;  %v5041_v30 = vld [vmem:[%s10263_s6 + $0x60] sm:$0xff] }
 0x520   : > { %5078 = vperm.xlu0 %5839, %v5032_v57   ;;  %v5040_v57 = vld [vmem:[%s10263_s6 + $0x58] sm:$0xff] }
 0x522   : > { %5093 = vperm.xlu1 %5838, %v5035_v46   ;;  %v5042_v46 = vld [vmem:[%s10263_s6 + $0x68] sm:$0xff] }
 0x524   : > { %5088 = vperm.xlu0 %5839, %v5034_v12  }
 0x526   : > { %5103 = vperm.xlu1 %5838, %v5037_v26  }
 0x528   : > { %5098 = vperm.xlu0 %5839, %v5036_v7  }
 0x52a   : > { %5113 = vperm.xlu1 %5838, %v5039_v44  }
 0x52c   : > { %5108 = vperm.xlu0 %5839, %v5038_v10  }
 0x52e   : > { %5123 = vperm.xlu1 %5838, %v5041_v30  }
 0x530   : > { %5118 = vperm.xlu0 %5839, %v5040_v57  }
 0x534   : > { %5128 = vperm.xlu0 %5839, %v5042_v46  }
 0x556   : > { %v4240_v12 = vpop.xlane.xlu1 %4239 }
 0x557   : > { %v4359_v26 = vmul.f32 0.0051020407, %v4240_v12  ;;  %v4232_v7 = vpop.xlane.xlu0 %4231 }
 0x558   : > { %v4357_v44 = vmul.f32 0.0051020407, %v4232_v7 }
 0x559   : > { %v9338_v58 = vsub.f32 %v8882_v55, %v4359_v26  ;;  %v9341_v10 = vsub.f32 %v8887_v3, %v4359_v26 }
 0x55a   : > { %v9344_v48 = vsub.f32 %v8892_v39, %v4357_v44  ;;  %v9347_v30 = vsub.f32 %v8899_v60, %v4357_v44  ;;  %v4244_v57 = vpop.xlane.xlu1 %4243 }
 0x55b   : > { %10847 = vst [vmem:[#allocation141_spill] sm:$0xff] %v9338_v58  ;;  %10848 = vst [vmem:[#allocation142_spill] sm:$0xff] %v9341_v10  ;;  %v4360_v36 = vmul.f32 0.0051020407, %v4244_v57  ;;  %v4236_v16 = vpop.xlane.xlu0 %4235  ;;  %v4458_v46 = vmul.f32 %v9341_v10, %v9341_v10  ;;  %v4457_v60 = vmul.f32 %v9338_v58, %v9338_v58 }
 0x55c   : > { %10849 = vst [vmem:[#allocation143_spill] sm:$0xff] %v9344_v48  ;;  %10850 = vst [vmem:[#allocation144_spill] sm:$0xff] %v9347_v30  ;;  %v4358_v12 = vmul.f32 0.0051020407, %v4236_v16  ;;  %v4453_v55 = vmul.f32 %v9344_v48, %v9344_v48  ;;  %v4454_v3 = vmul.f32 %v9347_v30, %v9347_v30 }
 0x55d   : > { %v9356_v26 = vsub.f32 %v8904_v22, %v4360_v36  ;;  %v9359_v39 = vsub.f32 %v8909_v52, %v4360_v36  ;;  %v4525_v10 = vsel %vm830_vm1, %v4458_v46, 0.0 }
 0x55e   : > { %v9364_v7 = vsub.f32 %v8919_v59, %v4358_v12  ;;  %v9367_v16 = vsub.f32 %v8924_v53, %v4358_v12  ;;  %v4252_v44 = vpop.xlane.xlu1 %4251  ;;  %v4517_v57 = vsel %vm830_vm1, %v4454_v3, 0.0 }
 0x55f   : > { %10851 = vst [vmem:[#allocation145_spill] sm:$0xff] %v9356_v26  ;;  %10852 = vst [vmem:[#allocation146_spill] sm:$0xff] %v9359_v39  ;;  %v4362_v30 = vmul.f32 0.0051020407, %v4252_v44  ;;  %v4248_v22 = vpop.xlane.xlu0 %4247  ;;  %v4518_v48 = vadd.f32 %v4517_v57, %v4453_v55  ;;  %v4460_v52 = vmul.f32 %v9359_v39, %v9359_v39  ;;  %v4459_v53 = vmul.f32 %v9356_v26, %v9356_v26 }
 0x560   : > { %10853 = vst [vmem:[#allocation147_spill] sm:$0xff] %v9367_v16  ;;  %v4361_v36 = vmul.f32 0.0051020407, %v4248_v22  ;;  %v4455_v58 = vmul.f32 %v9364_v7, %v9364_v7  ;;  %v4456_v59 = vmul.f32 %v9367_v16, %v9367_v16  ;;  %v4526_v55 = vadd.f32 %v4525_v10, %v4457_v60 }
 0x561   : > { %v9380_v12 = vsub.f32 %v8944_v25, %v4362_v30  ;;  %v9383_v46 = vsub.f32 %v8932_v6, %v4362_v30  ;;  %4519 = vadd.xlane.f32.xlu0 %v4518_v48  ;;  %v4529_v3 = vsel %vm830_vm1, %v4460_v52, 0.0 }
 0x562   : > { %v9387_v44 = vsub.f32 %v8951_v19, %v4361_v36  ;;  %v9390_v57 = vsub.f32 %v8937_v29, %v4361_v36  ;;  %v4260_v22 = vpop.xlane.xlu1 %4259  ;;  %v4521_v39 = vsel %vm830_vm1, %v4456_v59, 0.0  ;;  %v4530_v48 = vadd.f32 %v4529_v3, %v4459_v53 }
 0x563   : > { %v4364_v26 = vmul.f32 0.0051020407, %v4260_v22  ;;  %v4256_v16 = vpop.xlane.xlu0 %4255  ;;  %v4522_v25 = vadd.f32 %v4521_v39, %v4455_v58  ;;  %v4464_v6 = vmul.f32 %v9383_v46, %v9383_v46  ;;  %v4463_v58 = vmul.f32 %v9380_v12, %v9380_v12 }
 0x564   : > { %v4363_v30 = vmul.f32 0.0051020407, %v4256_v16  ;;  %v4461_v10 = vmul.f32 %v9387_v44, %v9387_v44  ;;  %v4462_v19 = vmul.f32 %v9390_v57, %v9390_v57 }
 0x565   : > { %v9400_v29 = vsub.f32 %v8970_v32, %v4364_v26  ;;  %v9403_v60 = vsub.f32 %v8958_v21, %v4364_v26  ;;  %4527 = vadd.xlane.f32.xlu0 %v4526_v55  ;;  %4523 = vadd.xlane.f32.xlu1 %v4522_v25  ;;  %v4537_v32 = vsel %vm830_vm1, %v4464_v6, 0.0 }
 0x566   : > { %v9408_v39 = vsub.f32 %v8977_v14, %v4363_v30  ;;  %v9411_v16 = vsub.f32 %v8963_v18, %v4363_v30  ;;  %v4268_v52 = vpop.xlane.xlu1 %4267  ;;  %v4533_v36 = vsel %vm830_vm1, %v4462_v19, 0.0  ;;  %v4538_v6 = vadd.f32 %v4537_v32, %v4463_v58 }
 0x567   : > { %10854 = vst [vmem:[#allocation148_spill] sm:$0xff] %v9403_v60  ;;  %v4366_v59 = vmul.f32 0.0051020407, %v4268_v52  ;;  %v4264_v53 = vpop.xlane.xlu0 %4263  ;;  %v4534_v21 = vadd.f32 %v4533_v36, %v4461_v10  ;;  %v4468_v26 = vmul.f32 %v9403_v60, %v9403_v60  ;;  %v4467_v18 = vmul.f32 %v9400_v29, %v9400_v29 }
 0x568   : > { %v4365_v55 = vmul.f32 0.0051020407, %v4264_v53  ;;  %v4465_v3 = vmul.f32 %v9408_v39, %v9408_v39  ;;  %v4466_v14 = vmul.f32 %v9411_v16, %v9411_v16 }
 0x569   : > { %v9424_v22 = vsub.f32 %v8996_v27, %v4366_v59  ;;  %v9427_v25 = vsub.f32 %v8984_v31, %v4366_v59  ;;  %4531 = vadd.xlane.f32.xlu1 %v4530_v48  ;;  %4535 = vadd.xlane.f32.xlu0 %v4534_v21  ;;  %v4545_v30 = vsel %vm830_vm1, %v4468_v26, 0.0 }
 0x56a   : > { %v9431_v10 = vsub.f32 %v9003_v47, %v4365_v55  ;;  %v9434_v19 = vsub.f32 %v8989_v23, %v4365_v55  ;;  %v4276_v52 = vpop.xlane.xlu1 %4275  ;;  %v4541_v36 = vsel %vm830_vm1, %v4466_v14, 0.0  ;;  %v4546_v59 = vadd.f32 %v4545_v30, %v4467_v18 }
 0x56b   : > { %v4368_v53 = vmul.f32 0.0051020407, %v4276_v52  ;;  %v4272_v27 = vpop.xlane.xlu0 %4271  ;;  %v4542_v60 = vadd.f32 %v4541_v36, %v4465_v3  ;;  %v4472_v31 = vmul.f32 %v9427_v25, %v9427_v25  ;;  %v4471_v21 = vmul.f32 %v9424_v22, %v9424_v22 }
 0x56c   : > { %v4367_v48 = vmul.f32 0.0051020407, %v4272_v27  ;;  %v4469_v58 = vmul.f32 %v9431_v10, %v9431_v10  ;;  %v4470_v47 = vmul.f32 %v9434_v19, %v9434_v19 }
 0x56d   : > { %v9444_v23 = vsub.f32 %v9022_v61, %v4368_v53  ;;  %v9447_v32 = vsub.f32 %v9010_v42, %v4368_v53  ;;  %4539 = vadd.xlane.f32.xlu1 %v4538_v6  ;;  %4543 = vadd.xlane.f32.xlu0 %v4542_v60  ;;  %v4553_v61 = vsel %vm830_vm1, %v4472_v31, 0.0 }
 0x56e   : > { %v9452_v26 = vsub.f32 %v9029_v40, %v4367_v48  ;;  %v9455_v55 = vsub.f32 %v9015_v5, %v4367_v48  ;;  %v4284_v3 = vpop.xlane.xlu1 %4283  ;;  %v4549_v14 = vsel %vm830_vm1, %v4470_v47, 0.0  ;;  %v4554_v27 = vadd.f32 %v4553_v61, %v4471_v21 }
 0x56f   : > { %v4370_v18 = vmul.f32 0.0051020407, %v4284_v3  ;;  %v4280_v30 = vpop.xlane.xlu0 %4279  ;;  %v4550_v42 = vadd.f32 %v4549_v14, %v4469_v58  ;;  %v4476_v60 = vmul.f32 %v9447_v32, %v9447_v32  ;;  %v4475_v5 = vmul.f32 %v9444_v23, %v9444_v23 }
 0x570   : > { %v4369_v6 = vmul.f32 0.0051020407, %v4280_v30  ;;  %v4473_v52 = vmul.f32 %v9452_v26, %v9452_v26  ;;  %v4474_v40 = vmul.f32 %v9455_v55, %v9455_v55 }
 0x571   : > { %v9468_v36 = vsub.f32 %v9048_v17, %v4370_v18  ;;  %v9471_v53 = vsub.f32 %v9036_v8, %v4370_v18  ;;  %4547 = vadd.xlane.f32.xlu1 %v4546_v59  ;;  %4551 = vadd.xlane.f32.xlu0 %v4550_v42  ;;  %v4561_v31 = vsel %vm830_vm1, %v4476_v60, 0.0 }
 0x572   : > { %v9475_v48 = vsub.f32 %v9055_v28, %v4369_v6  ;;  %v9478_v58 = vsub.f32 %v9041_v9, %v4369_v6  ;;  %v4292_v47 = vpop.xlane.xlu1 %4291  ;;  %v4557_v3 = vsel %vm830_vm1, %v4474_v40, 0.0  ;;  %v4562_v18 = vadd.f32 %v4561_v31, %v4475_v5 }
 0x573   : > { %v4372_v14 = vmul.f32 0.0051020407, %v4292_v47  ;;  %v4288_v17 = vpop.xlane.xlu0 %4287  ;;  %v4558_v30 = vadd.f32 %v4557_v3, %v4473_v52  ;;  %v4480_v8 = vmul.f32 %v9471_v53, %v9471_v53  ;;  %v4479_v42 = vmul.f32 %v9468_v36, %v9468_v36 }
 0x574   : > { %v4371_v59 = vmul.f32 0.0051020407, %v4288_v17  ;;  %v4477_v21 = vmul.f32 %v9475_v48, %v9475_v48  ;;  %v4478_v28 = vmul.f32 %v9478_v58, %v9478_v58 }
 0x575   : > { %v9488_v9 = vsub.f32 %v9074_v54, %v4372_v14  ;;  %v9491_v61 = vsub.f32 %v9062_v62, %v4372_v14  ;;  %4555 = vadd.xlane.f32.xlu1 %v4554_v27  ;;  %4559 = vadd.xlane.f32.xlu0 %v4558_v30  ;;  %v4569_v54 = vsel %vm830_vm1, %v4480_v8, 0.0 }
 0x576   : > { %v9496_v60 = vsub.f32 %v9081_v38, %v4371_v59  ;;  %v9499_v6 = vsub.f32 %v9067_v2, %v4371_v59  ;;  %v4300_v52 = vpop.xlane.xlu1 %4299  ;;  %v4565_v40 = vsel %vm830_vm1, %v4478_v28, 0.0  ;;  %v4570_v30 = vadd.f32 %v4569_v54, %v4479_v42 }
 0x577   : > { %v4374_v5 = vmul.f32 0.0051020407, %v4300_v52  ;;  %v4296_v31 = vpop.xlane.xlu0 %4295  ;;  %v4566_v62 = vadd.f32 %v4565_v40, %v4477_v21  ;;  %v4484_v27 = vmul.f32 %v9491_v61, %v9491_v61  ;;  %v4483_v2 = vmul.f32 %v9488_v9, %v9488_v9 }
 0x578   : > { %v4373_v47 = vmul.f32 0.0051020407, %v4296_v31  ;;  %v4481_v3 = vmul.f32 %v9496_v60, %v9496_v60  ;;  %v4482_v38 = vmul.f32 %v9499_v6, %v9499_v6 }
 0x579   : > { %v9512_v14 = vsub.f32 %v9100_v33, %v4374_v5  ;;  %v9515_v17 = vsub.f32 %v9088_v49, %v4374_v5  ;;  %4563 = vadd.xlane.f32.xlu1 %v4562_v18  ;;  %4567 = vadd.xlane.f32.xlu0 %v4566_v62  ;;  %v4577_v8 = vsel %vm830_vm1, %v4484_v27, 0.0 }
 0x57a   : > { %v9519_v59 = vsub.f32 %v9107_v37, %v4373_v47  ;;  %v9522_v21 = vsub.f32 %v9093_v15, %v4373_v47  ;;  %v4308_v28 = vpop.xlane.xlu1 %4307  ;;  %v4573_v52 = vsel %vm830_vm1, %v4482_v38, 0.0  ;;  %v4578_v5 = vadd.f32 %v4577_v8, %v4483_v2 }
 0x57b   : > { %v4376_v40 = vmul.f32 0.0051020407, %v4308_v28  ;;  %v4304_v33 = vpop.xlane.xlu0 %4303  ;;  %v4574_v31 = vadd.f32 %v4573_v52, %v4481_v3  ;;  %v4488_v49 = vmul.f32 %v9515_v17, %v9515_v17  ;;  %v4487_v62 = vmul.f32 %v9512_v14, %v9512_v14 }
 0x57c   : > { %10855 = vst [vmem:[#allocation149_spill] sm:$0xff] %v9519_v59  ;;  %10856 = vst [vmem:[#allocation150_spill] sm:$0xff] %v9522_v21  ;;  %v4375_v18 = vmul.f32 0.0051020407, %v4304_v33  ;;  %v4485_v42 = vmul.f32 %v9519_v59, %v9519_v59  ;;  %v4486_v37 = vmul.f32 %v9522_v21, %v9522_v21 }
 0x57d   : > { %v9532_v15 = vsub.f32 %v9126_v0, %v4376_v40  ;;  %v9535_v54 = vsub.f32 %v9114_v13, %v4376_v40  ;;  %4571 = vadd.xlane.f32.xlu1 %v4570_v30  ;;  %4575 = vadd.xlane.f32.xlu0 %v4574_v31  ;;  %v4585_v0 = vsel %vm830_vm1, %v4488_v49, 0.0 }
 0x57e   : > { %v9540_v27 = vsub.f32 %v9133_v24, %v4375_v18  ;;  %v9543_v47 = vsub.f32 %v9119_v56, %v4375_v18  ;;  %v4316_v3 = vpop.xlane.xlu1 %4315  ;;  %v4581_v38 = vsel %vm830_vm1, %v4486_v37, 0.0  ;;  %v4586_v31 = vadd.f32 %v4585_v0, %v4487_v62 }
 0x57f   : > { %v4378_v2 = vmul.f32 0.0051020407, %v4316_v3  ;;  %v4312_v8 = vpop.xlane.xlu0 %4311  ;;  %v4582_v13 = vadd.f32 %v4581_v38, %v4485_v42  ;;  %v4492_v30 = vmul.f32 %v9535_v54, %v9535_v54  ;;  %v4491_v56 = vmul.f32 %v9532_v15, %v9532_v15 }
 0x580   : > { %10857 = vst [vmem:[#allocation151_spill] sm:$0xff] %v9540_v27  ;;  %10858 = vst [vmem:[#allocation152_spill] sm:$0xff] %v9543_v47  ;;  %v4377_v28 = vmul.f32 0.0051020407, %v4312_v8  ;;  %v4489_v52 = vmul.f32 %v9540_v27, %v9540_v27  ;;  %v4490_v24 = vmul.f32 %v9543_v47, %v9543_v47 }
 0x581   : > { %v9556_v40 = vsub.f32 %v9152_v50, %v4378_v2  ;;  %v9559_v33 = vsub.f32 %v9140_v43, %v4378_v2  ;;  %4579 = vadd.xlane.f32.xlu1 %v4578_v5  ;;  %4583 = vadd.xlane.f32.xlu0 %v4582_v13  ;;  %v4593_v49 = vsel %vm830_vm1, %v4492_v30, 0.0 }
 0x582   : > { %v9563_v18 = vsub.f32 %v9159_v34, %v4377_v28  ;;  %v9566_v42 = vsub.f32 %v9145_v51, %v4377_v28  ;;  %v4324_v37 = vpop.xlane.xlu1 %4323  ;;  %v4589_v3 = vsel %vm830_vm1, %v4490_v24, 0.0  ;;  %v4594_v2 = vadd.f32 %v4593_v49, %v4491_v56 }
 0x583   : > { %10859 = vst [vmem:[#allocation153_spill] sm:$0xff] %v9556_v40  ;;  %10860 = vst [vmem:[#allocation154_spill] sm:$0xff] %v9559_v33  ;;  %v4380_v38 = vmul.f32 0.0051020407, %v4324_v37  ;;  %v4320_v50 = vpop.xlane.xlu0 %4319  ;;  %v4590_v8 = vadd.f32 %v4589_v3, %v4489_v52  ;;  %v4496_v43 = vmul.f32 %v9559_v33, %v9559_v33  ;;  %v4495_v13 = vmul.f32 %v9556_v40, %v9556_v40 }
 0x584   : > { %10861 = vst [vmem:[#allocation155_spill] sm:$0xff] %v9563_v18  ;;  %10862 = vst [vmem:[#allocation156_spill] sm:$0xff] %v9566_v42  ;;  %v4379_v5 = vmul.f32 0.0051020407, %v4320_v50  ;;  %v4493_v62 = vmul.f32 %v9563_v18, %v9563_v18  ;;  %v4494_v34 = vmul.f32 %v9566_v42, %v9566_v42 }
 0x585   : > { %v9576_v51 = vsub.f32 %v9178_v63, %v4380_v38  ;;  %v9579_v0 = vsub.f32 %v9166_v45, %v4380_v38  ;;  %4587 = vadd.xlane.f32.xlu1 %v4586_v31  ;;  %4591 = vadd.xlane.f32.xlu0 %v4590_v8  ;;  %v4601_v63 = vsel %vm830_vm1, %v4496_v43, 0.0 }
 0x586   : > { %v9584_v30 = vsub.f32 %v9185_v4, %v4379_v5  ;;  %v9587_v28 = vsub.f32 %v9171_v1, %v4379_v5  ;;  %v4332_v52 = vpop.xlane.xlu1 %4331  ;;  %v4597_v24 = vsel %vm830_vm1, %v4494_v34, 0.0  ;;  %v4602_v8 = vadd.f32 %v4601_v63, %v4495_v13  ;;  %v10872_v63 = vld [vmem:[#allocation132_spill] sm:$0xff] }
 0x587   : > { %10863 = vst [vmem:[#allocation157_spill] sm:$0xff] %v9576_v51  ;;  %10864 = vst [vmem:[#allocation158_spill] sm:$0xff] %v9579_v0  ;;  %v4382_v56 = vmul.f32 0.0051020407, %v4332_v52  ;;  %v4328_v49 = vpop.xlane.xlu0 %4327  ;;  %v4598_v45 = vadd.f32 %v4597_v24, %v4493_v62  ;;  %v4500_v31 = vmul.f32 %v9579_v0, %v9579_v0  ;;  %v4499_v1 = vmul.f32 %v9576_v51, %v9576_v51  ;;  %v10870_v62 = vld [vmem:[#allocation129_spill] sm:$0xff] }
 0x588   : > { %10865 = vst [vmem:[#allocation159_spill] sm:$0xff] %v9584_v30  ;;  %10866 = vst [vmem:[#allocation160_spill] sm:$0xff] %v9587_v28  ;;  %v4381_v37 = vmul.f32 0.0051020407, %v4328_v49  ;;  %v4497_v3 = vmul.f32 %v9584_v30, %v9584_v30  ;;  %v4498_v4 = vmul.f32 %v9587_v28, %v9587_v28 }
 0x589   : > { %v9600_v38 = vsub.f32 %v9204_v20, %v4382_v56  ;;  %v9603_v50 = vsub.f32 %v9192_v35, %v4382_v56  ;;  %4595 = vadd.xlane.f32.xlu1 %v4594_v2  ;;  %4599 = vadd.xlane.f32.xlu0 %v4598_v45  ;;  %v4609_v43 = vsel %vm830_vm1, %v4500_v31, 0.0  ;;  %v10874_v31 = vld [vmem:[#allocation130_spill] sm:$0xff] }
 0x58a   : > { %v9607_v5 = vsub.f32 %v9211_v41, %v4381_v37  ;;  %v9610_v34 = vsub.f32 %v10870_v62, %v4381_v37  ;;  %v4340_v52 = vpop.xlane.xlu1 %4339  ;;  %v4605_v24 = vsel %vm830_vm1, %v4498_v4, 0.0  ;;  %v4610_v56 = vadd.f32 %v4609_v43, %v4499_v1  ;;  %v10876_v4 = vld [vmem:[#allocation133_spill] sm:$0xff]  ;;  %v10878_v1 = vld [vmem:[#allocation131_spill] sm:$0xff] }
 0x58b   : > { %10867 = vst [vmem:[#allocation161_spill] sm:$0xff] %v9600_v38  ;;  %10868 = vst [vmem:[#allocation162_spill] sm:$0xff] %v9603_v50  ;;  %v4384_v49 = vmul.f32 0.0051020407, %v4340_v52  ;;  %v4336_v20 = vpop.xlane.xlu0 %4335  ;;  %v4606_v28 = vadd.f32 %v4605_v24, %v4497_v3  ;;  %v4504_v35 = vmul.f32 %v9603_v50, %v9603_v50  ;;  %v4503_v3 = vmul.f32 %v9600_v38, %v9600_v38 }
 0x58c   : > { %10869 = vst [vmem:[#allocation163_spill] sm:$0xff] %v9607_v5  ;;  %10871 = vst [vmem:[#allocation129_spill] sm:$0xff] %v9610_v34  ;;  %v4383_v2 = vmul.f32 0.0051020407, %v4336_v20  ;;  %v4501_v13 = vmul.f32 %v9607_v5, %v9607_v5  ;;  %v4502_v41 = vmul.f32 %v9610_v34, %v9610_v34 }
 0x58d   : > { %v9620_v45 = vsub.f32 %v10872_v63, %v4384_v49  ;;  %v9623_v37 = vsub.f32 %v10874_v31, %v4384_v49  ;;  %4603 = vadd.xlane.f32.xlu1 %v4602_v8  ;;  %4607 = vadd.xlane.f32.xlu0 %v4606_v28  ;;  %v4617_v20 = vsel %vm830_vm1, %v4504_v35, 0.0  ;;  %v10881_v35 = vld [vmem:[#allocation134_spill] sm:$0xff] }
 0x58e   : > { %v9628_v62 = vsub.f32 %v10876_v4, %v4383_v2  ;;  %v9631_v43 = vsub.f32 %v10878_v1, %v4383_v2  ;;  %v4348_v52 = vpop.xlane.xlu1 %4347  ;;  %v4613_v24 = vsel %vm830_vm1, %v4502_v41, 0.0 }
 0x58f   : > { %10873 = vst [vmem:[#allocation132_spill] sm:$0xff] %v9620_v45  ;;  %10875 = vst [vmem:[#allocation130_spill] sm:$0xff] %v9623_v37  ;;  %v4386_v63 = vmul.f32 0.0051020407, %v4348_v52  ;;  %v4344_v34 = vpop.xlane.xlu0 %4343  ;;  %v4614_v49 = vadd.f32 %v4613_v24, %v4501_v13  ;;  %v4508_v28 = vmul.f32 %v9623_v37, %v9623_v37  ;;  %v4507_v2 = vmul.f32 %v9620_v45, %v9620_v45  ;;  %v10883_v52 = vld [vmem:[#allocation136_spill] sm:$0xff] }
 0x590   : > { %10877 = vst [vmem:[#allocation133_spill] sm:$0xff] %v9628_v62  ;;  %10879 = vst [vmem:[#allocation131_spill] sm:$0xff] %v9631_v43  ;;  %v4385_v8 = vmul.f32 0.0051020407, %v4344_v34  ;;  %v4505_v31 = vmul.f32 %v9628_v62, %v9628_v62  ;;  %v4506_v4 = vmul.f32 %v9631_v43, %v9631_v43  ;;  %v4618_v13 = vadd.f32 %v4617_v20, %v4503_v3  ;;  %v10885_v62 = vld [vmem:[#allocation135_spill] sm:$0xff] }
 0x591   : > { %v9644_v41 = vsub.f32 %v9256_v11, %v4386_v63  ;;  %v9647_v1 = vsub.f32 %v10881_v35, %v4386_v63  ;;  %4611 = vadd.xlane.f32.xlu1 %v4610_v56  ;;  %4615 = vadd.xlane.f32.xlu0 %v4614_v49  ;;  %v4625_v34 = vsel %vm830_vm1, %v4508_v28, 0.0  ;;  %v10887_v28 = vld [vmem:[#allocation139_spill] sm:$0xff] }
 0x592   : > { %v9651_v24 = vsub.f32 %v10883_v52, %v4385_v8  ;;  %v9654_v5 = vsub.f32 %v10885_v62, %v4385_v8  ;;  %v4356_v43 = vpop.xlane.xlu1 %4355  ;;  %v4621_v30 = vsel %vm830_vm1, %v4506_v4, 0.0  ;;  %v4626_v49 = vadd.f32 %v4625_v34, %v4507_v2  ;;  %v10889_v8 = vld [vmem:[#allocation137_spill] sm:$0xff]  ;;  %v10893_v4 = vld [vmem:[#allocation138_spill] sm:$0xff] }
 0x593   : > { %10880 = vst [vmem:[#allocation164_spill] sm:$0xff] %v9644_v41  ;;  %10882 = vst [vmem:[#allocation134_spill] sm:$0xff] %v9647_v1  ;;  %v4388_v37 = vmul.f32 0.0051020407, %v4356_v43  ;;  %v4352_v11 = vpop.xlane.xlu0 %4351  ;;  %v4622_v45 = vadd.f32 %v4621_v30, %v4505_v31  ;;  %v4512_v63 = vmul.f32 %v9647_v1, %v9647_v1  ;;  %v4511_v30 = vmul.f32 %v9644_v41, %v9644_v41  ;;  %v10891_v43 = vld [vmem:[#allocation140_spill] sm:$0xff] }
 0x594   : > { %10884 = vst [vmem:[#allocation136_spill] sm:$0xff] %v9651_v24  ;;  %10886 = vst [vmem:[#allocation135_spill] sm:$0xff] %v9654_v5  ;;  %v4387_v56 = vmul.f32 0.0051020407, %v4352_v11  ;;  %v4509_v3 = vmul.f32 %v9651_v24, %v9651_v24  ;;  %v4510_v20 = vmul.f32 %v9654_v5, %v9654_v5 }
 0x595   : > { %v9664_v62 = vsub.f32 %v10887_v28, %v4388_v37  ;;  %v9667_v35 = vsub.f32 %v10889_v8, %v4388_v37  ;;  %4619 = vadd.xlane.f32.xlu1 %v4618_v13  ;;  %4623 = vadd.xlane.f32.xlu0 %v4622_v45  ;;  %v4633_v52 = vsel %vm830_vm1, %v4512_v63, 0.0 }
 0x596   : > { %v9672_v31 = vsub.f32 %v10891_v43, %v4387_v56  ;;  %v9675_v2 = vsub.f32 %v10893_v4, %v4387_v56  ;;  %v4629_v34 = vsel %vm830_vm1, %v4510_v20, 0.0  ;;  %v4634_v28 = vadd.f32 %v4633_v52, %v4511_v30  ;;  %v5043_v43 = vld [vmem:[%s10263_s6 + $0x70] sm:$0xff]  ;;  %v5045_v30 = vld [vmem:[%s10263_s6 + $0x80] sm:$0xff]  ;;  %v5046_v4 = vld [vmem:[%s10263_s6 + $0x88] sm:$0xff] }
 0x597   : > { %10888 = vst [vmem:[#allocation139_spill] sm:$0xff] %v9664_v62  ;;  %10890 = vst [vmem:[#allocation137_spill] sm:$0xff] %v9667_v35  ;;  %v4630_v11 = vadd.f32 %v4629_v34, %v4509_v3  ;;  %v4516_v37 = vmul.f32 %v9667_v35, %v9667_v35  ;;  %v4515_v56 = vmul.f32 %v9664_v62, %v9664_v62  ;;  %v5047_v34 = vld [vmem:[%s10263_s6 + $0x90] sm:$0xff]  ;;  %v5048_v52 = vld [vmem:[%s10263_s6 + $0x98] sm:$0xff] }
 0x598   : > { %10892 = vst [vmem:[#allocation140_spill] sm:$0xff] %v9672_v31  ;;  %10894 = vst [vmem:[#allocation138_spill] sm:$0xff] %v9675_v2  ;;  %v4513_v45 = vmul.f32 %v9672_v31, %v9672_v31  ;;  %v4514_v13 = vmul.f32 %v9675_v2, %v9675_v2 }
 0x599   : > { %4627 = vadd.xlane.f32.xlu1 %v4626_v49  ;;  %4631 = vadd.xlane.f32.xlu0 %v4630_v11  ;;  %v4641_v63 = vsel %vm830_vm1, %v4516_v37, 0.0  ;;  %v5044_v49 = vld [vmem:[%s10263_s6 + $0x78] sm:$0xff]  ;;  %v5049_v11 = vld [vmem:[%s10263_s6 + $0xa0] sm:$0xff]  ;;  %v5050_v37 = vld [vmem:[%s10263_s6 + $0xa8] sm:$0xff] }
 0x59a   : > { %v4637_v20 = vsel %vm830_vm1, %v4514_v13, 0.0  ;;  %v4642_v8 = vadd.f32 %v4641_v63, %v4515_v56  ;;  %v5052_v13 = vld [vmem:[%s10263_s6 + $0xb8] sm:$0xff]  ;;  %v5054_v56 = vld [vmem:[%s10263_s6 + $0xc8] sm:$0xff]  ;;  %v5055_v63 = vld [vmem:[%s10263_s6 + $0xd0] sm:$0xff] }
 0x59b   : > { %v4638_v3 = vadd.f32 %v4637_v20, %v4513_v45  ;;  %v5051_v45 = vld [vmem:[%s10263_s6 + $0xb0] sm:$0xff]  ;;  %v9725_v20 = vpop.permute.xlu0 %5068 }
 0x59d   : > { %4635 = vadd.xlane.f32.xlu1 %v4634_v28  ;;  %4639 = vadd.xlane.f32.xlu0 %v4638_v3  ;;  %v5053_v28 = vld [vmem:[%s10263_s6 + $0xc0] sm:$0xff]  ;;  %v5056_v3 = vld [vmem:[%s10263_s6 + $0xd8] sm:$0xff] }
 0x5a1   : > { %4643 = vadd.xlane.f32.xlu1 %v4642_v8  ;;  %v9733_v8 = vpop.permute.xlu1 %5063 }
 0x5b2   : > { %5133 = vperm.xlu1 %5838, %v5043_v43   ;;  %v5057_v43 = vld [vmem:[%s10263_s6 + $0xe0] sm:$0xff] }
 0x5b3   : > { %5138 = vperm.xlu0 %5839, %v5044_v49   ;;  %v9738_v49 = vpop.permute.xlu0 %5078 }
 0x5b6   : > { %5143 = vperm.xlu1 %5838, %v5045_v30   ;;  %v5058_v30 = vld [vmem:[%s10263_s6 + $0xe8] sm:$0xff] }
 0x5b7   : > { %5148 = vperm.xlu0 %5839, %v5046_v4   ;;  %v9743_v4 = vpop.permute.xlu1 %5073 }
 0x5ba   : > { %5153 = vperm.xlu1 %5838, %v5047_v34   ;;  %v9745_v34 = vpop.permute.xlu0 %5088 }
 0x5bb   : > { %5158 = vperm.xlu0 %5839, %v5048_v52   ;;  %v9747_v52 = vpop.permute.xlu1 %5083 }
 0x5be   : > { %5163 = vperm.xlu1 %5838, %v5049_v11   ;;  %v9749_v11 = vpop.permute.xlu0 %5098 }
 0x5bf   : > { %5168 = vperm.xlu0 %5839, %v5050_v37   ;;  %v9751_v37 = vpop.permute.xlu1 %5093 }
 0x5c2   : > { %5173 = vperm.xlu1 %5838, %v5051_v45   ;;  %v9753_v45 = vpop.permute.xlu0 %5108 }
 0x5c3   : > { %5178 = vperm.xlu0 %5839, %v5052_v13   ;;  %v9755_v13 = vpop.permute.xlu1 %5103 }
 0x5c6   : > { %5183 = vperm.xlu1 %5838, %v5053_v28   ;;  %v9757_v28 = vpop.permute.xlu0 %5118 }
 0x5c7   : > { %5188 = vperm.xlu0 %5839, %v5054_v56   ;;  %v9759_v56 = vpop.permute.xlu1 %5113 }
 0x5ca   : > { %5193 = vperm.xlu1 %5838, %v5055_v63   ;;  %v9761_v63 = vpop.permute.xlu0 %5128 }
 0x5cb   : > { %5198 = vperm.xlu0 %5839, %v5056_v3   ;;  %v9763_v3 = vpop.permute.xlu1 %5123 }
 0x5ce   : > { %5203 = vperm.xlu1 %5838, %v5057_v43  }
 0x5cf   : > { %5208 = vperm.xlu0 %5839, %v5058_v30  }
 0x5ee   : > { %v4520_v43 = vpop.xlane.xlu0 %4519 }
 0x5ef   : > { %v4645_v30 = vmul.f32 0.0051020407, %v4520_v43 }
 0x5f1   : > { %v4677_v2 = vadd.f32 1e-05, %v4645_v30 }
 0x5f2   : > { %v4524_v31 = vpop.xlane.xlu1 %4523  ;;  %v4528_v5 = vpop.xlane.xlu0 %4527 }
 0x5f3   : > { %5840 = vrsqrt.f32 %v4677_v2  ;;  %v4646_v24 = vmul.f32 0.0051020407, %v4524_v31  ;;  %v4647_v35 = vmul.f32 0.0051020407, %v4528_v5  ;;  %v4741_v2 = vld [vmem:[%s10262_s5] sm:$0xff] }
 0x5f5   : > { %v4678_v62 = vadd.f32 1e-05, %v4646_v24  ;;  %v4679_v1 = vadd.f32 1e-05, %v4647_v35 }
 0x5f6   : > { %v4532_v41 = vpop.xlane.xlu1 %4531  ;;  %v4536_v42 = vpop.xlane.xlu0 %4535 }
 0x5f7   : > { %5842 = vrsqrt.f32 %v4678_v62  ;;  %v4648_v18 = vmul.f32 0.0051020407, %v4532_v41  ;;  %v4649_v50 = vmul.f32 0.0051020407, %v4536_v42 }
 0x5f8   : > { %5844 = vrsqrt.f32 %v4679_v1 }
 0x5f9   : > { %v4680_v38 = vadd.f32 1e-05, %v4648_v18  ;;  %v4681_v43 = vadd.f32 1e-05, %v4649_v50  ;;  %v4742_v18 = vld [vmem:[%s10262_s5 + $0x8] sm:$0xff] }
 0x5fa   : > { %v4540_v47 = vpop.xlane.xlu1 %4539  ;;  %v4544_v27 = vpop.xlane.xlu0 %4543 }
 0x5fb   : > { %5846 = vrsqrt.f32 %v4680_v38  ;;  %v4650_v0 = vmul.f32 0.0051020407, %v4540_v47  ;;  %v4651_v24 = vmul.f32 0.0051020407, %v4544_v27  ;;  %v4743_v47 = vld [vmem:[%s10262_s5 + $0x10] sm:$0xff] }
 0x5fc   : > { %5848 = vrsqrt.f32 %v4681_v43 }
 0x5fd   : > { %v5841_v31 = vpop.eup %5840  ;;  %v4682_v51 = vadd.f32 1e-05, %v4650_v0  ;;  %v4683_v41 = vadd.f32 1e-05, %v4651_v24 }
 0x5fe   : > { %v4548_v5 = vpop.xlane.xlu1 %4547  ;;  %v4773_v35 = vmul.f32 %v5841_v31, %v4741_v2  ;;  %v4552_v30 = vpop.xlane.xlu0 %4551 }
 0x5ff   : > { %v4652_v50 = vmul.f32 0.0051020407, %v4548_v5  ;;  %5850 = vrsqrt.f32 %v4682_v51  ;;  %v4653_v59 = vmul.f32 0.0051020407, %v4552_v30 }
 0x600   : > { %4807 = vperm.xlu0 %5839, %v4773_v35   ;;  %v4744_v35 = vld [vmem:[%s10262_s5 + $0x18] sm:$0xff]  ;;  %5852 = vrsqrt.f32 %v4683_v41 }
 0x601   : > { %v5843_v42 = vpop.eup %5842  ;;  %v4684_v21 = vadd.f32 1e-05, %v4652_v50 }
 0x602   : > { %v5845_v38 = vpop.eup %5844  ;;  %v4556_v1 = vpop.xlane.xlu1 %4555  ;;  %v4774_v62 = vmul.f32 %v5843_v42, %v4742_v18  ;;  %v4745_v42 = vld [vmem:[%s10262_s5 + $0x20] sm:$0xff] }
 0x603   : > { %v4560_v27 = vpop.xlane.xlu0 %4559  ;;  %v4654_v2 = vmul.f32 0.0051020407, %v4556_v1  ;;  %v4775_v0 = vmul.f32 %v5845_v38, %v4743_v47  ;;  %v4685_v47 = vadd.f32 1e-05, %v4653_v59 }
 0x604   : > { %4812 = vperm.xlu1 %5838, %v4774_v62   ;;  %v4655_v38 = vmul.f32 0.0051020407, %v4560_v27 }
 0x605   : > { %v5847_v43 = vpop.eup %5846  ;;  %v4686_v31 = vadd.f32 1e-05, %v4654_v2 }
 0x606   : > { %v4564_v33 = vpop.xlane.xlu1 %4563  ;;  %v4776_v24 = vmul.f32 %v5847_v43, %v4744_v35  ;;  %v5849_v18 = vpop.eup %5848 }
 0x607   : > { %v4568_v40 = vpop.xlane.xlu0 %4567  ;;  %5854 = vrsqrt.f32 %v4686_v31  ;;  %v4656_v5 = vmul.f32 0.0051020407, %v4564_v33  ;;  %v4777_v30 = vmul.f32 %v5849_v18, %v4745_v42  ;;  %v4746_v33 = vld [vmem:[%s10262_s5 + $0x28] sm:$0xff] }
 0x608   : > { %4817 = vperm.xlu1 %5838, %v4775_v0   ;;  %5856 = vrsqrt.f32 %v4684_v21  ;;  %v4687_v0 = vadd.f32 1e-05, %v4655_v38  ;;  %v4657_v43 = vmul.f32 0.0051020407, %v4568_v40  ;;  %v4750_v21 = vld [vmem:[%s10262_s5 + $0x48] sm:$0xff] }
 0x609   : > { %v4688_v51 = vadd.f32 1e-05, %v4656_v5  ;;  %v5851_v41 = vpop.eup %5850 }
 0x60a   : > { %v4572_v1 = vpop.xlane.xlu1 %4571  ;;  %v5853_v27 = vpop.eup %5852  ;;  %v4778_v5 = vmul.f32 %v5851_v41, %v4746_v33  ;;  %v4689_v42 = vadd.f32 1e-05, %v4657_v43 }
 0x60b   : > { %v4576_v62 = vpop.xlane.xlu0 %4575  ;;  %5858 = vrsqrt.f32 %v4688_v51  ;;  %v4658_v50 = vmul.f32 0.0051020407, %v4572_v1  ;;  %v4747_v51 = vld [vmem:[%s10262_s5 + $0x30] sm:$0xff] }
 0x60c   : > { %4822 = vperm.xlu1 %5838, %v4776_v24   ;;  %5860 = vrsqrt.f32 %v4685_v47  ;;  %v4659_v40 = vmul.f32 0.0051020407, %v4576_v62  ;;  %v4779_v41 = vmul.f32 %v5853_v27, %v4747_v51 }
 0x60d   : > { %v4690_v2 = vadd.f32 1e-05, %v4658_v50 }
 0x60e   : > { %v4580_v31 = vpop.xlane.xlu1 %4579  ;;  %v4691_v62 = vadd.f32 1e-05, %v4659_v40 }
 0x60f   : > { %v4584_v35 = vpop.xlane.xlu0 %4583  ;;  %5862 = vrsqrt.f32 %v4690_v2  ;;  %v4660_v59 = vmul.f32 0.0051020407, %v4580_v31  ;;  %v4752_v2 = vld [vmem:[%s10262_s5 + $0x58] sm:$0xff] }
 0x610   : > { %4827 = vperm.xlu1 %5838, %v4777_v30   ;;  %5864 = vrsqrt.f32 %v4687_v0  ;;  %v4748_v0 = vld [vmem:[%s10262_s5 + $0x38] sm:$0xff]  ;;  %v4661_v43 = vmul.f32 0.0051020407, %v4584_v35 }
 0x611   : > { %v5855_v24 = vpop.eup %5854  ;;  %v4692_v18 = vadd.f32 1e-05, %v4660_v59 }
 0x612   : > { %v4588_v47 = vpop.xlane.xlu1 %4587  ;;  %v4782_v38 = vmul.f32 %v5855_v24, %v4750_v21  ;;  %v5857_v30 = vpop.eup %5856  ;;  %v4693_v35 = vadd.f32 1e-05, %v4661_v43 }
 0x613   : > { %v4592_v1 = vpop.xlane.xlu0 %4591  ;;  %5866 = vrsqrt.f32 %v4692_v18  ;;  %v4662_v50 = vmul.f32 0.0051020407, %v4588_v47  ;;  %v4754_v47 = vld [vmem:[%s10262_s5 + $0x68] sm:$0xff]  ;;  %v4780_v27 = vmul.f32 %v5857_v30, %v4748_v0 }
 0x614   : > { %4852 = vperm.xlu0 %5839, %v4782_v38   ;;  %4832 = vperm.xlu1 %5838, %v4778_v5   ;;  %5868 = vrsqrt.f32 %v4689_v42  ;;  %v4749_v42 = vld [vmem:[%s10262_s5 + $0x40] sm:$0xff]  ;;  %v4663_v40 = vmul.f32 0.0051020407, %v4592_v1 }
 0x615   : > { %v5859_v33 = vpop.eup %5858  ;;  %v4694_v31 = vadd.f32 1e-05, %v4662_v50 }
 0x616   : > { %v4596_v59 = vpop.xlane.xlu1 %4595  ;;  %v4784_v21 = vmul.f32 %v5859_v33, %v4752_v2  ;;  %v5861_v5 = vpop.eup %5860  ;;  %v4695_v1 = vadd.f32 1e-05, %v4663_v40 }
 0x617   : > { %v4600_v24 = vpop.xlane.xlu0 %4599  ;;  %5870 = vrsqrt.f32 %v4694_v31  ;;  %v4664_v18 = vmul.f32 0.0051020407, %v4596_v59  ;;  %v4756_v59 = vld [vmem:[%s10262_s5 + $0x78] sm:$0xff]  ;;  %v4781_v30 = vmul.f32 %v5861_v5, %v4749_v42 }
 0x618   : > { %4862 = vperm.xlu0 %5839, %v4784_v21   ;;  %4837 = vperm.xlu1 %5838, %v4779_v41   ;;  %5872 = vrsqrt.f32 %v4691_v62  ;;  %v4751_v62 = vld [vmem:[%s10262_s5 + $0x50] sm:$0xff]  ;;  %v4665_v43 = vmul.f32 0.0051020407, %v4600_v24 }
 0x619   : > { %v5863_v51 = vpop.eup %5862  ;;  %v4696_v38 = vadd.f32 1e-05, %v4664_v18 }
 0x61a   : > { %v4604_v50 = vpop.xlane.xlu1 %4603  ;;  %v4786_v2 = vmul.f32 %v5863_v51, %v4754_v47  ;;  %v5865_v41 = vpop.eup %5864  ;;  %v4697_v24 = vadd.f32 1e-05, %v4665_v43 }
 0x61b   : > { %v4608_v33 = vpop.xlane.xlu0 %4607  ;;  %5874 = vrsqrt.f32 %v4696_v38  ;;  %v4666_v31 = vmul.f32 0.0051020407, %v4604_v50  ;;  %v4758_v38 = vld [vmem:[%s10262_s5 + $0x88] sm:$0xff] }
 0x61c   : > { %4872 = vperm.xlu0 %5839, %v4786_v2   ;;  %4842 = vperm.xlu1 %5838, %v4780_v27   ;;  %5876 = vrsqrt.f32 %v4693_v35  ;;  %v4783_v27 = vmul.f32 %v5865_v41, %v4751_v62  ;;  %v4753_v35 = vld [vmem:[%s10262_s5 + $0x60] sm:$0xff]  ;;  %v4667_v40 = vmul.f32 0.0051020407, %v4608_v33 }
 0x61d   : > { %v5867_v0 = vpop.eup %5866  ;;  %v4698_v21 = vadd.f32 1e-05, %v4666_v31 }
 0x61e   : > { %v4612_v18 = vpop.xlane.xlu1 %4611  ;;  %v4788_v47 = vmul.f32 %v5867_v0, %v4756_v59  ;;  %v5869_v50 = vpop.eup %5868  ;;  %v4699_v33 = vadd.f32 1e-05, %v4667_v40 }
 0x61f   : > { %5878 = vrsqrt.f32 %v4698_v21  ;;  %v4668_v51 = vmul.f32 0.0051020407, %v4612_v18  ;;  %v4616_v5 = vpop.xlane.xlu0 %4615  ;;  %v4760_v21 = vld [vmem:[%s10262_s5 + $0x98] sm:$0xff]  ;;  %v4785_v41 = vmul.f32 %v5869_v50, %v4753_v35 }
 0x620   : > { %4882 = vperm.xlu0 %5839, %v4788_v47   ;;  %4847 = vperm.xlu1 %5838, %v4781_v30   ;;  %5880 = vrsqrt.f32 %v4695_v1  ;;  %v4755_v1 = vld [vmem:[%s10262_s5 + $0x70] sm:$0xff]  ;;  %v4669_v43 = vmul.f32 0.0051020407, %v4616_v5 }
 0x621   : > { %v5871_v42 = vpop.eup %5870  ;;  %v4700_v2 = vadd.f32 1e-05, %v4668_v51 }
 0x622   : > { %v4620_v31 = vpop.xlane.xlu1 %4619  ;;  %v4790_v59 = vmul.f32 %v5871_v42, %v4758_v38  ;;  %v5873_v30 = vpop.eup %5872  ;;  %v4701_v5 = vadd.f32 1e-05, %v4669_v43 }
 0x623   : > { %5882 = vrsqrt.f32 %v4700_v2  ;;  %v4670_v0 = vmul.f32 0.0051020407, %v4620_v31  ;;  %v4624_v51 = vpop.xlane.xlu0 %4623  ;;  %v4762_v2 = vld [vmem:[%s10262_s5 + $0xa8] sm:$0xff]  ;;  %v4787_v50 = vmul.f32 %v5873_v30, %v4755_v1 }
 0x624   : > { %4892 = vperm.xlu0 %5839, %v4790_v59   ;;  %4857 = vperm.xlu1 %5838, %v4783_v27   ;;  %5884 = vrsqrt.f32 %v4697_v24  ;;  %v4757_v24 = vld [vmem:[%s10262_s5 + $0x80] sm:$0xff]  ;;  %v4671_v40 = vmul.f32 0.0051020407, %v4624_v51 }
 0x625   : > { %v5875_v62 = vpop.eup %5874  ;;  %v4702_v18 = vadd.f32 1e-05, %v4670_v0 }
 0x626   : > { %v4628_v47 = vpop.xlane.xlu1 %4627  ;;  %v4792_v38 = vmul.f32 %v5875_v62, %v4760_v21  ;;  %v5877_v27 = vpop.eup %5876  ;;  %v4764_v62 = vld [vmem:[%s10262_s5 + $0xb8] sm:$0xff]  ;;  %v4703_v43 = vadd.f32 1e-05, %v4671_v40 }
 0x627   : > { %5886 = vrsqrt.f32 %v4702_v18  ;;  %v4672_v42 = vmul.f32 0.0051020407, %v4628_v47  ;;  %v4789_v30 = vmul.f32 %v5877_v27, %v4757_v24 }
 0x628   : > { %4902 = vperm.xlu0 %5839, %v4792_v38   ;;  %4867 = vperm.xlu1 %5838, %v4785_v41   ;;  %5888 = vrsqrt.f32 %v4699_v33  ;;  %v4632_v41 = vpop.xlane.xlu0 %4631  ;;  %v4759_v33 = vld [vmem:[%s10262_s5 + $0x90] sm:$0xff] }
 0x629   : > { %v5879_v35 = vpop.eup %5878  ;;  %v4704_v31 = vadd.f32 1e-05, %v4672_v42  ;;  %v4673_v42 = vmul.f32 0.0051020407, %v4632_v41 }
 0x62a   : > { %v4636_v59 = vpop.xlane.xlu1 %4635  ;;  %v4794_v0 = vmul.f32 %v5879_v35, %v4762_v2  ;;  %v5881_v18 = vpop.eup %5880  ;;  %v4766_v35 = vld [vmem:[%s10262_s5 + $0xc8] sm:$0xff] }
 0x62b   : > { %5890 = vrsqrt.f32 %v4704_v31  ;;  %v4674_v21 = vmul.f32 0.0051020407, %v4636_v59  ;;  %v4791_v27 = vmul.f32 %v5881_v18, %v4759_v33 }
 0x62c   : > { %4912 = vperm.xlu0 %5839, %v4794_v0   ;;  %4877 = vperm.xlu1 %5838, %v4787_v50   ;;  %5892 = vrsqrt.f32 %v4701_v5  ;;  %v4761_v5 = vld [vmem:[%s10262_s5 + $0xa0] sm:$0xff]  ;;  %v4640_v40 = vpop.xlane.xlu0 %4639  ;;  %v4705_v0 = vadd.f32 1e-05, %v4673_v42 }
 0x62d   : > { %v5883_v1 = vpop.eup %5882  ;;  %v4706_v47 = vadd.f32 1e-05, %v4674_v21  ;;  %v4675_v21 = vmul.f32 0.0051020407, %v4640_v40 }
 0x62e   : > { %v4644_v51 = vpop.xlane.xlu1 %4643  ;;  %v4796_v38 = vmul.f32 %v5883_v1, %v4764_v62  ;;  %v5885_v31 = vpop.eup %5884  ;;  %v4768_v62 = vld [vmem:[%s10262_s5 + $0xd8] sm:$0xff]  ;;  %v4763_v1 = vld [vmem:[%s10262_s5 + $0xb0] sm:$0xff] }
 0x62f   : > { %5894 = vrsqrt.f32 %v4706_v47  ;;  %v4676_v2 = vmul.f32 0.0051020407, %v4644_v51  ;;  %v4793_v18 = vmul.f32 %v5885_v31, %v4761_v5  ;;  %v4707_v33 = vadd.f32 1e-05, %v4675_v21  ;;  %v4772_v31 = vld [vmem:[%s10262_s5 + $0xf8] sm:$0xff]  ;;  %v4767_v5 = vld [vmem:[%s10262_s5 + $0xd0] sm:$0xff] }
 0x630   : > { %4922 = vperm.xlu0 %5839, %v4796_v38   ;;  %4887 = vperm.xlu1 %5838, %v4789_v30   ;;  %5896 = vrsqrt.f32 %v4703_v43  ;;  %v4770_v43 = vld [vmem:[%s10262_s5 + $0xe8] sm:$0xff]  ;;  %v5060_v21 = vld [vmem:[%s10263_s6 + $0xf8] sm:$0xff] }
 0x631   : > { %v5887_v50 = vpop.eup %5886  ;;  %v4708_v24 = vadd.f32 1e-05, %v4676_v2  ;;  %v4765_v2 = vld [vmem:[%s10262_s5 + $0xc0] sm:$0xff] }
 0x632   : > { %v4798_v59 = vmul.f32 %v5887_v50, %v4766_v35  ;;  %v5889_v41 = vpop.eup %5888 }
 0x633   : > { %5898 = vrsqrt.f32 %v4708_v24  ;;  %v4795_v38 = vmul.f32 %v5889_v41, %v4763_v1 }
 0x634   : > { %4932 = vperm.xlu0 %5839, %v4798_v59   ;;  %4897 = vperm.xlu1 %5838, %v4791_v27   ;;  %5900 = vrsqrt.f32 %v4705_v0 }
 0x635   : > { %v5891_v30 = vpop.eup %5890  ;;  %5902 = vrsqrt.f32 %v4707_v33  ;;  %v9867_v33 = vpop.permute.xlu0 %5138 }
 0x636   : > { %v4800_v47 = vmul.f32 %v5891_v30, %v4768_v62  ;;  %v5893_v51 = vpop.eup %5892  ;;  %v4769_v62 = vld [vmem:[%s10262_s5 + $0xe0] sm:$0xff]  ;;  %v4771_v30 = vld [vmem:[%s10262_s5 + $0xf0] sm:$0xff] }
 0x637   : > { %v4797_v50 = vmul.f32 %v5893_v51, %v4765_v2 }
 0x638   : > { %4942 = vperm.xlu0 %5839, %v4800_v47   ;;  %4907 = vperm.xlu1 %5838, %v4793_v18   ;;  %v5059_v47 = vld [vmem:[%s10263_s6 + $0xf0] sm:$0xff] }
 0x639   : > { %v5895_v42 = vpop.eup %5894  ;;  %v9871_v51 = vpop.permute.xlu0 %5148 }
 0x63a   : > { %v4802_v35 = vmul.f32 %v5895_v42, %v4770_v43  ;;  %v5897_v27 = vpop.eup %5896  ;;  %v9869_v43 = vpop.permute.xlu1 %5133 }
 0x63b   : > { %v4799_v59 = vmul.f32 %v5897_v27, %v4767_v5 }
 0x63c   : > { %4952 = vperm.xlu0 %5839, %v4802_v35   ;;  %4917 = vperm.xlu1 %5838, %v4795_v38  }
 0x63d   : > { %v5899_v24 = vpop.eup %5898  ;;  %v9875_v42 = vpop.permute.xlu0 %5158 }
 0x63e   : > { %v4804_v40 = vmul.f32 %v5899_v24, %v4772_v31  ;;  %v5901_v0 = vpop.eup %5900  ;;  %v9873_v38 = vpop.permute.xlu1 %5143 }
 0x63f   : > { %v4801_v41 = vmul.f32 %v5901_v0, %v4769_v62  ;;  %v5903_v18 = vpop.eup %5902 }
 0x640   : > { %4962 = vperm.xlu0 %5839, %v4804_v40   ;;  %4927 = vperm.xlu1 %5838, %v4797_v50   ;;  %v4803_v1 = vmul.f32 %v5903_v18, %v4771_v30  ;;  %v10900_v30 = vld [vmem:[#allocation144_spill] sm:$0xff] }
 0x641   : > { %v9879_v35 = vpop.permute.xlu0 %5168 }
 0x642   : > { %v9877_v2 = vpop.permute.xlu1 %5153 }
 0x644   : > { %5218 = vperm.xlu0 %5839, %v5060_v21   ;;  %4937 = vperm.xlu1 %5838, %v4799_v59  }
 0x645   : > { %v9883_v27 = vpop.permute.xlu0 %5178 }
 0x646   : > { %v9881_v31 = vpop.permute.xlu1 %5163 }
 0x647   : > { %10895 = vst [vmem:[#allocation165_spill] sm:$0xff] %v9881_v31 }
 0x648   : > { %4947 = vperm.xlu1 %5838, %v4801_v41   ;;  %v10899_v41 = vld [vmem:[#allocation143_spill] sm:$0xff] }
 0x649   : > { %v9887_v24 = vpop.permute.xlu0 %5188 }
 0x64a   : > { %v9885_v50 = vpop.permute.xlu1 %5173 }
 0x64b   : > { %10896 = vst [vmem:[#allocation166_spill] sm:$0xff] %v9885_v50 }
 0x64c   : > { %4957 = vperm.xlu1 %5838, %v4803_v1  }
 0x64d   : > { %v9891_v40 = vpop.permute.xlu0 %5198 }
 0x64e   : > { %v9889_v5 = vpop.permute.xlu1 %5183 }
 0x650   : > { %5213 = vperm.xlu1 %5838, %v5059_v47  }
 0x651   : > { %v9895_v0 = vpop.permute.xlu0 %5208 }
 0x652   : > { %v9893_v59 = vpop.permute.xlu1 %5193 }
 0x653   : > { %10897 = vst [vmem:[#allocation167_spill] sm:$0xff] %v9893_v59  ;;  %v10901_v59 = vld [vmem:[#allocation147_spill] sm:$0xff] }
 0x656   : > { %v9897_v21 = vpop.permute.xlu1 %5203 }
 0x657   : > { %10898 = vst [vmem:[#allocation168_spill] sm:$0xff] %v9897_v21 }
 0x67f   : > { %v4808_v62 = vpop.permute.xlu0 %4807 }
 0x680   : > { %v4965_v18 = vmul.f32 %v4808_v62, %v10899_v41  ;;  %v4966_v1 = vmul.f32 %v4808_v62, %v10900_v30 }
 0x682   : > { %v5221_v47 = vadd.f32 %v9733_v8, %v4965_v18  ;;  %v5222_v50 = vadd.f32 %v9733_v8, %v4966_v1  ;;  %v10902_v8 = vld [vmem:[#allocation141_spill] sm:$0xff]  ;;  %v10903_v1 = vld [vmem:[#allocation142_spill] sm:$0xff] }
 0x683   : > { %v4813_v31 = vpop.permute.xlu1 %4812 }
 0x684   : > { %5285 = vst [vmem:[%s10264_s7] sm:$0xff] %v5221_v47  ;;  %5286 = vst.msk [vmem:[%s10264_s7 + $0x8] sm:$0xff] %vm830_vm1, %v5222_v50  ;;  %v4967_v21 = vmul.f32 %v4813_v31, %v9364_v7  ;;  %v4968_v41 = vmul.f32 %v4813_v31, %v10901_v59 }
 0x686   : > { %v5223_v62 = vadd.f32 %v9725_v20, %v4967_v21  ;;  %v5224_v18 = vadd.f32 %v9725_v20, %v4968_v41  ;;  %v10904_v20 = vld [vmem:[#allocation145_spill] sm:$0xff]  ;;  %v10905_v41 = vld [vmem:[#allocation146_spill] sm:$0xff] }
 0x687   : > { %v4818_v30 = vpop.permute.xlu1 %4817 }
 0x688   : > { %5287 = vst [vmem:[%s10264_s7 + $0x10] sm:$0xff] %v5223_v62  ;;  %5288 = vst.msk [vmem:[%s10264_s7 + $0x18] sm:$0xff] %vm830_vm1, %v5224_v18  ;;  %v4969_v50 = vmul.f32 %v4818_v30, %v10902_v8  ;;  %v4970_v7 = vmul.f32 %v4818_v30, %v10903_v1 }
 0x68a   : > { %v5225_v31 = vadd.f32 %v9743_v4, %v4969_v50  ;;  %v5226_v59 = vadd.f32 %v9743_v4, %v4970_v7 }
 0x68b   : > { %v4823_v21 = vpop.permute.xlu1 %4822 }
 0x68c   : > { %5289 = vst [vmem:[%s10264_s7 + $0x20] sm:$0xff] %v5225_v31  ;;  %5290 = vst.msk [vmem:[%s10264_s7 + $0x28] sm:$0xff] %vm830_vm1, %v5226_v59  ;;  %v4971_v47 = vmul.f32 %v4823_v21, %v10904_v20  ;;  %v4972_v62 = vmul.f32 %v4823_v21, %v10905_v41 }
 0x68e   : > { %v5227_v18 = vadd.f32 %v9738_v49, %v4971_v47  ;;  %v5228_v30 = vadd.f32 %v9738_v49, %v4972_v62 }
 0x68f   : > { %v4828_v8 = vpop.permute.xlu1 %4827 }
 0x690   : > { %5291 = vst [vmem:[%s10264_s7 + $0x30] sm:$0xff] %v5227_v18  ;;  %5292 = vst.msk [vmem:[%s10264_s7 + $0x38] sm:$0xff] %vm830_vm1, %v5228_v30  ;;  %v4973_v4 = vmul.f32 %v4828_v8, %v9387_v44  ;;  %v4974_v50 = vmul.f32 %v4828_v8, %v9390_v57 }
 0x692   : > { %v5229_v1 = vadd.f32 %v9747_v52, %v4973_v4  ;;  %v5230_v7 = vadd.f32 %v9747_v52, %v4974_v50 }
 0x693   : > { %v4833_v31 = vpop.permute.xlu1 %4832  ;;  %v4853_v49 = vpop.permute.xlu0 %4852 }
 0x694   : > { %5293 = vst [vmem:[%s10264_s7 + $0x40] sm:$0xff] %v5229_v1  ;;  %5294 = vst.msk [vmem:[%s10264_s7 + $0x48] sm:$0xff] %vm830_vm1, %v5230_v7  ;;  %v4975_v59 = vmul.f32 %v4833_v31, %v9380_v12  ;;  %v4976_v44 = vmul.f32 %v4833_v31, %v9383_v46  ;;  %v4983_v57 = vmul.f32 %v4853_v49, %v9424_v22 }
 0x695   : > { %v4984_v21 = vmul.f32 %v4853_v49, %v9427_v25 }
 0x696   : > { %v5231_v52 = vadd.f32 %v9745_v34, %v4975_v59  ;;  %v5232_v20 = vadd.f32 %v9745_v34, %v4976_v44  ;;  %v5239_v47 = vadd.f32 %v9753_v45, %v4983_v57 }
 0x697   : > { %v5240_v41 = vadd.f32 %v9753_v45, %v4984_v21  ;;  %v4838_v62 = vpop.permute.xlu1 %4837  ;;  %v4863_v18 = vpop.permute.xlu0 %4862 }
 0x698   : > { %5295 = vst [vmem:[%s10264_s7 + $0x50] sm:$0xff] %v5231_v52  ;;  %5296 = vst.msk [vmem:[%s10264_s7 + $0x58] sm:$0xff] %vm830_vm1, %v5232_v20  ;;  %v4977_v12 = vmul.f32 %v4838_v62, %v9408_v39  ;;  %v4978_v46 = vmul.f32 %v4838_v62, %v9411_v16  ;;  %v4987_v22 = vmul.f32 %v4863_v18, %v9444_v23  ;;  %v10906_v16 = vld [vmem:[#allocation148_spill] sm:$0xff] }
 0x699   : > { %5303 = vst [vmem:[%s10264_s7 + $0x90] sm:$0xff] %v5239_v47  ;;  %5304 = vst.msk [vmem:[%s10264_s7 + $0x98] sm:$0xff] %vm830_vm1, %v5240_v41  ;;  %v4988_v25 = vmul.f32 %v4863_v18, %v9447_v32 }
 0x69a   : > { %v5233_v34 = vadd.f32 %v9751_v37, %v4977_v12  ;;  %v5234_v45 = vadd.f32 %v9751_v37, %v4978_v46  ;;  %v5243_v30 = vadd.f32 %v9757_v28, %v4987_v22 }
 0x69b   : > { %v5244_v8 = vadd.f32 %v9757_v28, %v4988_v25  ;;  %v4843_v4 = vpop.permute.xlu1 %4842  ;;  %v4873_v50 = vpop.permute.xlu0 %4872 }
 0x69c   : > { %5297 = vst [vmem:[%s10264_s7 + $0x60] sm:$0xff] %v5233_v34  ;;  %5298 = vst.msk [vmem:[%s10264_s7 + $0x68] sm:$0xff] %vm830_vm1, %v5234_v45  ;;  %v4979_v39 = vmul.f32 %v4843_v4, %v9400_v29  ;;  %v4980_v23 = vmul.f32 %v4843_v4, %v10906_v16  ;;  %v4991_v32 = vmul.f32 %v4873_v50, %v9468_v36 }
 0x69d   : > { %5307 = vst [vmem:[%s10264_s7 + $0xb0] sm:$0xff] %v5243_v30  ;;  %5308 = vst.msk [vmem:[%s10264_s7 + $0xb8] sm:$0xff] %vm830_vm1, %v5244_v8  ;;  %v4992_v37 = vmul.f32 %v4873_v50, %v9471_v53 }
 0x69e   : > { %v5235_v28 = vadd.f32 %v9749_v11, %v4979_v39  ;;  %v5236_v1 = vadd.f32 %v9749_v11, %v4980_v23  ;;  %v5247_v7 = vadd.f32 %v9761_v63, %v4991_v32  ;;  %v10911_v39 = vld [vmem:[#allocation157_spill] sm:$0xff]  ;;  %v10912_v23 = vld [vmem:[#allocation158_spill] sm:$0xff] }
 0x69f   : > { %v5248_v31 = vadd.f32 %v9761_v63, %v4992_v37  ;;  %v4848_v49 = vpop.permute.xlu1 %4847  ;;  %v4883_v59 = vpop.permute.xlu0 %4882 }
 0x6a0   : > { %5299 = vst [vmem:[%s10264_s7 + $0x70] sm:$0xff] %v5235_v28  ;;  %5300 = vst.msk [vmem:[%s10264_s7 + $0x78] sm:$0xff] %vm830_vm1, %v5236_v1  ;;  %v4981_v29 = vmul.f32 %v4848_v49, %v9431_v10  ;;  %v4982_v36 = vmul.f32 %v4848_v49, %v9434_v19  ;;  %v4995_v53 = vmul.f32 %v4883_v59, %v9488_v9 }
 0x6a1   : > { %5311 = vst [vmem:[%s10264_s7 + $0xd0] sm:$0xff] %v5247_v7  ;;  %5312 = vst.msk [vmem:[%s10264_s7 + $0xd8] sm:$0xff] %vm830_vm1, %v5248_v31  ;;  %v4996_v11 = vmul.f32 %v4883_v59, %v9491_v61  ;;  %v10914_v59 = vld [vmem:[#allocation152_spill] sm:$0xff] }
 0x6a2   : > { %v5237_v63 = vadd.f32 %v9755_v13, %v4981_v29  ;;  %v5238_v44 = vadd.f32 %v9755_v13, %v4982_v36  ;;  %v5251_v57 = vadd.f32 %v9867_v33, %v4995_v53  ;;  %v10915_v36 = vld [vmem:[#allocation161_spill] sm:$0xff] }
 0x6a3   : > { %v5252_v21 = vadd.f32 %v9867_v33, %v4996_v11  ;;  %v4858_v52 = vpop.permute.xlu1 %4857  ;;  %v4893_v20 = vpop.permute.xlu0 %4892  ;;  %v10916_v11 = vld [vmem:[#allocation162_spill] sm:$0xff] }
 0x6a4   : > { %5301 = vst [vmem:[%s10264_s7 + $0x80] sm:$0xff] %v5237_v63  ;;  %5302 = vst.msk [vmem:[%s10264_s7 + $0x88] sm:$0xff] %vm830_vm1, %v5238_v44  ;;  %v4985_v10 = vmul.f32 %v4858_v52, %v9452_v26  ;;  %v4986_v19 = vmul.f32 %v4858_v52, %v9455_v55  ;;  %v4999_v9 = vmul.f32 %v4893_v20, %v9512_v14 }
 0x6a5   : > { %5315 = vst [vmem:[%s10264_s7 + $0xf0] sm:$0xff] %v5251_v57  ;;  %5316 = vst.msk [vmem:[%s10264_s7 + $0xf8] sm:$0xff] %vm830_vm1, %v5252_v21  ;;  %v5000_v61 = vmul.f32 %v4893_v20, %v9515_v17 }
 0x6a6   : > { %v5241_v13 = vadd.f32 %v9759_v56, %v4985_v10  ;;  %v5242_v33 = vadd.f32 %v9759_v56, %v4986_v19  ;;  %v5255_v47 = vadd.f32 %v9871_v51, %v4999_v9  ;;  %v10918_v19 = vld [vmem:[#allocation156_spill] sm:$0xff] }
 0x6a7   : > { %v5256_v41 = vadd.f32 %v9871_v51, %v5000_v61  ;;  %v4868_v62 = vpop.permute.xlu1 %4867  ;;  %v4903_v18 = vpop.permute.xlu0 %4902  ;;  %v10919_v61 = vld [vmem:[#allocation132_spill] sm:$0xff] }
 0x6a8   : > { %5305 = vst [vmem:[%s10264_s7 + $0xa0] sm:$0xff] %v5241_v13  ;;  %5306 = vst.msk [vmem:[%s10264_s7 + $0xa8] sm:$0xff] %vm830_vm1, %v5242_v33  ;;  %v4989_v26 = vmul.f32 %v4868_v62, %v9475_v48  ;;  %v4990_v55 = vmul.f32 %v4868_v62, %v9478_v58  ;;  %v5003_v14 = vmul.f32 %v4903_v18, %v9532_v15  ;;  %v10907_v15 = vld [vmem:[#allocation153_spill] sm:$0xff]  ;;  %v10920_v33 = vld [vmem:[#allocation130_spill] sm:$0xff] }
 0x6a9   : > { %5319 = vst [vmem:[%s10264_s7 + $0x110] sm:$0xff] %v5255_v47  ;;  %5320 = vst.msk [vmem:[%s10264_s7 + $0x118] sm:$0xff] %vm830_vm1, %v5256_v41  ;;  %v5004_v17 = vmul.f32 %v4903_v18, %v9535_v54  ;;  %v10921_v41 = vld [vmem:[#allocation165_spill] sm:$0xff] }
 0x6aa   : > { %v5245_v56 = vadd.f32 %v9763_v3, %v4989_v26  ;;  %v5246_v51 = vadd.f32 %v9763_v3, %v4990_v55  ;;  %v5259_v12 = vadd.f32 %v9875_v42, %v5003_v14  ;;  %v10908_v3 = vld [vmem:[#allocation154_spill] sm:$0xff] }
 0x6ab   : > { %v5260_v46 = vadd.f32 %v9875_v42, %v5004_v17  ;;  %v4878_v22 = vpop.permute.xlu1 %4877  ;;  %v4913_v25 = vpop.permute.xlu0 %4912 }
 0x6ac   : > { %5309 = vst [vmem:[%s10264_s7 + $0xc0] sm:$0xff] %v5245_v56  ;;  %5310 = vst.msk [vmem:[%s10264_s7 + $0xc8] sm:$0xff] %vm830_vm1, %v5246_v51  ;;  %v4993_v48 = vmul.f32 %v4878_v22, %v9496_v60  ;;  %v4994_v58 = vmul.f32 %v4878_v22, %v9499_v6  ;;  %v5007_v54 = vmul.f32 %v4913_v25, %v10907_v15  ;;  %v10909_v60 = vld [vmem:[#allocation149_spill] sm:$0xff]  ;;  %v10923_v51 = vld [vmem:[#allocation160_spill] sm:$0xff] }
 0x6ad   : > { %5323 = vst [vmem:[%s10264_s7 + $0x130] sm:$0xff] %v5259_v12  ;;  %5324 = vst.msk [vmem:[%s10264_s7 + $0x138] sm:$0xff] %vm830_vm1, %v5260_v46  ;;  %v5008_v42 = vmul.f32 %v4913_v25, %v10908_v3  ;;  %v10924_v46 = vld [vmem:[#allocation164_spill] sm:$0xff]  ;;  %v10925_v25 = vld [vmem:[#allocation134_spill] sm:$0xff] }
 0x6ae   : > { %v5249_v34 = vadd.f32 %v9869_v43, %v4993_v48  ;;  %v5250_v45 = vadd.f32 %v9869_v43, %v4994_v58  ;;  %v5263_v30 = vadd.f32 %v9879_v35, %v5007_v54  ;;  %v10910_v43 = vld [vmem:[#allocation150_spill] sm:$0xff] }
 0x6af   : > { %v5264_v8 = vadd.f32 %v9879_v35, %v5008_v42  ;;  %v4888_v4 = vpop.permute.xlu1 %4887  ;;  %v4923_v50 = vpop.permute.xlu0 %4922  ;;  %v10926_v58 = vld [vmem:[#allocation166_spill] sm:$0xff] }
 0x6b0   : > { %5313 = vst [vmem:[%s10264_s7 + $0xe0] sm:$0xff] %v5249_v34  ;;  %5314 = vst.msk [vmem:[%s10264_s7 + $0xe8] sm:$0xff] %vm830_vm1, %v5250_v45  ;;  %v4997_v6 = vmul.f32 %v4888_v4, %v10909_v60  ;;  %v4998_v35 = vmul.f32 %v4888_v4, %v10910_v43  ;;  %v5011_v16 = vmul.f32 %v4923_v50, %v10911_v39 }
 0x6b1   : > { %5327 = vst [vmem:[%s10264_s7 + $0x150] sm:$0xff] %v5263_v30  ;;  %5328 = vst.msk [vmem:[%s10264_s7 + $0x158] sm:$0xff] %vm830_vm1, %v5264_v8  ;;  %v5012_v32 = vmul.f32 %v4923_v50, %v10912_v23  ;;  %v10928_v8 = vld [vmem:[#allocation129_spill] sm:$0xff] }
 0x6b2   : > { %v5253_v37 = vadd.f32 %v9873_v38, %v4997_v6  ;;  %v5254_v28 = vadd.f32 %v9873_v38, %v4998_v35  ;;  %v5267_v1 = vadd.f32 %v9883_v27, %v5011_v16  ;;  %v10913_v38 = vld [vmem:[#allocation151_spill] sm:$0xff]  ;;  %v10930_v35 = vld [vmem:[#allocation137_spill] sm:$0xff] }
 0x6b3   : > { %v5268_v7 = vadd.f32 %v9883_v27, %v5012_v32  ;;  %v4898_v31 = vpop.permute.xlu1 %4897  ;;  %v4933_v49 = vpop.permute.xlu0 %4932  ;;  %v10929_v6 = vld [vmem:[#allocation139_spill] sm:$0xff]  ;;  %v10931_v32 = vld [vmem:[#allocation133_spill] sm:$0xff] }
 0x6b4   : > { %5317 = vst [vmem:[%s10264_s7 + $0x100] sm:$0xff] %v5253_v37  ;;  %5318 = vst.msk [vmem:[%s10264_s7 + $0x108] sm:$0xff] %vm830_vm1, %v5254_v28  ;;  %v5001_v27 = vmul.f32 %v4898_v31, %v10913_v38  ;;  %v5002_v29 = vmul.f32 %v4898_v31, %v10914_v59  ;;  %v5015_v53 = vmul.f32 %v4933_v49, %v10915_v36  ;;  %v10932_v28 = vld [vmem:[#allocation131_spill] sm:$0xff]  ;;  %v10934_v59 = vld [vmem:[#allocation136_spill] sm:$0xff] }
 0x6b5   : > { %5331 = vst [vmem:[%s10264_s7 + $0x170] sm:$0xff] %v5267_v1  ;;  %5332 = vst.msk [vmem:[%s10264_s7 + $0x178] sm:$0xff] %vm830_vm1, %v5268_v7  ;;  %v5016_v63 = vmul.f32 %v4933_v49, %v10916_v11  ;;  %v10933_v31 = vld [vmem:[#allocation167_spill] sm:$0xff]  ;;  %v10936_v11 = vld [vmem:[#allocation168_spill] sm:$0xff] }
 0x6b6   : > { %v5257_v44 = vadd.f32 %v9877_v2, %v5001_v27  ;;  %v5258_v57 = vadd.f32 %v9877_v2, %v5002_v29  ;;  %v5271_v21 = vadd.f32 %v9887_v24, %v5015_v53  ;;  %v10917_v2 = vld [vmem:[#allocation155_spill] sm:$0xff] }
 0x6b7   : > { %v5272_v52 = vadd.f32 %v9887_v24, %v5016_v63  ;;  %v4908_v20 = vpop.permute.xlu1 %4907  ;;  %v4943_v10 = vpop.permute.xlu0 %4942  ;;  %v10935_v36 = vld [vmem:[#allocation135_spill] sm:$0xff] }
 0x6b8   : > { %5321 = vst [vmem:[%s10264_s7 + $0x120] sm:$0xff] %v5257_v44  ;;  %5322 = vst.msk [vmem:[%s10264_s7 + $0x128] sm:$0xff] %vm830_vm1, %v5258_v57  ;;  %v5005_v24 = vmul.f32 %v4908_v20, %v10917_v2  ;;  %v5006_v9 = vmul.f32 %v4908_v20, %v10918_v19  ;;  %v5019_v13 = vmul.f32 %v4943_v10, %v10919_v61  ;;  %v10938_v20 = vld [vmem:[#allocation138_spill] sm:$0xff] }
 0x6b9   : > { %5335 = vst [vmem:[%s10264_s7 + $0x190] sm:$0xff] %v5271_v21  ;;  %5336 = vst.msk [vmem:[%s10264_s7 + $0x198] sm:$0xff] %vm830_vm1, %v5272_v52  ;;  %v5020_v47 = vmul.f32 %v4943_v10, %v10920_v33  ;;  %v10937_v21 = vld [vmem:[#allocation140_spill] sm:$0xff] }
 0x6ba   : > { %v5261_v62 = vadd.f32 %v10921_v41, %v5005_v24  ;;  %v5262_v18 = vadd.f32 %v10921_v41, %v5006_v9  ;;  %v5275_v26 = vadd.f32 %v9891_v40, %v5019_v13 }
 0x6bb   : > { %v5276_v55 = vadd.f32 %v9891_v40, %v5020_v47  ;;  %v4918_v14 = vpop.permute.xlu1 %4917  ;;  %v4953_v17 = vpop.permute.xlu0 %4952  ;;  %v10922_v40 = vld [vmem:[#allocation159_spill] sm:$0xff] }
 0x6bc   : > { %5325 = vst [vmem:[%s10264_s7 + $0x140] sm:$0xff] %v5261_v62  ;;  %5326 = vst.msk [vmem:[%s10264_s7 + $0x148] sm:$0xff] %vm830_vm1, %v5262_v18  ;;  %v5009_v56 = vmul.f32 %v4918_v14, %v10922_v40  ;;  %v5010_v12 = vmul.f32 %v4918_v14, %v10923_v51  ;;  %v5023_v22 = vmul.f32 %v4953_v17, %v10924_v46 }
 0x6bd   : > { %5339 = vst [vmem:[%s10264_s7 + $0x1b0] sm:$0xff] %v5275_v26  ;;  %5340 = vst.msk [vmem:[%s10264_s7 + $0x1b8] sm:$0xff] %vm830_vm1, %v5276_v55  ;;  %v5024_v48 = vmul.f32 %v4953_v17, %v10925_v25 }
 0x6be   : > { %v5265_v15 = vadd.f32 %v10926_v58, %v5009_v56  ;;  %v5266_v54 = vadd.f32 %v10926_v58, %v5010_v12  ;;  %v5279_v3 = vadd.f32 %v9895_v0, %v5023_v22 }
 0x6bf   : > { %v5280_v42 = vadd.f32 %v9895_v0, %v5024_v48  ;;  %v4928_v34 = vpop.permute.xlu1 %4927  ;;  %v4963_v45 = vpop.permute.xlu0 %4962  ;;  %v10927_v0 = vld [vmem:[#allocation163_spill] sm:$0xff] }
 0x6c0   : > { %5329 = vst [vmem:[%s10264_s7 + $0x160] sm:$0xff] %v5265_v15  ;;  %5330 = vst.msk [vmem:[%s10264_s7 + $0x168] sm:$0xff] %vm830_vm1, %v5266_v54  ;;  %v5013_v30 = vmul.f32 %v4928_v34, %v10927_v0  ;;  %v5014_v4 = vmul.f32 %v4928_v34, %v10928_v8  ;;  %v5027_v43 = vmul.f32 %v4963_v45, %v10929_v6 }
 0x6c1   : > { %5343 = vst [vmem:[%s10264_s7 + $0x1d0] sm:$0xff] %v5279_v3  ;;  %5344 = vst.msk [vmem:[%s10264_s7 + $0x1d8] sm:$0xff] %vm830_vm1, %v5280_v42  ;;  %v5028_v39 = vmul.f32 %v4963_v45, %v10930_v35 }
 0x6c2   : > { %v5269_v50 = vadd.f32 %v9889_v5, %v5013_v30  ;;  %v5270_v60 = vadd.f32 %v9889_v5, %v5014_v4 }
 0x6c3   : > { %v4938_v16 = vpop.permute.xlu1 %4937  ;;  %v5219_v23 = vpop.permute.xlu0 %5218 }
 0x6c4   : > { %5333 = vst [vmem:[%s10264_s7 + $0x180] sm:$0xff] %v5269_v50  ;;  %5334 = vst.msk [vmem:[%s10264_s7 + $0x188] sm:$0xff] %vm830_vm1, %v5270_v60  ;;  %v5017_v37 = vmul.f32 %v4938_v16, %v10931_v32  ;;  %v5018_v1 = vmul.f32 %v4938_v16, %v10932_v28  ;;  %v5283_v5 = vadd.f32 %v5219_v23, %v5027_v43 }
 0x6c5   : > { %v5284_v7 = vadd.f32 %v5219_v23, %v5028_v39 }
 0x6c6   : > { %v5273_v49 = vadd.f32 %v10933_v31, %v5017_v37  ;;  %v5274_v38 = vadd.f32 %v10933_v31, %v5018_v1  ;;  %5347 = vst [vmem:[%s10264_s7 + $0x1f0] sm:$0xff] %v5283_v5 }
 0x6c7   : > { %5348 = vst.msk [vmem:[%s10264_s7 + $0x1f8] sm:$0xff] %vm830_vm1, %v5284_v7  ;;  %v4948_v27 = vpop.permute.xlu1 %4947 }
 0x6c8   : > { %5337 = vst [vmem:[%s10264_s7 + $0x1a0] sm:$0xff] %v5273_v49  ;;  %5338 = vst.msk [vmem:[%s10264_s7 + $0x1a8] sm:$0xff] %vm830_vm1, %v5274_v38  ;;  %v5021_v29 = vmul.f32 %v4948_v27, %v10934_v59  ;;  %v5022_v53 = vmul.f32 %v4948_v27, %v10935_v36 }
 0x6ca   : > { %v5277_v63 = vadd.f32 %v10936_v11, %v5021_v29  ;;  %v5278_v44 = vadd.f32 %v10936_v11, %v5022_v53 }
 0x6cb   : > { %v4958_v57 = vpop.permute.xlu1 %4957 }
 0x6cc   : > { %5341 = vst [vmem:[%s10264_s7 + $0x1c0] sm:$0xff] %v5277_v63  ;;  %5342 = vst.msk [vmem:[%s10264_s7 + $0x1c8] sm:$0xff] %vm830_vm1, %v5278_v44  ;;  %v5025_v52 = vmul.f32 %v4958_v57, %v10937_v21  ;;  %v5026_v10 = vmul.f32 %v4958_v57, %v10938_v20 }
 0x6cf   : > { %v5214_v2 = vpop.permute.xlu1 %5213 }
 0x6d0   : > { %v5281_v24 = vadd.f32 %v5214_v2, %v5025_v52  ;;  %v5282_v19 = vadd.f32 %v5214_v2, %v5026_v10 }
 0x6d2   : > { %5345 = vst [vmem:[%s10264_s7 + $0x1e0] sm:$0xff] %v5281_v24  ;;  %5346 = vst.msk [vmem:[%s10264_s7 + $0x1e8] sm:$0xff] %vm830_vm1, %v5282_v19 }
 0x6d3 PF: > { %p14_p11 = scmp.ge.s32.totalorder %s5990_s28, 4   ;;  %s10939_s24 = smov %s5922_s25 }
 0x6d4   : > { %s10940_s25 = smov %s5999_s8  ;;  %s10941_s26 = smov %s5990_s28 }
 0x6d5   :  { %16 = sbr.rel (!%p14_p11) target bundleno = 2 (0x2), region = 122 }

</bundles_post_ra>
